<compile_context>
chip_gen: v5e
topology: v5e:2x2
jax: 0.10.0
libtpu: 0.0.40
codegen_flags: <defaults>
</compile_context>

<pallas_src>
import re

import jax
import jax.numpy as jnp
from jax.experimental import pallas as pl
from jax.experimental.pallas import tpu as pltpu


_SMALL_FALLBACK_ELEMS = 256 * 1024   # below this, fused XLA reduce wins
_FOLD = 4                             # accumulator row-fold factor


def _round_up(a, b):
    return ((a + b - 1) // b) * b


def _tpu_generation():
    """Best-effort TPU generation (5, 6, 7, ...). 0 if unknown."""
    try:
        kind = jax.devices()[0].device_kind.lower()
    except Exception:
        return 0
    m = re.search(r"(\d+)", kind)
    return int(m.group(1)) if m else 0


def _make_fused_sqdiff_kernel(*, tile_rows, fold, width, steps, valid_rows, exact):
    """Kernel: per-core partial sum of (x - y)^2 over its row blocks.

    acc_ref: (tile_rows//fold, W) f32 VMEM accumulator, resident across the
    serial axis.  Steady state is pure VPU (cast/sub/mul/add); the single
    cross-lane reduce + SMEM scalar store happens once in the epilogue.
    Blocks that overrun the true row count (ragged tail / duplicated clamped
    blocks) take a masked path gated by pl.when, so the fast path stays clean.
    """
    fold_rows = tile_rows // fold

    def kernel(x_ref, y_ref, out_ref, acc_ref):
        c = pl.program_id(0)
        i = pl.program_id(1)

        @pl.when(i == 0)
        def _init():
            acc_ref[...] = jnp.zeros_like(acc_ref)

        def sq_slab(j):
            lo = j * fold_rows
            # NOTE: on bf16-VPU chips the subtraction could be done in bf16 to
            # save one cast/elem, but HBM stays the limiter; keep f32 numerics.
            xs = x_ref[pl.ds(lo, fold_rows), :].astype(jnp.float32)
            ys = y_ref[pl.ds(lo, fold_rows), :].astype(jnp.float32)
            d = xs - ys
            return d * d, lo

        def accumulate_fast():
            s = None
            for j in range(fold):
                sq, _ = sq_slab(j)
                s = sq if s is None else s + sq
            acc_ref[...] += s

        if exact:
            accumulate_fast()
        else:
            b = c * steps + i                       # un-clamped global block id
            row_start = b * tile_rows
            needs_mask = (row_start + tile_rows) > valid_rows

            @pl.when(jnp.logical_not(needs_mask))
            def _fast():
                accumulate_fast()

            @pl.when(needs_mask)
            def _tail():
                rows = jax.lax.broadcasted_iota(jnp.int32, (fold_rows, width), 0)
                s = None
                for j in range(fold):
                    sq, lo = sq_slab(j)
                    gmask = (rows + (row_start + lo)) < valid_rows
                    sq = jnp.where(gmask, sq, 0.0)   # zero OOB/garbage rows
                    s = sq if s is None else s + sq
                acc_ref[...] += s

        @pl.when(i == pl.num_programs(1) - 1)
        def _finalize():
            out_ref[0, 0] = jnp.sum(acc_ref[...])

    return kernel


def fused_mse_pallas(x, y):
    """MSE (reduction='mean') between x and y, streaming each input from HBM once."""
    assert x.shape == y.shape, "latents must have identical shapes"
    n_elems = x.size
    if n_elems == 0:
        return jnp.float32(0.0)

    # Lane width: largest multiple of 128 dividing n_elems -> reshape is a
    # free bitcast (no jnp.pad / no HBM copy before the kernel).
    width = 0
    for cand in (512, 256, 128):
        if n_elems % cand == 0:
            width = cand
            break

    # Tiny, non-128-divisible, or mixed-dtype inputs: fused XLA reduction is
    # faster than a pallas_call + layout plumbing and avoids any padding copy.
    if n_elems < _SMALL_FALLBACK_ELEMS or width == 0 or x.dtype != y.dtype:
        d = x.astype(jnp.float32) - y.astype(jnp.float32)
        return jnp.mean(d * d)

    itemsize = jnp.dtype(x.dtype).itemsize
    gen = _tpu_generation()

    # Generation-aware tiling / parallelism.
    if gen >= 7:                      # v7x: 2 TCs, 64 MiB VMEM, 3.2 TB/s HBM
        n_cores = 2
        block_bytes = 4 * 1024 * 1024
        vmem_limit = 32 * 1024 * 1024
    else:                             # v5e / v6e: 1 TC, 128 MiB VMEM
        n_cores = 1
        block_bytes = 8 * 1024 * 1024
        vmem_limit = 64 * 1024 * 1024

    sublane = {4: 8, 2: 16, 1: 32}.get(itemsize, 8)
    row_mult = _FOLD * sublane        # keep fold slices on native packed tiles

    r0 = n_elems // width             # true (lane-dense) row count
    max_tile_rows = max(row_mult,
                        (block_bytes // (width * itemsize)) // row_mult * row_mult)
    want_rows = _round_up(pl.cdiv(r0, n_cores), row_mult)
    tile_rows = min(max_tile_rows, want_rows)
    tile_rows = max(row_mult, min(tile_rows, (r0 // row_mult) * row_mult))

    total_blocks = pl.cdiv(r0, tile_rows)
    steps = pl.cdiv(total_blocks, n_cores)
    exact = (total_blocks * tile_rows == r0) and (n_cores * steps == total_blocks)

    x2 = x.reshape(r0, width)         # free reshape of contiguous data
    y2 = y.reshape(r0, width)

    if n_cores * steps == total_blocks:
        def in_map(c, i):
            return (c * steps + i, 0)
    else:
        last = total_blocks - 1       # clamp; duplicated blocks are fully masked

        def in_map(c, i):
            return (jnp.minimum(c * steps + i, last), 0)

    kernel = _make_fused_sqdiff_kernel(
        tile_rows=tile_rows, fold=_FOLD, width=width, steps=steps,
        valid_rows=r0, exact=exact)

    if n_cores > 1:
        dims = (pltpu.CORE_PARALLEL, pltpu.ARBITRARY)
    else:
        dims = (pltpu.ARBITRARY, pltpu.ARBITRARY)

    cost = pl.CostEstimate(
        flops=3 * n_elems,
        transcendentals=0,
        bytes_accessed=2 * n_elems * itemsize + 4 * n_cores)

    partials = pl.pallas_call(
        kernel,
        out_shape=jax.ShapeDtypeStruct((n_cores, 1), jnp.float32),
        grid_spec=pltpu.PrefetchScalarGridSpec(
            num_scalar_prefetch=0,
            grid=(n_cores, steps),
            in_specs=[
                pl.BlockSpec((tile_rows, width), in_map),
                pl.BlockSpec((tile_rows, width), in_map),
            ],
            out_specs=pl.BlockSpec((1, 1), lambda c, i: (c, 0),
                                   memory_space=pltpu.SMEM),
            scratch_shapes=[pltpu.VMEM((tile_rows // _FOLD, width), jnp.float32)],
        ),
        compiler_params=pltpu.CompilerParams(
            dimension_semantics=dims,
            vmem_limit_bytes=vmem_limit,
        ),
        cost_estimate=cost,
    )(x2, y2)

    return jnp.sum(partials) / jnp.float32(n_elems)


def selfsupervised_criterion_forward(outputs, iter_switch):
    """JAX/Pallas equivalent of selfsupervised_criterion.forward (forward values).

    iter_switch must be a static Python int (0 or 1), mirroring the PyTorch
    control flow.
    """
    img = outputs["imgfeat_latent"]
    rf = outputs["rf_latent"]

    # loss1 = MSE(img, rf.detach()); loss2 = MSE(rf, img.detach()).
    # Forward values are identical -> compute the reduction once, stream both
    # latents from HBM a single time.
    mse = fused_mse_pallas(img, rf)
    loss1 = mse
    loss2 = mse

    if iter_switch == 0:
        loss_coef = {"img-rf": 1.0, "rf-img": 0.0}
    elif iter_switch == 1:
        loss_coef = {"img-rf": 0.0, "rf-img": 1.0}
    else:
        raise ValueError("iter_switch must be 0 or 1")

    losses = {"img-rf": loss1, "rf-img": loss2}
    sum_loss = None
    for k in losses:
        term = loss_coef[k] * losses[k]
        sum_loss = term if sum_loss is None else sum_loss + term
    return losses, sum_loss


if __name__ == "__main__":
    key = jax.random.PRNGKey(0)
    k1, k2, k3, k4 = jax.random.split(key, 4)

    # data2vec-style latents (batch, seq, hidden) -- large enough to take the
    # Pallas streaming-reduction path.
    B, S, D = 2, 197, 768
    imgfeat_latent = jax.random.normal(k1, (B, S, D), dtype=jnp.float32)
    rf_latent = jax.random.normal(k2, (B, S, D), dtype=jnp.float32)
    outputs = {"imgfeat_latent": imgfeat_latent, "rf_latent": rf_latent}

    losses, sum_loss = selfsupervised_criterion_forward(outputs, iter_switch=0)
    jax.block_until_ready(sum_loss)

    ref = jnp.mean((imgfeat_latent - rf_latent) ** 2)
    assert jnp.allclose(losses["img-rf"], ref, rtol=1e-4, atol=1e-6)
    assert jnp.allclose(losses["rf-img"], ref, rtol=1e-4, atol=1e-6)
    assert jnp.allclose(sum_loss, ref, rtol=1e-4, atol=1e-6)

    _, sum_loss1 = selfsupervised_criterion_forward(outputs, iter_switch=1)
    jax.block_until_ready(sum_loss1)
    assert jnp.allclose(sum_loss1, ref, rtol=1e-4, atol=1e-6)

    # bf16 path through the kernel (exercises sublane=16 tiling + masked tail).
    a = jax.random.normal(k3, (4, 197, 1024), dtype=jnp.bfloat16)
    b = jax.random.normal(k4, (4, 197, 1024), dtype=jnp.bfloat16)
    got = fused_mse_pallas(a, b)
    jax.block_until_ready(got)
    ref_bf16 = jnp.mean((a.astype(jnp.float32) - b.astype(jnp.float32)) ** 2)
    assert jnp.allclose(got, ref_bf16, rtol=1e-3, atol=1e-4)

    # Tiny module-toy shape: takes the fused XLA fallback (no kernel launch).
    k5, k6 = jax.random.split(k4)
    small_a = jax.random.normal(k5, (2, 8, 32), dtype=jnp.float32)
    small_b = jax.random.normal(k6, (2, 8, 32), dtype=jnp.float32)
    got_small = fused_mse_pallas(small_a, small_b)
    jax.block_until_ready(got_small)
    ref_small = jnp.mean((small_a - small_b) ** 2)
    assert jnp.allclose(got_small, ref_small, rtol=1e-5, atol=1e-6)

    print("KERNEL_OK")
</pallas_src>

<mosaic_0001>
module attributes {stable_mosaic.version = 11 : i64} {
  func.func @kernel(%arg0: i32, %arg1: i32, %arg2: memref<576x512xf32, #tpu.memory_space<vmem>>, %arg3: memref<576x512xf32, #tpu.memory_space<vmem>>, %arg4: memref<1x1xf32, #tpu.memory_space<smem>>, %arg5: memref<144x512xf32, #tpu.memory_space<vmem>>) attributes {dimension_semantics = [#tpu.dimension_semantics<arbitrary>, #tpu.dimension_semantics<arbitrary>], iteration_bounds = array<i64: 1, 2>, scalar_prefetch = 0 : i64, scratch_operands = 1 : i64, tpu.core_type = #tpu.core_type<tc>, window_params = [{transform_indices = @transform_0, window_bounds = array<i64: 576, 512>}, {transform_indices = @transform_1, window_bounds = array<i64: 576, 512>}, {transform_indices = @transform_2, window_bounds = array<i64: 1, 1>}]} {
    %c0_i32 = arith.constant 0 : i32
    %0 = arith.cmpi eq, %arg1, %c0_i32 : i32
    %1 = arith.extui %0 : i1 to i32
    %c0_i32_0 = arith.constant 0 : i32
    %2 = arith.cmpi ne, %1, %c0_i32_0 : i32
    scf.if %2 {
      %cst = arith.constant 0.000000e+00 : f32
      %16 = vector.broadcast %cst : f32 to vector<144x512xf32>
      %c0 = arith.constant 0 : index
      %c0_5 = arith.constant 0 : index
      %17 = vector.load %arg5[%c0, %c0_5] : memref<144x512xf32, #tpu.memory_space<vmem>>, vector<144x512xf32>
      tpu.vector_store %arg5[%c0, %c0_5], %16 {strides = array<i32>} : memref<144x512xf32, #tpu.memory_space<vmem>>, vector<144x512xf32>,
    } else {
    }
    %c2_i32 = arith.constant 2 : i32
    %3 = arith.muli %arg0, %c2_i32 : i32
    %4 = arith.addi %3, %arg1 : i32
    %c576_i32 = arith.constant 576 : i32
    %5 = arith.muli %4, %c576_i32 : i32
    %c576_i32_1 = arith.constant 576 : i32
    %6 = arith.addi %5, %c576_i32_1 : i32
    %c591_i32 = arith.constant 591 : i32
    %7 = arith.cmpi sgt, %6, %c591_i32 : i32
    %true = arith.constant true
    %8 = arith.xori %7, %true : i1
    %9 = arith.extui %8 : i1 to i32
    %c0_i32_2 = arith.constant 0 : i32
    %10 = arith.cmpi ne, %9, %c0_i32_2 : i32
    scf.if %10 {
      %c0 = arith.constant 0 : index
      %c0_5 = arith.constant 0 : index
      %16 = vector.load %arg2[%c0, %c0_5] : memref<576x512xf32, #tpu.memory_space<vmem>>, vector<144x512xf32>
      %c0_6 = arith.constant 0 : index
      %c0_7 = arith.constant 0 : index
      %17 = vector.load %arg3[%c0_6, %c0_7] : memref<576x512xf32, #tpu.memory_space<vmem>>, vector<144x512xf32>
      %18 = arith.subf %16, %17 : vector<144x512xf32>
      %19 = arith.mulf %18, %18 : vector<144x512xf32>
      %c144 = arith.constant 144 : index
      %c0_8 = arith.constant 0 : index
      %20 = vector.load %arg2[%c144, %c0_8] : memref<576x512xf32, #tpu.memory_space<vmem>>, vector<144x512xf32>
      %c144_9 = arith.constant 144 : index
      %c0_10 = arith.constant 0 : index
      %21 = vector.load %arg3[%c144_9, %c0_10] : memref<576x512xf32, #tpu.memory_space<vmem>>, vector<144x512xf32>
      %22 = arith.subf %20, %21 : vector<144x512xf32>
      %23 = arith.mulf %22, %22 : vector<144x512xf32>
      %24 = arith.addf %19, %23 : vector<144x512xf32>
      %c288 = arith.constant 288 : index
      %c0_11 = arith.constant 0 : index
      %25 = vector.load %arg2[%c288, %c0_11] : memref<576x512xf32, #tpu.memory_space<vmem>>, vector<144x512xf32>
      %c288_12 = arith.constant 288 : index
      %c0_13 = arith.constant 0 : index
      %26 = vector.load %arg3[%c288_12, %c0_13] : memref<576x512xf32, #tpu.memory_space<vmem>>, vector<144x512xf32>
      %27 = arith.subf %25, %26 : vector<144x512xf32>
      %28 = arith.mulf %27, %27 : vector<144x512xf32>
      %29 = arith.addf %24, %28 : vector<144x512xf32>
      %c432 = arith.constant 432 : index
      %c0_14 = arith.constant 0 : index
      %30 = vector.load %arg2[%c432, %c0_14] : memref<576x512xf32, #tpu.memory_space<vmem>>, vector<144x512xf32>
      %c432_15 = arith.constant 432 : index
      %c0_16 = arith.constant 0 : index
      %31 = vector.load %arg3[%c432_15, %c0_16] : memref<576x512xf32, #tpu.memory_space<vmem>>, vector<144x512xf32>
      %32 = arith.subf %30, %31 : vector<144x512xf32>
      %33 = arith.mulf %32, %32 : vector<144x512xf32>
      %34 = arith.addf %29, %33 : vector<144x512xf32>
      %c0_17 = arith.constant 0 : index
      %c0_18 = arith.constant 0 : index
      %35 = vector.load %arg5[%c0_17, %c0_18] : memref<144x512xf32, #tpu.memory_space<vmem>>, vector<144x512xf32>
      %36 = arith.addf %35, %34 : vector<144x512xf32>
      %c0_19 = arith.constant 0 : index
      %c0_20 = arith.constant 0 : index
      %37 = vector.load %arg5[%c0_19, %c0_20] : memref<144x512xf32, #tpu.memory_space<vmem>>, vector<144x512xf32>
      tpu.vector_store %arg5[%c0_19, %c0_20], %36 {strides = array<i32>} : memref<144x512xf32, #tpu.memory_space<vmem>>, vector<144x512xf32>,
    } else {
    }
    %11 = arith.extui %7 : i1 to i32
    %c0_i32_3 = arith.constant 0 : i32
    %12 = arith.cmpi ne, %11, %c0_i32_3 : i32
    scf.if %12 {
      %16 = tpu.iota {dimensions = array<i32: 0>} : vector<144x512xi32>
      %c0 = arith.constant 0 : index
      %c0_5 = arith.constant 0 : index
      %17 = vector.load %arg2[%c0, %c0_5] : memref<576x512xf32, #tpu.memory_space<vmem>>, vector<144x512xf32>
      %c0_6 = arith.constant 0 : index
      %c0_7 = arith.constant 0 : index
      %18 = vector.load %arg3[%c0_6, %c0_7] : memref<576x512xf32, #tpu.memory_space<vmem>>, vector<144x512xf32>
      %19 = arith.subf %17, %18 : vector<144x512xf32>
      %20 = arith.mulf %19, %19 : vector<144x512xf32>
      %c0_i32_8 = arith.constant 0 : i32
      %21 = arith.addi %5, %c0_i32_8 : i32
      %22 = vector.broadcast %21 : i32 to vector<144x512xi32>
      %23 = arith.addi %16, %22 : vector<144x512xi32>
      %c591_i32_9 = arith.constant 591 : i32
      %24 = vector.broadcast %c591_i32_9 : i32 to vector<144x512xi32>
      %25 = arith.cmpi slt, %23, %24 : vector<144x512xi32>
      %cst = arith.constant 0.000000e+00 : f32
      %26 = vector.broadcast %cst : f32 to vector<144x512xf32>
      %27 = arith.select %25, %20, %26 : vector<144x512xi1>, vector<144x512xf32>
      %c144 = arith.constant 144 : index
      %c0_10 = arith.constant 0 : index
      %28 = vector.load %arg2[%c144, %c0_10] : memref<576x512xf32, #tpu.memory_space<vmem>>, vector<144x512xf32>
      %c144_11 = arith.constant 144 : index
      %c0_12 = arith.constant 0 : index
      %29 = vector.load %arg3[%c144_11, %c0_12] : memref<576x512xf32, #tpu.memory_space<vmem>>, vector<144x512xf32>
      %30 = arith.subf %28, %29 : vector<144x512xf32>
      %31 = arith.mulf %30, %30 : vector<144x512xf32>
      %c144_i32 = arith.constant 144 : i32
      %32 = arith.addi %5, %c144_i32 : i32
      %33 = vector.broadcast %32 : i32 to vector<144x512xi32>
      %34 = arith.addi %16, %33 : vector<144x512xi32>
      %c591_i32_13 = arith.constant 591 : i32
      %35 = vector.broadcast %c591_i32_13 : i32 to vector<144x512xi32>
      %36 = arith.cmpi slt, %34, %35 : vector<144x512xi32>
      %cst_14 = arith.constant 0.000000e+00 : f32
      %37 = vector.broadcast %cst_14 : f32 to vector<144x512xf32>
      %38 = arith.select %36, %31, %37 : vector<144x512xi1>, vector<144x512xf32>
      %39 = arith.addf %27, %38 : vector<144x512xf32>
      %c288 = arith.constant 288 : index
      %c0_15 = arith.constant 0 : index
      %40 = vector.load %arg2[%c288, %c0_15] : memref<576x512xf32, #tpu.memory_space<vmem>>, vector<144x512xf32>
      %c288_16 = arith.constant 288 : index
      %c0_17 = arith.constant 0 : index
      %41 = vector.load %arg3[%c288_16, %c0_17] : memref<576x512xf32, #tpu.memory_space<vmem>>, vector<144x512xf32>
      %42 = arith.subf %40, %41 : vector<144x512xf32>
      %43 = arith.mulf %42, %42 : vector<144x512xf32>
      %c288_i32 = arith.constant 288 : i32
      %44 = arith.addi %5, %c288_i32 : i32
      %45 = vector.broadcast %44 : i32 to vector<144x512xi32>
      %46 = arith.addi %16, %45 : vector<144x512xi32>
      %c591_i32_18 = arith.constant 591 : i32
      %47 = vector.broadcast %c591_i32_18 : i32 to vector<144x512xi32>
      %48 = arith.cmpi slt, %46, %47 : vector<144x512xi32>
      %cst_19 = arith.constant 0.000000e+00 : f32
      %49 = vector.broadcast %cst_19 : f32 to vector<144x512xf32>
      %50 = arith.select %48, %43, %49 : vector<144x512xi1>, vector<144x512xf32>
      %51 = arith.addf %39, %50 : vector<144x512xf32>
      %c432 = arith.constant 432 : index
      %c0_20 = arith.constant 0 : index
      %52 = vector.load %arg2[%c432, %c0_20] : memref<576x512xf32, #tpu.memory_space<vmem>>, vector<144x512xf32>
      %c432_21 = arith.constant 432 : index
      %c0_22 = arith.constant 0 : index
      %53 = vector.load %arg3[%c432_21, %c0_22] : memref<576x512xf32, #tpu.memory_space<vmem>>, vector<144x512xf32>
      %54 = arith.subf %52, %53 : vector<144x512xf32>
      %55 = arith.mulf %54, %54 : vector<144x512xf32>
      %c432_i32 = arith.constant 432 : i32
      %56 = arith.addi %5, %c432_i32 : i32
      %57 = vector.broadcast %56 : i32 to vector<144x512xi32>
      %58 = arith.addi %16, %57 : vector<144x512xi32>
      %c591_i32_23 = arith.constant 591 : i32
      %59 = vector.broadcast %c591_i32_23 : i32 to vector<144x512xi32>
      %60 = arith.cmpi slt, %58, %59 : vector<144x512xi32>
      %cst_24 = arith.constant 0.000000e+00 : f32
      %61 = vector.broadcast %cst_24 : f32 to vector<144x512xf32>
      %62 = arith.select %60, %55, %61 : vector<144x512xi1>, vector<144x512xf32>
      %63 = arith.addf %51, %62 : vector<144x512xf32>
      %c0_25 = arith.constant 0 : index
      %c0_26 = arith.constant 0 : index
      %64 = vector.load %arg5[%c0_25, %c0_26] : memref<144x512xf32, #tpu.memory_space<vmem>>, vector<144x512xf32>
      %65 = arith.addf %64, %63 : vector<144x512xf32>
      %c0_27 = arith.constant 0 : index
      %c0_28 = arith.constant 0 : index
      %66 = vector.load %arg5[%c0_27, %c0_28] : memref<144x512xf32, #tpu.memory_space<vmem>>, vector<144x512xf32>
      tpu.vector_store %arg5[%c0_27, %c0_28], %65 {strides = array<i32>} : memref<144x512xf32, #tpu.memory_space<vmem>>, vector<144x512xf32>,
    } else {
    }
    %c1_i32 = arith.constant 1 : i32
    %13 = arith.cmpi eq, %arg1, %c1_i32 : i32
    %14 = arith.extui %13 : i1 to i32
    %c0_i32_4 = arith.constant 0 : i32
    %15 = arith.cmpi ne, %14, %c0_i32_4 : i32
    scf.if %15 {
      %c0 = arith.constant 0 : index
      %c0_5 = arith.constant 0 : index
      %16 = vector.load %arg5[%c0, %c0_5] : memref<144x512xf32, #tpu.memory_space<vmem>>, vector<144x512xf32>
      %17 = vector.shape_cast %16 : vector<144x512xf32> to vector<1x144x512xf32>
      %cst = arith.constant dense<0.000000e+00> : vector<1xf32>
      %18 = vector.multi_reduction <add>, %17, %cst [1, 2] : vector<1x144x512xf32> to vector<1xf32>
      %19 = vector.shape_cast %18 : vector<1xf32> to vector<1x1x1xf32>
      %20 = vector.extract %19[0, 0, 0] : f32 from vector<1x1x1xf32>
      %c0_6 = arith.constant 0 : index
      %c0_7 = arith.constant 0 : index
      %21 = memref.load %arg4[%c0_6, %c0_7] : memref<1x1xf32, #tpu.memory_space<smem>>
      memref.store %20, %arg4[%c0_6, %c0_7] : memref<1x1xf32, #tpu.memory_space<smem>>
    } else {
    }
    return
  }
  func.func @transform_0(%arg0: i32, %arg1: i32) -> (i32, i32) {
    %c2_i32 = arith.constant 2 : i32
    %0 = arith.muli %arg0, %c2_i32 : i32
    %1 = arith.addi %0, %arg1 : i32
    %c0_i32 = arith.constant 0 : i32
    %c0_i32_0 = arith.constant 0 : i32
    return %1, %c0_i32 : i32, i32
  }
  func.func @transform_1(%arg0: i32, %arg1: i32) -> (i32, i32) {
    %c2_i32 = arith.constant 2 : i32
    %0 = arith.muli %arg0, %c2_i32 : i32
    %1 = arith.addi %0, %arg1 : i32
    %c0_i32 = arith.constant 0 : i32
    %c0_i32_0 = arith.constant 0 : i32
    return %1, %c0_i32 : i32, i32
  }
  func.func @transform_2(%arg0: i32, %arg1: i32) -> (i32, i32) {
    %c0_i32 = arith.constant 0 : i32
    %c0_i32_0 = arith.constant 0 : i32
    return %arg0, %c0_i32 : i32, i32
  }
}

</mosaic_0001>

<bundles_post_ra>
// kernel: tpu_custom_call.1
= control target key start
LH: loop header
LB: loop body
LE: loop exit
PB: predicated region body
PF: predicated region fallthrough
CT: control target
= control target key end

     0   :  { %7 = vsyncpa [#allocation4], 0  ;;  %s6813_s0 = inlined_call_operand.hbm [shape: f32[591,512], index: 0, kind: input, shape index: {}]   ;;  %s6814_s1 = inlined_call_operand.hbm [shape: f32[591,512], index: 1, kind: input, shape index: {}]   ;;  %s6815_s2 = inlined_call_operand.hbm [shape: f32[1,1], index: 2, kind: output, shape index: {}]  }
   0x1   :  { %9 = vsyncpa [#allocation4 + $0x1], 0 }
   0x2   :  { %10 = vsyncpa [#allocation7], 0 }
   0x3   :  { %12 = vsyncpa [#allocation7 + $0x1], 0 }
   0x4   :  { %13 = vsyncpa [#allocation5], 0  ;;  %s4501_s9 = smov 0   ;;  %s4503_s10 = smov 0  }
   0x5   :  { %s4505_s11 = smov 0   ;;  %s4507_s12 = smov 0  }
   0x6   :  { %s4509_s13 = smov 0   ;;  %s4511_s14 = smov 0  }
   0x7 LB: > { %s4225_s15 = sadd.s32 4294967295, %s4476_s14   ;;  %s28_s16 = sadd.s32 1, %s4472_s13  ;;  %s4476_s14 = sphi %s4511_s14, %s19_s14   ;;  %s4472_s13 = sphi %s4509_s13, %s6824_s13   ;;  %s4468_s12 = sphi %s4507_s12, %s6823_s12   ;;  %s4464_s11 = sphi %s4505_s11, %s6822_s11   ;;  %s4460_s10 = sphi %s4503_s10, %s6821_s10   ;;  %s4456_s9 = sphi %s4501_s9, %s6820_s9  }
   0x8   : > { %p29_p0 = scmp.ge.s32.totalorder %s28_s16, 2  ;;  %s42_s17 = sadd.s32 1, %s4464_s11 }
   0x9   : > { %p49_p1 = scmp.ne.s32.totalorder %s4464_s11, %s4460_s10  ;;  %p50_p2 = scmp.eq.s32.totalorder %s4476_s14, 0 }
   0xa   : > { %s6826_s16 = smov (%p29_p0, %s28_s16), 0  ;;  %p55_p4 = scmp.ne.s32.totalorder %s4460_s10, %s4456_s9 }
   0xb   : > { %p4537_p3 = por %p50_p2, %p49_p1  ;;  %s39_s19 = ssub.s32 %s4472_s13, %s6826_s16 }
   0xc   : > { %p56_p5 = scmp.eq.s32.totalorder %s4225_s15, 0  ;;  %p40_p6 = scmp.eq.s32.totalorder %s39_s19, 0 }
   0xd   : > { %p4227_p8 = scmp.ge.s32.totalorder %s4476_s14, 2 }
   0xe   : > { %p4546_p7 = por %p56_p5, %p55_p4 }
   0xf   : > { %s4551_s21 = scalar_select %p40_p6, %s4464_s11, %s42_s17  }
  0x10   : > { %131 = sbr.rel (%p4227_p8) target bundleno = 97 (0x61), region = 16 }
  0x15   : > { %134 = sbr.rel (!%p4537_p3) target bundleno = 59 (0x3b), region = 20  ;;  %s135_s22 = sand.u32 (%p4537_p3), 1, %s4464_s11  }
  0x16   : > { %s142_s23 = smul.u32 (%p4537_p3), 72, %s4472_s13  ;;  %s4561_s29 = scalar_lea.sflag (%p4537_p3), [#allocation4], %s135_s22 }
  0x17   : > { %s4259_s24 = smul.u32 (%p4537_p3), 2304, %s135_s22 }
  0x18   : > { %s143_s25 = ssub.s32 (%p4537_p3), 74, %s142_s23 }
  0x19   : > { %p144_p9 = scmp.lt.s32.totalorder (%p4537_p3), %s143_s25, 72  ;;  %s139_s30 = scalar_lea.vmem (%p4537_p3), [#allocation3], %s4259_s24 }
  0x1b   : > { %s6828_s25 = smov (!%p144_p9, %s143_s25), 72 }
  0x1c   : > { %s4251_s26 = sshll.u32 %s6828_s25, 5 }
  0x1d   : > { %s148_s27 = ssub.s32 2304, %s4251_s26 }
  0x1e   : > { %s149_s28 = sshll.u32 %s148_s27, 4 }
  0x1f   : > { %150 = vsyncadd %s4561_s29, %s149_s28  ;;  %p4564_p10 = scmp.ne.s32.totalorder %s4251_s26, 0  ;;  %s4257_s4 = smul.u32 2304, %s4472_s13 }
  0x20   : > { %s4569_s5 = sshll.u32 %s139_s30, 4  ;;  %s4234_s6 = sshll.u32 %s6828_s25, 9  ;;  %s159_s5 = int_to_ptr.vmem [resolvable:$true] %s4569_s5 }
  0x21   : > { %s154_s9 = scalar_lea.hbm %s6813_s0, %s4257_s4  ;;  %s4328_s22 = sshrl.u32 %s4234_s6, 4 }
  0x22   : > { %s156_s17 = sshll.u32 %s154_s9, 4  ;;  %s4337_s27 = scalar_lea.hbm %s6813_s0, 2368  ;;  %s4576_s17 = int_to_ptr.hbm [resolvable:$true] %s156_s17 }
  0x23   : > { %s4326_s19 = sshra.s32 %s4576_s17, 4  ;;  %s4327_s19 = int_to_ptr.hbm [resolvable:$true] %s4326_s19 }
  0x24   : > { %s4333_s23 = scalar_lea.hbm %s4327_s19, %s4328_s22 }
  0x25   : > { %p4334_p11 = scmp.ne.s32.totalorder %s4327_s19, %s4333_s23  ;;  %p4339_p0 = scmp.lt.s32.totalorder %s4337_s27, %s4333_s23 }
  0x27   : > { %p4335_p12 = pnand %p4334_p11, %p4564_p10 }
  0x29   : > { %p4336_p13 = pneg %p4335_p12 }
  0x2b   : > { %p4341_p1 = pnand %p4339_p0, %p4336_p13 }
  0x2d   : > { %4344 = shalt.err (!%p4341_p1)
}
  0x2e   : > { %s4345_s28 = sshra.s32 %s159_s5, 4  ;;  %s4478_s4 = smov [#allocation3]   ;;  %s4346_s28 = int_to_ptr.vmem [resolvable:$true] %s4345_s28 }
  0x2f   : > { %s4352_s30 = scalar_lea.vmem %s4346_s28, %s4328_s22  ;;  %s4356_s7 = scalar_lea.vmem %s4478_s4, 4608 }
  0x30   : > { %p4353_p2 = scmp.ne.s32.totalorder %s4346_s28, %s4352_s30  ;;  %p4358_p6 = scmp.lt.s32.totalorder %s4356_s7, %s4352_s30 }
  0x32   : > { %p4354_p4 = pnand %p4353_p2, %p4564_p10 }
  0x34   : > { %p4355_p5 = pneg %p4354_p4 }
  0x36   : > { %p4360_p8 = pnand %p4358_p6, %p4355_p5 }
  0x38   : > { %4363 = shalt.err (!%p4360_p8)
}
  0x39   : > { %s4479_s8 = smov 512   ;;  %s4480_s9 = smov 32  }
  0x3a   : > { %164 = dma.hbm_to_vmem [thread:$0]  (%p4564_p10), %s4576_s17, %s4234_s6, %s159_s5, %s4561_s29, %s4479_s8, %s4479_s8, %s4480_s9  }
  0x3b PF: > { %167 = sbr.rel (!%p4537_p3) target bundleno = 97 (0x61), region = 24  ;;  %s168_s19 = sand.u32 (%p4537_p3), 1, %s4464_s11  }
  0x3c   : > { %s175_s22 = smul.u32 (%p4537_p3), 72, %s4472_s13  ;;  %s4605_s28 = scalar_lea.sflag (%p4537_p3), [#allocation7], %s168_s19 }
  0x3d   : > { %s4260_s23 = smul.u32 (%p4537_p3), 2304, %s168_s19 }
  0x3e   : > { %s176_s24 = ssub.s32 (%p4537_p3), 74, %s175_s22 }
  0x3f   : > { %p177_p9 = scmp.lt.s32.totalorder (%p4537_p3), %s176_s24, 72  ;;  %s172_s25 = scalar_lea.vmem (%p4537_p3), [#allocation6], %s4260_s23 }
  0x41   : > { %s6830_s24 = smov (!%p177_p9, %s176_s24), 72 }
  0x42   : > { %s4254_s26 = sshll.u32 %s6830_s24, 5 }
  0x43   : > { %s181_s27 = ssub.s32 2304, %s4254_s26 }
  0x44   : > { %s182_s3 = sshll.u32 %s181_s27, 4 }
  0x45   : > { %183 = vsyncadd %s4605_s28, %s182_s3  ;;  %p4608_p3 = scmp.ne.s32.totalorder %s4254_s26, 0  ;;  %s4258_s29 = smul.u32 2304, %s4472_s13 }
  0x46   : > { %s4613_s5 = sshll.u32 %s172_s25, 4  ;;  %s4241_s6 = sshll.u32 %s6830_s24, 9  ;;  %s192_s5 = int_to_ptr.vmem [resolvable:$true] %s4613_s5 }
  0x47   : > { %s187_s4 = scalar_lea.hbm %s6814_s1, %s4258_s29  ;;  %s4367_s9 = sshrl.u32 %s4241_s6, 4 }
  0x48   : > { %s189_s7 = sshll.u32 %s187_s4, 4  ;;  %s4376_s26 = scalar_lea.hbm %s6814_s1, 2368  ;;  %s4620_s7 = int_to_ptr.hbm [resolvable:$true] %s189_s7 }
  0x49   : > { %s4365_s8 = sshra.s32 %s4620_s7, 4  ;;  %s4366_s8 = int_to_ptr.hbm [resolvable:$true] %s4365_s8 }
  0x4a   : > { %s4372_s19 = scalar_lea.hbm %s4366_s8, %s4367_s9 }
  0x4b   : > { %p4373_p10 = scmp.ne.s32.totalorder %s4366_s8, %s4372_s19  ;;  %p4378_p13 = scmp.lt.s32.totalorder %s4376_s26, %s4372_s19 }
  0x4d   : > { %p4374_p11 = pnand %p4373_p10, %p4608_p3 }
  0x4f   : > { %p4375_p12 = pneg %p4374_p11 }
  0x51   : > { %p4380_p0 = pnand %p4378_p13, %p4375_p12 }
  0x53   : > { %4383 = shalt.err (!%p4380_p0)
}
  0x54   : > { %s4384_s27 = sshra.s32 %s192_s5, 4  ;;  %s4481_s25 = smov [#allocation6]   ;;  %s4385_s27 = int_to_ptr.vmem [resolvable:$true] %s4384_s27 }
  0x55   : > { %s4391_s3 = scalar_lea.vmem %s4385_s27, %s4367_s9  ;;  %s4395_s29 = scalar_lea.vmem %s4481_s25, 4608 }
  0x56   : > { %p4392_p1 = scmp.ne.s32.totalorder %s4385_s27, %s4391_s3  ;;  %p4397_p5 = scmp.lt.s32.totalorder %s4395_s29, %s4391_s3 }
  0x58   : > { %p4393_p2 = pnand %p4392_p1, %p4608_p3 }
  0x5a   : > { %p4394_p4 = pneg %p4393_p2 }
  0x5c   : > { %p4399_p6 = pnand %p4397_p5, %p4394_p4 }
  0x5e   : > { %4402 = shalt.err (!%p4399_p6)
}
  0x5f   : > { %s4482_s17 = smov 512   ;;  %s4483_s30 = smov 32  }
  0x60   : > { %197 = dma.hbm_to_vmem [thread:$0]  (%p4608_p3), %s4620_s7, %s4241_s6, %s192_s5, %s4605_s28, %s4482_s17, %s4482_s17, %s4483_s30  }
  0x61 PF: > { %p4242_p8 = scmp.ge.s32.totalorder %s4476_s14, 1  ;;  %p199_p9 = scmp.lt.s32.totalorder %s4476_s14, 3 }
  0x63   : > { %p200_p10 = pnand %p4242_p8, %p199_p9 }
  0x64   : > { %s205_s4 = sand.u32 (!%p200_p10), 1, %s4460_s10  }
  0x65   : > { %203 = sbr.rel (%p200_p10) target bundleno = 1109 (0x455), region = 28  ;;  %s206_s9 = scalar_lea.sflag (!%p200_p10), [#allocation4], %s205_s4 }
  0x66   : > { %s4261_s8 = smul.u32 (!%p200_p10), 2304, %s205_s4 }
  0x68   : > { %s4645_s19 = scalar_lea.vmem (!%p200_p10), [#allocation3], %s4261_s8 }
  0x6a   : > { %4443 = dma.done.wait (%p4546_p7), %s206_s9, 36864  }
  0x6b   : > { %4445 = vsyncadd (%p4546_p7), %s206_s9, 4294930432  ;;  %s216_s24 = scalar_lea.sflag [#allocation7], %s205_s4  ;;  %s4651_s28 = scalar_lea.vmem [#allocation6], %s4261_s8 }
  0x6c   : > { %4447 = dma.done.wait (%p4546_p7), %s216_s24, 36864  }
  0x6d   : > { %4449 = vsyncadd (%p4546_p7), %s216_s24, 4294930432  ;;  %p4243_p3 = scmp.ne.s32.totalorder %s4468_s12, 0 }
  0x6f   : > { %260 = sbr.rel (%p4243_p3) target bundleno = 189 (0xbd), region = 40 }
  0x74   : > { %v4484_v0 = vmov 0.0  }
  0x75   : > { %261 = vst [vmem:[#allocation2 + $0xc8] sm:$0xff] %v4484_v0 }
  0x76   : > { %262 = vst [vmem:[#allocation2 + $0x8] sm:$0xff] %v4484_v0 }
  0x77   : > { %263 = vst [vmem:[#allocation2 + $0x40] sm:$0xff] %v4484_v0 }
  0x78   : > { %264 = vst [vmem:[#allocation2 + $0x28] sm:$0xff] %v4484_v0 }
  0x79   : > { %265 = vst [vmem:[#allocation2 + $0xe8] sm:$0xff] %v4484_v0 }
  0x7a   : > { %266 = vst [vmem:[#allocation2 + $0xf0] sm:$0xff] %v4484_v0 }
  0x7b   : > { %267 = vst [vmem:[#allocation2 + $0x70] sm:$0xff] %v4484_v0 }
  0x7c   : > { %268 = vst [vmem:[#allocation2 + $0x120] sm:$0xff] %v4484_v0 }
  0x7d   : > { %269 = vst [vmem:[#allocation2 + $0xd8] sm:$0xff] %v4484_v0 }
  0x7e   : > { %270 = vst [vmem:[#allocation2 + $0x18] sm:$0xff] %v4484_v0 }
  0x7f   : > { %271 = vst [vmem:[#allocation2 + $0xb0] sm:$0xff] %v4484_v0 }
  0x80   : > { %272 = vst [vmem:[#allocation2 + $0x158] sm:$0xff] %v4484_v0 }
  0x81   : > { %273 = vst [vmem:[#allocation2 + $0x108] sm:$0xff] %v4484_v0 }
  0x82   : > { %274 = vst [vmem:[#allocation2 + $0x110] sm:$0xff] %v4484_v0 }
  0x83   : > { %275 = vst [vmem:[#allocation2 + $0x1f8] sm:$0xff] %v4484_v0 }
  0x84   : > { %276 = vst [vmem:[#allocation2 + $0xb8] sm:$0xff] %v4484_v0 }
  0x85   : > { %277 = vst [vmem:[#allocation2 + $0x180] sm:$0xff] %v4484_v0 }
  0x86   : > { %278 = vst [vmem:[#allocation2 + $0x190] sm:$0xff] %v4484_v0 }
  0x87   : > { %279 = vst [vmem:[#allocation2 + $0x140] sm:$0xff] %v4484_v0 }
  0x88   : > { %280 = vst [vmem:[#allocation2 + $0x1c0] sm:$0xff] %v4484_v0 }
  0x89   : > { %281 = vst [vmem:[#allocation2 + $0xd0] sm:$0xff] %v4484_v0 }
  0x8a   : > { %282 = vst [vmem:[#allocation2 + $0x138] sm:$0xff] %v4484_v0 }
  0x8b   : > { %283 = vst [vmem:[#allocation2 + $0x60] sm:$0xff] %v4484_v0 }
  0x8c   : > { %284 = vst [vmem:[#allocation2 + $0x1b8] sm:$0xff] %v4484_v0 }
  0x8d   : > { %285 = vst [vmem:[#allocation2 + $0x88] sm:$0xff] %v4484_v0 }
  0x8e   : > { %286 = vst [vmem:[#allocation2] sm:$0xff] %v4484_v0 }
  0x8f   : > { %287 = vst [vmem:[#allocation2 + $0x188] sm:$0xff] %v4484_v0 }
  0x90   : > { %288 = vst [vmem:[#allocation2 + $0x38] sm:$0xff] %v4484_v0 }
  0x91   : > { %289 = vst [vmem:[#allocation2 + $0x1a8] sm:$0xff] %v4484_v0 }
  0x92   : > { %290 = vst [vmem:[#allocation2 + $0x220] sm:$0xff] %v4484_v0 }
  0x93   : > { %291 = vst [vmem:[#allocation2 + $0x1e8] sm:$0xff] %v4484_v0 }
  0x94   : > { %292 = vst [vmem:[#allocation2 + $0x1c8] sm:$0xff] %v4484_v0 }
  0x95   : > { %293 = vst [vmem:[#allocation2 + $0x80] sm:$0xff] %v4484_v0 }
  0x96   : > { %294 = vst [vmem:[#allocation2 + $0xf8] sm:$0xff] %v4484_v0 }
  0x97   : > { %295 = vst [vmem:[#allocation2 + $0x78] sm:$0xff] %v4484_v0 }
  0x98   : > { %296 = vst [vmem:[#allocation2 + $0x170] sm:$0xff] %v4484_v0 }
  0x99   : > { %297 = vst [vmem:[#allocation2 + $0x198] sm:$0xff] %v4484_v0 }
  0x9a   : > { %298 = vst [vmem:[#allocation2 + $0xe0] sm:$0xff] %v4484_v0 }
  0x9b   : > { %299 = vst [vmem:[#allocation2 + $0x1e0] sm:$0xff] %v4484_v0 }
  0x9c   : > { %300 = vst [vmem:[#allocation2 + $0x1f0] sm:$0xff] %v4484_v0 }
  0x9d   : > { %301 = vst [vmem:[#allocation2 + $0x48] sm:$0xff] %v4484_v0 }
  0x9e   : > { %302 = vst [vmem:[#allocation2 + $0x98] sm:$0xff] %v4484_v0 }
  0x9f   : > { %303 = vst [vmem:[#allocation2 + $0x238] sm:$0xff] %v4484_v0 }
  0xa0   : > { %304 = vst [vmem:[#allocation2 + $0x160] sm:$0xff] %v4484_v0 }
  0xa1   : > { %305 = vst [vmem:[#allocation2 + $0x50] sm:$0xff] %v4484_v0 }
  0xa2   : > { %306 = vst [vmem:[#allocation2 + $0x100] sm:$0xff] %v4484_v0 }
  0xa3   : > { %307 = vst [vmem:[#allocation2 + $0x30] sm:$0xff] %v4484_v0 }
  0xa4   : > { %308 = vst [vmem:[#allocation2 + $0x1b0] sm:$0xff] %v4484_v0 }
  0xa5   : > { %309 = vst [vmem:[#allocation2 + $0x90] sm:$0xff] %v4484_v0 }
  0xa6   : > { %310 = vst [vmem:[#allocation2 + $0x130] sm:$0xff] %v4484_v0 }
  0xa7   : > { %311 = vst [vmem:[#allocation2 + $0x68] sm:$0xff] %v4484_v0 }
  0xa8   : > { %312 = vst [vmem:[#allocation2 + $0x230] sm:$0xff] %v4484_v0 }
  0xa9   : > { %313 = vst [vmem:[#allocation2 + $0x1d8] sm:$0xff] %v4484_v0 }
  0xaa   : > { %314 = vst [vmem:[#allocation2 + $0x228] sm:$0xff] %v4484_v0 }
  0xab   : > { %315 = vst [vmem:[#allocation2 + $0x218] sm:$0xff] %v4484_v0 }
  0xac   : > { %316 = vst [vmem:[#allocation2 + $0x200] sm:$0xff] %v4484_v0 }
  0xad   : > { %317 = vst [vmem:[#allocation2 + $0x10] sm:$0xff] %v4484_v0 }
  0xae   : > { %318 = vst [vmem:[#allocation2 + $0x128] sm:$0xff] %v4484_v0 }
  0xaf   : > { %319 = vst [vmem:[#allocation2 + $0x178] sm:$0xff] %v4484_v0 }
  0xb0   : > { %320 = vst [vmem:[#allocation2 + $0x208] sm:$0xff] %v4484_v0 }
  0xb1   : > { %321 = vst [vmem:[#allocation2 + $0x210] sm:$0xff] %v4484_v0 }
  0xb2   : > { %322 = vst [vmem:[#allocation2 + $0x1d0] sm:$0xff] %v4484_v0 }
  0xb3   : > { %323 = vst [vmem:[#allocation2 + $0x168] sm:$0xff] %v4484_v0 }
  0xb4   : > { %324 = vst [vmem:[#allocation2 + $0xc0] sm:$0xff] %v4484_v0 }
  0xb5   : > { %325 = vst [vmem:[#allocation2 + $0x1a0] sm:$0xff] %v4484_v0 }
  0xb6   : > { %326 = vst [vmem:[#allocation2 + $0x58] sm:$0xff] %v4484_v0 }
  0xb7   : > { %327 = vst [vmem:[#allocation2 + $0x118] sm:$0xff] %v4484_v0 }
  0xb8   : > { %328 = vst [vmem:[#allocation2 + $0x20] sm:$0xff] %v4484_v0 }
  0xb9   : > { %329 = vst [vmem:[#allocation2 + $0x148] sm:$0xff] %v4484_v0 }
  0xba   : > { %330 = vst [vmem:[#allocation2 + $0xa8] sm:$0xff] %v4484_v0 }
  0xbb   : > { %331 = vst [vmem:[#allocation2 + $0x150] sm:$0xff] %v4484_v0 }
  0xbc   : > { %332 = vst [vmem:[#allocation2 + $0xa0] sm:$0xff] %v4484_v0 }
  0xbd PF: > { %s4731_s20 = smul.u32 576, %s4468_s12 }
  0xbf   : > { %s336_s18 = sadd.s32 576, %s4731_s20 }
  0xc0   : > { %p4244_p7 = scmp.gt.s32.totalorder %s336_s18, 591 }
  0xc2   : > { %341 = sbr.rel (%p4244_p7) target bundleno = 427 (0x1ab), region = 44 }
  0xc7   : > { %v342_v1 = vld [vmem:[%s4645_s19] sm:$0xff]  ;;  %v343_v14 = vld [vmem:[%s4645_s19 + $0x8] sm:$0xff]  ;;  %v344_v31 = vld [vmem:[%s4645_s19 + $0x10] sm:$0xff] }
  0xc8   : > { %v414_v2 = vld [vmem:[%s4651_s28] sm:$0xff]  ;;  %v415_v15 = vld [vmem:[%s4651_s28 + $0x8] sm:$0xff]  ;;  %v416_v32 = vld [vmem:[%s4651_s28 + $0x10] sm:$0xff] }
  0xc9   : > { %v630_v3 = vld [vmem:[%s4645_s19 + $0x240] sm:$0xff]  ;;  %v486_v4 = vsub.f32 %v342_v1, %v414_v2  ;;  %v631_v16 = vld [vmem:[%s4645_s19 + $0x248] sm:$0xff]  ;;  %v487_v19 = vsub.f32 %v343_v14, %v415_v15  ;;  %v632_v33 = vld [vmem:[%s4645_s19 + $0x250] sm:$0xff]  ;;  %v488_v36 = vsub.f32 %v344_v31, %v416_v32 }
  0xca   : > { %v702_v5 = vld [vmem:[%s4651_s28 + $0x240] sm:$0xff]  ;;  %v703_v20 = vld [vmem:[%s4651_s28 + $0x248] sm:$0xff]  ;;  %v704_v37 = vld [vmem:[%s4651_s28 + $0x250] sm:$0xff] }
  0xcb   : > { %v990_v6 = vld [vmem:[%s4645_s19 + $0x480] sm:$0xff]  ;;  %v774_v8 = vsub.f32 %v630_v3, %v702_v5  ;;  %v558_v12 = vmul.f32 %v486_v4, %v486_v4  ;;  %v991_v21 = vld [vmem:[%s4645_s19 + $0x488] sm:$0xff]  ;;  %v775_v23 = vsub.f32 %v631_v16, %v703_v20  ;;  %v559_v29 = vmul.f32 %v487_v19, %v487_v19  ;;  %v992_v38 = vld [vmem:[%s4645_s19 + $0x490] sm:$0xff] }
  0xcc   : > { %v1062_v7 = vld [vmem:[%s4651_s28 + $0x480] sm:$0xff]  ;;  %v1063_v22 = vld [vmem:[%s4651_s28 + $0x488] sm:$0xff]  ;;  %v1064_v39 = vld [vmem:[%s4651_s28 + $0x490] sm:$0xff]  ;;  %v776_v42 = vsub.f32 %v632_v33, %v704_v37  ;;  %v560_v48 = vmul.f32 %v488_v36, %v488_v36 }
  0xcd   : > { %v1134_v9 = vsub.f32 %v990_v6, %v1062_v7  ;;  %v1350_v10 = vld [vmem:[%s4645_s19 + $0x6c0] sm:$0xff]  ;;  %v846_v17 = vmul.f32 %v774_v8, %v774_v8  ;;  %v1135_v24 = vsub.f32 %v991_v21, %v1063_v22  ;;  %v1351_v25 = vld [vmem:[%s4645_s19 + $0x6c8] sm:$0xff]  ;;  %v847_v34 = vmul.f32 %v775_v23, %v775_v23  ;;  %v1352_v44 = vld [vmem:[%s4645_s19 + $0x6d0] sm:$0xff] }
  0xce   : > { %v1422_v11 = vld [vmem:[%s4651_s28 + $0x6c0] sm:$0xff]  ;;  %v1423_v26 = vld [vmem:[%s4651_s28 + $0x6c8] sm:$0xff]  ;;  %v1136_v43 = vsub.f32 %v992_v38, %v1064_v39  ;;  %v1424_v45 = vld [vmem:[%s4651_s28 + $0x6d0] sm:$0xff]  ;;  %v848_v54 = vmul.f32 %v776_v42, %v776_v42 }
  0xcf   : > { %v1494_v13 = vsub.f32 %v1350_v10, %v1422_v11  ;;  %v1206_v18 = vmul.f32 %v1134_v9, %v1134_v9  ;;  %v918_v27 = vadd.f32 %v846_v17, %v558_v12  ;;  %v1495_v30 = vsub.f32 %v1351_v25, %v1423_v26  ;;  %v1710_v41 = vld [vmem:[#allocation2 + $0xc8] sm:$0xff]  ;;  %v345_v50 = vld [vmem:[%s4645_s19 + $0x18] sm:$0xff]  ;;  %v346_v7 = vld [vmem:[%s4645_s19 + $0x20] sm:$0xff] }
  0xd0   : > { %v1207_v35 = vmul.f32 %v1135_v24, %v1135_v24  ;;  %v919_v46 = vadd.f32 %v847_v34, %v559_v29  ;;  %v1496_v49 = vsub.f32 %v1352_v44, %v1424_v45  ;;  %v417_v51 = vld [vmem:[%s4651_s28 + $0x18] sm:$0xff]  ;;  %v1208_v55 = vmul.f32 %v1136_v43, %v1136_v43  ;;  %v1711_v61 = vld [vmem:[#allocation2 + $0x8] sm:$0xff]  ;;  %v418_v8 = vld [vmem:[%s4651_s28 + $0x20] sm:$0xff] }
  0xd1   : > { %v1566_v28 = vmul.f32 %v1494_v13, %v1494_v13  ;;  %v1278_v40 = vadd.f32 %v1206_v18, %v918_v27  ;;  %v1567_v47 = vmul.f32 %v1495_v30, %v1495_v30  ;;  %v633_v52 = vld [vmem:[%s4645_s19 + $0x258] sm:$0xff]  ;;  %v489_v56 = vsub.f32 %v345_v50, %v417_v51  ;;  %v634_v9 = vld [vmem:[%s4645_s19 + $0x260] sm:$0xff]  ;;  %v419_v29 = vld [vmem:[%s4651_s28 + $0x28] sm:$0xff] }
  0xd2   : > { %v705_v57 = vld [vmem:[%s4651_s28 + $0x258] sm:$0xff]  ;;  %v1279_v60 = vadd.f32 %v1207_v35, %v919_v46  ;;  %v1568_v62 = vmul.f32 %v1496_v49, %v1496_v49  ;;  %v920_v4 = vadd.f32 %v848_v54, %v560_v48  ;;  %v490_v13 = vsub.f32 %v346_v7, %v418_v8  ;;  %v706_v14 = vld [vmem:[%s4651_s28 + $0x260] sm:$0xff]  ;;  %v635_v30 = vld [vmem:[%s4645_s19 + $0x268] sm:$0xff] }
  0xd3   : > { %v1638_v53 = vadd.f32 %v1566_v28, %v1278_v40  ;;  %v993_v58 = vld [vmem:[%s4645_s19 + $0x498] sm:$0xff]  ;;  %v777_v63 = vsub.f32 %v633_v52, %v705_v57  ;;  %v561_v5 = vmul.f32 %v489_v56, %v489_v56  ;;  %v994_v15 = vld [vmem:[%s4645_s19 + $0x4a0] sm:$0xff]  ;;  %v778_v20 = vsub.f32 %v634_v9, %v706_v14  ;;  %v347_v28 = vld [vmem:[%s4645_s19 + $0x28] sm:$0xff] }
  0xd4   : > { %v1065_v59 = vld [vmem:[%s4651_s28 + $0x498] sm:$0xff]  ;;  %v1639_v10 = vadd.f32 %v1567_v47, %v1279_v60  ;;  %v1066_v16 = vld [vmem:[%s4651_s28 + $0x4a0] sm:$0xff]  ;;  %v1280_v17 = vadd.f32 %v1208_v55, %v920_v4  ;;  %v562_v26 = vmul.f32 %v490_v13, %v490_v13  ;;  %v491_v34 = vsub.f32 %v347_v28, %v419_v29  ;;  %v707_v35 = vld [vmem:[%s4651_s28 + $0x268] sm:$0xff] }
  0xd5   : > { %v1137_v0 = vsub.f32 %v993_v58, %v1065_v59  ;;  %v1353_v1 = vld [vmem:[%s4645_s19 + $0x6d8] sm:$0xff]  ;;  %v1782_v3 = vadd.f32 %v1710_v41, %v1638_v53  ;;  %v849_v11 = vmul.f32 %v777_v63, %v777_v63  ;;  %v1712_v18 = vld [vmem:[#allocation2 + $0x40] sm:$0xff]  ;;  %v1138_v21 = vsub.f32 %v994_v15, %v1066_v16  ;;  %v995_v36 = vld [vmem:[%s4645_s19 + $0x4a8] sm:$0xff] }
  0xd6   : > { %v1425_v2 = vld [vmem:[%s4651_s28 + $0x6d8] sm:$0xff]  ;;  %v1354_v22 = vld [vmem:[%s4645_s19 + $0x6e0] sm:$0xff]  ;;  %v1783_v24 = vadd.f32 %v1711_v61, %v1639_v10  ;;  %v1640_v31 = vadd.f32 %v1568_v62, %v1280_v17  ;;  %v850_v32 = vmul.f32 %v778_v20, %v778_v20  ;;  %v1067_v37 = vld [vmem:[%s4651_s28 + $0x4a8] sm:$0xff]  ;;  %v779_v41 = vsub.f32 %v635_v30, %v707_v35 }
  0xd7   : > { %v1497_v6 = vsub.f32 %v1353_v1, %v1425_v2  ;;  %v1209_v12 = vmul.f32 %v1137_v0, %v1137_v0  ;;  %1854 = vst [vmem:[#allocation2 + $0xc8] sm:$0xff] %v1782_v3  ;;  %v1426_v23 = vld [vmem:[%s4651_s28 + $0x6e0] sm:$0xff]  ;;  %v921_v25 = vadd.f32 %v849_v11, %v561_v5  ;;  %v1210_v33 = vmul.f32 %v1138_v21, %v1138_v21  ;;  %v1713_v39 = vld [vmem:[#allocation2 + $0x28] sm:$0xff]  ;;  %v348_v49 = vld [vmem:[%s4645_s19 + $0x30] sm:$0xff] }
  0xd8   : > { %v1498_v27 = vsub.f32 %v1354_v22, %v1426_v23  ;;  %1855 = vst [vmem:[#allocation2 + $0x8] sm:$0xff] %v1783_v24  ;;  %v1139_v42 = vsub.f32 %v995_v36, %v1067_v37  ;;  %v1355_v43 = vld [vmem:[%s4645_s19 + $0x6e8] sm:$0xff]  ;;  %v1784_v45 = vadd.f32 %v1712_v18, %v1640_v31  ;;  %v922_v46 = vadd.f32 %v850_v32, %v562_v26  ;;  %v420_v50 = vld [vmem:[%s4651_s28 + $0x30] sm:$0xff]  ;;  %v421_v7 = vld [vmem:[%s4651_s28 + $0x38] sm:$0xff] }
  0xd9   : > { %v1569_v19 = vmul.f32 %v1497_v6, %v1497_v6  ;;  %v1281_v38 = vadd.f32 %v1209_v12, %v921_v25  ;;  %v1427_v44 = vld [vmem:[%s4651_s28 + $0x6e8] sm:$0xff]  ;;  %v563_v47 = vmul.f32 %v491_v34, %v491_v34  ;;  %v636_v51 = vld [vmem:[%s4645_s19 + $0x270] sm:$0xff]  ;;  %v851_v53 = vmul.f32 %v779_v41, %v779_v41  ;;  %v349_v6 = vld [vmem:[%s4645_s19 + $0x38] sm:$0xff] }
  0xda   : > { %v1570_v40 = vmul.f32 %v1498_v27, %v1498_v27  ;;  %v1499_v48 = vsub.f32 %v1355_v43, %v1427_v44  ;;  %v1211_v54 = vmul.f32 %v1139_v42, %v1139_v42  ;;  %v492_v55 = vsub.f32 %v348_v49, %v420_v50  ;;  %v708_v56 = vld [vmem:[%s4651_s28 + $0x270] sm:$0xff]  ;;  %1856 = vst [vmem:[#allocation2 + $0x40] sm:$0xff] %v1784_v45  ;;  %v1714_v60 = vld [vmem:[#allocation2 + $0xe8] sm:$0xff]  ;;  %v637_v8 = vld [vmem:[%s4645_s19 + $0x278] sm:$0xff] }
  0xdb   : > { %v1641_v52 = vadd.f32 %v1569_v19, %v1281_v38  ;;  %v996_v57 = vld [vmem:[%s4645_s19 + $0x4b0] sm:$0xff]  ;;  %v1282_v59 = vadd.f32 %v1210_v33, %v922_v46  ;;  %v780_v62 = vsub.f32 %v636_v51, %v708_v56  ;;  %v923_v3 = vadd.f32 %v851_v53, %v563_v47  ;;  %v709_v13 = vld [vmem:[%s4651_s28 + $0x278] sm:$0xff]  ;;  %v350_v27 = vld [vmem:[%s4645_s19 + $0x40] sm:$0xff] }
  0xdc   : > { %v1068_v58 = vld [vmem:[%s4651_s28 + $0x4b0] sm:$0xff]  ;;  %v1571_v61 = vmul.f32 %v1499_v48, %v1499_v48  ;;  %v564_v4 = vmul.f32 %v492_v55, %v492_v55  ;;  %v493_v12 = vsub.f32 %v349_v6, %v421_v7  ;;  %v997_v14 = vld [vmem:[%s4645_s19 + $0x4b8] sm:$0xff]  ;;  %v781_v19 = vsub.f32 %v637_v8, %v709_v13  ;;  %v422_v28 = vld [vmem:[%s4651_s28 + $0x40] sm:$0xff] }
  0xdd   : > { %v1140_v63 = vsub.f32 %v996_v57, %v1068_v58  ;;  %v1356_v0 = vld [vmem:[%s4645_s19 + $0x6f0] sm:$0xff]  ;;  %v1785_v2 = vadd.f32 %v1713_v39, %v1641_v52  ;;  %v1642_v9 = vadd.f32 %v1570_v40, %v1282_v59  ;;  %v852_v10 = vmul.f32 %v780_v62, %v780_v62  ;;  %v1069_v15 = vld [vmem:[%s4651_s28 + $0x4b8] sm:$0xff]  ;;  %v638_v29 = vld [vmem:[%s4645_s19 + $0x280] sm:$0xff] }
  0xde   : > { %v1428_v1 = vld [vmem:[%s4651_s28 + $0x6f0] sm:$0xff]  ;;  %v1283_v16 = vadd.f32 %v1211_v54, %v923_v3  ;;  %v1141_v20 = vsub.f32 %v997_v14, %v1069_v15  ;;  %v1357_v21 = vld [vmem:[%s4645_s19 + $0x6f8] sm:$0xff]  ;;  %v565_v25 = vmul.f32 %v493_v12, %v493_v12  ;;  %v853_v31 = vmul.f32 %v781_v19, %v781_v19  ;;  %v710_v34 = vld [vmem:[%s4651_s28 + $0x280] sm:$0xff] }
  0xdf   : > { %v1500_v5 = vsub.f32 %v1356_v0, %v1428_v1  ;;  %v1212_v11 = vmul.f32 %v1140_v63, %v1140_v63  ;;  %1857 = vst [vmem:[#allocation2 + $0x28] sm:$0xff] %v1785_v2  ;;  %v1715_v17 = vld [vmem:[#allocation2 + $0xf0] sm:$0xff]  ;;  %v1429_v22 = vld [vmem:[%s4651_s28 + $0x6f8] sm:$0xff]  ;;  %v1786_v23 = vadd.f32 %v1714_v60, %v1642_v9  ;;  %v924_v24 = vadd.f32 %v852_v10, %v564_v4  ;;  %v998_v35 = vld [vmem:[%s4645_s19 + $0x4c0] sm:$0xff] }
  0xe0   : > { %v1501_v26 = vsub.f32 %v1357_v21, %v1429_v22  ;;  %v1643_v30 = vadd.f32 %v1571_v61, %v1283_v16  ;;  %v1213_v32 = vmul.f32 %v1141_v20, %v1141_v20  ;;  %v494_v33 = vsub.f32 %v350_v27, %v422_v28  ;;  %v1070_v36 = vld [vmem:[%s4651_s28 + $0x4c0] sm:$0xff]  ;;  %v1716_v38 = vld [vmem:[#allocation2 + $0x70] sm:$0xff]  ;;  %v351_v48 = vld [vmem:[%s4645_s19 + $0x48] sm:$0xff] }
  0xe1   : > { %v1572_v18 = vmul.f32 %v1500_v5, %v1500_v5  ;;  %1858 = vst [vmem:[#allocation2 + $0xe8] sm:$0xff] %v1786_v23  ;;  %v1284_v37 = vadd.f32 %v1212_v11, %v924_v24  ;;  %v782_v40 = vsub.f32 %v638_v29, %v710_v34  ;;  %v1142_v41 = vsub.f32 %v998_v35, %v1070_v36  ;;  %v1358_v42 = vld [vmem:[%s4645_s19 + $0x700] sm:$0xff]  ;;  %v423_v49 = vld [vmem:[%s4651_s28 + $0x48] sm:$0xff]  ;;  %v352_v5 = vld [vmem:[%s4645_s19 + $0x50] sm:$0xff] }
  0xe2   : > { %v1573_v39 = vmul.f32 %v1501_v26, %v1501_v26  ;;  %v1430_v43 = vld [vmem:[%s4651_s28 + $0x700] sm:$0xff]  ;;  %v1787_v44 = vadd.f32 %v1715_v17, %v1643_v30  ;;  %v925_v45 = vadd.f32 %v853_v31, %v565_v25  ;;  %v566_v46 = vmul.f32 %v494_v33, %v494_v33  ;;  %v639_v50 = vld [vmem:[%s4645_s19 + $0x288] sm:$0xff]  ;;  %v424_v6 = vld [vmem:[%s4651_s28 + $0x50] sm:$0xff] }
  0xe3   : > { %v1502_v47 = vsub.f32 %v1358_v42, %v1430_v43  ;;  %v1644_v51 = vadd.f32 %v1572_v18, %v1284_v37  ;;  %v854_v52 = vmul.f32 %v782_v40, %v782_v40  ;;  %v1214_v53 = vmul.f32 %v1142_v41, %v1142_v41  ;;  %v711_v55 = vld [vmem:[%s4651_s28 + $0x288] sm:$0xff]  ;;  %v1717_v59 = vld [vmem:[#allocation2 + $0x120] sm:$0xff]  ;;  %v640_v7 = vld [vmem:[%s4645_s19 + $0x290] sm:$0xff] }
  0xe4   : > { %v495_v54 = vsub.f32 %v351_v48, %v423_v49  ;;  %v999_v56 = vld [vmem:[%s4645_s19 + $0x4c8] sm:$0xff]  ;;  %1859 = vst [vmem:[#allocation2 + $0xf0] sm:$0xff] %v1787_v44  ;;  %v1285_v58 = vadd.f32 %v1213_v32, %v925_v45  ;;  %v783_v61 = vsub.f32 %v639_v50, %v711_v55  ;;  %v496_v11 = vsub.f32 %v352_v5, %v424_v6  ;;  %v712_v12 = vld [vmem:[%s4651_s28 + $0x290] sm:$0xff]  ;;  %v1718_v16 = vld [vmem:[#allocation2 + $0xd8] sm:$0xff] }
  0xe5   : > { %v1071_v57 = vld [vmem:[%s4651_s28 + $0x4c8] sm:$0xff]  ;;  %v1574_v60 = vmul.f32 %v1502_v47, %v1502_v47  ;;  %v1788_v1 = vadd.f32 %v1716_v38, %v1644_v51  ;;  %v926_v2 = vadd.f32 %v854_v52, %v566_v46  ;;  %v1000_v13 = vld [vmem:[%s4645_s19 + $0x4d0] sm:$0xff]  ;;  %v784_v18 = vsub.f32 %v640_v7, %v712_v12  ;;  %v353_v26 = vld [vmem:[%s4645_s19 + $0x58] sm:$0xff] }
  0xe6   : > { %v1143_v62 = vsub.f32 %v999_v56, %v1071_v57  ;;  %v1359_v63 = vld [vmem:[%s4645_s19 + $0x708] sm:$0xff]  ;;  %v567_v3 = vmul.f32 %v495_v54, %v495_v54  ;;  %v1645_v8 = vadd.f32 %v1573_v39, %v1285_v58  ;;  %v855_v9 = vmul.f32 %v783_v61, %v783_v61  ;;  %v1072_v14 = vld [vmem:[%s4651_s28 + $0x4d0] sm:$0xff]  ;;  %v425_v27 = vld [vmem:[%s4651_s28 + $0x58] sm:$0xff] }
  0xe7   : > { %v1431_v0 = vld [vmem:[%s4651_s28 + $0x708] sm:$0xff]  ;;  %1860 = vst [vmem:[#allocation2 + $0x70] sm:$0xff] %v1788_v1  ;;  %v1286_v15 = vadd.f32 %v1214_v53, %v926_v2  ;;  %v1144_v19 = vsub.f32 %v1000_v13, %v1072_v14  ;;  %v1360_v20 = vld [vmem:[%s4645_s19 + $0x710] sm:$0xff]  ;;  %v568_v24 = vmul.f32 %v496_v11, %v496_v11  ;;  %v641_v28 = vld [vmem:[%s4645_s19 + $0x298] sm:$0xff]  ;;  %v856_v30 = vmul.f32 %v784_v18, %v784_v18 }
  0xe8   : > { %v1503_v4 = vsub.f32 %v1359_v63, %v1431_v0  ;;  %v1215_v10 = vmul.f32 %v1143_v62, %v1143_v62  ;;  %v1432_v21 = vld [vmem:[%s4651_s28 + $0x710] sm:$0xff]  ;;  %v1789_v22 = vadd.f32 %v1717_v59, %v1645_v8  ;;  %v927_v23 = vadd.f32 %v855_v9, %v567_v3  ;;  %v713_v33 = vld [vmem:[%s4651_s28 + $0x298] sm:$0xff]  ;;  %v354_v47 = vld [vmem:[%s4645_s19 + $0x60] sm:$0xff] }
  0xe9   : > { %v1504_v25 = vsub.f32 %v1360_v20, %v1432_v21  ;;  %v1646_v29 = vadd.f32 %v1574_v60, %v1286_v15  ;;  %v1216_v31 = vmul.f32 %v1144_v19, %v1144_v19  ;;  %v497_v32 = vsub.f32 %v353_v26, %v425_v27  ;;  %v1001_v34 = vld [vmem:[%s4645_s19 + $0x4d8] sm:$0xff]  ;;  %v426_v48 = vld [vmem:[%s4651_s28 + $0x60] sm:$0xff]  ;;  %v1720_v58 = vld [vmem:[#allocation2 + $0xb0] sm:$0xff] }
  0xea   : > { %v1575_v17 = vmul.f32 %v1503_v4, %v1503_v4  ;;  %v1073_v35 = vld [vmem:[%s4651_s28 + $0x4d8] sm:$0xff]  ;;  %1861 = vst [vmem:[#allocation2 + $0x120] sm:$0xff] %v1789_v22  ;;  %v1287_v36 = vadd.f32 %v1215_v10, %v927_v23  ;;  %v785_v39 = vsub.f32 %v641_v28, %v713_v33  ;;  %v928_v44 = vadd.f32 %v856_v30, %v568_v24  ;;  %v642_v49 = vld [vmem:[%s4645_s19 + $0x2a0] sm:$0xff]  ;;  %v355_v4 = vld [vmem:[%s4645_s19 + $0x68] sm:$0xff] }
  0xeb   : > { %v1719_v37 = vld [vmem:[#allocation2 + $0x18] sm:$0xff]  ;;  %v1576_v38 = vmul.f32 %v1504_v25, %v1504_v25  ;;  %v1145_v40 = vsub.f32 %v1001_v34, %v1073_v35  ;;  %v1790_v43 = vadd.f32 %v1718_v16, %v1646_v29  ;;  %v569_v45 = vmul.f32 %v497_v32, %v497_v32  ;;  %v714_v54 = vld [vmem:[%s4651_s28 + $0x2a0] sm:$0xff]  ;;  %v427_v5 = vld [vmem:[%s4651_s28 + $0x68] sm:$0xff] }
  0xec   : > { %v1361_v41 = vld [vmem:[%s4645_s19 + $0x718] sm:$0xff]  ;;  %v1647_v50 = vadd.f32 %v1575_v17, %v1287_v36  ;;  %v857_v51 = vmul.f32 %v785_v39, %v785_v39  ;;  %v498_v53 = vsub.f32 %v354_v47, %v426_v48  ;;  %v1002_v55 = vld [vmem:[%s4645_s19 + $0x4e0] sm:$0xff]  ;;  %v1288_v57 = vadd.f32 %v1216_v31, %v928_v44  ;;  %v643_v6 = vld [vmem:[%s4645_s19 + $0x2a8] sm:$0xff] }
  0xed   : > { %v1433_v42 = vld [vmem:[%s4651_s28 + $0x718] sm:$0xff]  ;;  %v1217_v52 = vmul.f32 %v1145_v40, %v1145_v40  ;;  %v1074_v56 = vld [vmem:[%s4651_s28 + $0x4e0] sm:$0xff]  ;;  %1862 = vst [vmem:[#allocation2 + $0xd8] sm:$0xff] %v1790_v43  ;;  %v786_v60 = vsub.f32 %v642_v49, %v714_v54  ;;  %v499_v10 = vsub.f32 %v355_v4, %v427_v5  ;;  %v715_v11 = vld [vmem:[%s4651_s28 + $0x2a8] sm:$0xff] }
  0xee   : > { %v1505_v46 = vsub.f32 %v1361_v41, %v1433_v42  ;;  %v1146_v61 = vsub.f32 %v1002_v55, %v1074_v56  ;;  %v1362_v62 = vld [vmem:[%s4645_s19 + $0x720] sm:$0xff]  ;;  %v1791_v0 = vadd.f32 %v1719_v37, %v1647_v50  ;;  %v929_v1 = vadd.f32 %v857_v51, %v569_v45  ;;  %v1003_v12 = vld [vmem:[%s4645_s19 + $0x4e8] sm:$0xff]  ;;  %v1721_v15 = vld [vmem:[#allocation2 + $0x158] sm:$0xff] }
  0xef   : > { %v1434_v63 = vld [vmem:[%s4651_s28 + $0x720] sm:$0xff]  ;;  %v570_v2 = vmul.f32 %v498_v53, %v498_v53  ;;  %v1648_v7 = vadd.f32 %v1576_v38, %v1288_v57  ;;  %v858_v8 = vmul.f32 %v786_v60, %v786_v60  ;;  %v1075_v13 = vld [vmem:[%s4651_s28 + $0x4e8] sm:$0xff]  ;;  %v787_v17 = vsub.f32 %v643_v6, %v715_v11  ;;  %v356_v25 = vld [vmem:[%s4645_s19 + $0x70] sm:$0xff] }
  0xf0   : > { %v1577_v59 = vmul.f32 %v1505_v46, %v1505_v46  ;;  %v1506_v3 = vsub.f32 %v1362_v62, %v1434_v63  ;;  %v1218_v9 = vmul.f32 %v1146_v61, %v1146_v61  ;;  %1863 = vst [vmem:[#allocation2 + $0x18] sm:$0xff] %v1791_v0  ;;  %v1289_v14 = vadd.f32 %v1217_v52, %v929_v1  ;;  %v1363_v19 = vld [vmem:[%s4645_s19 + $0x728] sm:$0xff]  ;;  %v428_v26 = vld [vmem:[%s4651_s28 + $0x70] sm:$0xff]  ;;  %v357_v46 = vld [vmem:[%s4645_s19 + $0x78] sm:$0xff] }
  0xf1   : > { %v1147_v18 = vsub.f32 %v1003_v12, %v1075_v13  ;;  %v1435_v20 = vld [vmem:[%s4651_s28 + $0x728] sm:$0xff]  ;;  %v1792_v21 = vadd.f32 %v1720_v58, %v1648_v7  ;;  %v930_v22 = vadd.f32 %v858_v8, %v570_v2  ;;  %v571_v23 = vmul.f32 %v499_v10, %v499_v10  ;;  %v644_v27 = vld [vmem:[%s4645_s19 + $0x2b0] sm:$0xff]  ;;  %v429_v47 = vld [vmem:[%s4651_s28 + $0x78] sm:$0xff] }
  0xf2   : > { %v1578_v16 = vmul.f32 %v1506_v3, %v1506_v3  ;;  %v1507_v24 = vsub.f32 %v1363_v19, %v1435_v20  ;;  %v1649_v28 = vadd.f32 %v1577_v59, %v1289_v14  ;;  %v859_v29 = vmul.f32 %v787_v17, %v787_v17  ;;  %v716_v32 = vld [vmem:[%s4651_s28 + $0x2b0] sm:$0xff]  ;;  %v1722_v36 = vld [vmem:[#allocation2 + $0x108] sm:$0xff]  ;;  %v645_v48 = vld [vmem:[%s4645_s19 + $0x2b8] sm:$0xff] }
  0xf3   : > { %v1219_v30 = vmul.f32 %v1147_v18, %v1147_v18  ;;  %v500_v31 = vsub.f32 %v356_v25, %v428_v26  ;;  %v1004_v33 = vld [vmem:[%s4645_s19 + $0x4f0] sm:$0xff]  ;;  %1864 = vst [vmem:[#allocation2 + $0xb0] sm:$0xff] %v1792_v21  ;;  %v1290_v35 = vadd.f32 %v1218_v9, %v930_v22  ;;  %v788_v38 = vsub.f32 %v644_v27, %v716_v32  ;;  %v717_v53 = vld [vmem:[%s4651_s28 + $0x2b8] sm:$0xff]  ;;  %v358_v3 = vld [vmem:[%s4645_s19 + $0x80] sm:$0xff] }
  0xf4   : > { %v1076_v34 = vld [vmem:[%s4651_s28 + $0x4f0] sm:$0xff]  ;;  %v1579_v37 = vmul.f32 %v1507_v24, %v1507_v24  ;;  %v1793_v42 = vadd.f32 %v1721_v15, %v1649_v28  ;;  %v931_v43 = vadd.f32 %v859_v29, %v571_v23  ;;  %v501_v52 = vsub.f32 %v357_v46, %v429_v47  ;;  %v1005_v54 = vld [vmem:[%s4645_s19 + $0x4f8] sm:$0xff]  ;;  %v430_v4 = vld [vmem:[%s4651_s28 + $0x80] sm:$0xff] }
  0xf5   : > { %v1148_v39 = vsub.f32 %v1004_v33, %v1076_v34  ;;  %v1364_v40 = vld [vmem:[%s4645_s19 + $0x730] sm:$0xff]  ;;  %v572_v44 = vmul.f32 %v500_v31, %v500_v31  ;;  %v1650_v49 = vadd.f32 %v1578_v16, %v1290_v35  ;;  %v860_v50 = vmul.f32 %v788_v38, %v788_v38  ;;  %v1077_v55 = vld [vmem:[%s4651_s28 + $0x4f8] sm:$0xff]  ;;  %v646_v5 = vld [vmem:[%s4645_s19 + $0x2c0] sm:$0xff] }
  0xf6   : > { %v1436_v41 = vld [vmem:[%s4651_s28 + $0x730] sm:$0xff]  ;;  %1865 = vst [vmem:[#allocation2 + $0x158] sm:$0xff] %v1793_v42  ;;  %v1291_v56 = vadd.f32 %v1219_v30, %v931_v43  ;;  %v789_v59 = vsub.f32 %v645_v48, %v717_v53  ;;  %v1149_v60 = vsub.f32 %v1005_v54, %v1077_v55  ;;  %v1365_v61 = vld [vmem:[%s4645_s19 + $0x738] sm:$0xff]  ;;  %v573_v1 = vmul.f32 %v501_v52, %v501_v52  ;;  %v718_v10 = vld [vmem:[%s4651_s28 + $0x2c0] sm:$0xff] }
  0xf7   : > { %v1508_v45 = vsub.f32 %v1364_v40, %v1436_v41  ;;  %v1220_v51 = vmul.f32 %v1148_v39, %v1148_v39  ;;  %v1723_v57 = vld [vmem:[#allocation2 + $0x110] sm:$0xff]  ;;  %v1437_v62 = vld [vmem:[%s4651_s28 + $0x738] sm:$0xff]  ;;  %v1794_v63 = vadd.f32 %v1722_v36, %v1650_v49  ;;  %v932_v0 = vadd.f32 %v860_v50, %v572_v44  ;;  %v1006_v11 = vld [vmem:[%s4645_s19 + $0x500] sm:$0xff] }
  0xf8   : > { %v1509_v2 = vsub.f32 %v1365_v61, %v1437_v62  ;;  %v1651_v6 = vadd.f32 %v1579_v37, %v1291_v56  ;;  %v861_v7 = vmul.f32 %v789_v59, %v789_v59  ;;  %v1221_v8 = vmul.f32 %v1149_v60, %v1149_v60  ;;  %v1078_v12 = vld [vmem:[%s4651_s28 + $0x500] sm:$0xff]  ;;  %v1724_v14 = vld [vmem:[#allocation2 + $0x1f8] sm:$0xff]  ;;  %v359_v24 = vld [vmem:[%s4645_s19 + $0x88] sm:$0xff] }
  0xf9   : > { %v1580_v58 = vmul.f32 %v1508_v45, %v1508_v45  ;;  %v502_v9 = vsub.f32 %v358_v3, %v430_v4  ;;  %1866 = vst [vmem:[#allocation2 + $0x108] sm:$0xff] %v1794_v63  ;;  %v1292_v13 = vadd.f32 %v1220_v51, %v932_v0  ;;  %v790_v16 = vsub.f32 %v646_v5, %v718_v10  ;;  %v1366_v18 = vld [vmem:[%s4645_s19 + $0x740] sm:$0xff]  ;;  %v431_v25 = vld [vmem:[%s4651_s28 + $0x88] sm:$0xff]  ;;  %v1725_v35 = vld [vmem:[#allocation2 + $0xb8] sm:$0xff] }
  0xfa   : > { %v1581_v15 = vmul.f32 %v1509_v2, %v1509_v2  ;;  %v1150_v17 = vsub.f32 %v1006_v11, %v1078_v12  ;;  %v1438_v19 = vld [vmem:[%s4651_s28 + $0x740] sm:$0xff]  ;;  %v1795_v20 = vadd.f32 %v1723_v57, %v1651_v6  ;;  %v933_v21 = vadd.f32 %v861_v7, %v573_v1  ;;  %v647_v26 = vld [vmem:[%s4645_s19 + $0x2c8] sm:$0xff]  ;;  %v360_v45 = vld [vmem:[%s4645_s19 + $0x90] sm:$0xff] }
  0xfb   : > { %v574_v22 = vmul.f32 %v502_v9, %v502_v9  ;;  %v1510_v23 = vsub.f32 %v1366_v18, %v1438_v19  ;;  %v1652_v27 = vadd.f32 %v1580_v58, %v1292_v13  ;;  %v862_v28 = vmul.f32 %v790_v16, %v790_v16  ;;  %v719_v31 = vld [vmem:[%s4651_s28 + $0x2c8] sm:$0xff]  ;;  %v432_v46 = vld [vmem:[%s4651_s28 + $0x90] sm:$0xff]  ;;  %v1726_v56 = vld [vmem:[#allocation2 + $0x180] sm:$0xff] }
  0xfc   : > { %v1222_v29 = vmul.f32 %v1150_v17, %v1150_v17  ;;  %v503_v30 = vsub.f32 %v359_v24, %v431_v25  ;;  %v1007_v32 = vld [vmem:[%s4645_s19 + $0x508] sm:$0xff]  ;;  %1867 = vst [vmem:[#allocation2 + $0x110] sm:$0xff] %v1795_v20  ;;  %v1293_v34 = vadd.f32 %v1221_v8, %v933_v21  ;;  %v791_v37 = vsub.f32 %v647_v26, %v719_v31  ;;  %v648_v47 = vld [vmem:[%s4645_s19 + $0x2d0] sm:$0xff]  ;;  %v361_v2 = vld [vmem:[%s4645_s19 + $0x98] sm:$0xff] }
  0xfd   : > { %v1079_v33 = vld [vmem:[%s4651_s28 + $0x508] sm:$0xff]  ;;  %v1582_v36 = vmul.f32 %v1510_v23, %v1510_v23  ;;  %v1796_v41 = vadd.f32 %v1724_v14, %v1652_v27  ;;  %v934_v42 = vadd.f32 %v862_v28, %v574_v22  ;;  %v504_v51 = vsub.f32 %v360_v45, %v432_v46  ;;  %v720_v52 = vld [vmem:[%s4651_s28 + $0x2d0] sm:$0xff]  ;;  %v433_v3 = vld [vmem:[%s4651_s28 + $0x98] sm:$0xff] }
  0xfe   : > { %v1151_v38 = vsub.f32 %v1007_v32, %v1079_v33  ;;  %v1367_v39 = vld [vmem:[%s4645_s19 + $0x748] sm:$0xff]  ;;  %v575_v43 = vmul.f32 %v503_v30, %v503_v30  ;;  %v1653_v48 = vadd.f32 %v1581_v15, %v1293_v34  ;;  %v863_v49 = vmul.f32 %v791_v37, %v791_v37  ;;  %v1008_v53 = vld [vmem:[%s4645_s19 + $0x510] sm:$0xff]  ;;  %v649_v4 = vld [vmem:[%s4645_s19 + $0x2d8] sm:$0xff] }
  0xff   : > { %v1439_v40 = vld [vmem:[%s4651_s28 + $0x748] sm:$0xff]  ;;  %v1080_v54 = vld [vmem:[%s4651_s28 + $0x510] sm:$0xff]  ;;  %1868 = vst [vmem:[#allocation2 + $0x1f8] sm:$0xff] %v1796_v41  ;;  %v1294_v55 = vadd.f32 %v1222_v29, %v934_v42  ;;  %v792_v58 = vsub.f32 %v648_v47, %v720_v52  ;;  %v576_v0 = vmul.f32 %v504_v51, %v504_v51  ;;  %v505_v8 = vsub.f32 %v361_v2, %v433_v3  ;;  %v721_v9 = vld [vmem:[%s4651_s28 + $0x2d8] sm:$0xff] }
 0x100   : > { %v1511_v44 = vsub.f32 %v1367_v39, %v1439_v40  ;;  %v1223_v50 = vmul.f32 %v1151_v38, %v1151_v38  ;;  %v1152_v59 = vsub.f32 %v1008_v53, %v1080_v54  ;;  %v1368_v60 = vld [vmem:[%s4645_s19 + $0x750] sm:$0xff]  ;;  %v1797_v62 = vadd.f32 %v1725_v35, %v1653_v48  ;;  %v1009_v10 = vld [vmem:[%s4645_s19 + $0x518] sm:$0xff]  ;;  %v362_v23 = vld [vmem:[%s4645_s19 + $0xa0] sm:$0xff] }
 0x101   : > { %v1440_v61 = vld [vmem:[%s4651_s28 + $0x750] sm:$0xff]  ;;  %v935_v63 = vadd.f32 %v863_v49, %v575_v43  ;;  %v1654_v5 = vadd.f32 %v1582_v36, %v1294_v55  ;;  %v864_v6 = vmul.f32 %v792_v58, %v792_v58  ;;  %v1081_v11 = vld [vmem:[%s4651_s28 + $0x518] sm:$0xff]  ;;  %v793_v15 = vsub.f32 %v649_v4, %v721_v9  ;;  %v434_v24 = vld [vmem:[%s4651_s28 + $0xa0] sm:$0xff] }
 0x102   : > { %v1583_v57 = vmul.f32 %v1511_v44, %v1511_v44  ;;  %v1512_v1 = vsub.f32 %v1368_v60, %v1440_v61  ;;  %v1224_v7 = vmul.f32 %v1152_v59, %v1152_v59  ;;  %1869 = vst [vmem:[#allocation2 + $0xb8] sm:$0xff] %v1797_v62  ;;  %v1727_v13 = vld [vmem:[#allocation2 + $0x190] sm:$0xff]  ;;  %v1153_v16 = vsub.f32 %v1009_v10, %v1081_v11  ;;  %v1369_v17 = vld [vmem:[%s4645_s19 + $0x758] sm:$0xff]  ;;  %v650_v25 = vld [vmem:[%s4645_s19 + $0x2e0] sm:$0xff] }
 0x103   : > { %v1295_v12 = vadd.f32 %v1223_v50, %v935_v63  ;;  %v1441_v18 = vld [vmem:[%s4651_s28 + $0x758] sm:$0xff]  ;;  %v1798_v19 = vadd.f32 %v1726_v56, %v1654_v5  ;;  %v936_v20 = vadd.f32 %v864_v6, %v576_v0  ;;  %v577_v21 = vmul.f32 %v505_v8, %v505_v8  ;;  %v722_v30 = vld [vmem:[%s4651_s28 + $0x2e0] sm:$0xff]  ;;  %v363_v44 = vld [vmem:[%s4645_s19 + $0xa8] sm:$0xff] }
 0x104   : > { %v1584_v14 = vmul.f32 %v1512_v1, %v1512_v1  ;;  %v1513_v22 = vsub.f32 %v1369_v17, %v1441_v18  ;;  %v865_v27 = vmul.f32 %v793_v15, %v793_v15  ;;  %v1225_v28 = vmul.f32 %v1153_v16, %v1153_v16  ;;  %v1010_v31 = vld [vmem:[%s4645_s19 + $0x520] sm:$0xff]  ;;  %v435_v45 = vld [vmem:[%s4651_s28 + $0xa8] sm:$0xff]  ;;  %v364_v1 = vld [vmem:[%s4645_s19 + $0xb0] sm:$0xff] }
 0x105   : > { %v1655_v26 = vadd.f32 %v1583_v57, %v1295_v12  ;;  %v506_v29 = vsub.f32 %v362_v23, %v434_v24  ;;  %v1082_v32 = vld [vmem:[%s4651_s28 + $0x520] sm:$0xff]  ;;  %1870 = vst [vmem:[#allocation2 + $0x180] sm:$0xff] %v1798_v19  ;;  %v1296_v33 = vadd.f32 %v1224_v7, %v936_v20  ;;  %v794_v36 = vsub.f32 %v650_v25, %v722_v30  ;;  %v651_v46 = vld [vmem:[%s4645_s19 + $0x2e8] sm:$0xff]  ;;  %v436_v2 = vld [vmem:[%s4651_s28 + $0xb0] sm:$0xff] }
 0x106   : > { %v1728_v34 = vld [vmem:[#allocation2 + $0x140] sm:$0xff]  ;;  %v1585_v35 = vmul.f32 %v1513_v22, %v1513_v22  ;;  %v1154_v37 = vsub.f32 %v1010_v31, %v1082_v32  ;;  %v937_v41 = vadd.f32 %v865_v27, %v577_v21  ;;  %v507_v50 = vsub.f32 %v363_v44, %v435_v45  ;;  %v723_v51 = vld [vmem:[%s4651_s28 + $0x2e8] sm:$0xff]  ;;  %v652_v3 = vld [vmem:[%s4645_s19 + $0x2f0] sm:$0xff] }
 0x107   : > { %v1370_v38 = vld [vmem:[%s4645_s19 + $0x760] sm:$0xff]  ;;  %v1799_v40 = vadd.f32 %v1727_v13, %v1655_v26  ;;  %v578_v42 = vmul.f32 %v506_v29, %v506_v29  ;;  %v1656_v47 = vadd.f32 %v1584_v14, %v1296_v33  ;;  %v866_v48 = vmul.f32 %v794_v36, %v794_v36  ;;  %v1011_v52 = vld [vmem:[%s4645_s19 + $0x528] sm:$0xff]  ;;  %v724_v8 = vld [vmem:[%s4651_s28 + $0x2f0] sm:$0xff] }
 0x108   : > { %v1442_v39 = vld [vmem:[%s4651_s28 + $0x760] sm:$0xff]  ;;  %v1226_v49 = vmul.f32 %v1154_v37, %v1154_v37  ;;  %v1083_v53 = vld [vmem:[%s4651_s28 + $0x528] sm:$0xff]  ;;  %v1297_v54 = vadd.f32 %v1225_v28, %v937_v41  ;;  %v795_v57 = vsub.f32 %v651_v46, %v723_v51  ;;  %v579_v63 = vmul.f32 %v507_v50, %v507_v50  ;;  %v1012_v9 = vld [vmem:[%s4645_s19 + $0x530] sm:$0xff] }
 0x109   : > { %v1514_v43 = vsub.f32 %v1370_v38, %v1442_v39  ;;  %1871 = vst [vmem:[#allocation2 + $0x190] sm:$0xff] %v1799_v40  ;;  %v1729_v55 = vld [vmem:[#allocation2 + $0x1c0] sm:$0xff]  ;;  %v1155_v58 = vsub.f32 %v1011_v52, %v1083_v53  ;;  %v1371_v59 = vld [vmem:[%s4645_s19 + $0x768] sm:$0xff]  ;;  %v1800_v61 = vadd.f32 %v1728_v34, %v1656_v47  ;;  %v938_v62 = vadd.f32 %v866_v48, %v578_v42  ;;  %v1084_v10 = vld [vmem:[%s4651_s28 + $0x530] sm:$0xff] }
 0x10a   : > { %v1443_v60 = vld [vmem:[%s4651_s28 + $0x768] sm:$0xff]  ;;  %v1657_v4 = vadd.f32 %v1585_v35, %v1297_v54  ;;  %v867_v5 = vmul.f32 %v795_v57, %v795_v57  ;;  %v508_v7 = vsub.f32 %v364_v1, %v436_v2  ;;  %v1730_v12 = vld [vmem:[#allocation2 + $0xd0] sm:$0xff]  ;;  %v796_v14 = vsub.f32 %v652_v3, %v724_v8  ;;  %v365_v22 = vld [vmem:[%s4645_s19 + $0xb8] sm:$0xff] }
 0x10b   : > { %v1586_v56 = vmul.f32 %v1514_v43, %v1514_v43  ;;  %v1515_v0 = vsub.f32 %v1371_v59, %v1443_v60  ;;  %v1227_v6 = vmul.f32 %v1155_v58, %v1155_v58  ;;  %1872 = vst [vmem:[#allocation2 + $0x140] sm:$0xff] %v1800_v61  ;;  %v1298_v11 = vadd.f32 %v1226_v49, %v938_v62  ;;  %v1372_v16 = vld [vmem:[%s4645_s19 + $0x770] sm:$0xff]  ;;  %v437_v23 = vld [vmem:[%s4651_s28 + $0xb8] sm:$0xff]  ;;  %v366_v43 = vld [vmem:[%s4645_s19 + $0xc0] sm:$0xff] }
 0x10c   : > { %v1156_v15 = vsub.f32 %v1012_v9, %v1084_v10  ;;  %v1444_v17 = vld [vmem:[%s4651_s28 + $0x770] sm:$0xff]  ;;  %v1801_v18 = vadd.f32 %v1729_v55, %v1657_v4  ;;  %v939_v19 = vadd.f32 %v867_v5, %v579_v63  ;;  %v580_v20 = vmul.f32 %v508_v7, %v508_v7  ;;  %v653_v24 = vld [vmem:[%s4645_s19 + $0x2f8] sm:$0xff]  ;;  %v438_v44 = vld [vmem:[%s4651_s28 + $0xc0] sm:$0xff] }
 0x10d   : > { %v1587_v13 = vmul.f32 %v1515_v0, %v1515_v0  ;;  %v1516_v21 = vsub.f32 %v1372_v16, %v1444_v17  ;;  %v1658_v25 = vadd.f32 %v1586_v56, %v1298_v11  ;;  %v868_v26 = vmul.f32 %v796_v14, %v796_v14  ;;  %v725_v29 = vld [vmem:[%s4651_s28 + $0x2f8] sm:$0xff]  ;;  %v654_v45 = vld [vmem:[%s4645_s19 + $0x300] sm:$0xff]  ;;  %v367_v0 = vld [vmem:[%s4645_s19 + $0xc8] sm:$0xff] }
 0x10e   : > { %v1228_v27 = vmul.f32 %v1156_v15, %v1156_v15  ;;  %v509_v28 = vsub.f32 %v365_v22, %v437_v23  ;;  %v1013_v30 = vld [vmem:[%s4645_s19 + $0x538] sm:$0xff]  ;;  %1873 = vst [vmem:[#allocation2 + $0x1c0] sm:$0xff] %v1801_v18  ;;  %v1299_v32 = vadd.f32 %v1227_v6, %v939_v19  ;;  %v797_v35 = vsub.f32 %v653_v24, %v725_v29  ;;  %v726_v50 = vld [vmem:[%s4651_s28 + $0x300] sm:$0xff]  ;;  %v439_v1 = vld [vmem:[%s4651_s28 + $0xc8] sm:$0xff] }
 0x10f   : > { %v1085_v31 = vld [vmem:[%s4651_s28 + $0x538] sm:$0xff]  ;;  %v1588_v34 = vmul.f32 %v1516_v21, %v1516_v21  ;;  %v1802_v39 = vadd.f32 %v1730_v12, %v1658_v25  ;;  %v940_v40 = vadd.f32 %v868_v26, %v580_v20  ;;  %v510_v49 = vsub.f32 %v366_v43, %v438_v44  ;;  %v1014_v51 = vld [vmem:[%s4645_s19 + $0x540] sm:$0xff]  ;;  %v655_v2 = vld [vmem:[%s4645_s19 + $0x308] sm:$0xff] }
 0x110   : > { %v1731_v33 = vld [vmem:[#allocation2 + $0x138] sm:$0xff]  ;;  %v1157_v36 = vsub.f32 %v1013_v30, %v1085_v31  ;;  %v581_v41 = vmul.f32 %v509_v28, %v509_v28  ;;  %v1659_v46 = vadd.f32 %v1587_v13, %v1299_v32  ;;  %v869_v47 = vmul.f32 %v797_v35, %v797_v35  ;;  %v1086_v52 = vld [vmem:[%s4651_s28 + $0x540] sm:$0xff]  ;;  %v727_v7 = vld [vmem:[%s4651_s28 + $0x308] sm:$0xff] }
 0x111   : > { %v1373_v37 = vld [vmem:[%s4645_s19 + $0x778] sm:$0xff]  ;;  %1874 = vst [vmem:[#allocation2 + $0xd0] sm:$0xff] %v1802_v39  ;;  %v1300_v53 = vadd.f32 %v1228_v27, %v940_v40  ;;  %v1732_v54 = vld [vmem:[#allocation2 + $0x60] sm:$0xff]  ;;  %v798_v56 = vsub.f32 %v654_v45, %v726_v50  ;;  %v1158_v57 = vsub.f32 %v1014_v51, %v1086_v52  ;;  %v582_v62 = vmul.f32 %v510_v49, %v510_v49  ;;  %v1015_v8 = vld [vmem:[%s4645_s19 + $0x548] sm:$0xff] }
 0x112   : > { %v1445_v38 = vld [vmem:[%s4651_s28 + $0x778] sm:$0xff]  ;;  %v1229_v48 = vmul.f32 %v1157_v36, %v1157_v36  ;;  %v1374_v58 = vld [vmem:[%s4645_s19 + $0x780] sm:$0xff]  ;;  %v1803_v60 = vadd.f32 %v1731_v33, %v1659_v46  ;;  %v941_v61 = vadd.f32 %v869_v47, %v581_v41  ;;  %v511_v6 = vsub.f32 %v367_v0, %v439_v1  ;;  %v1087_v9 = vld [vmem:[%s4651_s28 + $0x548] sm:$0xff] }
 0x113   : > { %v1517_v42 = vsub.f32 %v1373_v37, %v1445_v38  ;;  %v1446_v59 = vld [vmem:[%s4651_s28 + $0x780] sm:$0xff]  ;;  %v1660_v3 = vadd.f32 %v1588_v34, %v1300_v53  ;;  %v870_v4 = vmul.f32 %v798_v56, %v798_v56  ;;  %v1230_v5 = vmul.f32 %v1158_v57, %v1158_v57  ;;  %v1733_v11 = vld [vmem:[#allocation2 + $0x1b8] sm:$0xff]  ;;  %v1375_v15 = vld [vmem:[%s4645_s19 + $0x788] sm:$0xff] }
 0x114   : > { %v1518_v63 = vsub.f32 %v1374_v58, %v1446_v59  ;;  %1875 = vst [vmem:[#allocation2 + $0x138] sm:$0xff] %v1803_v60  ;;  %v1301_v10 = vadd.f32 %v1229_v48, %v941_v61  ;;  %v799_v13 = vsub.f32 %v655_v2, %v727_v7  ;;  %v1159_v14 = vsub.f32 %v1015_v8, %v1087_v9  ;;  %v1447_v16 = vld [vmem:[%s4651_s28 + $0x788] sm:$0xff]  ;;  %v368_v21 = vld [vmem:[%s4645_s19 + $0xd0] sm:$0xff]  ;;  %v441_v43 = vld [vmem:[%s4651_s28 + $0xd8] sm:$0xff] }
 0x115   : > { %v1589_v55 = vmul.f32 %v1517_v42, %v1517_v42  ;;  %v1804_v17 = vadd.f32 %v1732_v54, %v1660_v3  ;;  %v942_v18 = vadd.f32 %v870_v4, %v582_v62  ;;  %v583_v19 = vmul.f32 %v511_v6, %v511_v6  ;;  %v440_v22 = vld [vmem:[%s4651_s28 + $0xd0] sm:$0xff]  ;;  %v1734_v32 = vld [vmem:[#allocation2 + $0x88] sm:$0xff]  ;;  %v369_v42 = vld [vmem:[%s4645_s19 + $0xd8] sm:$0xff] }
 0x116   : > { %v1590_v12 = vmul.f32 %v1518_v63, %v1518_v63  ;;  %v1519_v20 = vsub.f32 %v1375_v15, %v1447_v16  ;;  %v656_v23 = vld [vmem:[%s4645_s19 + $0x310] sm:$0xff]  ;;  %v871_v25 = vmul.f32 %v799_v13, %v799_v13  ;;  %v1231_v26 = vmul.f32 %v1159_v14, %v1159_v14  ;;  %v657_v44 = vld [vmem:[%s4645_s19 + $0x318] sm:$0xff]  ;;  %v1735_v53 = vld [vmem:[#allocation2] sm:$0xff] }
 0x117   : > { %v1661_v24 = vadd.f32 %v1589_v55, %v1301_v10  ;;  %v512_v27 = vsub.f32 %v368_v21, %v440_v22  ;;  %v728_v28 = vld [vmem:[%s4651_s28 + $0x310] sm:$0xff]  ;;  %1876 = vst [vmem:[#allocation2 + $0x60] sm:$0xff] %v1804_v17  ;;  %v1302_v31 = vadd.f32 %v1230_v5, %v942_v18  ;;  %v513_v48 = vsub.f32 %v369_v42, %v441_v43  ;;  %v729_v49 = vld [vmem:[%s4651_s28 + $0x318] sm:$0xff]  ;;  %v370_v63 = vld [vmem:[%s4645_s19 + $0xe0] sm:$0xff] }
 0x118   : > { %v1016_v29 = vld [vmem:[%s4645_s19 + $0x550] sm:$0xff]  ;;  %v1591_v33 = vmul.f32 %v1519_v20, %v1519_v20  ;;  %v800_v34 = vsub.f32 %v656_v23, %v728_v28  ;;  %v943_v39 = vadd.f32 %v871_v25, %v583_v19  ;;  %v1017_v50 = vld [vmem:[%s4645_s19 + $0x558] sm:$0xff]  ;;  %v801_v55 = vsub.f32 %v657_v44, %v729_v49  ;;  %v442_v0 = vld [vmem:[%s4651_s28 + $0xe0] sm:$0xff] }
 0x119   : > { %v1088_v30 = vld [vmem:[%s4651_s28 + $0x550] sm:$0xff]  ;;  %v1805_v38 = vadd.f32 %v1733_v11, %v1661_v24  ;;  %v584_v40 = vmul.f32 %v512_v27, %v512_v27  ;;  %v1662_v45 = vadd.f32 %v1590_v12, %v1302_v31  ;;  %v1089_v51 = vld [vmem:[%s4651_s28 + $0x558] sm:$0xff]  ;;  %v585_v61 = vmul.f32 %v513_v48, %v513_v48  ;;  %v658_v1 = vld [vmem:[%s4645_s19 + $0x320] sm:$0xff] }
 0x11a   : > { %v1160_v35 = vsub.f32 %v1016_v29, %v1088_v30  ;;  %v1376_v36 = vld [vmem:[%s4645_s19 + $0x790] sm:$0xff]  ;;  %v872_v46 = vmul.f32 %v800_v34, %v800_v34  ;;  %v1303_v52 = vadd.f32 %v1231_v26, %v943_v39  ;;  %v1161_v56 = vsub.f32 %v1017_v50, %v1089_v51  ;;  %v1377_v57 = vld [vmem:[%s4645_s19 + $0x798] sm:$0xff]  ;;  %v730_v6 = vld [vmem:[%s4651_s28 + $0x320] sm:$0xff] }
 0x11b   : > { %v1448_v37 = vld [vmem:[%s4651_s28 + $0x790] sm:$0xff]  ;;  %1877 = vst [vmem:[#allocation2 + $0x1b8] sm:$0xff] %v1805_v38  ;;  %v1449_v58 = vld [vmem:[%s4651_s28 + $0x798] sm:$0xff]  ;;  %v1806_v59 = vadd.f32 %v1734_v32, %v1662_v45  ;;  %v873_v3 = vmul.f32 %v801_v55, %v801_v55  ;;  %v514_v5 = vsub.f32 %v370_v63, %v442_v0  ;;  %v1018_v7 = vld [vmem:[%s4645_s19 + $0x560] sm:$0xff]  ;;  %v802_v12 = vsub.f32 %v658_v1, %v730_v6 }
 0x11c   : > { %v1520_v41 = vsub.f32 %v1376_v36, %v1448_v37  ;;  %v1232_v47 = vmul.f32 %v1160_v35, %v1160_v35  ;;  %v944_v60 = vadd.f32 %v872_v46, %v584_v40  ;;  %v1521_v62 = vsub.f32 %v1377_v57, %v1449_v58  ;;  %v1090_v8 = vld [vmem:[%s4651_s28 + $0x560] sm:$0xff]  ;;  %v1736_v10 = vld [vmem:[#allocation2 + $0x188] sm:$0xff]  ;;  %v1737_v31 = vld [vmem:[#allocation2 + $0x38] sm:$0xff] }
 0x11d   : > { %v1663_v2 = vadd.f32 %v1591_v33, %v1303_v52  ;;  %v1233_v4 = vmul.f32 %v1161_v56, %v1161_v56  ;;  %1878 = vst [vmem:[#allocation2 + $0x88] sm:$0xff] %v1806_v59  ;;  %v1162_v13 = vsub.f32 %v1018_v7, %v1090_v8  ;;  %v1378_v14 = vld [vmem:[%s4645_s19 + $0x7a0] sm:$0xff]  ;;  %v945_v17 = vadd.f32 %v873_v3, %v585_v61  ;;  %v371_v20 = vld [vmem:[%s4645_s19 + $0xe8] sm:$0xff]  ;;  %v444_v42 = vld [vmem:[%s4651_s28 + $0xf0] sm:$0xff] }
 0x11e   : > { %v1592_v54 = vmul.f32 %v1520_v41, %v1520_v41  ;;  %v1304_v9 = vadd.f32 %v1232_v47, %v944_v60  ;;  %v1593_v11 = vmul.f32 %v1521_v62, %v1521_v62  ;;  %v1450_v15 = vld [vmem:[%s4651_s28 + $0x7a0] sm:$0xff]  ;;  %v586_v18 = vmul.f32 %v514_v5, %v514_v5  ;;  %v443_v21 = vld [vmem:[%s4651_s28 + $0xe8] sm:$0xff]  ;;  %v372_v41 = vld [vmem:[%s4645_s19 + $0xf0] sm:$0xff] }
 0x11f   : > { %v1807_v16 = vadd.f32 %v1735_v53, %v1663_v2  ;;  %v1522_v19 = vsub.f32 %v1378_v14, %v1450_v15  ;;  %v659_v22 = vld [vmem:[%s4645_s19 + $0x328] sm:$0xff]  ;;  %v874_v24 = vmul.f32 %v802_v12, %v802_v12  ;;  %v1234_v25 = vmul.f32 %v1162_v13, %v1162_v13  ;;  %v660_v43 = vld [vmem:[%s4645_s19 + $0x330] sm:$0xff]  ;;  %v373_v62 = vld [vmem:[%s4645_s19 + $0xf8] sm:$0xff] }
 0x120   : > { %v1664_v23 = vadd.f32 %v1592_v54, %v1304_v9  ;;  %v515_v26 = vsub.f32 %v371_v20, %v443_v21  ;;  %v731_v27 = vld [vmem:[%s4651_s28 + $0x328] sm:$0xff]  ;;  %v1305_v30 = vadd.f32 %v1233_v4, %v945_v17  ;;  %v516_v47 = vsub.f32 %v372_v41, %v444_v42  ;;  %v732_v48 = vld [vmem:[%s4651_s28 + $0x330] sm:$0xff]  ;;  %v445_v63 = vld [vmem:[%s4651_s28 + $0xf8] sm:$0xff] }
 0x121   : > { %v1019_v28 = vld [vmem:[%s4645_s19 + $0x568] sm:$0xff]  ;;  %1879 = vst [vmem:[#allocation2] sm:$0xff] %v1807_v16  ;;  %v1594_v32 = vmul.f32 %v1522_v19, %v1522_v19  ;;  %v803_v33 = vsub.f32 %v659_v22, %v731_v27  ;;  %v946_v38 = vadd.f32 %v874_v24, %v586_v18  ;;  %v1020_v49 = vld [vmem:[%s4645_s19 + $0x570] sm:$0xff]  ;;  %v804_v54 = vsub.f32 %v660_v43, %v732_v48  ;;  %v661_v0 = vld [vmem:[%s4645_s19 + $0x338] sm:$0xff] }
 0x122   : > { %v1091_v29 = vld [vmem:[%s4651_s28 + $0x568] sm:$0xff]  ;;  %v1808_v37 = vadd.f32 %v1736_v10, %v1664_v23  ;;  %v587_v39 = vmul.f32 %v515_v26, %v515_v26  ;;  %v1665_v44 = vadd.f32 %v1593_v11, %v1305_v30  ;;  %v1092_v50 = vld [vmem:[%s4651_s28 + $0x570] sm:$0xff]  ;;  %v588_v60 = vmul.f32 %v516_v47, %v516_v47  ;;  %v733_v5 = vld [vmem:[%s4651_s28 + $0x338] sm:$0xff] }
 0x123   : > { %v1163_v34 = vsub.f32 %v1019_v28, %v1091_v29  ;;  %v1379_v35 = vld [vmem:[%s4645_s19 + $0x7a8] sm:$0xff]  ;;  %v875_v45 = vmul.f32 %v803_v33, %v803_v33  ;;  %v1306_v51 = vadd.f32 %v1234_v25, %v946_v38  ;;  %v1164_v55 = vsub.f32 %v1020_v49, %v1092_v50  ;;  %v1380_v56 = vld [vmem:[%s4645_s19 + $0x7b0] sm:$0xff]  ;;  %v1021_v6 = vld [vmem:[%s4645_s19 + $0x578] sm:$0xff] }
 0x124   : > { %v1451_v36 = vld [vmem:[%s4651_s28 + $0x7a8] sm:$0xff]  ;;  %1880 = vst [vmem:[#allocation2 + $0x188] sm:$0xff] %v1808_v37  ;;  %v1452_v57 = vld [vmem:[%s4651_s28 + $0x7b0] sm:$0xff]  ;;  %v1809_v58 = vadd.f32 %v1737_v31, %v1665_v44  ;;  %v876_v2 = vmul.f32 %v804_v54, %v804_v54  ;;  %v517_v4 = vsub.f32 %v373_v62, %v445_v63  ;;  %v1093_v7 = vld [vmem:[%s4651_s28 + $0x578] sm:$0xff]  ;;  %v805_v11 = vsub.f32 %v661_v0, %v733_v5 }
 0x125   : > { %v1523_v40 = vsub.f32 %v1379_v35, %v1451_v36  ;;  %v1235_v46 = vmul.f32 %v1163_v34, %v1163_v34  ;;  %v1738_v52 = vld [vmem:[#allocation2 + $0x1a8] sm:$0xff]  ;;  %v947_v59 = vadd.f32 %v875_v45, %v587_v39  ;;  %v1524_v61 = vsub.f32 %v1380_v56, %v1452_v57  ;;  %v1739_v9 = vld [vmem:[#allocation2 + $0x220] sm:$0xff]  ;;  %v1381_v13 = vld [vmem:[%s4645_s19 + $0x7b8] sm:$0xff] }
 0x126   : > { %v1666_v1 = vadd.f32 %v1594_v32, %v1306_v51  ;;  %v1236_v3 = vmul.f32 %v1164_v55, %v1164_v55  ;;  %1881 = vst [vmem:[#allocation2 + $0x38] sm:$0xff] %v1809_v58  ;;  %v1165_v12 = vsub.f32 %v1021_v6, %v1093_v7  ;;  %v1453_v14 = vld [vmem:[%s4651_s28 + $0x7b8] sm:$0xff]  ;;  %v948_v16 = vadd.f32 %v876_v2, %v588_v60  ;;  %v374_v19 = vld [vmem:[%s4645_s19 + $0x100] sm:$0xff]  ;;  %v1740_v30 = vld [vmem:[#allocation2 + $0x1e8] sm:$0xff] }
 0x127   : > { %v1595_v53 = vmul.f32 %v1523_v40, %v1523_v40  ;;  %v1307_v8 = vadd.f32 %v1235_v46, %v947_v59  ;;  %v1596_v10 = vmul.f32 %v1524_v61, %v1524_v61  ;;  %v589_v17 = vmul.f32 %v517_v4, %v517_v4  ;;  %v446_v20 = vld [vmem:[%s4651_s28 + $0x100] sm:$0xff]  ;;  %v375_v40 = vld [vmem:[%s4645_s19 + $0x108] sm:$0xff]  ;;  %v376_v61 = vld [vmem:[%s4645_s19 + $0x110] sm:$0xff] }
 0x128   : > { %v1810_v15 = vadd.f32 %v1738_v52, %v1666_v1  ;;  %v1525_v18 = vsub.f32 %v1381_v13, %v1453_v14  ;;  %v662_v21 = vld [vmem:[%s4645_s19 + $0x340] sm:$0xff]  ;;  %v877_v23 = vmul.f32 %v805_v11, %v805_v11  ;;  %v1237_v24 = vmul.f32 %v1165_v12, %v1165_v12  ;;  %v447_v41 = vld [vmem:[%s4651_s28 + $0x108] sm:$0xff]  ;;  %v448_v62 = vld [vmem:[%s4651_s28 + $0x110] sm:$0xff] }
 0x129   : > { %v1667_v22 = vadd.f32 %v1595_v53, %v1307_v8  ;;  %v518_v25 = vsub.f32 %v374_v19, %v446_v20  ;;  %v734_v26 = vld [vmem:[%s4651_s28 + $0x340] sm:$0xff]  ;;  %v1308_v29 = vadd.f32 %v1236_v3, %v948_v16  ;;  %v663_v42 = vld [vmem:[%s4645_s19 + $0x348] sm:$0xff]  ;;  %v519_v46 = vsub.f32 %v375_v40, %v447_v41  ;;  %v664_v63 = vld [vmem:[%s4645_s19 + $0x350] sm:$0xff] }
 0x12a   : > { %v1022_v27 = vld [vmem:[%s4645_s19 + $0x580] sm:$0xff]  ;;  %1882 = vst [vmem:[#allocation2 + $0x1a8] sm:$0xff] %v1810_v15  ;;  %v1597_v31 = vmul.f32 %v1525_v18, %v1525_v18  ;;  %v806_v32 = vsub.f32 %v662_v21, %v734_v26  ;;  %v949_v37 = vadd.f32 %v877_v23, %v589_v17  ;;  %v735_v47 = vld [vmem:[%s4651_s28 + $0x348] sm:$0xff]  ;;  %v520_v3 = vsub.f32 %v376_v61, %v448_v62  ;;  %v736_v4 = vld [vmem:[%s4651_s28 + $0x350] sm:$0xff] }
 0x12b   : > { %v1094_v28 = vld [vmem:[%s4651_s28 + $0x580] sm:$0xff]  ;;  %v1811_v36 = vadd.f32 %v1739_v9, %v1667_v22  ;;  %v590_v38 = vmul.f32 %v518_v25, %v518_v25  ;;  %v1668_v43 = vadd.f32 %v1596_v10, %v1308_v29  ;;  %v1023_v48 = vld [vmem:[%s4645_s19 + $0x588] sm:$0xff]  ;;  %v807_v53 = vsub.f32 %v663_v42, %v735_v47  ;;  %v1024_v5 = vld [vmem:[%s4645_s19 + $0x590] sm:$0xff] }
 0x12c   : > { %v1166_v33 = vsub.f32 %v1022_v27, %v1094_v28  ;;  %v1382_v34 = vld [vmem:[%s4645_s19 + $0x7c0] sm:$0xff]  ;;  %v878_v44 = vmul.f32 %v806_v32, %v806_v32  ;;  %v1095_v49 = vld [vmem:[%s4651_s28 + $0x588] sm:$0xff]  ;;  %v1309_v50 = vadd.f32 %v1237_v24, %v949_v37  ;;  %v591_v59 = vmul.f32 %v519_v46, %v519_v46  ;;  %v1096_v6 = vld [vmem:[%s4651_s28 + $0x590] sm:$0xff] }
 0x12d   : > { %v1454_v35 = vld [vmem:[%s4651_s28 + $0x7c0] sm:$0xff]  ;;  %1883 = vst [vmem:[#allocation2 + $0x220] sm:$0xff] %v1811_v36  ;;  %v1741_v51 = vld [vmem:[#allocation2 + $0x1c8] sm:$0xff]  ;;  %v1167_v54 = vsub.f32 %v1023_v48, %v1095_v49  ;;  %v1812_v57 = vadd.f32 %v1740_v30, %v1668_v43  ;;  %v879_v1 = vmul.f32 %v807_v53, %v807_v53  ;;  %v808_v10 = vsub.f32 %v664_v63, %v736_v4  ;;  %v1384_v12 = vld [vmem:[%s4645_s19 + $0x7d0] sm:$0xff] }
 0x12e   : > { %v1526_v39 = vsub.f32 %v1382_v34, %v1454_v35  ;;  %v1238_v45 = vmul.f32 %v1166_v33, %v1166_v33  ;;  %v1383_v55 = vld [vmem:[%s4645_s19 + $0x7c8] sm:$0xff]  ;;  %v950_v58 = vadd.f32 %v878_v44, %v590_v38  ;;  %v1669_v0 = vadd.f32 %v1597_v31, %v1309_v50  ;;  %v1742_v8 = vld [vmem:[#allocation2 + $0x80] sm:$0xff]  ;;  %v1456_v13 = vld [vmem:[%s4651_s28 + $0x7d0] sm:$0xff] }
 0x12f   : > { %v1455_v56 = vld [vmem:[%s4651_s28 + $0x7c8] sm:$0xff]  ;;  %v1239_v2 = vmul.f32 %v1167_v54, %v1167_v54  ;;  %1884 = vst [vmem:[#allocation2 + $0x1e8] sm:$0xff] %v1812_v57  ;;  %v1168_v11 = vsub.f32 %v1024_v5, %v1096_v6  ;;  %v951_v15 = vadd.f32 %v879_v1, %v591_v59  ;;  %v592_v16 = vmul.f32 %v520_v3, %v520_v3  ;;  %v377_v18 = vld [vmem:[%s4645_s19 + $0x118] sm:$0xff]  ;;  %v450_v40 = vld [vmem:[%s4651_s28 + $0x120] sm:$0xff] }
 0x130   : > { %v1598_v52 = vmul.f32 %v1526_v39, %v1526_v39  ;;  %v1527_v60 = vsub.f32 %v1383_v55, %v1455_v56  ;;  %v1310_v7 = vadd.f32 %v1238_v45, %v950_v58  ;;  %v1813_v14 = vadd.f32 %v1741_v51, %v1669_v0  ;;  %v449_v19 = vld [vmem:[%s4651_s28 + $0x118] sm:$0xff]  ;;  %v378_v39 = vld [vmem:[%s4645_s19 + $0x120] sm:$0xff]  ;;  %v451_v61 = vld [vmem:[%s4651_s28 + $0x128] sm:$0xff] }
 0x131   : > { %v1528_v17 = vsub.f32 %v1384_v12, %v1456_v13  ;;  %v665_v20 = vld [vmem:[%s4645_s19 + $0x358] sm:$0xff]  ;;  %v880_v22 = vmul.f32 %v808_v10, %v808_v10  ;;  %v1240_v23 = vmul.f32 %v1168_v11, %v1168_v11  ;;  %v521_v24 = vsub.f32 %v377_v18, %v449_v19  ;;  %v666_v41 = vld [vmem:[%s4645_s19 + $0x360] sm:$0xff]  ;;  %v667_v62 = vld [vmem:[%s4645_s19 + $0x368] sm:$0xff] }
 0x132   : > { %v1599_v9 = vmul.f32 %v1527_v60, %v1527_v60  ;;  %v1670_v21 = vadd.f32 %v1598_v52, %v1310_v7  ;;  %v737_v25 = vld [vmem:[%s4651_s28 + $0x358] sm:$0xff]  ;;  %1885 = vst [vmem:[#allocation2 + $0x1c8] sm:$0xff] %v1813_v14  ;;  %v1311_v28 = vadd.f32 %v1239_v2, %v951_v15  ;;  %v522_v45 = vsub.f32 %v378_v39, %v450_v40  ;;  %v738_v46 = vld [vmem:[%s4651_s28 + $0x360] sm:$0xff]  ;;  %v379_v60 = vld [vmem:[%s4645_s19 + $0x128] sm:$0xff] }
 0x133   : > { %v1025_v26 = vld [vmem:[%s4645_s19 + $0x598] sm:$0xff]  ;;  %v1600_v30 = vmul.f32 %v1528_v17, %v1528_v17  ;;  %v809_v31 = vsub.f32 %v665_v20, %v737_v25  ;;  %v952_v36 = vadd.f32 %v880_v22, %v592_v16  ;;  %v593_v37 = vmul.f32 %v521_v24, %v521_v24  ;;  %v1026_v47 = vld [vmem:[%s4645_s19 + $0x5a0] sm:$0xff]  ;;  %v739_v3 = vld [vmem:[%s4651_s28 + $0x368] sm:$0xff] }
 0x134   : > { %v1097_v27 = vld [vmem:[%s4651_s28 + $0x598] sm:$0xff]  ;;  %v1814_v35 = vadd.f32 %v1742_v8, %v1670_v21  ;;  %v1671_v42 = vadd.f32 %v1599_v9, %v1311_v28  ;;  %v1098_v48 = vld [vmem:[%s4651_s28 + $0x5a0] sm:$0xff]  ;;  %v810_v52 = vsub.f32 %v666_v41, %v738_v46  ;;  %v594_v58 = vmul.f32 %v522_v45, %v522_v45  ;;  %v1027_v4 = vld [vmem:[%s4645_s19 + $0x5a8] sm:$0xff] }
 0x135   : > { %v1743_v29 = vld [vmem:[#allocation2 + $0xf8] sm:$0xff]  ;;  %v1169_v32 = vsub.f32 %v1025_v26, %v1097_v27  ;;  %v881_v43 = vmul.f32 %v809_v31, %v809_v31  ;;  %v1312_v49 = vadd.f32 %v1240_v23, %v952_v36  ;;  %v1170_v53 = vsub.f32 %v1026_v47, %v1098_v48  ;;  %v1386_v54 = vld [vmem:[%s4645_s19 + $0x7e0] sm:$0xff]  ;;  %v1099_v5 = vld [vmem:[%s4651_s28 + $0x5a8] sm:$0xff] }
 0x136   : > { %v1385_v33 = vld [vmem:[%s4645_s19 + $0x7d8] sm:$0xff]  ;;  %1886 = vst [vmem:[#allocation2 + $0x80] sm:$0xff] %v1814_v35  ;;  %v1458_v55 = vld [vmem:[%s4651_s28 + $0x7e0] sm:$0xff]  ;;  %v1815_v56 = vadd.f32 %v1743_v29, %v1671_v42  ;;  %v882_v0 = vmul.f32 %v810_v52, %v810_v52  ;;  %v523_v2 = vsub.f32 %v379_v60, %v451_v61  ;;  %v1745_v7 = vld [vmem:[#allocation2 + $0x170] sm:$0xff]  ;;  %v811_v9 = vsub.f32 %v667_v62, %v739_v3 }
 0x137   : > { %v1457_v34 = vld [vmem:[%s4651_s28 + $0x7d8] sm:$0xff]  ;;  %v1241_v44 = vmul.f32 %v1169_v32, %v1169_v32  ;;  %v953_v57 = vadd.f32 %v881_v43, %v593_v37  ;;  %v1530_v59 = vsub.f32 %v1386_v54, %v1458_v55  ;;  %v1672_v63 = vadd.f32 %v1600_v30, %v1312_v49  ;;  %v1387_v11 = vld [vmem:[%s4645_s19 + $0x7e8] sm:$0xff]  ;;  %v380_v17 = vld [vmem:[%s4645_s19 + $0x130] sm:$0xff] }
 0x138   : > { %v1529_v38 = vsub.f32 %v1385_v33, %v1457_v34  ;;  %v1744_v50 = vld [vmem:[#allocation2 + $0x78] sm:$0xff]  ;;  %v1242_v1 = vmul.f32 %v1170_v53, %v1170_v53  ;;  %1887 = vst [vmem:[#allocation2 + $0xf8] sm:$0xff] %v1815_v56  ;;  %v1171_v10 = vsub.f32 %v1027_v4, %v1099_v5  ;;  %v1459_v12 = vld [vmem:[%s4651_s28 + $0x7e8] sm:$0xff]  ;;  %v954_v14 = vadd.f32 %v882_v0, %v594_v58  ;;  %v452_v18 = vld [vmem:[%s4651_s28 + $0x130] sm:$0xff] }
 0x139   : > { %v1313_v6 = vadd.f32 %v1241_v44, %v953_v57  ;;  %v1602_v8 = vmul.f32 %v1530_v59, %v1530_v59  ;;  %v1816_v13 = vadd.f32 %v1744_v50, %v1672_v63  ;;  %v595_v15 = vmul.f32 %v523_v2, %v523_v2  ;;  %v668_v19 = vld [vmem:[%s4645_s19 + $0x370] sm:$0xff]  ;;  %v1746_v28 = vld [vmem:[#allocation2 + $0x198] sm:$0xff]  ;;  %v1747_v49 = vld [vmem:[#allocation2 + $0xe0] sm:$0xff] }
 0x13a   : > { %v1601_v51 = vmul.f32 %v1529_v38, %v1529_v38  ;;  %v1531_v16 = vsub.f32 %v1387_v11, %v1459_v12  ;;  %v883_v21 = vmul.f32 %v811_v9, %v811_v9  ;;  %v1243_v22 = vmul.f32 %v1171_v10, %v1171_v10  ;;  %v740_v24 = vld [vmem:[%s4651_s28 + $0x370] sm:$0xff]  ;;  %v381_v38 = vld [vmem:[%s4645_s19 + $0x138] sm:$0xff]  ;;  %v382_v59 = vld [vmem:[%s4645_s19 + $0x140] sm:$0xff] }
 0x13b   : > { %v524_v23 = vsub.f32 %v380_v17, %v452_v18  ;;  %v1028_v25 = vld [vmem:[%s4645_s19 + $0x5b0] sm:$0xff]  ;;  %1888 = vst [vmem:[#allocation2 + $0x78] sm:$0xff] %v1816_v13  ;;  %v1314_v27 = vadd.f32 %v1242_v1, %v954_v14  ;;  %v812_v30 = vsub.f32 %v668_v19, %v740_v24  ;;  %v453_v39 = vld [vmem:[%s4651_s28 + $0x138] sm:$0xff]  ;;  %v454_v60 = vld [vmem:[%s4651_s28 + $0x140] sm:$0xff] }
 0x13c   : > { %v1673_v20 = vadd.f32 %v1601_v51, %v1313_v6  ;;  %v1100_v26 = vld [vmem:[%s4651_s28 + $0x5b0] sm:$0xff]  ;;  %v1603_v29 = vmul.f32 %v1531_v16, %v1531_v16  ;;  %v955_v35 = vadd.f32 %v883_v21, %v595_v15  ;;  %v669_v40 = vld [vmem:[%s4645_s19 + $0x378] sm:$0xff]  ;;  %v525_v44 = vsub.f32 %v381_v38, %v453_v39  ;;  %v670_v61 = vld [vmem:[%s4645_s19 + $0x380] sm:$0xff] }
 0x13d   : > { %v1172_v31 = vsub.f32 %v1028_v25, %v1100_v26  ;;  %v1388_v32 = vld [vmem:[%s4645_s19 + $0x7f0] sm:$0xff]  ;;  %v596_v36 = vmul.f32 %v524_v23, %v524_v23  ;;  %v1674_v41 = vadd.f32 %v1602_v8, %v1314_v27  ;;  %v884_v42 = vmul.f32 %v812_v30, %v812_v30  ;;  %v741_v45 = vld [vmem:[%s4651_s28 + $0x378] sm:$0xff]  ;;  %v742_v2 = vld [vmem:[%s4651_s28 + $0x380] sm:$0xff] }
 0x13e   : > { %v1460_v33 = vld [vmem:[%s4651_s28 + $0x7f0] sm:$0xff]  ;;  %v1817_v34 = vadd.f32 %v1745_v7, %v1673_v20  ;;  %v1029_v46 = vld [vmem:[%s4645_s19 + $0x5b8] sm:$0xff]  ;;  %v1315_v48 = vadd.f32 %v1243_v22, %v955_v35  ;;  %v813_v51 = vsub.f32 %v669_v40, %v741_v45  ;;  %v597_v57 = vmul.f32 %v525_v44, %v525_v44  ;;  %v1030_v3 = vld [vmem:[%s4645_s19 + $0x5c0] sm:$0xff] }
 0x13f   : > { %v1532_v37 = vsub.f32 %v1388_v32, %v1460_v33  ;;  %v1244_v43 = vmul.f32 %v1172_v31, %v1172_v31  ;;  %v1101_v47 = vld [vmem:[%s4651_s28 + $0x5b8] sm:$0xff]  ;;  %v1818_v55 = vadd.f32 %v1746_v28, %v1674_v41  ;;  %v956_v56 = vadd.f32 %v884_v42, %v596_v36  ;;  %v1102_v4 = vld [vmem:[%s4651_s28 + $0x5c0] sm:$0xff]  ;;  %v383_v16 = vld [vmem:[%s4645_s19 + $0x148] sm:$0xff] }
 0x140   : > { %1889 = vst [vmem:[#allocation2 + $0x170] sm:$0xff] %v1817_v34  ;;  %v1173_v52 = vsub.f32 %v1029_v46, %v1101_v47  ;;  %v1389_v53 = vld [vmem:[%s4645_s19 + $0x7f8] sm:$0xff]  ;;  %v1675_v62 = vadd.f32 %v1603_v29, %v1315_v48  ;;  %v885_v63 = vmul.f32 %v813_v51, %v813_v51  ;;  %v526_v1 = vsub.f32 %v382_v59, %v454_v60  ;;  %v1748_v6 = vld [vmem:[#allocation2 + $0x1e0] sm:$0xff]  ;;  %v455_v17 = vld [vmem:[%s4651_s28 + $0x148] sm:$0xff] }
 0x141   : > { %v1604_v50 = vmul.f32 %v1532_v37, %v1532_v37  ;;  %v1461_v54 = vld [vmem:[%s4651_s28 + $0x7f8] sm:$0xff]  ;;  %1890 = vst [vmem:[#allocation2 + $0x198] sm:$0xff] %v1818_v55  ;;  %v1316_v5 = vadd.f32 %v1244_v43, %v956_v56  ;;  %v814_v8 = vsub.f32 %v670_v61, %v742_v2  ;;  %v1174_v9 = vsub.f32 %v1030_v3, %v1102_v4  ;;  %v1390_v10 = vld [vmem:[%s4645_s19 + $0x800] sm:$0xff]  ;;  %v671_v18 = vld [vmem:[%s4645_s19 + $0x388] sm:$0xff] }
 0x142   : > { %v1533_v58 = vsub.f32 %v1389_v53, %v1461_v54  ;;  %v1245_v0 = vmul.f32 %v1173_v52, %v1173_v52  ;;  %v1462_v11 = vld [vmem:[%s4651_s28 + $0x800] sm:$0xff]  ;;  %v1819_v12 = vadd.f32 %v1747_v49, %v1675_v62  ;;  %v957_v13 = vadd.f32 %v885_v63, %v597_v57  ;;  %v743_v23 = vld [vmem:[%s4651_s28 + $0x388] sm:$0xff]  ;;  %v1749_v27 = vld [vmem:[#allocation2 + $0x1f0] sm:$0xff] }
 0x143   : > { %v598_v14 = vmul.f32 %v526_v1, %v526_v1  ;;  %v1534_v15 = vsub.f32 %v1390_v10, %v1462_v11  ;;  %v1676_v19 = vadd.f32 %v1604_v50, %v1316_v5  ;;  %v886_v20 = vmul.f32 %v814_v8, %v814_v8  ;;  %v1031_v24 = vld [vmem:[%s4645_s19 + $0x5c8] sm:$0xff]  ;;  %v384_v37 = vld [vmem:[%s4645_s19 + $0x150] sm:$0xff]  ;;  %v457_v59 = vld [vmem:[%s4651_s28 + $0x158] sm:$0xff] }
 0x144   : > { %v1605_v7 = vmul.f32 %v1533_v58, %v1533_v58  ;;  %v1246_v21 = vmul.f32 %v1174_v9, %v1174_v9  ;;  %v527_v22 = vsub.f32 %v383_v16, %v455_v17  ;;  %v1103_v25 = vld [vmem:[%s4651_s28 + $0x5c8] sm:$0xff]  ;;  %1891 = vst [vmem:[#allocation2 + $0xe0] sm:$0xff] %v1819_v12  ;;  %v1317_v26 = vadd.f32 %v1245_v0, %v957_v13  ;;  %v456_v38 = vld [vmem:[%s4651_s28 + $0x150] sm:$0xff]  ;;  %v385_v58 = vld [vmem:[%s4645_s19 + $0x158] sm:$0xff] }
 0x145   : > { %v1606_v28 = vmul.f32 %v1534_v15, %v1534_v15  ;;  %v815_v29 = vsub.f32 %v671_v18, %v743_v23  ;;  %v1175_v30 = vsub.f32 %v1031_v24, %v1103_v25  ;;  %v1391_v31 = vld [vmem:[%s4645_s19 + $0x808] sm:$0xff]  ;;  %v1820_v33 = vadd.f32 %v1748_v6, %v1676_v19  ;;  %v672_v39 = vld [vmem:[%s4645_s19 + $0x390] sm:$0xff]  ;;  %v673_v60 = vld [vmem:[%s4645_s19 + $0x398] sm:$0xff] }
 0x146   : > { %v1463_v32 = vld [vmem:[%s4651_s28 + $0x808] sm:$0xff]  ;;  %v958_v34 = vadd.f32 %v886_v20, %v598_v14  ;;  %v599_v35 = vmul.f32 %v527_v22, %v527_v22  ;;  %v1677_v40 = vadd.f32 %v1605_v7, %v1317_v26  ;;  %v528_v43 = vsub.f32 %v384_v37, %v456_v38  ;;  %v744_v44 = vld [vmem:[%s4651_s28 + $0x390] sm:$0xff]  ;;  %v745_v1 = vld [vmem:[%s4651_s28 + $0x398] sm:$0xff] }
 0x147   : > { %v1535_v36 = vsub.f32 %v1391_v31, %v1463_v32  ;;  %v887_v41 = vmul.f32 %v815_v29, %v815_v29  ;;  %v1247_v42 = vmul.f32 %v1175_v30, %v1175_v30  ;;  %v1032_v45 = vld [vmem:[%s4645_s19 + $0x5d0] sm:$0xff]  ;;  %1892 = vst [vmem:[#allocation2 + $0x1e0] sm:$0xff] %v1820_v33  ;;  %v1750_v48 = vld [vmem:[#allocation2 + $0x48] sm:$0xff]  ;;  %v816_v50 = vsub.f32 %v672_v39, %v744_v44  ;;  %v1033_v2 = vld [vmem:[%s4645_s19 + $0x5d8] sm:$0xff] }
 0x148   : > { %v1104_v46 = vld [vmem:[%s4651_s28 + $0x5d0] sm:$0xff]  ;;  %v1318_v47 = vadd.f32 %v1246_v21, %v958_v34  ;;  %v1821_v54 = vadd.f32 %v1749_v27, %v1677_v40  ;;  %v600_v56 = vmul.f32 %v528_v43, %v528_v43  ;;  %v529_v0 = vsub.f32 %v385_v58, %v457_v59  ;;  %v1105_v3 = vld [vmem:[%s4651_s28 + $0x5d8] sm:$0xff]  ;;  %v386_v15 = vld [vmem:[%s4645_s19 + $0x160] sm:$0xff] }
 0x149   : > { %v1607_v49 = vmul.f32 %v1535_v36, %v1535_v36  ;;  %v1176_v51 = vsub.f32 %v1032_v45, %v1104_v46  ;;  %v1392_v52 = vld [vmem:[%s4645_s19 + $0x810] sm:$0xff]  ;;  %v959_v55 = vadd.f32 %v887_v41, %v599_v35  ;;  %v888_v62 = vmul.f32 %v816_v50, %v816_v50  ;;  %v1751_v5 = vld [vmem:[#allocation2 + $0x98] sm:$0xff]  ;;  %v458_v16 = vld [vmem:[%s4651_s28 + $0x160] sm:$0xff] }
 0x14a   : > { %v1464_v53 = vld [vmem:[%s4651_s28 + $0x810] sm:$0xff]  ;;  %v1678_v61 = vadd.f32 %v1606_v28, %v1318_v47  ;;  %1893 = vst [vmem:[#allocation2 + $0x1f0] sm:$0xff] %v1821_v54  ;;  %v817_v7 = vsub.f32 %v673_v60, %v745_v1  ;;  %v1177_v8 = vsub.f32 %v1033_v2, %v1105_v3  ;;  %v1393_v9 = vld [vmem:[%s4645_s19 + $0x818] sm:$0xff]  ;;  %v601_v13 = vmul.f32 %v529_v0, %v529_v0  ;;  %v674_v17 = vld [vmem:[%s4645_s19 + $0x3a0] sm:$0xff] }
 0x14b   : > { %v1536_v57 = vsub.f32 %v1392_v52, %v1464_v53  ;;  %v1248_v63 = vmul.f32 %v1176_v51, %v1176_v51  ;;  %v1319_v4 = vadd.f32 %v1247_v42, %v959_v55  ;;  %v1465_v10 = vld [vmem:[%s4651_s28 + $0x818] sm:$0xff]  ;;  %v960_v12 = vadd.f32 %v888_v62, %v600_v56  ;;  %v746_v22 = vld [vmem:[%s4651_s28 + $0x3a0] sm:$0xff]  ;;  %v387_v36 = vld [vmem:[%s4645_s19 + $0x168] sm:$0xff] }
 0x14c   : > { %v1822_v11 = vadd.f32 %v1750_v48, %v1678_v61  ;;  %v1537_v14 = vsub.f32 %v1393_v9, %v1465_v10  ;;  %v889_v19 = vmul.f32 %v817_v7, %v817_v7  ;;  %v1249_v20 = vmul.f32 %v1177_v8, %v1177_v8  ;;  %v1034_v23 = vld [vmem:[%s4645_s19 + $0x5e0] sm:$0xff]  ;;  %v1752_v26 = vld [vmem:[#allocation2 + $0x238] sm:$0xff]  ;;  %v459_v37 = vld [vmem:[%s4651_s28 + $0x168] sm:$0xff] }
 0x14d   : > { %v1608_v6 = vmul.f32 %v1536_v57, %v1536_v57  ;;  %v1679_v18 = vadd.f32 %v1607_v49, %v1319_v4  ;;  %v530_v21 = vsub.f32 %v386_v15, %v458_v16  ;;  %v1106_v24 = vld [vmem:[%s4651_s28 + $0x5e0] sm:$0xff]  ;;  %v1320_v25 = vadd.f32 %v1248_v63, %v960_v12  ;;  %v675_v38 = vld [vmem:[%s4645_s19 + $0x3a8] sm:$0xff]  ;;  %v388_v57 = vld [vmem:[%s4645_s19 + $0x170] sm:$0xff] }
 0x14e   : > { %1894 = vst [vmem:[#allocation2 + $0x48] sm:$0xff] %v1822_v11  ;;  %v1609_v27 = vmul.f32 %v1537_v14, %v1537_v14  ;;  %v818_v28 = vsub.f32 %v674_v17, %v746_v22  ;;  %v1178_v29 = vsub.f32 %v1034_v23, %v1106_v24  ;;  %v1394_v30 = vld [vmem:[%s4645_s19 + $0x820] sm:$0xff]  ;;  %v961_v33 = vadd.f32 %v889_v19, %v601_v13  ;;  %v747_v43 = vld [vmem:[%s4651_s28 + $0x3a8] sm:$0xff]  ;;  %v460_v58 = vld [vmem:[%s4651_s28 + $0x170] sm:$0xff] }
 0x14f   : > { %v1466_v31 = vld [vmem:[%s4651_s28 + $0x820] sm:$0xff]  ;;  %v1823_v32 = vadd.f32 %v1751_v5, %v1679_v18  ;;  %v602_v34 = vmul.f32 %v530_v21, %v530_v21  ;;  %v1680_v39 = vadd.f32 %v1608_v6, %v1320_v25  ;;  %v531_v42 = vsub.f32 %v387_v36, %v459_v37  ;;  %v1035_v44 = vld [vmem:[%s4645_s19 + $0x5e8] sm:$0xff]  ;;  %v676_v59 = vld [vmem:[%s4645_s19 + $0x3b0] sm:$0xff] }
 0x150   : > { %v1538_v35 = vsub.f32 %v1394_v30, %v1466_v31  ;;  %v890_v40 = vmul.f32 %v818_v28, %v818_v28  ;;  %v1250_v41 = vmul.f32 %v1178_v29, %v1178_v29  ;;  %v1107_v45 = vld [vmem:[%s4651_s28 + $0x5e8] sm:$0xff]  ;;  %v1321_v46 = vadd.f32 %v1249_v20, %v961_v33  ;;  %v1753_v47 = vld [vmem:[#allocation2 + $0x160] sm:$0xff]  ;;  %v748_v0 = vld [vmem:[%s4651_s28 + $0x3b0] sm:$0xff] }
 0x151   : > { %1895 = vst [vmem:[#allocation2 + $0x98] sm:$0xff] %v1823_v32  ;;  %v819_v49 = vsub.f32 %v675_v38, %v747_v43  ;;  %v1179_v50 = vsub.f32 %v1035_v44, %v1107_v45  ;;  %v1395_v51 = vld [vmem:[%s4645_s19 + $0x828] sm:$0xff]  ;;  %v1824_v53 = vadd.f32 %v1752_v26, %v1680_v39  ;;  %v603_v55 = vmul.f32 %v531_v42, %v531_v42  ;;  %v1036_v1 = vld [vmem:[%s4645_s19 + $0x5f0] sm:$0xff]  ;;  %v389_v14 = vld [vmem:[%s4645_s19 + $0x178] sm:$0xff] }
 0x152   : > { %v1610_v48 = vmul.f32 %v1538_v35, %v1538_v35  ;;  %v1467_v52 = vld [vmem:[%s4651_s28 + $0x828] sm:$0xff]  ;;  %v962_v54 = vadd.f32 %v890_v40, %v602_v34  ;;  %v1681_v60 = vadd.f32 %v1609_v27, %v1321_v46  ;;  %v532_v63 = vsub.f32 %v388_v57, %v460_v58  ;;  %v1108_v2 = vld [vmem:[%s4651_s28 + $0x5f0] sm:$0xff]  ;;  %v461_v15 = vld [vmem:[%s4651_s28 + $0x178] sm:$0xff] }
 0x153   : > { %v1539_v56 = vsub.f32 %v1395_v51, %v1467_v52  ;;  %v891_v61 = vmul.f32 %v819_v49, %v819_v49  ;;  %v1251_v62 = vmul.f32 %v1179_v50, %v1179_v50  ;;  %1896 = vst [vmem:[#allocation2 + $0x238] sm:$0xff] %v1824_v53  ;;  %v1754_v4 = vld [vmem:[#allocation2 + $0x50] sm:$0xff]  ;;  %v820_v6 = vsub.f32 %v676_v59, %v748_v0  ;;  %v677_v16 = vld [vmem:[%s4645_s19 + $0x3b8] sm:$0xff]  ;;  %v1755_v25 = vld [vmem:[#allocation2 + $0x100] sm:$0xff] }
 0x154   : > { %v1322_v3 = vadd.f32 %v1250_v41, %v962_v54  ;;  %v1180_v7 = vsub.f32 %v1036_v1, %v1108_v2  ;;  %v1396_v8 = vld [vmem:[%s4645_s19 + $0x830] sm:$0xff]  ;;  %v1825_v10 = vadd.f32 %v1753_v47, %v1681_v60  ;;  %v604_v12 = vmul.f32 %v532_v63, %v532_v63  ;;  %v749_v21 = vld [vmem:[%s4651_s28 + $0x3b8] sm:$0xff]  ;;  %v390_v35 = vld [vmem:[%s4645_s19 + $0x180] sm:$0xff] }
 0x155   : > { %v1611_v5 = vmul.f32 %v1539_v56, %v1539_v56  ;;  %v1468_v9 = vld [vmem:[%s4651_s28 + $0x830] sm:$0xff]  ;;  %v963_v11 = vadd.f32 %v891_v61, %v603_v55  ;;  %v892_v18 = vmul.f32 %v820_v6, %v820_v6  ;;  %v533_v20 = vsub.f32 %v389_v14, %v461_v15  ;;  %v1037_v22 = vld [vmem:[%s4645_s19 + $0x5f8] sm:$0xff]  ;;  %v462_v36 = vld [vmem:[%s4651_s28 + $0x180] sm:$0xff] }
 0x156   : > { %v1540_v13 = vsub.f32 %v1396_v8, %v1468_v9  ;;  %v1682_v17 = vadd.f32 %v1610_v48, %v1322_v3  ;;  %v1252_v19 = vmul.f32 %v1180_v7, %v1180_v7  ;;  %v1109_v23 = vld [vmem:[%s4651_s28 + $0x5f8] sm:$0xff]  ;;  %1897 = vst [vmem:[#allocation2 + $0x160] sm:$0xff] %v1825_v10  ;;  %v821_v27 = vsub.f32 %v677_v16, %v749_v21  ;;  %v678_v37 = vld [vmem:[%s4645_s19 + $0x3c0] sm:$0xff]  ;;  %v1756_v46 = vld [vmem:[#allocation2 + $0x30] sm:$0xff] }
 0x157   : > { %v1323_v24 = vadd.f32 %v1251_v62, %v963_v11  ;;  %v1181_v28 = vsub.f32 %v1037_v22, %v1109_v23  ;;  %v1397_v29 = vld [vmem:[%s4645_s19 + $0x838] sm:$0xff]  ;;  %v964_v32 = vadd.f32 %v892_v18, %v604_v12  ;;  %v605_v33 = vmul.f32 %v533_v20, %v533_v20  ;;  %v750_v42 = vld [vmem:[%s4651_s28 + $0x3c0] sm:$0xff]  ;;  %v391_v56 = vld [vmem:[%s4645_s19 + $0x188] sm:$0xff] }
 0x158   : > { %v1612_v26 = vmul.f32 %v1540_v13, %v1540_v13  ;;  %v1469_v30 = vld [vmem:[%s4651_s28 + $0x838] sm:$0xff]  ;;  %v1826_v31 = vadd.f32 %v1754_v4, %v1682_v17  ;;  %v893_v39 = vmul.f32 %v821_v27, %v821_v27  ;;  %v534_v41 = vsub.f32 %v390_v35, %v462_v36  ;;  %v1038_v43 = vld [vmem:[%s4645_s19 + $0x600] sm:$0xff]  ;;  %v463_v57 = vld [vmem:[%s4651_s28 + $0x188] sm:$0xff] }
 0x159   : > { %v1541_v34 = vsub.f32 %v1397_v29, %v1469_v30  ;;  %v1683_v38 = vadd.f32 %v1611_v5, %v1323_v24  ;;  %v1253_v40 = vmul.f32 %v1181_v28, %v1181_v28  ;;  %v1110_v44 = vld [vmem:[%s4651_s28 + $0x600] sm:$0xff]  ;;  %v1324_v45 = vadd.f32 %v1252_v19, %v964_v32  ;;  %v679_v58 = vld [vmem:[%s4645_s19 + $0x3c8] sm:$0xff]  ;;  %v1757_v3 = vld [vmem:[#allocation2 + $0x1b0] sm:$0xff] }
 0x15a   : > { %1898 = vst [vmem:[#allocation2 + $0x50] sm:$0xff] %v1826_v31  ;;  %v822_v48 = vsub.f32 %v678_v37, %v750_v42  ;;  %v1182_v49 = vsub.f32 %v1038_v43, %v1110_v44  ;;  %v1398_v50 = vld [vmem:[%s4645_s19 + $0x840] sm:$0xff]  ;;  %v965_v53 = vadd.f32 %v893_v39, %v605_v33  ;;  %v606_v54 = vmul.f32 %v534_v41, %v534_v41  ;;  %v751_v63 = vld [vmem:[%s4651_s28 + $0x3c8] sm:$0xff]  ;;  %v392_v13 = vld [vmem:[%s4645_s19 + $0x190] sm:$0xff] }
 0x15b   : > { %v1613_v47 = vmul.f32 %v1541_v34, %v1541_v34  ;;  %v1470_v51 = vld [vmem:[%s4651_s28 + $0x840] sm:$0xff]  ;;  %v1827_v52 = vadd.f32 %v1755_v25, %v1683_v38  ;;  %v1684_v59 = vadd.f32 %v1612_v26, %v1324_v45  ;;  %v535_v62 = vsub.f32 %v391_v56, %v463_v57  ;;  %v1039_v0 = vld [vmem:[%s4645_s19 + $0x608] sm:$0xff]  ;;  %v464_v14 = vld [vmem:[%s4651_s28 + $0x190] sm:$0xff] }
 0x15c   : > { %v1542_v55 = vsub.f32 %v1398_v50, %v1470_v51  ;;  %v894_v60 = vmul.f32 %v822_v48, %v822_v48  ;;  %v1254_v61 = vmul.f32 %v1182_v49, %v1182_v49  ;;  %v1111_v1 = vld [vmem:[%s4651_s28 + $0x608] sm:$0xff]  ;;  %v1325_v2 = vadd.f32 %v1253_v40, %v965_v53  ;;  %v680_v15 = vld [vmem:[%s4645_s19 + $0x3d0] sm:$0xff]  ;;  %v393_v34 = vld [vmem:[%s4645_s19 + $0x198] sm:$0xff] }
 0x15d   : > { %1899 = vst [vmem:[#allocation2 + $0x100] sm:$0xff] %v1827_v52  ;;  %v823_v5 = vsub.f32 %v679_v58, %v751_v63  ;;  %v1183_v6 = vsub.f32 %v1039_v0, %v1111_v1  ;;  %v1399_v7 = vld [vmem:[%s4645_s19 + $0x848] sm:$0xff]  ;;  %v1828_v9 = vadd.f32 %v1756_v46, %v1684_v59  ;;  %v607_v11 = vmul.f32 %v535_v62, %v535_v62  ;;  %v752_v20 = vld [vmem:[%s4651_s28 + $0x3d0] sm:$0xff]  ;;  %v465_v35 = vld [vmem:[%s4651_s28 + $0x198] sm:$0xff] }
 0x15e   : > { %v1614_v4 = vmul.f32 %v1542_v55, %v1542_v55  ;;  %v1471_v8 = vld [vmem:[%s4651_s28 + $0x848] sm:$0xff]  ;;  %v966_v10 = vadd.f32 %v894_v60, %v606_v54  ;;  %v1685_v16 = vadd.f32 %v1613_v47, %v1325_v2  ;;  %v536_v19 = vsub.f32 %v392_v13, %v464_v14  ;;  %v1040_v21 = vld [vmem:[%s4645_s19 + $0x610] sm:$0xff]  ;;  %v681_v36 = vld [vmem:[%s4645_s19 + $0x3d8] sm:$0xff] }
 0x15f   : > { %v1543_v12 = vsub.f32 %v1399_v7, %v1471_v8  ;;  %v895_v17 = vmul.f32 %v823_v5, %v823_v5  ;;  %v1255_v18 = vmul.f32 %v1183_v6, %v1183_v6  ;;  %v1112_v22 = vld [vmem:[%s4651_s28 + $0x610] sm:$0xff]  ;;  %1900 = vst [vmem:[#allocation2 + $0x30] sm:$0xff] %v1828_v9  ;;  %v824_v26 = vsub.f32 %v680_v15, %v752_v20  ;;  %v753_v41 = vld [vmem:[%s4651_s28 + $0x3d8] sm:$0xff]  ;;  %v394_v55 = vld [vmem:[%s4645_s19 + $0x1a0] sm:$0xff] }
 0x160   : > { %v1326_v23 = vadd.f32 %v1254_v61, %v966_v10  ;;  %v1758_v24 = vld [vmem:[#allocation2 + $0x90] sm:$0xff]  ;;  %v1184_v27 = vsub.f32 %v1040_v21, %v1112_v22  ;;  %v1829_v30 = vadd.f32 %v1757_v3, %v1685_v16  ;;  %v608_v32 = vmul.f32 %v536_v19, %v536_v19  ;;  %v1041_v42 = vld [vmem:[%s4645_s19 + $0x618] sm:$0xff]  ;;  %v466_v56 = vld [vmem:[%s4651_s28 + $0x1a0] sm:$0xff] }
 0x161   : > { %v1615_v25 = vmul.f32 %v1543_v12, %v1543_v12  ;;  %v1400_v28 = vld [vmem:[%s4645_s19 + $0x850] sm:$0xff]  ;;  %v967_v31 = vadd.f32 %v895_v17, %v607_v11  ;;  %v896_v38 = vmul.f32 %v824_v26, %v824_v26  ;;  %v537_v40 = vsub.f32 %v393_v34, %v465_v35  ;;  %v1113_v43 = vld [vmem:[%s4651_s28 + $0x618] sm:$0xff]  ;;  %v682_v57 = vld [vmem:[%s4645_s19 + $0x3e0] sm:$0xff] }
 0x162   : > { %v1472_v29 = vld [vmem:[%s4651_s28 + $0x850] sm:$0xff]  ;;  %v1686_v37 = vadd.f32 %v1614_v4, %v1326_v23  ;;  %v1256_v39 = vmul.f32 %v1184_v27, %v1184_v27  ;;  %1901 = vst [vmem:[#allocation2 + $0x1b0] sm:$0xff] %v1829_v30  ;;  %v825_v47 = vsub.f32 %v681_v36, %v753_v41  ;;  %v1185_v48 = vsub.f32 %v1041_v42, %v1113_v43  ;;  %v1401_v49 = vld [vmem:[%s4645_s19 + $0x858] sm:$0xff]  ;;  %v754_v62 = vld [vmem:[%s4651_s28 + $0x3e0] sm:$0xff] }
 0x163   : > { %v1544_v33 = vsub.f32 %v1400_v28, %v1472_v29  ;;  %v1327_v44 = vadd.f32 %v1255_v18, %v967_v31  ;;  %v1759_v45 = vld [vmem:[#allocation2 + $0x130] sm:$0xff]  ;;  %v1473_v50 = vld [vmem:[%s4651_s28 + $0x858] sm:$0xff]  ;;  %v968_v52 = vadd.f32 %v896_v38, %v608_v32  ;;  %v609_v53 = vmul.f32 %v537_v40, %v537_v40  ;;  %v1042_v63 = vld [vmem:[%s4645_s19 + $0x620] sm:$0xff] }
 0x164   : > { %v1830_v51 = vadd.f32 %v1758_v24, %v1686_v37  ;;  %v1545_v54 = vsub.f32 %v1401_v49, %v1473_v50  ;;  %v897_v59 = vmul.f32 %v825_v47, %v825_v47  ;;  %v1257_v60 = vmul.f32 %v1185_v48, %v1185_v48  ;;  %v1114_v0 = vld [vmem:[%s4651_s28 + $0x620] sm:$0xff]  ;;  %v1760_v2 = vld [vmem:[#allocation2 + $0x68] sm:$0xff]  ;;  %v1761_v23 = vld [vmem:[#allocation2 + $0x230] sm:$0xff] }
 0x165   : > { %v1616_v46 = vmul.f32 %v1544_v33, %v1544_v33  ;;  %v1687_v58 = vadd.f32 %v1615_v25, %v1327_v44  ;;  %v538_v61 = vsub.f32 %v394_v55, %v466_v56  ;;  %v1328_v1 = vadd.f32 %v1256_v39, %v968_v52  ;;  %v1402_v6 = vld [vmem:[%s4645_s19 + $0x860] sm:$0xff]  ;;  %v395_v12 = vld [vmem:[%s4645_s19 + $0x1a8] sm:$0xff]  ;;  %v396_v33 = vld [vmem:[%s4645_s19 + $0x1b0] sm:$0xff] }
 0x166   : > { %1902 = vst [vmem:[#allocation2 + $0x90] sm:$0xff] %v1830_v51  ;;  %v1617_v3 = vmul.f32 %v1545_v54, %v1545_v54  ;;  %v826_v4 = vsub.f32 %v682_v57, %v754_v62  ;;  %v1186_v5 = vsub.f32 %v1042_v63, %v1114_v0  ;;  %v1474_v7 = vld [vmem:[%s4651_s28 + $0x860] sm:$0xff]  ;;  %v969_v9 = vadd.f32 %v897_v59, %v609_v53  ;;  %v467_v13 = vld [vmem:[%s4651_s28 + $0x1a8] sm:$0xff]  ;;  %v468_v34 = vld [vmem:[%s4651_s28 + $0x1b0] sm:$0xff] }
 0x167   : > { %v1831_v8 = vadd.f32 %v1759_v45, %v1687_v58  ;;  %v610_v10 = vmul.f32 %v538_v61, %v538_v61  ;;  %v1546_v11 = vsub.f32 %v1402_v6, %v1474_v7  ;;  %v683_v14 = vld [vmem:[%s4645_s19 + $0x3e8] sm:$0xff]  ;;  %v1688_v15 = vadd.f32 %v1616_v46, %v1328_v1  ;;  %v684_v35 = vld [vmem:[%s4645_s19 + $0x3f0] sm:$0xff]  ;;  %v1762_v44 = vld [vmem:[#allocation2 + $0x1d8] sm:$0xff] }
 0x168   : > { %v898_v16 = vmul.f32 %v826_v4, %v826_v4  ;;  %v1258_v17 = vmul.f32 %v1186_v5, %v1186_v5  ;;  %v539_v18 = vsub.f32 %v395_v12, %v467_v13  ;;  %v755_v19 = vld [vmem:[%s4651_s28 + $0x3e8] sm:$0xff]  ;;  %v1329_v22 = vadd.f32 %v1257_v60, %v969_v9  ;;  %v756_v40 = vld [vmem:[%s4651_s28 + $0x3f0] sm:$0xff]  ;;  %v397_v54 = vld [vmem:[%s4645_s19 + $0x1b8] sm:$0xff] }
 0x169   : > { %v1043_v20 = vld [vmem:[%s4645_s19 + $0x628] sm:$0xff]  ;;  %1903 = vst [vmem:[#allocation2 + $0x130] sm:$0xff] %v1831_v8  ;;  %v1618_v24 = vmul.f32 %v1546_v11, %v1546_v11  ;;  %v827_v25 = vsub.f32 %v683_v14, %v755_v19  ;;  %v1832_v29 = vadd.f32 %v1760_v2, %v1688_v15  ;;  %v540_v39 = vsub.f32 %v396_v33, %v468_v34  ;;  %v1044_v41 = vld [vmem:[%s4645_s19 + $0x630] sm:$0xff]  ;;  %v469_v55 = vld [vmem:[%s4651_s28 + $0x1b8] sm:$0xff] }
 0x16a   : > { %v1115_v21 = vld [vmem:[%s4651_s28 + $0x628] sm:$0xff]  ;;  %v970_v30 = vadd.f32 %v898_v16, %v610_v10  ;;  %v611_v31 = vmul.f32 %v539_v18, %v539_v18  ;;  %v1689_v36 = vadd.f32 %v1617_v3, %v1329_v22  ;;  %v1116_v42 = vld [vmem:[%s4651_s28 + $0x630] sm:$0xff]  ;;  %v828_v46 = vsub.f32 %v684_v35, %v756_v40  ;;  %v685_v56 = vld [vmem:[%s4645_s19 + $0x3f8] sm:$0xff] }
 0x16b   : > { %v1187_v26 = vsub.f32 %v1043_v20, %v1115_v21  ;;  %v1403_v27 = vld [vmem:[%s4645_s19 + $0x868] sm:$0xff]  ;;  %v899_v37 = vmul.f32 %v827_v25, %v827_v25  ;;  %1904 = vst [vmem:[#allocation2 + $0x68] sm:$0xff] %v1832_v29  ;;  %v1188_v47 = vsub.f32 %v1044_v41, %v1116_v42  ;;  %v1404_v48 = vld [vmem:[%s4645_s19 + $0x870] sm:$0xff]  ;;  %v612_v52 = vmul.f32 %v540_v39, %v540_v39  ;;  %v757_v61 = vld [vmem:[%s4651_s28 + $0x3f8] sm:$0xff] }
 0x16c   : > { %v1475_v28 = vld [vmem:[%s4651_s28 + $0x868] sm:$0xff]  ;;  %v1330_v43 = vadd.f32 %v1258_v17, %v970_v30  ;;  %v1476_v49 = vld [vmem:[%s4651_s28 + $0x870] sm:$0xff]  ;;  %v1833_v50 = vadd.f32 %v1761_v23, %v1689_v36  ;;  %v900_v58 = vmul.f32 %v828_v46, %v828_v46  ;;  %v541_v60 = vsub.f32 %v397_v54, %v469_v55  ;;  %v1045_v62 = vld [vmem:[%s4645_s19 + $0x638] sm:$0xff] }
 0x16d   : > { %v1547_v32 = vsub.f32 %v1403_v27, %v1475_v28  ;;  %v1259_v38 = vmul.f32 %v1187_v26, %v1187_v26  ;;  %v971_v51 = vadd.f32 %v899_v37, %v611_v31  ;;  %v1548_v53 = vsub.f32 %v1404_v48, %v1476_v49  ;;  %v1117_v63 = vld [vmem:[%s4651_s28 + $0x638] sm:$0xff]  ;;  %v1763_v1 = vld [vmem:[#allocation2 + $0x228] sm:$0xff]  ;;  %v398_v11 = vld [vmem:[%s4645_s19 + $0x1c0] sm:$0xff] }
 0x16e   : > { %v1690_v57 = vadd.f32 %v1618_v24, %v1330_v43  ;;  %v1260_v59 = vmul.f32 %v1188_v47, %v1188_v47  ;;  %1905 = vst [vmem:[#allocation2 + $0x230] sm:$0xff] %v1833_v50  ;;  %v829_v3 = vsub.f32 %v685_v56, %v757_v61  ;;  %v1189_v4 = vsub.f32 %v1045_v62, %v1117_v63  ;;  %v1405_v5 = vld [vmem:[%s4645_s19 + $0x878] sm:$0xff]  ;;  %v470_v12 = vld [vmem:[%s4651_s28 + $0x1c0] sm:$0xff]  ;;  %v471_v33 = vld [vmem:[%s4651_s28 + $0x1c8] sm:$0xff] }
 0x16f   : > { %v1619_v45 = vmul.f32 %v1547_v32, %v1547_v32  ;;  %v1331_v0 = vadd.f32 %v1259_v38, %v971_v51  ;;  %v1620_v2 = vmul.f32 %v1548_v53, %v1548_v53  ;;  %v1477_v6 = vld [vmem:[%s4651_s28 + $0x878] sm:$0xff]  ;;  %v972_v8 = vadd.f32 %v900_v58, %v612_v52  ;;  %v686_v13 = vld [vmem:[%s4645_s19 + $0x400] sm:$0xff]  ;;  %v399_v32 = vld [vmem:[%s4645_s19 + $0x1c8] sm:$0xff] }
 0x170   : > { %v1834_v7 = vadd.f32 %v1762_v44, %v1690_v57  ;;  %v613_v9 = vmul.f32 %v541_v60, %v541_v60  ;;  %v1549_v10 = vsub.f32 %v1405_v5, %v1477_v6  ;;  %v901_v15 = vmul.f32 %v829_v3, %v829_v3  ;;  %v758_v18 = vld [vmem:[%s4651_s28 + $0x400] sm:$0xff]  ;;  %v1764_v22 = vld [vmem:[#allocation2 + $0x218] sm:$0xff]  ;;  %v687_v34 = vld [vmem:[%s4645_s19 + $0x408] sm:$0xff] }
 0x171   : > { %v1691_v14 = vadd.f32 %v1619_v45, %v1331_v0  ;;  %v1261_v16 = vmul.f32 %v1189_v4, %v1189_v4  ;;  %v542_v17 = vsub.f32 %v398_v11, %v470_v12  ;;  %v1046_v19 = vld [vmem:[%s4645_s19 + $0x640] sm:$0xff]  ;;  %v1332_v21 = vadd.f32 %v1260_v59, %v972_v8  ;;  %v759_v39 = vld [vmem:[%s4651_s28 + $0x408] sm:$0xff]  ;;  %v400_v53 = vld [vmem:[%s4645_s19 + $0x1d0] sm:$0xff] }
 0x172   : > { %v1118_v20 = vld [vmem:[%s4651_s28 + $0x640] sm:$0xff]  ;;  %1906 = vst [vmem:[#allocation2 + $0x1d8] sm:$0xff] %v1834_v7  ;;  %v1621_v23 = vmul.f32 %v1549_v10, %v1549_v10  ;;  %v830_v24 = vsub.f32 %v686_v13, %v758_v18  ;;  %v973_v29 = vadd.f32 %v901_v15, %v613_v9  ;;  %v543_v38 = vsub.f32 %v399_v32, %v471_v33  ;;  %v1047_v40 = vld [vmem:[%s4645_s19 + $0x648] sm:$0xff]  ;;  %v472_v54 = vld [vmem:[%s4651_s28 + $0x1d0] sm:$0xff] }
 0x173   : > { %v1190_v25 = vsub.f32 %v1046_v19, %v1118_v20  ;;  %v1406_v26 = vld [vmem:[%s4645_s19 + $0x880] sm:$0xff]  ;;  %v1835_v28 = vadd.f32 %v1763_v1, %v1691_v14  ;;  %v614_v30 = vmul.f32 %v542_v17, %v542_v17  ;;  %v1692_v35 = vadd.f32 %v1620_v2, %v1332_v21  ;;  %v1119_v41 = vld [vmem:[%s4651_s28 + $0x648] sm:$0xff]  ;;  %v688_v55 = vld [vmem:[%s4645_s19 + $0x410] sm:$0xff] }
 0x174   : > { %v1478_v27 = vld [vmem:[%s4651_s28 + $0x880] sm:$0xff]  ;;  %v902_v36 = vmul.f32 %v830_v24, %v830_v24  ;;  %v1333_v42 = vadd.f32 %v1261_v16, %v973_v29  ;;  %v831_v45 = vsub.f32 %v687_v34, %v759_v39  ;;  %v1191_v46 = vsub.f32 %v1047_v40, %v1119_v41  ;;  %v1407_v47 = vld [vmem:[%s4645_s19 + $0x888] sm:$0xff]  ;;  %v760_v60 = vld [vmem:[%s4651_s28 + $0x410] sm:$0xff] }
 0x175   : > { %v1550_v31 = vsub.f32 %v1406_v26, %v1478_v27  ;;  %v1262_v37 = vmul.f32 %v1190_v25, %v1190_v25  ;;  %1907 = vst [vmem:[#allocation2 + $0x228] sm:$0xff] %v1835_v28  ;;  %v1765_v43 = vld [vmem:[#allocation2 + $0x200] sm:$0xff]  ;;  %v1479_v48 = vld [vmem:[%s4651_s28 + $0x888] sm:$0xff]  ;;  %v1836_v49 = vadd.f32 %v1764_v22, %v1692_v35  ;;  %v615_v51 = vmul.f32 %v543_v38, %v543_v38  ;;  %v1048_v61 = vld [vmem:[%s4645_s19 + $0x650] sm:$0xff] }
 0x176   : > { %v974_v50 = vadd.f32 %v902_v36, %v614_v30  ;;  %v1551_v52 = vsub.f32 %v1407_v47, %v1479_v48  ;;  %v1693_v56 = vadd.f32 %v1621_v23, %v1333_v42  ;;  %v903_v57 = vmul.f32 %v831_v45, %v831_v45  ;;  %v1120_v62 = vld [vmem:[%s4651_s28 + $0x650] sm:$0xff]  ;;  %v401_v10 = vld [vmem:[%s4645_s19 + $0x1d8] sm:$0xff]  ;;  %v1767_v21 = vld [vmem:[#allocation2 + $0x128] sm:$0xff] }
 0x177   : > { %v1622_v44 = vmul.f32 %v1550_v31, %v1550_v31  ;;  %v1263_v58 = vmul.f32 %v1191_v46, %v1191_v46  ;;  %v544_v59 = vsub.f32 %v400_v53, %v472_v54  ;;  %1908 = vst [vmem:[#allocation2 + $0x218] sm:$0xff] %v1836_v49  ;;  %v1766_v0 = vld [vmem:[#allocation2 + $0x10] sm:$0xff]  ;;  %v832_v2 = vsub.f32 %v688_v55, %v760_v60  ;;  %v473_v11 = vld [vmem:[%s4651_s28 + $0x1d8] sm:$0xff]  ;;  %v402_v31 = vld [vmem:[%s4645_s19 + $0x1e0] sm:$0xff] }
 0x178   : > { %v1334_v63 = vadd.f32 %v1262_v37, %v974_v50  ;;  %v1623_v1 = vmul.f32 %v1551_v52, %v1551_v52  ;;  %v1192_v3 = vsub.f32 %v1048_v61, %v1120_v62  ;;  %v1408_v4 = vld [vmem:[%s4645_s19 + $0x890] sm:$0xff]  ;;  %v1837_v6 = vadd.f32 %v1765_v43, %v1693_v56  ;;  %v689_v12 = vld [vmem:[%s4645_s19 + $0x418] sm:$0xff]  ;;  %v474_v32 = vld [vmem:[%s4651_s28 + $0x1e0] sm:$0xff] }
 0x179   : > { %v1480_v5 = vld [vmem:[%s4651_s28 + $0x890] sm:$0xff]  ;;  %v975_v7 = vadd.f32 %v903_v57, %v615_v51  ;;  %v616_v8 = vmul.f32 %v544_v59, %v544_v59  ;;  %v904_v14 = vmul.f32 %v832_v2, %v832_v2  ;;  %v545_v16 = vsub.f32 %v401_v10, %v473_v11  ;;  %v761_v17 = vld [vmem:[%s4651_s28 + $0x418] sm:$0xff]  ;;  %v690_v33 = vld [vmem:[%s4645_s19 + $0x420] sm:$0xff] }
 0x17a   : > { %v1552_v9 = vsub.f32 %v1408_v4, %v1480_v5  ;;  %v1694_v13 = vadd.f32 %v1622_v44, %v1334_v63  ;;  %v1264_v15 = vmul.f32 %v1192_v3, %v1192_v3  ;;  %v1049_v18 = vld [vmem:[%s4645_s19 + $0x658] sm:$0xff]  ;;  %1909 = vst [vmem:[#allocation2 + $0x200] sm:$0xff] %v1837_v6  ;;  %v833_v23 = vsub.f32 %v689_v12, %v761_v17  ;;  %v762_v38 = vld [vmem:[%s4651_s28 + $0x420] sm:$0xff]  ;;  %v403_v52 = vld [vmem:[%s4645_s19 + $0x1e8] sm:$0xff] }
 0x17b   : > { %v1121_v19 = vld [vmem:[%s4651_s28 + $0x658] sm:$0xff]  ;;  %v1335_v20 = vadd.f32 %v1263_v58, %v975_v7  ;;  %v976_v28 = vadd.f32 %v904_v14, %v616_v8  ;;  %v617_v29 = vmul.f32 %v545_v16, %v545_v16  ;;  %v546_v37 = vsub.f32 %v402_v31, %v474_v32  ;;  %v1050_v39 = vld [vmem:[%s4645_s19 + $0x660] sm:$0xff]  ;;  %v475_v53 = vld [vmem:[%s4651_s28 + $0x1e8] sm:$0xff] }
 0x17c   : > { %v1624_v22 = vmul.f32 %v1552_v9, %v1552_v9  ;;  %v1193_v24 = vsub.f32 %v1049_v18, %v1121_v19  ;;  %v1409_v25 = vld [vmem:[%s4645_s19 + $0x898] sm:$0xff]  ;;  %v1838_v27 = vadd.f32 %v1766_v0, %v1694_v13  ;;  %v905_v35 = vmul.f32 %v833_v23, %v833_v23  ;;  %v1122_v40 = vld [vmem:[%s4651_s28 + $0x660] sm:$0xff]  ;;  %v691_v54 = vld [vmem:[%s4645_s19 + $0x428] sm:$0xff] }
 0x17d   : > { %v1481_v26 = vld [vmem:[%s4651_s28 + $0x898] sm:$0xff]  ;;  %v1695_v34 = vadd.f32 %v1623_v1, %v1335_v20  ;;  %v1336_v41 = vadd.f32 %v1264_v15, %v976_v28  ;;  %v834_v44 = vsub.f32 %v690_v33, %v762_v38  ;;  %v1194_v45 = vsub.f32 %v1050_v39, %v1122_v40  ;;  %v1410_v46 = vld [vmem:[%s4645_s19 + $0x8a0] sm:$0xff]  ;;  %v763_v59 = vld [vmem:[%s4651_s28 + $0x428] sm:$0xff] }
 0x17e   : > { %v1553_v30 = vsub.f32 %v1409_v25, %v1481_v26  ;;  %v1265_v36 = vmul.f32 %v1193_v24, %v1193_v24  ;;  %1910 = vst [vmem:[#allocation2 + $0x10] sm:$0xff] %v1838_v27  ;;  %v1768_v42 = vld [vmem:[#allocation2 + $0x178] sm:$0xff]  ;;  %v1482_v47 = vld [vmem:[%s4651_s28 + $0x8a0] sm:$0xff]  ;;  %v977_v49 = vadd.f32 %v905_v35, %v617_v29  ;;  %v618_v50 = vmul.f32 %v546_v37, %v546_v37  ;;  %v1051_v60 = vld [vmem:[%s4645_s19 + $0x668] sm:$0xff] }
 0x17f   : > { %v1839_v48 = vadd.f32 %v1767_v21, %v1695_v34  ;;  %v1554_v51 = vsub.f32 %v1410_v46, %v1482_v47  ;;  %v1696_v55 = vadd.f32 %v1624_v22, %v1336_v41  ;;  %v906_v56 = vmul.f32 %v834_v44, %v834_v44  ;;  %v1123_v61 = vld [vmem:[%s4651_s28 + $0x668] sm:$0xff]  ;;  %v404_v9 = vld [vmem:[%s4645_s19 + $0x1f0] sm:$0xff]  ;;  %v477_v31 = vld [vmem:[%s4651_s28 + $0x1f8] sm:$0xff] }
 0x180   : > { %v1625_v43 = vmul.f32 %v1553_v30, %v1553_v30  ;;  %v1266_v57 = vmul.f32 %v1194_v45, %v1194_v45  ;;  %v547_v58 = vsub.f32 %v403_v52, %v475_v53  ;;  %v1337_v62 = vadd.f32 %v1265_v36, %v977_v49  ;;  %v1769_v63 = vld [vmem:[#allocation2 + $0x208] sm:$0xff]  ;;  %v476_v10 = vld [vmem:[%s4651_s28 + $0x1f0] sm:$0xff]  ;;  %v405_v30 = vld [vmem:[%s4645_s19 + $0x1f8] sm:$0xff] }
 0x181   : > { %1911 = vst [vmem:[#allocation2 + $0x128] sm:$0xff] %v1839_v48  ;;  %v1626_v0 = vmul.f32 %v1554_v51, %v1554_v51  ;;  %v835_v1 = vsub.f32 %v691_v54, %v763_v59  ;;  %v1195_v2 = vsub.f32 %v1051_v60, %v1123_v61  ;;  %v1411_v3 = vld [vmem:[%s4645_s19 + $0x8a8] sm:$0xff]  ;;  %v1840_v5 = vadd.f32 %v1768_v42, %v1696_v55  ;;  %v692_v11 = vld [vmem:[%s4645_s19 + $0x430] sm:$0xff]  ;;  %v693_v32 = vld [vmem:[%s4645_s19 + $0x438] sm:$0xff] }
 0x182   : > { %v1483_v4 = vld [vmem:[%s4651_s28 + $0x8a8] sm:$0xff]  ;;  %v978_v6 = vadd.f32 %v906_v56, %v618_v50  ;;  %v619_v7 = vmul.f32 %v547_v58, %v547_v58  ;;  %v1697_v12 = vadd.f32 %v1625_v43, %v1337_v62  ;;  %v548_v15 = vsub.f32 %v404_v9, %v476_v10  ;;  %v764_v16 = vld [vmem:[%s4651_s28 + $0x430] sm:$0xff]  ;;  %v765_v37 = vld [vmem:[%s4651_s28 + $0x438] sm:$0xff] }
 0x183   : > { %v1555_v8 = vsub.f32 %v1411_v3, %v1483_v4  ;;  %v907_v13 = vmul.f32 %v835_v1, %v835_v1  ;;  %v1267_v14 = vmul.f32 %v1195_v2, %v1195_v2  ;;  %v1052_v17 = vld [vmem:[%s4645_s19 + $0x670] sm:$0xff]  ;;  %1912 = vst [vmem:[#allocation2 + $0x178] sm:$0xff] %v1840_v5  ;;  %v836_v22 = vsub.f32 %v692_v11, %v764_v16  ;;  %v1053_v38 = vld [vmem:[%s4645_s19 + $0x678] sm:$0xff]  ;;  %v406_v51 = vld [vmem:[%s4645_s19 + $0x200] sm:$0xff] }
 0x184   : > { %v1124_v18 = vld [vmem:[%s4651_s28 + $0x670] sm:$0xff]  ;;  %v1338_v19 = vadd.f32 %v1266_v57, %v978_v6  ;;  %v1841_v26 = vadd.f32 %v1769_v63, %v1697_v12  ;;  %v620_v28 = vmul.f32 %v548_v15, %v548_v15  ;;  %v549_v36 = vsub.f32 %v405_v30, %v477_v31  ;;  %v1125_v39 = vld [vmem:[%s4651_s28 + $0x678] sm:$0xff]  ;;  %v478_v52 = vld [vmem:[%s4651_s28 + $0x200] sm:$0xff] }
 0x185   : > { %v1770_v20 = vld [vmem:[#allocation2 + $0x210] sm:$0xff]  ;;  %v1627_v21 = vmul.f32 %v1555_v8, %v1555_v8  ;;  %v1196_v23 = vsub.f32 %v1052_v17, %v1124_v18  ;;  %v979_v27 = vadd.f32 %v907_v13, %v619_v7  ;;  %v908_v34 = vmul.f32 %v836_v22, %v836_v22  ;;  %v1413_v45 = vld [vmem:[%s4645_s19 + $0x8b8] sm:$0xff]  ;;  %v694_v53 = vld [vmem:[%s4645_s19 + $0x440] sm:$0xff] }
 0x186   : > { %v1412_v24 = vld [vmem:[%s4645_s19 + $0x8b0] sm:$0xff]  ;;  %v1698_v33 = vadd.f32 %v1626_v0, %v1338_v19  ;;  %1913 = vst [vmem:[#allocation2 + $0x208] sm:$0xff] %v1841_v26  ;;  %v837_v43 = vsub.f32 %v693_v32, %v765_v37  ;;  %v1197_v44 = vsub.f32 %v1053_v38, %v1125_v39  ;;  %v1485_v46 = vld [vmem:[%s4651_s28 + $0x8b8] sm:$0xff]  ;;  %v621_v49 = vmul.f32 %v549_v36, %v549_v36  ;;  %v766_v58 = vld [vmem:[%s4651_s28 + $0x440] sm:$0xff] }
 0x187   : > { %v1484_v25 = vld [vmem:[%s4651_s28 + $0x8b0] sm:$0xff]  ;;  %v1268_v35 = vmul.f32 %v1196_v23, %v1196_v23  ;;  %v1339_v40 = vadd.f32 %v1267_v14, %v979_v27  ;;  %v980_v48 = vadd.f32 %v908_v34, %v620_v28  ;;  %v1557_v50 = vsub.f32 %v1413_v45, %v1485_v46  ;;  %v1054_v59 = vld [vmem:[%s4645_s19 + $0x680] sm:$0xff]  ;;  %v1772_v62 = vld [vmem:[#allocation2 + $0x168] sm:$0xff] }
 0x188   : > { %v1556_v29 = vsub.f32 %v1412_v24, %v1484_v25  ;;  %v1771_v41 = vld [vmem:[#allocation2 + $0x1d0] sm:$0xff]  ;;  %v1842_v47 = vadd.f32 %v1770_v20, %v1698_v33  ;;  %v909_v55 = vmul.f32 %v837_v43, %v837_v43  ;;  %v1269_v56 = vmul.f32 %v1197_v44, %v1197_v44  ;;  %v1126_v60 = vld [vmem:[%s4651_s28 + $0x680] sm:$0xff]  ;;  %v407_v8 = vld [vmem:[%s4645_s19 + $0x208] sm:$0xff] }
 0x189   : > { %v1699_v54 = vadd.f32 %v1627_v21, %v1339_v40  ;;  %v550_v57 = vsub.f32 %v406_v51, %v478_v52  ;;  %v1340_v61 = vadd.f32 %v1268_v35, %v980_v48  ;;  %v1629_v63 = vmul.f32 %v1557_v50, %v1557_v50  ;;  %v1414_v2 = vld [vmem:[%s4645_s19 + $0x8c0] sm:$0xff]  ;;  %v479_v9 = vld [vmem:[%s4651_s28 + $0x208] sm:$0xff]  ;;  %v480_v30 = vld [vmem:[%s4651_s28 + $0x210] sm:$0xff] }
 0x18a   : > { %v1628_v42 = vmul.f32 %v1556_v29, %v1556_v29  ;;  %1914 = vst [vmem:[#allocation2 + $0x210] sm:$0xff] %v1842_v47  ;;  %v838_v0 = vsub.f32 %v694_v53, %v766_v58  ;;  %v1198_v1 = vsub.f32 %v1054_v59, %v1126_v60  ;;  %v1486_v3 = vld [vmem:[%s4651_s28 + $0x8c0] sm:$0xff]  ;;  %v981_v5 = vadd.f32 %v909_v55, %v621_v49  ;;  %v695_v10 = vld [vmem:[%s4645_s19 + $0x448] sm:$0xff]  ;;  %v408_v29 = vld [vmem:[%s4645_s19 + $0x210] sm:$0xff] }
 0x18b   : > { %v1843_v4 = vadd.f32 %v1771_v41, %v1699_v54  ;;  %v622_v6 = vmul.f32 %v550_v57, %v550_v57  ;;  %v1558_v7 = vsub.f32 %v1414_v2, %v1486_v3  ;;  %v551_v14 = vsub.f32 %v407_v8, %v479_v9  ;;  %v767_v15 = vld [vmem:[%s4651_s28 + $0x448] sm:$0xff]  ;;  %v1773_v19 = vld [vmem:[#allocation2 + $0xc0] sm:$0xff]  ;;  %v696_v31 = vld [vmem:[%s4645_s19 + $0x450] sm:$0xff] }
 0x18c   : > { %v1700_v11 = vadd.f32 %v1628_v42, %v1340_v61  ;;  %v910_v12 = vmul.f32 %v838_v0, %v838_v0  ;;  %v1270_v13 = vmul.f32 %v1198_v1, %v1198_v1  ;;  %v1055_v16 = vld [vmem:[%s4645_s19 + $0x688] sm:$0xff]  ;;  %v1341_v18 = vadd.f32 %v1269_v56, %v981_v5  ;;  %v768_v36 = vld [vmem:[%s4651_s28 + $0x450] sm:$0xff]  ;;  %v1774_v40 = vld [vmem:[#allocation2 + $0x1a0] sm:$0xff] }
 0x18d   : > { %v1127_v17 = vld [vmem:[%s4651_s28 + $0x688] sm:$0xff]  ;;  %1915 = vst [vmem:[#allocation2 + $0x1d0] sm:$0xff] %v1843_v4  ;;  %v1630_v20 = vmul.f32 %v1558_v7, %v1558_v7  ;;  %v839_v21 = vsub.f32 %v695_v10, %v767_v15  ;;  %v623_v27 = vmul.f32 %v551_v14, %v551_v14  ;;  %v552_v35 = vsub.f32 %v408_v29, %v480_v30  ;;  %v1056_v37 = vld [vmem:[%s4645_s19 + $0x690] sm:$0xff]  ;;  %v409_v50 = vld [vmem:[%s4645_s19 + $0x218] sm:$0xff] }
 0x18e   : > { %v1199_v22 = vsub.f32 %v1055_v16, %v1127_v17  ;;  %v1415_v23 = vld [vmem:[%s4645_s19 + $0x8c8] sm:$0xff]  ;;  %v1844_v25 = vadd.f32 %v1772_v62, %v1700_v11  ;;  %v982_v26 = vadd.f32 %v910_v12, %v622_v6  ;;  %v1701_v32 = vadd.f32 %v1629_v63, %v1341_v18  ;;  %v1128_v38 = vld [vmem:[%s4651_s28 + $0x690] sm:$0xff]  ;;  %v481_v51 = vld [vmem:[%s4651_s28 + $0x218] sm:$0xff] }
 0x18f   : > { %v1487_v24 = vld [vmem:[%s4651_s28 + $0x8c8] sm:$0xff]  ;;  %v911_v33 = vmul.f32 %v839_v21, %v839_v21  ;;  %v840_v42 = vsub.f32 %v696_v31, %v768_v36  ;;  %v1200_v43 = vsub.f32 %v1056_v37, %v1128_v38  ;;  %v1416_v44 = vld [vmem:[%s4645_s19 + $0x8d0] sm:$0xff]  ;;  %v624_v48 = vmul.f32 %v552_v35, %v552_v35  ;;  %v697_v52 = vld [vmem:[%s4645_s19 + $0x458] sm:$0xff] }
 0x190   : > { %v1559_v28 = vsub.f32 %v1415_v23, %v1487_v24  ;;  %v1271_v34 = vmul.f32 %v1199_v22, %v1199_v22  ;;  %1916 = vst [vmem:[#allocation2 + $0x168] sm:$0xff] %v1844_v25  ;;  %v1342_v39 = vadd.f32 %v1270_v13, %v982_v26  ;;  %v1488_v45 = vld [vmem:[%s4651_s28 + $0x8d0] sm:$0xff]  ;;  %v1845_v46 = vadd.f32 %v1773_v19, %v1701_v32  ;;  %v769_v57 = vld [vmem:[%s4651_s28 + $0x458] sm:$0xff]  ;;  %v410_v7 = vld [vmem:[%s4645_s19 + $0x220] sm:$0xff] }
 0x191   : > { %v983_v47 = vadd.f32 %v911_v33, %v623_v27  ;;  %v1560_v49 = vsub.f32 %v1416_v44, %v1488_v45  ;;  %v912_v54 = vmul.f32 %v840_v42, %v840_v42  ;;  %v1272_v55 = vmul.f32 %v1200_v43, %v1200_v43  ;;  %v1057_v58 = vld [vmem:[%s4645_s19 + $0x698] sm:$0xff]  ;;  %v482_v8 = vld [vmem:[%s4651_s28 + $0x220] sm:$0xff]  ;;  %v483_v29 = vld [vmem:[%s4651_s28 + $0x228] sm:$0xff] }
 0x192   : > { %v1631_v41 = vmul.f32 %v1559_v28, %v1559_v28  ;;  %v1702_v53 = vadd.f32 %v1630_v20, %v1342_v39  ;;  %v553_v56 = vsub.f32 %v409_v50, %v481_v51  ;;  %v1129_v59 = vld [vmem:[%s4651_s28 + $0x698] sm:$0xff]  ;;  %1917 = vst [vmem:[#allocation2 + $0xc0] sm:$0xff] %v1845_v46  ;;  %v841_v63 = vsub.f32 %v697_v52, %v769_v57  ;;  %v698_v9 = vld [vmem:[%s4645_s19 + $0x460] sm:$0xff]  ;;  %v411_v28 = vld [vmem:[%s4645_s19 + $0x228] sm:$0xff] }
 0x193   : > { %v1343_v60 = vadd.f32 %v1271_v34, %v983_v47  ;;  %v1775_v61 = vld [vmem:[#allocation2 + $0x58] sm:$0xff]  ;;  %v1632_v62 = vmul.f32 %v1560_v49, %v1560_v49  ;;  %v1201_v0 = vsub.f32 %v1057_v58, %v1129_v59  ;;  %v984_v4 = vadd.f32 %v912_v54, %v624_v48  ;;  %v770_v14 = vld [vmem:[%s4651_s28 + $0x460] sm:$0xff]  ;;  %v699_v30 = vld [vmem:[%s4645_s19 + $0x468] sm:$0xff] }
 0x194   : > { %v1417_v1 = vld [vmem:[%s4645_s19 + $0x8d8] sm:$0xff]  ;;  %v1846_v3 = vadd.f32 %v1774_v40, %v1702_v53  ;;  %v625_v5 = vmul.f32 %v553_v56, %v553_v56  ;;  %v913_v11 = vmul.f32 %v841_v63, %v841_v63  ;;  %v554_v13 = vsub.f32 %v410_v7, %v482_v8  ;;  %v1058_v15 = vld [vmem:[%s4645_s19 + $0x6a0] sm:$0xff]  ;;  %v771_v35 = vld [vmem:[%s4651_s28 + $0x468] sm:$0xff] }
 0x195   : > { %v1489_v2 = vld [vmem:[%s4651_s28 + $0x8d8] sm:$0xff]  ;;  %v1703_v10 = vadd.f32 %v1631_v41, %v1343_v60  ;;  %v1273_v12 = vmul.f32 %v1201_v0, %v1201_v0  ;;  %v1130_v16 = vld [vmem:[%s4651_s28 + $0x6a0] sm:$0xff]  ;;  %v1344_v17 = vadd.f32 %v1272_v55, %v984_v4  ;;  %v842_v20 = vsub.f32 %v698_v9, %v770_v14  ;;  %v1059_v36 = vld [vmem:[%s4645_s19 + $0x6a8] sm:$0xff] }
 0x196   : > { %v1561_v6 = vsub.f32 %v1417_v1, %v1489_v2  ;;  %1918 = vst [vmem:[#allocation2 + $0x1a0] sm:$0xff] %v1846_v3  ;;  %v1776_v18 = vld [vmem:[#allocation2 + $0x118] sm:$0xff]  ;;  %v1202_v21 = vsub.f32 %v1058_v15, %v1130_v16  ;;  %v1418_v22 = vld [vmem:[%s4645_s19 + $0x8e0] sm:$0xff]  ;;  %v985_v25 = vadd.f32 %v913_v11, %v625_v5  ;;  %v626_v26 = vmul.f32 %v554_v13, %v554_v13  ;;  %v1131_v37 = vld [vmem:[%s4651_s28 + $0x6a8] sm:$0xff] }
 0x197   : > { %v1490_v23 = vld [vmem:[%s4651_s28 + $0x8e0] sm:$0xff]  ;;  %v1847_v24 = vadd.f32 %v1775_v61, %v1703_v10  ;;  %v1704_v31 = vadd.f32 %v1632_v62, %v1344_v17  ;;  %v914_v32 = vmul.f32 %v842_v20, %v842_v20  ;;  %v555_v34 = vsub.f32 %v411_v28, %v483_v29  ;;  %v1419_v43 = vld [vmem:[%s4645_s19 + $0x8e8] sm:$0xff]  ;;  %v412_v49 = vld [vmem:[%s4645_s19 + $0x230] sm:$0xff] }
 0x198   : > { %v1633_v19 = vmul.f32 %v1561_v6, %v1561_v6  ;;  %v1562_v27 = vsub.f32 %v1418_v22, %v1490_v23  ;;  %v1274_v33 = vmul.f32 %v1202_v21, %v1202_v21  ;;  %v1345_v38 = vadd.f32 %v1273_v12, %v985_v25  ;;  %v1777_v39 = vld [vmem:[#allocation2 + $0x20] sm:$0xff]  ;;  %v1491_v44 = vld [vmem:[%s4651_s28 + $0x8e8] sm:$0xff]  ;;  %v484_v50 = vld [vmem:[%s4651_s28 + $0x230] sm:$0xff] }
 0x199   : > { %1919 = vst [vmem:[#allocation2 + $0x58] sm:$0xff] %v1847_v24  ;;  %v843_v41 = vsub.f32 %v699_v30, %v771_v35  ;;  %v1203_v42 = vsub.f32 %v1059_v36, %v1131_v37  ;;  %v1848_v45 = vadd.f32 %v1776_v18, %v1704_v31  ;;  %v986_v46 = vadd.f32 %v914_v32, %v626_v26  ;;  %v700_v51 = vld [vmem:[%s4645_s19 + $0x470] sm:$0xff]  ;;  %v1778_v60 = vld [vmem:[#allocation2 + $0x148] sm:$0xff]  ;;  %v413_v6 = vld [vmem:[%s4645_s19 + $0x238] sm:$0xff] }
 0x19a   : > { %v1634_v40 = vmul.f32 %v1562_v27, %v1562_v27  ;;  %v627_v47 = vmul.f32 %v555_v34, %v555_v34  ;;  %v1563_v48 = vsub.f32 %v1419_v43, %v1491_v44  ;;  %v1705_v52 = vadd.f32 %v1633_v19, %v1345_v38  ;;  %v772_v56 = vld [vmem:[%s4651_s28 + $0x470] sm:$0xff]  ;;  %v485_v7 = vld [vmem:[%s4651_s28 + $0x238] sm:$0xff]  ;;  %v1779_v23 = vld [vmem:[#allocation2 + $0xa8] sm:$0xff] }
 0x19b   : > { %v915_v53 = vmul.f32 %v843_v41, %v843_v41  ;;  %v1275_v54 = vmul.f32 %v1203_v42, %v1203_v42  ;;  %v556_v55 = vsub.f32 %v412_v49, %v484_v50  ;;  %v1060_v57 = vld [vmem:[%s4645_s19 + $0x6b0] sm:$0xff]  ;;  %1920 = vst [vmem:[#allocation2 + $0x118] sm:$0xff] %v1848_v45  ;;  %v1346_v59 = vadd.f32 %v1274_v33, %v986_v46  ;;  %v701_v8 = vld [vmem:[%s4645_s19 + $0x478] sm:$0xff]  ;;  %v1781_v38 = vld [vmem:[#allocation2 + $0xa0] sm:$0xff] }
 0x19c   : > { %v1132_v58 = vld [vmem:[%s4651_s28 + $0x6b0] sm:$0xff]  ;;  %v1635_v61 = vmul.f32 %v1563_v48, %v1563_v48  ;;  %v844_v62 = vsub.f32 %v700_v51, %v772_v56  ;;  %v1849_v2 = vadd.f32 %v1777_v39, %v1705_v52  ;;  %v557_v12 = vsub.f32 %v413_v6, %v485_v7  ;;  %v773_v13 = vld [vmem:[%s4651_s28 + $0x478] sm:$0xff] }
 0x19d   : > { %v1204_v63 = vsub.f32 %v1060_v57, %v1132_v58  ;;  %v1420_v0 = vld [vmem:[%s4645_s19 + $0x8f0] sm:$0xff]  ;;  %v987_v3 = vadd.f32 %v915_v53, %v627_v47  ;;  %v628_v4 = vmul.f32 %v556_v55, %v556_v55  ;;  %v1706_v9 = vadd.f32 %v1634_v40, %v1346_v59  ;;  %v1061_v14 = vld [vmem:[%s4645_s19 + $0x6b8] sm:$0xff] }
 0x19e   : > { %v1492_v1 = vld [vmem:[%s4651_s28 + $0x8f0] sm:$0xff]  ;;  %v916_v10 = vmul.f32 %v844_v62, %v844_v62  ;;  %v1133_v15 = vld [vmem:[%s4651_s28 + $0x6b8] sm:$0xff]  ;;  %1921 = vst [vmem:[#allocation2 + $0x20] sm:$0xff] %v1849_v2  ;;  %v845_v18 = vsub.f32 %v701_v8, %v773_v13  ;;  %v629_v25 = vmul.f32 %v557_v12, %v557_v12 }
 0x19f   : > { %v1564_v5 = vsub.f32 %v1420_v0, %v1492_v1  ;;  %v1276_v11 = vmul.f32 %v1204_v63, %v1204_v63  ;;  %v1347_v16 = vadd.f32 %v1275_v54, %v987_v3  ;;  %v1205_v19 = vsub.f32 %v1061_v14, %v1133_v15  ;;  %v1421_v20 = vld [vmem:[%s4645_s19 + $0x8f8] sm:$0xff]  ;;  %v1780_v32 = vld [vmem:[#allocation2 + $0x150] sm:$0xff] }
 0x1a0   : > { %v1493_v21 = vld [vmem:[%s4651_s28 + $0x8f8] sm:$0xff]  ;;  %v1850_v22 = vadd.f32 %v1778_v60, %v1706_v9  ;;  %v988_v24 = vadd.f32 %v916_v10, %v628_v4  ;;  %v917_v28 = vmul.f32 %v845_v18, %v845_v18 }
 0x1a1   : > { %v1636_v17 = vmul.f32 %v1564_v5, %v1564_v5  ;;  %v1565_v26 = vsub.f32 %v1421_v20, %v1493_v21  ;;  %v1707_v27 = vadd.f32 %v1635_v61, %v1347_v16  ;;  %v1277_v29 = vmul.f32 %v1205_v19, %v1205_v19 }
 0x1a2   : > { %1922 = vst [vmem:[#allocation2 + $0x148] sm:$0xff] %v1850_v22  ;;  %v1348_v30 = vadd.f32 %v1276_v11, %v988_v24  ;;  %v989_v33 = vadd.f32 %v917_v28, %v629_v25 }
 0x1a3   : > { %v1851_v31 = vadd.f32 %v1779_v23, %v1707_v27  ;;  %v1637_v34 = vmul.f32 %v1565_v26, %v1565_v26 }
 0x1a4   : > { %v1708_v35 = vadd.f32 %v1636_v17, %v1348_v30  ;;  %v1349_v36 = vadd.f32 %v1277_v29, %v989_v33 }
 0x1a5   : > { %1923 = vst [vmem:[#allocation2 + $0xa8] sm:$0xff] %v1851_v31 }
 0x1a6   : > { %v1852_v37 = vadd.f32 %v1780_v32, %v1708_v35  ;;  %v1709_v39 = vadd.f32 %v1637_v34, %v1349_v36 }
 0x1a8   : > { %1924 = vst [vmem:[#allocation2 + $0x150] sm:$0xff] %v1852_v37  ;;  %v1853_v40 = vadd.f32 %v1781_v38, %v1709_v39 }
 0x1aa   : > { %1925 = vst [vmem:[#allocation2 + $0xa0] sm:$0xff] %v1853_v40 }
 0x1ab PF: > { %p4245_p11 = scmp.le.s32.totalorder %s336_s18, 591 }
 0x1ac   : > { %s2633_s5 = sadd.s32 (!%p4245_p11), 144, %s4731_s20  ;;  %s3103_s6 = sadd.s32 (!%p4245_p11), 288, %s4731_s20 }
 0x1ad   : > { %1928 = sbr.rel (%p4245_p11) target bundleno = 773 (0x305), region = 48  ;;  %s3573_s7 = sadd.s32 (!%p4245_p11), 432, %s4731_s20 }
 0x1b2   : > { %v1929_v41 = vlaneseq  ;;  %v1948_v42 = vld [vmem:[%s4645_s19] sm:$0xff]  ;;  %v5317_v44 = vstv %s4731_s20  ;;  %v5323_v48 = vstv %s2633_s5  ;;  %v5330_v54 = vstv %s3103_s6  ;;  %v3755_v38 = vld [vmem:[#allocation2 + $0xc8] sm:$0xff] }
 0x1b3   : > { %v2020_v43 = vld [vmem:[%s4651_s28] sm:$0xff]  ;;  %v5334_v59 = vstv %s3573_s7  ;;  %v1949_v60 = vld [vmem:[%s4645_s19 + $0x8] sm:$0xff]  ;;  %v1950_v14 = vld [vmem:[%s4645_s19 + $0x10] sm:$0xff] }
 0x1b4   : > { %v2345_v45 = vld [vmem:[%s4645_s19 + $0x240] sm:$0xff]  ;;  %v2092_v46 = vsub.f32 %v1948_v42, %v2020_v43  ;;  %v5328_v51 = vshrl.u32 %v1929_v41, 7  ;;  %v2021_v61 = vld [vmem:[%s4651_s28 + $0x8] sm:$0xff]  ;;  %v2022_v15 = vld [vmem:[%s4651_s28 + $0x10] sm:$0xff] }
 0x1b5   : > { %v2417_v47 = vld [vmem:[%s4651_s28 + $0x240] sm:$0xff]  ;;  %v2346_v62 = vld [vmem:[%s4645_s19 + $0x248] sm:$0xff]  ;;  %v2093_v9 = vsub.f32 %v1949_v60, %v2021_v61  ;;  %v2347_v16 = vld [vmem:[%s4645_s19 + $0x250] sm:$0xff]  ;;  %v2094_v29 = vsub.f32 %v1950_v14, %v2022_v15 }
 0x1b6   : > { %v2815_v49 = vld [vmem:[%s4645_s19 + $0x480] sm:$0xff]  ;;  %v2489_v52 = vsub.f32 %v2345_v45, %v2417_v47  ;;  %v2164_v57 = vmul.f32 %v2092_v46, %v2092_v46  ;;  %v5341_v63 = vadd.s32 %v5317_v44, %v5328_v51  ;;  %v5345_v1 = vadd.s32 %v5323_v48, %v5328_v51  ;;  %v2418_v3 = vld [vmem:[%s4651_s28 + $0x248] sm:$0xff]  ;;  %v2419_v19 = vld [vmem:[%s4651_s28 + $0x250] sm:$0xff] }
 0x1b7   : > { %v2887_v50 = vld [vmem:[%s4651_s28 + $0x480] sm:$0xff]  ;;  %v2816_v4 = vld [vmem:[%s4645_s19 + $0x488] sm:$0xff]  ;;  %v5352_v6 = vadd.s32 %v5330_v54, %v5328_v51  ;;  %v5356_v8 = vadd.s32 %v5334_v59, %v5328_v51  ;;  %v2490_v12 = vsub.f32 %v2346_v62, %v2418_v3  ;;  %v2817_v20 = vld [vmem:[%s4645_s19 + $0x490] sm:$0xff]  ;;  %v2165_v24 = vmul.f32 %v2093_v9, %v2093_v9 }
 0x1b8   : > { %v2959_v53 = vsub.f32 %v2815_v49, %v2887_v50  ;;  %v3285_v55 = vld [vmem:[%s4645_s19 + $0x6c0] sm:$0xff]  ;;  %v2561_v0 = vmul.f32 %v2489_v52, %v2489_v52  ;;  %v2888_v5 = vld [vmem:[%s4651_s28 + $0x488] sm:$0xff]  ;;  %vm2255_vm0 = vcmp.lt.s32.totalorder %v5341_v63, 591  ;;  %vm2653_vm1 = vcmp.lt.s32.totalorder %v5345_v1, 591  ;;  %v2889_v25 = vld [vmem:[%s4651_s28 + $0x490] sm:$0xff] }
 0x1b9   : > { %v3357_v56 = vld [vmem:[%s4651_s28 + $0x6c0] sm:$0xff]  ;;  %v3286_v10 = vld [vmem:[%s4645_s19 + $0x6c8] sm:$0xff]  ;;  %v2960_v13 = vsub.f32 %v2816_v4, %v2888_v5  ;;  %v2273_v17 = vsel %vm2255_vm0, %v2164_v57, 0.0  ;;  %vm3123_vm2 = vcmp.lt.s32.totalorder %v5352_v6, 591  ;;  %vm3593_vm3 = vcmp.lt.s32.totalorder %v5356_v8, 591  ;;  %v3287_v30 = vld [vmem:[%s4645_s19 + $0x6d0] sm:$0xff] }
 0x1ba   : > { %v3429_v58 = vsub.f32 %v3285_v55, %v3357_v56  ;;  %v3031_v2 = vmul.f32 %v2959_v53, %v2959_v53  ;;  %v3358_v11 = vld [vmem:[%s4651_s28 + $0x6c8] sm:$0xff]  ;;  %v2671_v18 = vsel %vm2653_vm1, %v2561_v0, 0.0  ;;  %v2562_v26 = vmul.f32 %v2490_v12, %v2490_v12  ;;  %v3359_v35 = vld [vmem:[%s4651_s28 + $0x6d0] sm:$0xff]  ;;  %v1951_v36 = vld [vmem:[%s4645_s19 + $0x18] sm:$0xff] }
 0x1bb   : > { %v2743_v21 = vadd.f32 %v2671_v18, %v2273_v17  ;;  %v3032_v27 = vmul.f32 %v2960_v13, %v2960_v13  ;;  %v3430_v28 = vsub.f32 %v3286_v10, %v3358_v11  ;;  %v2274_v32 = vsel %vm2255_vm0, %v2165_v24, 0.0  ;;  %v2023_v37 = vld [vmem:[%s4651_s28 + $0x18] sm:$0xff]  ;;  %v3756_v4 = vld [vmem:[#allocation2 + $0x8] sm:$0xff]  ;;  %v1952_v11 = vld [vmem:[%s4645_s19 + $0x20] sm:$0xff] }
 0x1bc   : > { %v3501_v7 = vmul.f32 %v3429_v58, %v3429_v58  ;;  %v3141_v22 = vsel %vm3123_vm2, %v3031_v2, 0.0  ;;  %v2491_v33 = vsub.f32 %v2347_v16, %v2419_v19  ;;  %v2961_v34 = vsub.f32 %v2817_v20, %v2889_v25  ;;  %v2348_v49 = vld [vmem:[%s4645_s19 + $0x258] sm:$0xff]  ;;  %v2024_v12 = vld [vmem:[%s4651_s28 + $0x20] sm:$0xff] }
 0x1bd   : > { %v3213_v31 = vadd.f32 %v3141_v22, %v2743_v21  ;;  %v2672_v39 = vsel %vm2653_vm1, %v2562_v26, 0.0  ;;  %v3142_v40 = vsel %vm3123_vm2, %v3032_v27, 0.0  ;;  %v3502_v41 = vmul.f32 %v3430_v28, %v3430_v28  ;;  %v2420_v50 = vld [vmem:[%s4651_s28 + $0x258] sm:$0xff]  ;;  %v2349_v17 = vld [vmem:[%s4645_s19 + $0x260] sm:$0xff] }
 0x1be   : > { %v3611_v23 = vsel %vm3593_vm3, %v3501_v7, 0.0  ;;  %v2166_v42 = vmul.f32 %v2094_v29, %v2094_v29  ;;  %v2744_v45 = vadd.f32 %v2672_v39, %v2274_v32  ;;  %v2563_v46 = vmul.f32 %v2491_v33, %v2491_v33  ;;  %v2818_v52 = vld [vmem:[%s4645_s19 + $0x498] sm:$0xff]  ;;  %v2421_v18 = vld [vmem:[%s4651_s28 + $0x260] sm:$0xff]  ;;  %v2025_v39 = vld [vmem:[%s4651_s28 + $0x28] sm:$0xff] }
 0x1bf   : > { %v3683_v43 = vadd.f32 %v3611_v23, %v3213_v31  ;;  %v3033_v47 = vmul.f32 %v2961_v34, %v2961_v34  ;;  %v3612_v53 = vsel %vm3593_vm3, %v3502_v41, 0.0  ;;  %v3431_v56 = vsub.f32 %v3287_v30, %v3359_v35  ;;  %v2890_v58 = vld [vmem:[%s4651_s28 + $0x498] sm:$0xff]  ;;  %v3757_v24 = vld [vmem:[#allocation2 + $0x40] sm:$0xff] }
 0x1c0   : > { %v2275_v55 = vsel %vm2255_vm0, %v2166_v42, 0.0  ;;  %v2095_v57 = vsub.f32 %v1951_v36, %v2023_v37  ;;  %v3288_v60 = vld [vmem:[%s4645_s19 + $0x6d8] sm:$0xff]  ;;  %v3214_v0 = vadd.f32 %v3142_v40, %v2744_v45  ;;  %v2673_v2 = vsel %vm2653_vm1, %v2563_v46, 0.0  ;;  %v2819_v32 = vld [vmem:[%s4645_s19 + $0x4a0] sm:$0xff] }
 0x1c1   : > { %v3360_v61 = vld [vmem:[%s4651_s28 + $0x6d8] sm:$0xff]  ;;  %v3827_v62 = vadd.f32 %v3755_v38, %v3683_v43  ;;  %v3143_v3 = vsel %vm3123_vm2, %v3033_v47, 0.0  ;;  %v2745_v5 = vadd.f32 %v2673_v2, %v2275_v55  ;;  %v3503_v7 = vmul.f32 %v3431_v56, %v3431_v56  ;;  %v2891_v63 = vld [vmem:[%s4651_s28 + $0x4a0] sm:$0xff]  ;;  %v1953_v38 = vld [vmem:[%s4645_s19 + $0x28] sm:$0xff] }
 0x1c2   : > { %v2167_v9 = vmul.f32 %v2095_v57, %v2095_v57  ;;  %v2492_v10 = vsub.f32 %v2348_v49, %v2420_v50  ;;  %v3684_v13 = vadd.f32 %v3612_v53, %v3214_v0  ;;  %v2962_v14 = vsub.f32 %v2818_v52, %v2890_v58  ;;  %v3289_v33 = vld [vmem:[%s4645_s19 + $0x6e0] sm:$0xff]  ;;  %v3758_v43 = vld [vmem:[#allocation2 + $0x28] sm:$0xff]  ;;  %v1954_v0 = vld [vmem:[%s4645_s19 + $0x30] sm:$0xff] }
 0x1c3   : > { %3899 = vst [vmem:[#allocation2 + $0xc8] sm:$0xff] %v3827_v62  ;;  %v3432_v15 = vsub.f32 %v3288_v60, %v3360_v61  ;;  %v1931_v16 = vadd.s32 8, %v5328_v51  ;;  %v3215_v19 = vadd.f32 %v3143_v3, %v2745_v5  ;;  %v3613_v20 = vsel %vm3593_vm3, %v3503_v7, 0.0  ;;  %v3361_v1 = vld [vmem:[%s4651_s28 + $0x6e0] sm:$0xff]  ;;  %v2350_v47 = vld [vmem:[%s4645_s19 + $0x268] sm:$0xff]  ;;  %v2026_v2 = vld [vmem:[%s4651_s28 + $0x30] sm:$0xff] }
 0x1c4   : > { %v2276_v21 = vsel %vm2255_vm0, %v2167_v9, 0.0  ;;  %v2564_v22 = vmul.f32 %v2492_v10, %v2492_v10  ;;  %v3828_v23 = vadd.f32 %v3756_v4, %v3684_v13  ;;  %v3034_v25 = vmul.f32 %v2962_v14, %v2962_v14  ;;  %v2422_v49 = vld [vmem:[%s4651_s28 + $0x268] sm:$0xff]  ;;  %v2351_v7 = vld [vmem:[%s4645_s19 + $0x270] sm:$0xff] }
 0x1c5   : > { %v3504_v26 = vmul.f32 %v3432_v15, %v3432_v15  ;;  %v2096_v27 = vsub.f32 %v1952_v11, %v2024_v12  ;;  %v3685_v28 = vadd.f32 %v3613_v20, %v3215_v19  ;;  %v5414_v30 = vadd.s32 %v5317_v44, %v1931_v16  ;;  %v2820_v55 = vld [vmem:[%s4645_s19 + $0x4a8] sm:$0xff]  ;;  %v2423_v9 = vld [vmem:[%s4651_s28 + $0x270] sm:$0xff] }
 0x1c6   : > { %v2674_v29 = vsel %vm2653_vm1, %v2564_v22, 0.0  ;;  %v2493_v31 = vsub.f32 %v2349_v17, %v2421_v18  ;;  %3900 = vst [vmem:[#allocation2 + $0x8] sm:$0xff] %v3828_v23  ;;  %v3144_v35 = vsel %vm3123_vm2, %v3034_v25, 0.0  ;;  %v5428_v42 = vadd.s32 %v5323_v48, %v1931_v16  ;;  %v2892_v56 = vld [vmem:[%s4651_s28 + $0x4a8] sm:$0xff]  ;;  %v2821_v10 = vld [vmem:[%s4645_s19 + $0x4b0] sm:$0xff] }
 0x1c7   : > { %v2746_v34 = vadd.f32 %v2674_v29, %v2276_v21  ;;  %v3614_v36 = vsel %vm3593_vm3, %v3504_v26, 0.0  ;;  %v2168_v37 = vmul.f32 %v2096_v27, %v2096_v27  ;;  %v3829_v40 = vadd.f32 %v3757_v24, %v3685_v28  ;;  %v3290_v57 = vld [vmem:[%s4645_s19 + $0x6e8] sm:$0xff]  ;;  %v2893_v15 = vld [vmem:[%s4651_s28 + $0x4b0] sm:$0xff] }
 0x1c8   : > { %vm2256_vm4 = vcmp.lt.s32.totalorder %v5414_v30, 591  ;;  %v2565_v41 = vmul.f32 %v2493_v31, %v2493_v31  ;;  %v2963_v45 = vsub.f32 %v2819_v32, %v2891_v63  ;;  %v5433_v46 = vadd.s32 %v5330_v54, %v1931_v16  ;;  %v3362_v62 = vld [vmem:[%s4651_s28 + $0x6e8] sm:$0xff]  ;;  %v3363_v17 = vld [vmem:[%s4651_s28 + $0x6f0] sm:$0xff]  ;;  %v1955_v32 = vld [vmem:[%s4645_s19 + $0x38] sm:$0xff] }
 0x1c9   : > { %v3216_v6 = vadd.f32 %v3144_v35, %v2746_v34  ;;  %v2277_v8 = vsel %vm2256_vm4, %v2168_v37, 0.0  ;;  %3901 = vst [vmem:[#allocation2 + $0x40] sm:$0xff] %v3829_v40  ;;  %vm2654_vm5 = vcmp.lt.s32.totalorder %v5428_v42, 591  ;;  %v3433_v50 = vsub.f32 %v3289_v33, %v3361_v1  ;;  %v3759_v22 = vld [vmem:[#allocation2 + $0xe8] sm:$0xff]  ;;  %v2027_v63 = vld [vmem:[%s4651_s28 + $0x38] sm:$0xff]  ;;  %v2895_v30 = vld [vmem:[%s4651_s28 + $0x4c0] sm:$0xff] }
 0x1ca   : > { %v5439_v52 = vadd.s32 %v5334_v59, %v1931_v16  ;;  %v2097_v53 = vsub.f32 %v1953_v38, %v2025_v39  ;;  %v2675_v60 = vsel %vm2654_vm5, %v2565_v41, 0.0  ;;  %v3035_v61 = vmul.f32 %v2963_v45, %v2963_v45  ;;  %v3291_v16 = vld [vmem:[%s4645_s19 + $0x6f0] sm:$0xff]  ;;  %v2352_v37 = vld [vmem:[%s4645_s19 + $0x278] sm:$0xff]  ;;  %v3365_v42 = vld [vmem:[%s4651_s28 + $0x700] sm:$0xff] }
 0x1cb   : > { %v3686_v58 = vadd.f32 %v3614_v36, %v3216_v6  ;;  %vm3124_vm6 = vcmp.lt.s32.totalorder %v5433_v46, 591  ;;  %v2747_v3 = vadd.f32 %v2675_v60, %v2277_v8  ;;  %v3505_v4 = vmul.f32 %v3433_v50, %v3433_v50  ;;  %v2424_v1 = vld [vmem:[%s4651_s28 + $0x278] sm:$0xff]  ;;  %v1956_v60 = vld [vmem:[%s4645_s19 + $0x40] sm:$0xff]  ;;  %v1957_v46 = vld [vmem:[%s4645_s19 + $0x48] sm:$0xff] }
 0x1cc   : > { %vm3594_vm7 = vcmp.lt.s32.totalorder %v5439_v52, 591  ;;  %v2169_v5 = vmul.f32 %v2097_v53, %v2097_v53  ;;  %v3145_v12 = vsel %vm3124_vm6, %v3035_v61, 0.0  ;;  %v2494_v13 = vsub.f32 %v2350_v47, %v2422_v49  ;;  %v2822_v38 = vld [vmem:[%s4645_s19 + $0x4b8] sm:$0xff]  ;;  %v2028_v61 = vld [vmem:[%s4651_s28 + $0x40] sm:$0xff] }
 0x1cd   : > { %v3830_v11 = vadd.f32 %v3758_v43, %v3686_v58  ;;  %v2964_v14 = vsub.f32 %v2820_v55, %v2892_v56  ;;  %v3217_v18 = vadd.f32 %v3145_v12, %v2747_v3  ;;  %v3615_v19 = vsel %vm3594_vm7, %v3505_v4, 0.0  ;;  %v2894_v43 = vld [vmem:[%s4651_s28 + $0x4b8] sm:$0xff] }
 0x1ce   : > { %v2278_v20 = vsel %vm2256_vm4, %v2169_v5, 0.0  ;;  %v3434_v21 = vsub.f32 %v3290_v57, %v3362_v62  ;;  %v2566_v23 = vmul.f32 %v2494_v13, %v2494_v13  ;;  %v2098_v25 = vsub.f32 %v1954_v0, %v2026_v2  ;;  %v3292_v8 = vld [vmem:[%s4645_s19 + $0x6f8] sm:$0xff]  ;;  %v3760_v62 = vld [vmem:[#allocation2 + $0xf0] sm:$0xff] }
 0x1cf   : > { %3902 = vst [vmem:[#allocation2 + $0x28] sm:$0xff] %v3830_v11  ;;  %v3036_v24 = vmul.f32 %v2964_v14, %v2964_v14  ;;  %v2495_v26 = vsub.f32 %v2351_v7, %v2423_v9  ;;  %v3687_v27 = vadd.f32 %v3615_v19, %v3217_v18  ;;  %v2965_v29 = vsub.f32 %v2821_v10, %v2893_v15  ;;  %v3364_v45 = vld [vmem:[%s4651_s28 + $0x6f8] sm:$0xff]  ;;  %v3761_v11 = vld [vmem:[#allocation2 + $0x70] sm:$0xff] }
 0x1d0   : > { %v3506_v28 = vmul.f32 %v3434_v21, %v3434_v21  ;;  %v3435_v31 = vsub.f32 %v3291_v16, %v3363_v17  ;;  %v2676_v33 = vsel %vm2654_vm5, %v2566_v23, 0.0  ;;  %v2170_v35 = vmul.f32 %v2098_v25, %v2098_v25  ;;  %v2353_v16 = vld [vmem:[%s4645_s19 + $0x280] sm:$0xff] }
 0x1d1   : > { %v3146_v34 = vsel %vm3124_vm6, %v3036_v24, 0.0  ;;  %v2567_v36 = vmul.f32 %v2495_v26, %v2495_v26  ;;  %v3831_v39 = vadd.f32 %v3759_v22, %v3687_v27  ;;  %v2748_v40 = vadd.f32 %v2676_v33, %v2278_v20  ;;  %v2425_v17 = vld [vmem:[%s4651_s28 + $0x280] sm:$0xff] }
 0x1d2   : > { %v3616_v41 = vsel %vm3594_vm7, %v3506_v28, 0.0  ;;  %v3037_v6 = vmul.f32 %v2965_v29, %v2965_v29  ;;  %v2279_v47 = vsel %vm2256_vm4, %v2170_v35, 0.0  ;;  %v3507_v50 = vmul.f32 %v3435_v31, %v3435_v31  ;;  %v2823_v22 = vld [vmem:[%s4645_s19 + $0x4c0] sm:$0xff]  ;;  %v2354_v35 = vld [vmem:[%s4645_s19 + $0x288] sm:$0xff] }
 0x1d3   : > { %v2677_v49 = vsel %vm2654_vm5, %v2567_v36, 0.0  ;;  %v2099_v53 = vsub.f32 %v1955_v32, %v2027_v63  ;;  %3903 = vst [vmem:[#allocation2 + $0xe8] sm:$0xff] %v3831_v39  ;;  %v3218_v55 = vadd.f32 %v3146_v34, %v2748_v40  ;;  %v2496_v58 = vsub.f32 %v2352_v37, %v2424_v1  ;;  %v3293_v27 = vld [vmem:[%s4645_s19 + $0x700] sm:$0xff]  ;;  %v2029_v32 = vld [vmem:[%s4651_s28 + $0x48] sm:$0xff] }
 0x1d4   : > { %v2749_v56 = vadd.f32 %v2677_v49, %v2279_v47  ;;  %v3147_v57 = vsel %vm3124_vm6, %v3037_v6, 0.0  ;;  %v3617_v0 = vsel %vm3594_vm7, %v3507_v50, 0.0  ;;  %v2966_v3 = vsub.f32 %v2822_v38, %v2894_v43  ;;  %v2426_v36 = vld [vmem:[%s4651_s28 + $0x288] sm:$0xff]  ;;  %v3762_v37 = vld [vmem:[#allocation2 + $0x120] sm:$0xff]  ;;  %v1958_v49 = vld [vmem:[%s4645_s19 + $0x50] sm:$0xff] }
 0x1d5   : > { %v2171_v2 = vmul.f32 %v2099_v53, %v2099_v53  ;;  %v3436_v4 = vsub.f32 %v3292_v8, %v3364_v45  ;;  %v3688_v5 = vadd.f32 %v3616_v41, %v3218_v55  ;;  %v2568_v9 = vmul.f32 %v2496_v58, %v2496_v58  ;;  %v2824_v40 = vld [vmem:[%s4645_s19 + $0x4c8] sm:$0xff]  ;;  %v2427_v58 = vld [vmem:[%s4651_s28 + $0x290] sm:$0xff] }
 0x1d6   : > { %v3219_v7 = vadd.f32 %v3147_v57, %v2749_v56  ;;  %v1932_v10 = vadd.s32 16, %v5328_v51  ;;  %v3038_v13 = vmul.f32 %v2966_v3, %v2966_v3  ;;  %v2100_v15 = vsub.f32 %v1956_v60, %v2028_v61  ;;  %v2896_v41 = vld [vmem:[%s4651_s28 + $0x4c8] sm:$0xff]  ;;  %v2030_v56 = vld [vmem:[%s4651_s28 + $0x50] sm:$0xff] }
 0x1d7   : > { %v2280_v12 = vsel %vm2256_vm4, %v2171_v2, 0.0  ;;  %v3508_v14 = vmul.f32 %v3436_v4, %v3436_v4  ;;  %v3832_v18 = vadd.f32 %v3760_v62, %v3688_v5  ;;  %v2678_v20 = vsel %vm2654_vm5, %v2568_v9, 0.0  ;;  %v3294_v45 = vld [vmem:[%s4645_s19 + $0x708] sm:$0xff]  ;;  %v2355_v57 = vld [vmem:[%s4645_s19 + $0x290] sm:$0xff] }
 0x1d8   : > { %v3689_v19 = vadd.f32 %v3617_v0, %v3219_v7  ;;  %v5495_v21 = vadd.s32 %v5317_v44, %v1932_v10  ;;  %v2750_v23 = vadd.f32 %v2678_v20, %v2280_v12  ;;  %v3148_v24 = vsel %vm3124_vm6, %v3038_v13, 0.0  ;;  %v3366_v47 = vld [vmem:[%s4651_s28 + $0x708] sm:$0xff]  ;;  %v2825_v2 = vld [vmem:[%s4645_s19 + $0x4d0] sm:$0xff] }
 0x1d9   : > { %v3618_v25 = vsel %vm3594_vm7, %v3508_v14, 0.0  ;;  %v2172_v26 = vmul.f32 %v2100_v15, %v2100_v15  ;;  %3904 = vst [vmem:[#allocation2 + $0xf0] sm:$0xff] %v3832_v18  ;;  %v2497_v29 = vsub.f32 %v2353_v16, %v2425_v17  ;;  %v5507_v31 = vadd.s32 %v5323_v48, %v1932_v10  ;;  %v2897_v3 = vld [vmem:[%s4651_s28 + $0x4d0] sm:$0xff]  ;;  %v3763_v16 = vld [vmem:[#allocation2 + $0xd8] sm:$0xff] }
 0x1da   : > { %v3833_v28 = vadd.f32 %v3761_v11, %v3689_v19  ;;  %vm2257_vm8 = vcmp.lt.s32.totalorder %v5495_v21, 591  ;;  %v3220_v63 = vadd.f32 %v3148_v24, %v2750_v23  ;;  %v2967_v33 = vsub.f32 %v2823_v22, %v2895_v30  ;;  %v3295_v14 = vld [vmem:[%s4645_s19 + $0x710] sm:$0xff]  ;;  %v1959_v22 = vld [vmem:[%s4645_s19 + $0x58] sm:$0xff] }
 0x1db   : > { %v2281_v52 = vsel %vm2257_vm8, %v2172_v26, 0.0  ;;  %v5514_v34 = vadd.s32 %v5330_v54, %v1932_v10  ;;  %v2569_v1 = vmul.f32 %v2497_v29, %v2497_v29  ;;  %vm2655_vm9 = vcmp.lt.s32.totalorder %v5507_v31, 591  ;;  %v3367_v15 = vld [vmem:[%s4651_s28 + $0x710] sm:$0xff]  ;;  %v2031_v30 = vld [vmem:[%s4651_s28 + $0x58] sm:$0xff]  ;;  %v2033_v31 = vld [vmem:[%s4651_s28 + $0x68] sm:$0xff] }
 0x1dc   : > { %3905 = vst [vmem:[#allocation2 + $0x70] sm:$0xff] %v3833_v28  ;;  %v3437_v38 = vsub.f32 %v3293_v27, %v3365_v42  ;;  %v5520_v39 = vadd.s32 %v5334_v59, %v1932_v10  ;;  %v3690_v6 = vadd.f32 %v3618_v25, %v3220_v63  ;;  %v3039_v43 = vmul.f32 %v2967_v33, %v2967_v33  ;;  %v2356_v27 = vld [vmem:[%s4645_s19 + $0x298] sm:$0xff] }
 0x1dd   : > { %vm3125_vm10 = vcmp.lt.s32.totalorder %v5514_v34, 591  ;;  %v2101_v8 = vsub.f32 %v1957_v46, %v2029_v32  ;;  %v2679_v50 = vsel %vm2655_vm9, %v2569_v1, 0.0  ;;  %v2498_v55 = vsub.f32 %v2354_v35, %v2426_v36  ;;  %v2428_v42 = vld [vmem:[%s4651_s28 + $0x298] sm:$0xff] }
 0x1de   : > { %v3509_v53 = vmul.f32 %v3437_v38, %v3437_v38  ;;  %vm3595_vm11 = vcmp.lt.s32.totalorder %v5520_v39, 591  ;;  %v3834_v60 = vadd.f32 %v3762_v37, %v3690_v6  ;;  %v2751_v61 = vadd.f32 %v2679_v50, %v2281_v52  ;;  %v2826_v28 = vld [vmem:[%s4645_s19 + $0x4d8] sm:$0xff] }
 0x1df   : > { %v3149_v62 = vsel %vm3125_vm10, %v3039_v43, 0.0  ;;  %v2173_v0 = vmul.f32 %v2101_v8, %v2101_v8  ;;  %v2570_v5 = vmul.f32 %v2498_v55, %v2498_v55  ;;  %v2968_v7 = vsub.f32 %v2824_v40, %v2896_v41  ;;  %v2898_v52 = vld [vmem:[%s4651_s28 + $0x4d8] sm:$0xff]  ;;  %v2032_v55 = vld [vmem:[%s4651_s28 + $0x60] sm:$0xff] }
 0x1e0   : > { %v3619_v4 = vsel %vm3595_vm11, %v3509_v53, 0.0  ;;  %v3438_v9 = vsub.f32 %v3294_v45, %v3366_v47  ;;  %3906 = vst [vmem:[#allocation2 + $0x120] sm:$0xff] %v3834_v60  ;;  %v3221_v10 = vadd.f32 %v3149_v62, %v2751_v61  ;;  %v2102_v12 = vsub.f32 %v1958_v49, %v2030_v56  ;;  %v3296_v33 = vld [vmem:[%s4645_s19 + $0x718] sm:$0xff]  ;;  %v1960_v53 = vld [vmem:[%s4645_s19 + $0x60] sm:$0xff] }
 0x1e1   : > { %v2282_v11 = vsel %vm2257_vm8, %v2173_v0, 0.0  ;;  %v2499_v13 = vsub.f32 %v2355_v57, %v2427_v58  ;;  %v2680_v17 = vsel %vm2655_vm9, %v2570_v5, 0.0  ;;  %v3040_v18 = vmul.f32 %v2968_v7, %v2968_v7  ;;  %v3368_v35 = vld [vmem:[%s4651_s28 + $0x718] sm:$0xff]  ;;  %v2357_v61 = vld [vmem:[%s4645_s19 + $0x2a0] sm:$0xff] }
 0x1e2   : > { %v3510_v19 = vmul.f32 %v3438_v9, %v3438_v9  ;;  %v2969_v20 = vsub.f32 %v2825_v2, %v2897_v3  ;;  %v3691_v23 = vadd.f32 %v3619_v4, %v3221_v10  ;;  %v2752_v24 = vadd.f32 %v2680_v17, %v2282_v11  ;;  %v3764_v40 = vld [vmem:[#allocation2 + $0x18] sm:$0xff]  ;;  %v2429_v62 = vld [vmem:[%s4651_s28 + $0x2a0] sm:$0xff]  ;;  %v3765_v2 = vld [vmem:[#allocation2 + $0xb0] sm:$0xff] }
 0x1e3   : > { %v2174_v25 = vmul.f32 %v2102_v12, %v2102_v12  ;;  %v2571_v26 = vmul.f32 %v2499_v13, %v2499_v13  ;;  %v3150_v29 = vsel %vm3125_vm10, %v3040_v18, 0.0  ;;  %v3439_v63 = vsub.f32 %v3295_v14, %v3367_v15  ;;  %v2827_v12 = vld [vmem:[%s4645_s19 + $0x4e0] sm:$0xff] }
 0x1e4   : > { %v3620_v46 = vsel %vm3595_vm11, %v3510_v19, 0.0  ;;  %v3041_v32 = vmul.f32 %v2969_v20, %v2969_v20  ;;  %v3835_v36 = vadd.f32 %v3763_v16, %v3691_v23  ;;  %v3222_v37 = vadd.f32 %v3150_v29, %v2752_v24  ;;  %v2899_v13 = vld [vmem:[%s4651_s28 + $0x4e0] sm:$0xff]  ;;  %v3766_v23 = vld [vmem:[#allocation2 + $0x158] sm:$0xff]  ;;  %v2358_v29 = vld [vmem:[%s4645_s19 + $0x2a8] sm:$0xff] }
 0x1e5   : > { %v2283_v1 = vsel %vm2257_vm8, %v2174_v25, 0.0  ;;  %v2681_v38 = vsel %vm2655_vm9, %v2571_v26, 0.0  ;;  %v3511_v43 = vmul.f32 %v3439_v63, %v3439_v63  ;;  %v2103_v8 = vsub.f32 %v1959_v22, %v2031_v30  ;;  %v3297_v17 = vld [vmem:[%s4645_s19 + $0x720] sm:$0xff]  ;;  %v1961_v30 = vld [vmem:[%s4645_s19 + $0x68] sm:$0xff] }
 0x1e6   : > { %v2753_v41 = vadd.f32 %v2681_v38, %v2283_v1  ;;  %v3151_v6 = vsel %vm3125_vm10, %v3041_v32, 0.0  ;;  %3907 = vst [vmem:[#allocation2 + $0xd8] sm:$0xff] %v3835_v36  ;;  %v3692_v45 = vadd.f32 %v3620_v46, %v3222_v37  ;;  %v2500_v47 = vsub.f32 %v2356_v27, %v2428_v42  ;;  %v3369_v18 = vld [vmem:[%s4651_s28 + $0x720] sm:$0xff]  ;;  %v2430_v46 = vld [vmem:[%s4651_s28 + $0x2a8] sm:$0xff] }
 0x1e7   : > { %v2970_v49 = vsub.f32 %v2826_v28, %v2898_v52  ;;  %v3440_v50 = vsub.f32 %v3296_v33, %v3368_v35  ;;  %v3621_v57 = vsel %vm3595_vm11, %v3511_v43, 0.0  ;;  %v2175_v58 = vmul.f32 %v2103_v8, %v2103_v8  ;;  %v2828_v32 = vld [vmem:[%s4645_s19 + $0x4e8] sm:$0xff] }
 0x1e8   : > { %v3223_v56 = vadd.f32 %v3151_v6, %v2753_v41  ;;  %v1933_v60 = vadd.s32 24, %v5328_v51  ;;  %v3836_v0 = vadd.f32 %v3764_v40, %v3692_v45  ;;  %v2572_v3 = vmul.f32 %v2500_v47, %v2500_v47  ;;  %v2900_v33 = vld [vmem:[%s4651_s28 + $0x4e8] sm:$0xff]  ;;  %v1962_v40 = vld [vmem:[%s4645_s19 + $0x70] sm:$0xff] }
 0x1e9   : > { %v3042_v4 = vmul.f32 %v2970_v49, %v2970_v49  ;;  %v3512_v5 = vmul.f32 %v3440_v50, %v3440_v50  ;;  %v2284_v9 = vsel %vm2257_vm8, %v2175_v58, 0.0  ;;  %v2104_v10 = vsub.f32 %v1960_v53, %v2032_v55  ;;  %v3298_v35 = vld [vmem:[%s4645_s19 + $0x728] sm:$0xff]  ;;  %v2034_v41 = vld [vmem:[%s4651_s28 + $0x70] sm:$0xff] }
 0x1ea   : > { %v3693_v7 = vadd.f32 %v3621_v57, %v3223_v56  ;;  %v5574_v11 = vadd.s32 %v5317_v44, %v1933_v60  ;;  %3908 = vst [vmem:[#allocation2 + $0x18] sm:$0xff] %v3836_v0  ;;  %v2682_v14 = vsel %vm2655_vm9, %v2572_v3, 0.0  ;;  %v2501_v21 = vsub.f32 %v2357_v61, %v2429_v62  ;;  %v3370_v36 = vld [vmem:[%s4651_s28 + $0x728] sm:$0xff]  ;;  %v2359_v6 = vld [vmem:[%s4645_s19 + $0x2b0] sm:$0xff] }
 0x1eb   : > { %v3152_v15 = vsel %vm3125_vm10, %v3042_v4, 0.0  ;;  %v3622_v16 = vsel %vm3595_vm11, %v3512_v5, 0.0  ;;  %v2754_v20 = vadd.f32 %v2682_v14, %v2284_v9  ;;  %v2176_v22 = vmul.f32 %v2104_v10, %v2104_v10  ;;  %v2431_v49 = vld [vmem:[%s4651_s28 + $0x2b0] sm:$0xff]  ;;  %v3767_v4 = vld [vmem:[#allocation2 + $0x108] sm:$0xff] }
 0x1ec   : > { %v3837_v19 = vadd.f32 %v3765_v2, %v3693_v7  ;;  %vm2258_vm12 = vcmp.lt.s32.totalorder %v5574_v11, 591  ;;  %v2573_v24 = vmul.f32 %v2501_v21, %v2501_v21  ;;  %v5590_v34 = vadd.s32 %v5323_v48, %v1933_v60  ;;  %v2829_v50 = vld [vmem:[%s4645_s19 + $0x4f0] sm:$0xff]  ;;  %v2035_v21 = vld [vmem:[%s4651_s28 + $0x78] sm:$0xff] }
 0x1ed   : > { %v2971_v39 = vsub.f32 %v2827_v12, %v2899_v13  ;;  %v5593_v25 = vadd.s32 %v5330_v54, %v1933_v60  ;;  %v3224_v26 = vadd.f32 %v3152_v15, %v2754_v20  ;;  %v2285_v27 = vsel %vm2258_vm12, %v2176_v22, 0.0  ;;  %v2901_v53 = vld [vmem:[%s4651_s28 + $0x4f0] sm:$0xff]  ;;  %v1963_v12 = vld [vmem:[%s4645_s19 + $0x78] sm:$0xff] }
 0x1ee   : > { %3909 = vst [vmem:[#allocation2 + $0xb0] sm:$0xff] %v3837_v19  ;;  %v3441_v42 = vsub.f32 %v3297_v17, %v3369_v18  ;;  %v5598_v28 = vadd.s32 %v5334_v59, %v1933_v60  ;;  %vm2656_vm13 = vcmp.lt.s32.totalorder %v5590_v34, 591  ;;  %v2105_v52 = vsub.f32 %v1961_v30, %v2033_v31  ;;  %v3299_v60 = vld [vmem:[%s4645_s19 + $0x730] sm:$0xff]  ;;  %v2360_v17 = vld [vmem:[%s4645_s19 + $0x2b8] sm:$0xff] }
 0x1ef   : > { %v3043_v63 = vmul.f32 %v2971_v39, %v2971_v39  ;;  %vm3126_vm14 = vcmp.lt.s32.totalorder %v5593_v25, 591  ;;  %v3694_v37 = vadd.f32 %v3622_v16, %v3224_v26  ;;  %v2683_v1 = vsel %vm2656_vm13, %v2573_v24, 0.0  ;;  %v3371_v61 = vld [vmem:[%s4651_s28 + $0x730] sm:$0xff]  ;;  %v2432_v18 = vld [vmem:[%s4651_s28 + $0x2b8] sm:$0xff] }
 0x1f0   : > { %v3513_v38 = vmul.f32 %v3441_v42, %v3441_v42  ;;  %vm3596_vm15 = vcmp.lt.s32.totalorder %v5598_v28, 591  ;;  %v2755_v43 = vadd.f32 %v2683_v1, %v2285_v27  ;;  %v2177_v45 = vmul.f32 %v2105_v52, %v2105_v52  ;;  %v2830_v31 = vld [vmem:[%s4645_s19 + $0x4f8] sm:$0xff]  ;;  %v1965_v28 = vld [vmem:[%s4645_s19 + $0x88] sm:$0xff] }
 0x1f1   : > { %v3153_v8 = vsel %vm3126_vm14, %v3043_v63, 0.0  ;;  %v2502_v47 = vsub.f32 %v2358_v29, %v2430_v46  ;;  %v3838_v55 = vadd.f32 %v3766_v23, %v3694_v37  ;;  %v2972_v57 = vsub.f32 %v2828_v32, %v2900_v33  ;;  %v2902_v23 = vld [vmem:[%s4651_s28 + $0x4f8] sm:$0xff]  ;;  %v1964_v33 = vld [vmem:[%s4645_s19 + $0x80] sm:$0xff] }
 0x1f2   : > { %v3623_v56 = vsel %vm3596_vm15, %v3513_v38, 0.0  ;;  %v3442_v58 = vsub.f32 %v3298_v35, %v3370_v36  ;;  %v3225_v62 = vadd.f32 %v3153_v8, %v2755_v43  ;;  %v2286_v0 = vsel %vm2258_vm12, %v2177_v45, 0.0  ;;  %v3300_v42 = vld [vmem:[%s4645_s19 + $0x738] sm:$0xff]  ;;  %v2036_v35 = vld [vmem:[%s4651_s28 + $0x80] sm:$0xff]  ;;  %v3768_v36 = vld [vmem:[#allocation2 + $0x110] sm:$0xff] }
 0x1f3   : > { %v2574_v2 = vmul.f32 %v2502_v47, %v2502_v47  ;;  %v2106_v3 = vsub.f32 %v1962_v40, %v2034_v41  ;;  %3910 = vst [vmem:[#allocation2 + $0x158] sm:$0xff] %v3838_v55  ;;  %v3044_v5 = vmul.f32 %v2972_v57, %v2972_v57  ;;  %v2503_v9 = vsub.f32 %v2359_v6, %v2431_v49  ;;  %v3372_v29 = vld [vmem:[%s4651_s28 + $0x738] sm:$0xff]  ;;  %v2433_v55 = vld [vmem:[%s4651_s28 + $0x2c0] sm:$0xff] }
 0x1f4   : > { %v3514_v7 = vmul.f32 %v3442_v58, %v3442_v58  ;;  %v2973_v10 = vsub.f32 %v2829_v50, %v2901_v53  ;;  %v3695_v13 = vadd.f32 %v3623_v56, %v3225_v62  ;;  %v3443_v16 = vsub.f32 %v3299_v60, %v3371_v61  ;;  %v2361_v53 = vld [vmem:[%s4645_s19 + $0x2c0] sm:$0xff]  ;;  %v3769_v57 = vld [vmem:[#allocation2 + $0x1f8] sm:$0xff] }
 0x1f5   : > { %v2684_v14 = vsel %vm2656_vm13, %v2574_v2, 0.0  ;;  %v2178_v15 = vmul.f32 %v2106_v3, %v2106_v3  ;;  %v3154_v20 = vsel %vm3126_vm14, %v3044_v5, 0.0  ;;  %v2575_v30 = vmul.f32 %v2503_v9, %v2503_v9  ;;  %v2831_v62 = vld [vmem:[%s4645_s19 + $0x500] sm:$0xff] }
 0x1f6   : > { %v2756_v19 = vadd.f32 %v2684_v14, %v2286_v0  ;;  %v3624_v22 = vsel %vm3596_vm15, %v3514_v7, 0.0  ;;  %v3839_v24 = vadd.f32 %v3767_v4, %v3695_v13  ;;  %v3045_v26 = vmul.f32 %v2973_v10, %v2973_v10  ;;  %v2903_v0 = vld [vmem:[%s4651_s28 + $0x500] sm:$0xff]  ;;  %v3770_v14 = vld [vmem:[#allocation2 + $0xb8] sm:$0xff] }
 0x1f7   : > { %v2287_v39 = vsel %vm2258_vm12, %v2178_v15, 0.0  ;;  %v3515_v27 = vmul.f32 %v3443_v16, %v3443_v16  ;;  %v2685_v32 = vsel %vm2656_vm13, %v2575_v30, 0.0  ;;  %v2107_v63 = vsub.f32 %v1963_v12, %v2035_v21  ;;  %v3301_v7 = vld [vmem:[%s4645_s19 + $0x740] sm:$0xff]  ;;  %v2037_v21 = vld [vmem:[%s4651_s28 + $0x88] sm:$0xff] }
 0x1f8   : > { %v3226_v46 = vadd.f32 %v3154_v20, %v2756_v19  ;;  %v2504_v52 = vsub.f32 %v2360_v17, %v2432_v18  ;;  %3911 = vst [vmem:[#allocation2 + $0x108] sm:$0xff] %v3839_v24  ;;  %v2757_v37 = vadd.f32 %v2685_v32, %v2287_v39  ;;  %v3155_v1 = vsel %vm3126_vm14, %v3045_v26, 0.0  ;;  %v3373_v9 = vld [vmem:[%s4651_s28 + $0x740] sm:$0xff]  ;;  %v2362_v19 = vld [vmem:[%s4645_s19 + $0x2c8] sm:$0xff]  ;;  %v1966_v32 = vld [vmem:[%s4645_s19 + $0x90] sm:$0xff] }
 0x1f9   : > { %v3625_v38 = vsel %vm3596_vm15, %v3515_v27, 0.0  ;;  %v2974_v40 = vsub.f32 %v2830_v31, %v2902_v23  ;;  %v2179_v6 = vmul.f32 %v2107_v63, %v2107_v63  ;;  %v3444_v8 = vsub.f32 %v3300_v42, %v3372_v29  ;;  %v2434_v20 = vld [vmem:[%s4651_s28 + $0x2c8] sm:$0xff]  ;;  %v2038_v63 = vld [vmem:[%s4651_s28 + $0x90] sm:$0xff] }
 0x1fa   : > { %v3696_v41 = vadd.f32 %v3624_v22, %v3226_v46  ;;  %v2576_v43 = vmul.f32 %v2504_v52, %v2504_v52  ;;  %v3227_v45 = vadd.f32 %v3155_v1, %v2757_v37  ;;  %v1934_v49 = vadd.s32 32, %v5328_v51  ;;  %v2832_v22 = vld [vmem:[%s4645_s19 + $0x508] sm:$0xff]  ;;  %v2363_v37 = vld [vmem:[%s4645_s19 + $0x2d0] sm:$0xff] }
 0x1fb   : > { %v3046_v47 = vmul.f32 %v2974_v40, %v2974_v40  ;;  %v2108_v50 = vsub.f32 %v1964_v33, %v2036_v35  ;;  %v2288_v58 = vsel %vm2258_vm12, %v2179_v6, 0.0  ;;  %v3516_v61 = vmul.f32 %v3444_v8, %v3444_v8  ;;  %v2904_v24 = vld [vmem:[%s4651_s28 + $0x508] sm:$0xff]  ;;  %v2435_v1 = vld [vmem:[%s4651_s28 + $0x2d0] sm:$0xff] }
 0x1fc   : > { %v3840_v56 = vadd.f32 %v3768_v36, %v3696_v41  ;;  %v2686_v60 = vsel %vm2656_vm13, %v2576_v43, 0.0  ;;  %v3697_v2 = vadd.f32 %v3625_v38, %v3227_v45  ;;  %v5665_v34 = vadd.s32 %v5317_v44, %v1934_v49  ;;  %v3302_v39 = vld [vmem:[%s4645_s19 + $0x748] sm:$0xff]  ;;  %v2833_v6 = vld [vmem:[%s4645_s19 + $0x510] sm:$0xff] }
 0x1fd   : > { %v2758_v3 = vadd.f32 %v2686_v60, %v2288_v58  ;;  %v3156_v4 = vsel %vm3126_vm14, %v3046_v47, 0.0  ;;  %v2180_v5 = vmul.f32 %v2108_v50, %v2108_v50  ;;  %v3626_v11 = vsel %vm3596_vm15, %v3516_v61, 0.0  ;;  %v3374_v26 = vld [vmem:[%s4651_s28 + $0x748] sm:$0xff]  ;;  %v2905_v43 = vld [vmem:[%s4651_s28 + $0x510] sm:$0xff]  ;;  %v3771_v47 = vld [vmem:[#allocation2 + $0x180] sm:$0xff] }
 0x1fe   : > { %3912 = vst [vmem:[#allocation2 + $0x110] sm:$0xff] %v3840_v56  ;;  %v2505_v10 = vsub.f32 %v2361_v53, %v2433_v55  ;;  %v5668_v12 = vadd.s32 %v5323_v48, %v1934_v49  ;;  %v3841_v25 = vadd.f32 %v3769_v57, %v3697_v2  ;;  %v2975_v15 = vsub.f32 %v2831_v62, %v2903_v0  ;;  %v3303_v58 = vld [vmem:[%s4645_s19 + $0x750] sm:$0xff]  ;;  %v1967_v61 = vld [vmem:[%s4645_s19 + $0x98] sm:$0xff] }
 0x1ff   : > { %v3228_v13 = vadd.f32 %v3156_v4, %v2758_v3  ;;  %v5671_v16 = vadd.s32 %v5330_v54, %v1934_v49  ;;  %vm2259_vm0 = vcmp.lt.s32.totalorder %v5665_v34, 591  ;;  %v3445_v18 = vsub.f32 %v3301_v7, %v3373_v9  ;;  %v3375_v60 = vld [vmem:[%s4651_s28 + $0x750] sm:$0xff]  ;;  %v2039_v4 = vld [vmem:[%s4651_s28 + $0x98] sm:$0xff] }
 0x200   : > { %v2577_v17 = vmul.f32 %v2505_v10, %v2505_v10  ;;  %vm2657_vm1 = vcmp.lt.s32.totalorder %v5668_v12, 591  ;;  %3913 = vst [vmem:[#allocation2 + $0x1f8] sm:$0xff] %v3841_v25  ;;  %v2289_v31 = vsel %vm2259_vm0, %v2180_v5, 0.0  ;;  %v3047_v23 = vmul.f32 %v2975_v15, %v2975_v15  ;;  %v2364_v5 = vld [vmem:[%s4645_s19 + $0x2d8] sm:$0xff] }
 0x201   : > { %v3698_v30 = vadd.f32 %v3626_v11, %v3228_v13  ;;  %vm3127_vm2 = vcmp.lt.s32.totalorder %v5671_v16, 591  ;;  %v3517_v42 = vmul.f32 %v3445_v18, %v3445_v18  ;;  %v5689_v29 = vadd.s32 %v5334_v59, %v1934_v49  ;;  %v2436_v7 = vld [vmem:[%s4651_s28 + $0x2d8] sm:$0xff] }
 0x202   : > { %v2687_v27 = vsel %vm2657_vm1, %v2577_v17, 0.0  ;;  %v2109_v46 = vsub.f32 %v1965_v28, %v2037_v21  ;;  %v3157_v35 = vsel %vm3127_vm2, %v3047_v23, 0.0  ;;  %v2506_v36 = vsub.f32 %v2362_v19, %v2434_v20  ;;  %v2834_v13 = vld [vmem:[%s4645_s19 + $0x518] sm:$0xff]  ;;  %v3772_v23 = vld [vmem:[#allocation2 + $0x190] sm:$0xff] }
 0x203   : > { %v3842_v52 = vadd.f32 %v3770_v14, %v3698_v30  ;;  %v2759_v33 = vadd.f32 %v2687_v27, %v2289_v31  ;;  %vm3597_vm3 = vcmp.lt.s32.totalorder %v5689_v29, 591  ;;  %v2976_v40 = vsub.f32 %v2832_v22, %v2904_v24  ;;  %v2906_v14 = vld [vmem:[%s4651_s28 + $0x518] sm:$0xff]  ;;  %v2041_v29 = vld [vmem:[%s4651_s28 + $0xa8] sm:$0xff] }
 0x204   : > { %v2181_v38 = vmul.f32 %v2109_v46, %v2109_v46  ;;  %v3446_v41 = vsub.f32 %v3302_v39, %v3374_v26  ;;  %v3627_v45 = vsel %vm3597_vm3, %v3517_v42, 0.0  ;;  %v2578_v49 = vmul.f32 %v2506_v36, %v2506_v36  ;;  %v3304_v18 = vld [vmem:[%s4645_s19 + $0x758] sm:$0xff] }
 0x205   : > { %3914 = vst [vmem:[#allocation2 + $0xb8] sm:$0xff] %v3842_v52  ;;  %v3229_v8 = vadd.f32 %v3157_v35, %v2759_v33  ;;  %v2110_v50 = vsub.f32 %v1966_v32, %v2038_v63  ;;  %v3048_v55 = vmul.f32 %v2976_v40, %v2976_v40  ;;  %v2507_v57 = vsub.f32 %v2363_v37, %v2435_v1  ;;  %v3376_v19 = vld [vmem:[%s4651_s28 + $0x758] sm:$0xff]  ;;  %v1968_v52 = vld [vmem:[%s4645_s19 + $0xa0] sm:$0xff] }
 0x206   : > { %v2290_v53 = vsel %vm2259_vm0, %v2181_v38, 0.0  ;;  %v3518_v56 = vmul.f32 %v3446_v41, %v3446_v41  ;;  %v2688_v0 = vsel %vm2657_vm1, %v2578_v49, 0.0  ;;  %v2977_v3 = vsub.f32 %v2833_v6, %v2905_v43  ;;  %v2040_v33 = vld [vmem:[%s4651_s28 + $0xa0] sm:$0xff] }
 0x207   : > { %v3699_v62 = vadd.f32 %v3627_v45, %v3229_v8  ;;  %v2182_v2 = vmul.f32 %v2110_v50, %v2110_v50  ;;  %v2760_v9 = vadd.f32 %v2688_v0, %v2290_v53  ;;  %v3158_v11 = vsel %vm3127_vm2, %v3048_v55, 0.0  ;;  %v2365_v38 = vld [vmem:[%s4645_s19 + $0x2e0] sm:$0xff] }
 0x208   : > { %v3628_v10 = vsel %vm3597_vm3, %v3518_v56, 0.0  ;;  %v2579_v25 = vmul.f32 %v2507_v57, %v2507_v57  ;;  %v3049_v21 = vmul.f32 %v2977_v3, %v2977_v3  ;;  %v3447_v17 = vsub.f32 %v3303_v58, %v3375_v60  ;;  %v2437_v40 = vld [vmem:[%s4651_s28 + $0x2e0] sm:$0xff]  ;;  %v1969_v3 = vld [vmem:[%s4645_s19 + $0xa8] sm:$0xff] }
 0x209   : > { %v3843_v15 = vadd.f32 %v3771_v47, %v3699_v62  ;;  %v2291_v28 = vsel %vm2259_vm0, %v2182_v2, 0.0  ;;  %v3230_v20 = vadd.f32 %v3158_v11, %v2760_v9  ;;  %v2111_v30 = vsub.f32 %v1967_v61, %v2039_v4  ;;  %v3773_v6 = vld [vmem:[#allocation2 + $0x140] sm:$0xff]  ;;  %v2366_v9 = vld [vmem:[%s4645_s19 + $0x2e8] sm:$0xff] }
 0x20a   : > { %v2689_v22 = vsel %vm2657_vm1, %v2579_v25, 0.0  ;;  %v2508_v31 = vsub.f32 %v2364_v5, %v2436_v7  ;;  %v3159_v39 = vsel %vm3127_vm2, %v3049_v21, 0.0  ;;  %v3519_v26 = vmul.f32 %v3447_v17, %v3447_v17  ;;  %v2835_v47 = vld [vmem:[%s4645_s19 + $0x520] sm:$0xff]  ;;  %v2438_v11 = vld [vmem:[%s4651_s28 + $0x2e8] sm:$0xff]  ;;  %v1970_v21 = vld [vmem:[%s4645_s19 + $0xb0] sm:$0xff] }
 0x20b   : > { %3915 = vst [vmem:[#allocation2 + $0x180] sm:$0xff] %v3843_v15  ;;  %v2761_v24 = vadd.f32 %v2689_v22, %v2291_v28  ;;  %v2978_v27 = vsub.f32 %v2834_v13, %v2906_v14  ;;  %v3700_v42 = vadd.f32 %v3628_v10, %v3230_v20  ;;  %v2183_v46 = vmul.f32 %v2111_v30, %v2111_v30  ;;  %v2907_v49 = vld [vmem:[%s4651_s28 + $0x520] sm:$0xff]  ;;  %v2836_v15 = vld [vmem:[%s4645_s19 + $0x528] sm:$0xff]  ;;  %v2042_v30 = vld [vmem:[%s4651_s28 + $0xb0] sm:$0xff] }
 0x20c   : > { %v2580_v32 = vmul.f32 %v2508_v31, %v2508_v31  ;;  %v3448_v63 = vsub.f32 %v3304_v18, %v3376_v19  ;;  %v3629_v36 = vsel %vm3597_vm3, %v3519_v26, 0.0  ;;  %v1935_v1 = vadd.s32 40, %v5328_v51  ;;  %v3305_v60 = vld [vmem:[%s4645_s19 + $0x760] sm:$0xff]  ;;  %v2908_v28 = vld [vmem:[%s4651_s28 + $0x528] sm:$0xff]  ;;  %v2367_v26 = vld [vmem:[%s4645_s19 + $0x2f0] sm:$0xff] }
 0x20d   : > { %v3231_v35 = vadd.f32 %v3159_v39, %v2761_v24  ;;  %v3050_v37 = vmul.f32 %v2978_v27, %v2978_v27  ;;  %v3844_v41 = vadd.f32 %v3772_v23, %v3700_v42  ;;  %v2292_v43 = vsel %vm2259_vm0, %v2183_v46, 0.0  ;;  %v3377_v61 = vld [vmem:[%s4651_s28 + $0x760] sm:$0xff]  ;;  %v3306_v20 = vld [vmem:[%s4645_s19 + $0x768] sm:$0xff]  ;;  %v2439_v27 = vld [vmem:[%s4651_s28 + $0x2f0] sm:$0xff] }
 0x20e   : > { %v2690_v8 = vsel %vm2657_vm1, %v2580_v32, 0.0  ;;  %v3520_v45 = vmul.f32 %v3448_v63, %v3448_v63  ;;  %v2112_v56 = vsub.f32 %v1968_v52, %v2040_v33  ;;  %v5744_v57 = vadd.s32 %v5317_v44, %v1935_v1  ;;  %v3774_v4 = vld [vmem:[#allocation2 + $0x1c0] sm:$0xff]  ;;  %v3378_v22 = vld [vmem:[%s4651_s28 + $0x768] sm:$0xff]  ;;  %v2837_v63 = vld [vmem:[%s4645_s19 + $0x530] sm:$0xff] }
 0x20f   : > { %v3701_v50 = vadd.f32 %v3629_v36, %v3231_v35  ;;  %v2762_v53 = vadd.f32 %v2690_v8, %v2292_v43  ;;  %v3160_v55 = vsel %vm3127_vm2, %v3050_v37, 0.0  ;;  %3916 = vst [vmem:[#allocation2 + $0x190] sm:$0xff] %v3844_v41  ;;  %v2509_v12 = vsub.f32 %v2365_v38, %v2437_v40  ;;  %v2909_v52 = vld [vmem:[%s4651_s28 + $0x530] sm:$0xff] }
 0x210   : > { %v3630_v34 = vsel %vm3597_vm3, %v3520_v45, 0.0  ;;  %v5747_v58 = vadd.s32 %v5323_v48, %v1935_v1  ;;  %v2184_v16 = vmul.f32 %v2112_v56, %v2112_v56  ;;  %v2979_v2 = vsub.f32 %v2835_v47, %v2907_v49  ;;  %v3379_v38 = vld [vmem:[%s4651_s28 + $0x770] sm:$0xff]  ;;  %v2368_v56 = vld [vmem:[%s4645_s19 + $0x2f8] sm:$0xff] }
 0x211   : > { %v3845_v62 = vadd.f32 %v3773_v6, %v3701_v50  ;;  %v3232_v0 = vadd.f32 %v3160_v55, %v2762_v53  ;;  %vm2260_vm4 = vcmp.lt.s32.totalorder %v5744_v57, 591  ;;  %v2581_v5 = vmul.f32 %v2509_v12, %v2509_v12  ;;  %v3775_v40 = vld [vmem:[#allocation2 + $0xd0] sm:$0xff]  ;;  %v1971_v53 = vld [vmem:[%s4645_s19 + $0xb8] sm:$0xff] }
 0x212   : > { %vm2658_vm5 = vcmp.lt.s32.totalorder %v5747_v58, 591  ;;  %v5756_v7 = vadd.s32 %v5330_v54, %v1935_v1  ;;  %v2293_v25 = vsel %vm2260_vm4, %v2184_v16, 0.0  ;;  %v3051_v13 = vmul.f32 %v2979_v2, %v2979_v2  ;;  %v2043_v55 = vld [vmem:[%s4651_s28 + $0xb8] sm:$0xff] }
 0x213   : > { %3917 = vst [vmem:[#allocation2 + $0x140] sm:$0xff] %v3845_v62  ;;  %v3702_v10 = vadd.f32 %v3630_v34, %v3232_v0  ;;  %v3449_v14 = vsub.f32 %v3305_v60, %v3377_v61  ;;  %v2691_v17 = vsel %vm2658_vm5, %v2581_v5, 0.0  ;;  %v5769_v18 = vadd.s32 %v5334_v59, %v1935_v1  ;;  %v3307_v1 = vld [vmem:[%s4645_s19 + $0x770] sm:$0xff]  ;;  %v2440_v62 = vld [vmem:[%s4651_s28 + $0x2f8] sm:$0xff] }
 0x214   : > { %vm3128_vm6 = vcmp.lt.s32.totalorder %v5756_v7, 591  ;;  %v2113_v19 = vsub.f32 %v1969_v3, %v2041_v29  ;;  %v2763_v23 = vadd.f32 %v2691_v17, %v2293_v25  ;;  %v2510_v46 = vsub.f32 %v2366_v9, %v2438_v11  ;;  %v2838_v0 = vld [vmem:[%s4645_s19 + $0x538] sm:$0xff]  ;;  %v1972_v17 = vld [vmem:[%s4645_s19 + $0xc0] sm:$0xff] }
 0x215   : > { %v3846_v31 = vadd.f32 %v3774_v4, %v3702_v10  ;;  %v3161_v24 = vsel %vm3128_vm6, %v3051_v13, 0.0  ;;  %v3521_v39 = vmul.f32 %v3449_v14, %v3449_v14  ;;  %vm3598_vm7 = vcmp.lt.s32.totalorder %v5769_v18, 591  ;;  %v2910_v16 = vld [vmem:[%s4651_s28 + $0x538] sm:$0xff] }
 0x216   : > { %v2185_v42 = vmul.f32 %v2113_v19, %v2113_v19  ;;  %v2980_v32 = vsub.f32 %v2836_v15, %v2908_v28  ;;  %v3233_v33 = vadd.f32 %v3161_v24, %v2763_v23  ;;  %v3450_v36 = vsub.f32 %v3306_v20, %v3378_v22  ;;  %v3308_v5 = vld [vmem:[%s4645_s19 + $0x778] sm:$0xff]  ;;  %v2044_v19 = vld [vmem:[%s4651_s28 + $0xc0] sm:$0xff] }
 0x217   : > { %3918 = vst [vmem:[#allocation2 + $0x1c0] sm:$0xff] %v3846_v31  ;;  %v3631_v35 = vsel %vm3598_vm7, %v3521_v39, 0.0  ;;  %v2114_v37 = vsub.f32 %v1970_v21, %v2042_v30  ;;  %v2582_v6 = vmul.f32 %v2510_v46, %v2510_v46  ;;  %v2511_v8 = vsub.f32 %v2367_v26, %v2439_v27  ;;  %v3380_v9 = vld [vmem:[%s4651_s28 + $0x778] sm:$0xff]  ;;  %v2441_v46 = vld [vmem:[%s4651_s28 + $0x300] sm:$0xff] }
 0x218   : > { %v2294_v41 = vsel %vm2260_vm4, %v2185_v42, 0.0  ;;  %v3052_v43 = vmul.f32 %v2980_v32, %v2980_v32  ;;  %v3703_v45 = vadd.f32 %v3631_v35, %v3233_v33  ;;  %v3522_v47 = vmul.f32 %v3450_v36, %v3450_v36  ;;  %v3776_v20 = vld [vmem:[#allocation2 + $0x138] sm:$0xff]  ;;  %v2369_v42 = vld [vmem:[%s4645_s19 + $0x300] sm:$0xff] }
 0x219   : > { %v2186_v49 = vmul.f32 %v2114_v37, %v2114_v37  ;;  %v2981_v50 = vsub.f32 %v2837_v63, %v2909_v52  ;;  %v2692_v34 = vsel %vm2658_vm5, %v2582_v6, 0.0  ;;  %v2583_v60 = vmul.f32 %v2511_v8, %v2511_v8  ;;  %v3777_v32 = vld [vmem:[#allocation2 + $0x60] sm:$0xff] }
 0x21a   : > { %v3162_v12 = vsel %vm3128_vm6, %v3052_v43, 0.0  ;;  %v3451_v61 = vsub.f32 %v3307_v1, %v3379_v38  ;;  %v3847_v2 = vadd.f32 %v3775_v40, %v3703_v45  ;;  %v2764_v3 = vadd.f32 %v2692_v34, %v2294_v41  ;;  %v2839_v36 = vld [vmem:[%s4645_s19 + $0x540] sm:$0xff]  ;;  %v2045_v34 = vld [vmem:[%s4651_s28 + $0xc8] sm:$0xff] }
 0x21b   : > { %v3632_v29 = vsel %vm3598_vm7, %v3522_v47, 0.0  ;;  %v2295_v4 = vsel %vm2260_vm4, %v2186_v49, 0.0  ;;  %v2693_v11 = vsel %vm2658_vm5, %v2583_v60, 0.0  ;;  %v3053_v10 = vmul.f32 %v2981_v50, %v2981_v50  ;;  %v2911_v37 = vld [vmem:[%s4651_s28 + $0x540] sm:$0xff]  ;;  %v2442_v60 = vld [vmem:[%s4651_s28 + $0x308] sm:$0xff] }
 0x21c   : > { %v3523_v25 = vmul.f32 %v3451_v61, %v3451_v61  ;;  %v2115_v13 = vsub.f32 %v1971_v53, %v2043_v55  ;;  %3919 = vst [vmem:[#allocation2 + $0xd0] sm:$0xff] %v3847_v2  ;;  %v3234_v14 = vadd.f32 %v3162_v12, %v2764_v3  ;;  %v2765_v15 = vadd.f32 %v2693_v11, %v2295_v4  ;;  %v3309_v6 = vld [vmem:[%s4645_s19 + $0x780] sm:$0xff]  ;;  %v1973_v53 = vld [vmem:[%s4645_s19 + $0xc8] sm:$0xff]  ;;  %v3778_v61 = vld [vmem:[#allocation2 + $0x1b8] sm:$0xff] }
 0x21d   : > { %v2512_v28 = vsub.f32 %v2368_v56, %v2440_v62  ;;  %v2982_v21 = vsub.f32 %v2838_v0, %v2910_v16  ;;  %v3163_v22 = vsel %vm3128_vm6, %v3053_v10, 0.0  ;;  %v3452_v23 = vsub.f32 %v3308_v5, %v3380_v9  ;;  %v3381_v43 = vld [vmem:[%s4651_s28 + $0x780] sm:$0xff]  ;;  %v2370_v12 = vld [vmem:[%s4645_s19 + $0x308] sm:$0xff]  ;;  %v1974_v10 = vld [vmem:[%s4645_s19 + $0xd0] sm:$0xff] }
 0x21e   : > { %v3633_v30 = vsel %vm3598_vm7, %v3523_v25, 0.0  ;;  %v2187_v31 = vmul.f32 %v2115_v13, %v2115_v13  ;;  %v3704_v24 = vadd.f32 %v3632_v29, %v3234_v14  ;;  %v3235_v39 = vadd.f32 %v3163_v22, %v2765_v15  ;;  %v2840_v2 = vld [vmem:[%s4645_s19 + $0x548] sm:$0xff] }
 0x21f   : > { %v2584_v26 = vmul.f32 %v2512_v28, %v2512_v28  ;;  %v3054_v27 = vmul.f32 %v2982_v21, %v2982_v21  ;;  %v3524_v52 = vmul.f32 %v3452_v23, %v3452_v23  ;;  %v1936_v33 = vadd.s32 48, %v5328_v51  ;;  %v2912_v3 = vld [vmem:[%s4651_s28 + $0x548] sm:$0xff]  ;;  %v2046_v28 = vld [vmem:[%s4651_s28 + $0xd0] sm:$0xff] }
 0x220   : > { %v2296_v63 = vsel %vm2260_vm4, %v2187_v31, 0.0  ;;  %v2116_v35 = vsub.f32 %v1972_v17, %v2044_v19  ;;  %v3848_v1 = vadd.f32 %v3776_v20, %v3704_v24  ;;  %v3705_v38 = vadd.f32 %v3633_v30, %v3235_v39  ;;  %v3310_v9 = vld [vmem:[%s4645_s19 + $0x788] sm:$0xff]  ;;  %v2371_v21 = vld [vmem:[%s4645_s19 + $0x310] sm:$0xff] }
 0x221   : > { %v2694_v40 = vsel %vm2658_vm5, %v2584_v26, 0.0  ;;  %v3164_v41 = vsel %vm3128_vm6, %v3054_v27, 0.0  ;;  %v3634_v8 = vsel %vm3598_vm7, %v3524_v52, 0.0  ;;  %v5827_v47 = vadd.s32 %v5317_v44, %v1936_v33  ;;  %v3382_v11 = vld [vmem:[%s4651_s28 + $0x788] sm:$0xff]  ;;  %v2443_v17 = vld [vmem:[%s4651_s28 + $0x310] sm:$0xff] }
 0x222   : > { %v2766_v57 = vadd.f32 %v2694_v40, %v2296_v63  ;;  %v2188_v45 = vmul.f32 %v2116_v35, %v2116_v35  ;;  %3920 = vst [vmem:[#allocation2 + $0x138] sm:$0xff] %v3848_v1  ;;  %v3849_v49 = vadd.f32 %v3777_v32, %v3705_v38  ;;  %v2513_v58 = vsub.f32 %v2369_v42, %v2441_v46  ;;  %v2841_v30 = vld [vmem:[%s4645_s19 + $0x550] sm:$0xff]  ;;  %v1975_v38 = vld [vmem:[%s4645_s19 + $0xd8] sm:$0xff] }
 0x223   : > { %v5830_v50 = vadd.s32 %v5323_v48, %v1936_v33  ;;  %v2983_v7 = vsub.f32 %v2839_v36, %v2911_v37  ;;  %vm2261_vm8 = vcmp.lt.s32.totalorder %v5827_v47, 591  ;;  %v5835_v18 = vadd.s32 %v5330_v54, %v1936_v33  ;;  %v2913_v31 = vld [vmem:[%s4651_s28 + $0x550] sm:$0xff]  ;;  %v2047_v40 = vld [vmem:[%s4651_s28 + $0xd8] sm:$0xff] }
 0x224   : > { %v3236_v55 = vadd.f32 %v3164_v41, %v2766_v57  ;;  %v3453_v56 = vsub.f32 %v3309_v6, %v3381_v43  ;;  %3921 = vst [vmem:[#allocation2 + $0x60] sm:$0xff] %v3849_v49  ;;  %v2297_v62 = vsel %vm2261_vm8, %v2188_v45, 0.0  ;;  %v2585_v0 = vmul.f32 %v2513_v58, %v2513_v58  ;;  %v3311_v63 = vld [vmem:[%s4645_s19 + $0x790] sm:$0xff]  ;;  %v2444_v45 = vld [vmem:[%s4651_s28 + $0x318] sm:$0xff] }
 0x225   : > { %vm2659_vm9 = vcmp.lt.s32.totalorder %v5830_v50, 591  ;;  %v3055_v16 = vmul.f32 %v2983_v7, %v2983_v7  ;;  %vm3129_vm10 = vcmp.lt.s32.totalorder %v5835_v18, 591  ;;  %v5847_v5 = vadd.s32 %v5334_v59, %v1936_v33  ;;  %v3383_v52 = vld [vmem:[%s4651_s28 + $0x790] sm:$0xff]  ;;  %v3779_v33 = vld [vmem:[#allocation2 + $0x88] sm:$0xff]  ;;  %v3385_v50 = vld [vmem:[%s4651_s28 + $0x7a0] sm:$0xff] }
 0x226   : > { %v3706_v29 = vadd.f32 %v3634_v8, %v3236_v55  ;;  %v3525_v4 = vmul.f32 %v3453_v56, %v3453_v56  ;;  %v2695_v25 = vsel %vm2659_vm9, %v2585_v0, 0.0  ;;  %v2117_v14 = vsub.f32 %v1973_v53, %v2045_v34  ;;  %v2372_v8 = vld [vmem:[%s4645_s19 + $0x318] sm:$0xff] }
 0x227   : > { %v3165_v13 = vsel %vm3129_vm10, %v3055_v16, 0.0  ;;  %v2514_v15 = vsub.f32 %v2370_v12, %v2442_v60  ;;  %v2767_v20 = vadd.f32 %v2695_v25, %v2297_v62  ;;  %vm3599_vm11 = vcmp.lt.s32.totalorder %v5847_v5, 591  ;;  %v2842_v55 = vld [vmem:[%s4645_s19 + $0x558] sm:$0xff]  ;;  %v3780_v16 = vld [vmem:[#allocation2] sm:$0xff]  ;;  %v2374_v5 = vld [vmem:[%s4645_s19 + $0x328] sm:$0xff] }
 0x228   : > { %v3850_v19 = vadd.f32 %v3778_v61, %v3706_v29  ;;  %v2984_v22 = vsub.f32 %v2840_v2, %v2912_v3  ;;  %v3635_v23 = vsel %vm3599_vm11, %v3525_v4, 0.0  ;;  %v2189_v24 = vmul.f32 %v2117_v14, %v2117_v14  ;;  %v2914_v56 = vld [vmem:[%s4651_s28 + $0x558] sm:$0xff]  ;;  %v2048_v14 = vld [vmem:[%s4651_s28 + $0xe0] sm:$0xff] }
 0x229   : > { %v2586_v39 = vmul.f32 %v2514_v15, %v2514_v15  ;;  %v3454_v26 = vsub.f32 %v3310_v9, %v3382_v11  ;;  %v3237_v27 = vadd.f32 %v3165_v13, %v2767_v20  ;;  %v2118_v46 = vsub.f32 %v1974_v10, %v2046_v28  ;;  %v3312_v62 = vld [vmem:[%s4645_s19 + $0x798] sm:$0xff]  ;;  %v1976_v13 = vld [vmem:[%s4645_s19 + $0xe0] sm:$0xff] }
 0x22a   : > { %3922 = vst [vmem:[#allocation2 + $0x1b8] sm:$0xff] %v3850_v19  ;;  %v3056_v42 = vmul.f32 %v2984_v22, %v2984_v22  ;;  %v2515_v32 = vsub.f32 %v2371_v21, %v2443_v17  ;;  %v2298_v35 = vsel %vm2261_vm8, %v2189_v24, 0.0  ;;  %v2985_v1 = vsub.f32 %v2841_v30, %v2913_v31  ;;  %v3384_v0 = vld [vmem:[%s4651_s28 + $0x798] sm:$0xff]  ;;  %v2373_v19 = vld [vmem:[%s4645_s19 + $0x320] sm:$0xff]  ;;  %v3781_v24 = vld [vmem:[#allocation2 + $0x188] sm:$0xff] }
 0x22b   : > { %v2696_v36 = vsel %vm2659_vm9, %v2586_v39, 0.0  ;;  %v3526_v37 = vmul.f32 %v3454_v26, %v3454_v26  ;;  %v3707_v41 = vadd.f32 %v3635_v23, %v3237_v27  ;;  %v2190_v57 = vmul.f32 %v2118_v46, %v2118_v46  ;;  %v2445_v20 = vld [vmem:[%s4651_s28 + $0x320] sm:$0xff] }
 0x22c   : > { %v2768_v6 = vadd.f32 %v2696_v36, %v2298_v35  ;;  %v3166_v43 = vsel %vm3129_vm10, %v3056_v42, 0.0  ;;  %v2587_v58 = vmul.f32 %v2515_v32, %v2515_v32  ;;  %v3057_v7 = vmul.f32 %v2985_v1, %v2985_v1  ;;  %v2843_v46 = vld [vmem:[%s4645_s19 + $0x560] sm:$0xff] }
 0x22d   : > { %v3636_v49 = vsel %vm3599_vm11, %v3526_v37, 0.0  ;;  %v3455_v53 = vsub.f32 %v3311_v63, %v3383_v52  ;;  %v3851_v34 = vadd.f32 %v3779_v33, %v3707_v41  ;;  %v2299_v60 = vsel %vm2261_vm8, %v2190_v57, 0.0  ;;  %v2915_v32 = vld [vmem:[%s4651_s28 + $0x560] sm:$0xff]  ;;  %v3782_v41 = vld [vmem:[#allocation2 + $0x38] sm:$0xff]  ;;  %v2049_v57 = vld [vmem:[%s4651_s28 + $0xe8] sm:$0xff] }
 0x22e   : > { %v3238_v12 = vadd.f32 %v3166_v43, %v2768_v6  ;;  %v2119_v61 = vsub.f32 %v1975_v38, %v2047_v40  ;;  %v2697_v2 = vsel %vm2659_vm9, %v2587_v58, 0.0  ;;  %v3167_v3 = vsel %vm3129_vm10, %v3057_v7, 0.0  ;;  %v3313_v35 = vld [vmem:[%s4645_s19 + $0x7a0] sm:$0xff]  ;;  %v1977_v38 = vld [vmem:[%s4645_s19 + $0xe8] sm:$0xff]  ;;  %v1978_v7 = vld [vmem:[%s4645_s19 + $0xf0] sm:$0xff] }
 0x22f   : > { %v3527_v29 = vmul.f32 %v3455_v53, %v3455_v53  ;;  %v2516_v4 = vsub.f32 %v2372_v8, %v2444_v45  ;;  %3923 = vst [vmem:[#allocation2 + $0x88] sm:$0xff] %v3851_v34  ;;  %v2769_v11 = vadd.f32 %v2697_v2, %v2299_v60  ;;  %v2986_v25 = vsub.f32 %v2842_v55, %v2914_v56  ;;  %v2446_v58 = vld [vmem:[%s4651_s28 + $0x328] sm:$0xff]  ;;  %v2050_v53 = vld [vmem:[%s4651_s28 + $0xf0] sm:$0xff] }
 0x230   : > { %v3708_v9 = vadd.f32 %v3636_v49, %v3238_v12  ;;  %v2191_v10 = vmul.f32 %v2119_v61, %v2119_v61  ;;  %v3456_v21 = vsub.f32 %v3312_v62, %v3384_v0  ;;  %v1937_v17 = vadd.s32 56, %v5328_v51  ;;  %v2844_v60 = vld [vmem:[%s4645_s19 + $0x568] sm:$0xff]  ;;  %v2375_v62 = vld [vmem:[%s4645_s19 + $0x330] sm:$0xff] }
 0x231   : > { %v3637_v15 = vsel %vm3599_vm11, %v3527_v29, 0.0  ;;  %v2588_v28 = vmul.f32 %v2516_v4, %v2516_v4  ;;  %v3239_v30 = vadd.f32 %v3167_v3, %v2769_v11  ;;  %v3058_v23 = vmul.f32 %v2986_v25, %v2986_v25  ;;  %v2916_v61 = vld [vmem:[%s4651_s28 + $0x568] sm:$0xff]  ;;  %v2447_v4 = vld [vmem:[%s4651_s28 + $0x330] sm:$0xff] }
 0x232   : > { %v3852_v22 = vadd.f32 %v3780_v16, %v3708_v9  ;;  %v2300_v31 = vsel %vm2261_vm8, %v2191_v10, 0.0  ;;  %v3528_v26 = vmul.f32 %v3456_v21, %v3456_v21  ;;  %v2120_v27 = vsub.f32 %v1976_v13, %v2048_v14  ;;  %v3314_v3 = vld [vmem:[%s4645_s19 + $0x7a8] sm:$0xff]  ;;  %v2845_v25 = vld [vmem:[%s4645_s19 + $0x570] sm:$0xff] }
 0x233   : > { %v2698_v39 = vsel %vm2659_vm9, %v2588_v28, 0.0  ;;  %v5900_v42 = vadd.s32 %v5317_v44, %v1937_v17  ;;  %v3709_v63 = vadd.f32 %v3637_v15, %v3239_v30  ;;  %v3168_v47 = vsel %vm3129_vm10, %v3058_v23, 0.0  ;;  %v3386_v29 = vld [vmem:[%s4651_s28 + $0x7a8] sm:$0xff]  ;;  %v2917_v13 = vld [vmem:[%s4651_s28 + $0x570] sm:$0xff] }
 0x234   : > { %3924 = vst [vmem:[#allocation2] sm:$0xff] %v3852_v22  ;;  %v2770_v52 = vadd.f32 %v2698_v39, %v2300_v31  ;;  %v2517_v33 = vsub.f32 %v2373_v19, %v2445_v20  ;;  %v3638_v36 = vsel %vm3599_vm11, %v3528_v26, 0.0  ;;  %v2192_v37 = vmul.f32 %v2120_v27, %v2120_v27  ;;  %v1979_v31 = vld [vmem:[%s4645_s19 + $0xf8] sm:$0xff]  ;;  %v3315_v27 = vld [vmem:[%s4645_s19 + $0x7b0] sm:$0xff] }
 0x235   : > { %vm2262_vm12 = vcmp.lt.s32.totalorder %v5900_v42, 591  ;;  %v5912_v1 = vadd.s32 %v5323_v48, %v1937_v17  ;;  %v3853_v40 = vadd.f32 %v3781_v24, %v3709_v63  ;;  %v2987_v43 = vsub.f32 %v2843_v46, %v2915_v32  ;;  %v3387_v46 = vld [vmem:[%s4651_s28 + $0x7b0] sm:$0xff]  ;;  %v2051_v32 = vld [vmem:[%s4651_s28 + $0xf8] sm:$0xff]  ;;  %v3317_v42 = vld [vmem:[%s4645_s19 + $0x7c0] sm:$0xff] }
 0x236   : > { %v3240_v18 = vadd.f32 %v3168_v47, %v2770_v52  ;;  %v2589_v6 = vmul.f32 %v2517_v33, %v2517_v33  ;;  %v2301_v8 = vsel %vm2262_vm12, %v2192_v37, 0.0  ;;  %v5921_v45 = vadd.s32 %v5330_v54, %v1937_v17 }
 0x237   : > { %vm2660_vm13 = vcmp.lt.s32.totalorder %v5912_v1, 591  ;;  %v3457_v49 = vsub.f32 %v3313_v35, %v3385_v50  ;;  %3925 = vst [vmem:[#allocation2 + $0x188] sm:$0xff] %v3853_v40  ;;  %v3059_v34 = vmul.f32 %v2987_v43, %v2987_v43  ;;  %v5929_v12 = vadd.s32 %v5334_v59, %v1937_v17  ;;  %v3783_v17 = vld [vmem:[#allocation2 + $0x1a8] sm:$0xff]  ;;  %v2376_v35 = vld [vmem:[%s4645_s19 + $0x338] sm:$0xff] }
 0x238   : > { %v3710_v55 = vadd.f32 %v3638_v36, %v3240_v18  ;;  %v2699_v56 = vsel %vm2660_vm13, %v2589_v6, 0.0  ;;  %vm3130_vm14 = vcmp.lt.s32.totalorder %v5921_v45, 591  ;;  %v2121_v2 = vsub.f32 %v1977_v38, %v2049_v57  ;;  %v2448_v50 = vld [vmem:[%s4651_s28 + $0x338] sm:$0xff] }
 0x239   : > { %v2771_v0 = vadd.f32 %v2699_v56, %v2301_v8  ;;  %v3529_v16 = vmul.f32 %v3457_v49, %v3457_v49  ;;  %v3169_v11 = vsel %vm3130_vm14, %v3059_v34, 0.0  ;;  %vm3600_vm15 = vcmp.lt.s32.totalorder %v5929_v12, 591  ;;  %v2846_v36 = vld [vmem:[%s4645_s19 + $0x578] sm:$0xff]  ;;  %v3784_v56 = vld [vmem:[#allocation2 + $0x220] sm:$0xff] }
 0x23a   : > { %v3854_v9 = vadd.f32 %v3782_v41, %v3710_v55  ;;  %v2518_v10 = vsub.f32 %v2374_v5, %v2446_v58  ;;  %v2193_v28 = vmul.f32 %v2121_v2, %v2121_v2  ;;  %v2988_v21 = vsub.f32 %v2844_v60, %v2916_v61  ;;  %v2918_v41 = vld [vmem:[%s4651_s28 + $0x578] sm:$0xff] }
 0x23b   : > { %v3241_v14 = vadd.f32 %v3169_v11, %v2771_v0  ;;  %v3639_v15 = vsel %vm3600_vm15, %v3529_v16, 0.0  ;;  %v3458_v20 = vsub.f32 %v3314_v3, %v3386_v29  ;;  %v2122_v22 = vsub.f32 %v1978_v7, %v2050_v53  ;;  %v3316_v6 = vld [vmem:[%s4645_s19 + $0x7b8] sm:$0xff]  ;;  %v1980_v0 = vld [vmem:[%s4645_s19 + $0x100] sm:$0xff]  ;;  %v3785_v11 = vld [vmem:[#allocation2 + $0x1e8] sm:$0xff] }
 0x23c   : > { %3926 = vst [vmem:[#allocation2 + $0x38] sm:$0xff] %v3854_v9  ;;  %v2590_v19 = vmul.f32 %v2518_v10, %v2518_v10  ;;  %v2519_v30 = vsub.f32 %v2375_v62, %v2447_v4  ;;  %v2302_v24 = vsel %vm2262_vm12, %v2193_v28, 0.0  ;;  %v3060_v39 = vmul.f32 %v2988_v21, %v2988_v21  ;;  %v3388_v43 = vld [vmem:[%s4651_s28 + $0x7b8] sm:$0xff]  ;;  %v2052_v16 = vld [vmem:[%s4651_s28 + $0x100] sm:$0xff] }
 0x23d   : > { %v3711_v23 = vadd.f32 %v3639_v15, %v3241_v14  ;;  %v2989_v26 = vsub.f32 %v2845_v25, %v2917_v13  ;;  %v3530_v52 = vmul.f32 %v3458_v20, %v3458_v20  ;;  %v2194_v47 = vmul.f32 %v2122_v22, %v2122_v22  ;;  %v2377_v14 = vld [vmem:[%s4645_s19 + $0x340] sm:$0xff] }
 0x23e   : > { %v2700_v63 = vsel %vm2660_vm13, %v2590_v19, 0.0  ;;  %v2591_v33 = vmul.f32 %v2519_v30, %v2519_v30  ;;  %v3170_v40 = vsel %vm3130_vm14, %v3060_v39, 0.0  ;;  %v3459_v49 = vsub.f32 %v3315_v27, %v3387_v46  ;;  %v2449_v15 = vld [vmem:[%s4651_s28 + $0x340] sm:$0xff] }
 0x23f   : > { %v3855_v37 = vadd.f32 %v3783_v17, %v3711_v23  ;;  %v2772_v38 = vadd.f32 %v2700_v63, %v2302_v24  ;;  %v3061_v18 = vmul.f32 %v2989_v26, %v2989_v26  ;;  %v3640_v57 = vsel %vm3600_vm15, %v3530_v52, 0.0  ;;  %v2847_v20 = vld [vmem:[%s4645_s19 + $0x580] sm:$0xff]  ;;  %v1981_v63 = vld [vmem:[%s4645_s19 + $0x108] sm:$0xff] }
 0x240   : > { %v2303_v5 = vsel %vm2262_vm12, %v2194_v47, 0.0  ;;  %v2701_v8 = vsel %vm2660_vm13, %v2591_v33, 0.0  ;;  %v2123_v55 = vsub.f32 %v1979_v31, %v2051_v32  ;;  %v3531_v34 = vmul.f32 %v3459_v49, %v3459_v49  ;;  %v2919_v22 = vld [vmem:[%s4651_s28 + $0x580] sm:$0xff]  ;;  %v2053_v52 = vld [vmem:[%s4651_s28 + $0x108] sm:$0xff] }
 0x241   : > { %3927 = vst [vmem:[#allocation2 + $0x1a8] sm:$0xff] %v3855_v37  ;;  %v3242_v58 = vadd.f32 %v3170_v40, %v2772_v38  ;;  %v2773_v7 = vadd.f32 %v2701_v8, %v2303_v5  ;;  %v3171_v53 = vsel %vm3130_vm14, %v3061_v18, 0.0  ;;  %v2520_v60 = vsub.f32 %v2376_v35, %v2448_v50  ;;  %v3389_v39 = vld [vmem:[%s4651_s28 + $0x7c0] sm:$0xff]  ;;  %v2378_v47 = vld [vmem:[%s4645_s19 + $0x348] sm:$0xff]  ;;  %v1982_v40 = vld [vmem:[%s4645_s19 + $0x110] sm:$0xff] }
 0x242   : > { %v2990_v61 = vsub.f32 %v2846_v36, %v2918_v41  ;;  %v3460_v62 = vsub.f32 %v3316_v6, %v3388_v43  ;;  %v2195_v29 = vmul.f32 %v2123_v55, %v2123_v55  ;;  %v1938_v4 = vadd.s32 64, %v5328_v51  ;;  %v3786_v35 = vld [vmem:[#allocation2 + $0x1c8] sm:$0xff]  ;;  %v2379_v55 = vld [vmem:[%s4645_s19 + $0x350] sm:$0xff] }
 0x243   : > { %v3712_v2 = vadd.f32 %v3640_v57, %v3242_v58  ;;  %v3243_v3 = vadd.f32 %v3171_v53, %v2773_v7  ;;  %v3641_v9 = vsel %vm3600_vm15, %v3531_v34, 0.0  ;;  %v2592_v10 = vmul.f32 %v2520_v60, %v2520_v60  ;;  %v2450_v38 = vld [vmem:[%s4651_s28 + $0x348] sm:$0xff]  ;;  %v2054_v57 = vld [vmem:[%s4651_s28 + $0x110] sm:$0xff] }
 0x244   : > { %v3062_v25 = vmul.f32 %v2990_v61, %v2990_v61  ;;  %v3532_v13 = vmul.f32 %v3460_v62, %v3460_v62  ;;  %v2304_v17 = vsel %vm2262_vm12, %v2195_v29, 0.0  ;;  %v2124_v19 = vsub.f32 %v1980_v0, %v2052_v16  ;;  %v2848_v6 = vld [vmem:[%s4645_s19 + $0x588] sm:$0xff]  ;;  %v2451_v61 = vld [vmem:[%s4651_s28 + $0x350] sm:$0xff] }
 0x245   : > { %v3856_v28 = vadd.f32 %v3784_v56, %v3712_v2  ;;  %v3713_v21 = vadd.f32 %v3641_v9, %v3243_v3  ;;  %v2702_v30 = vsel %vm2660_vm13, %v2592_v10, 0.0  ;;  %v5987_v24 = vadd.s32 %v5317_v44, %v1938_v4  ;;  %v2920_v43 = vld [vmem:[%s4651_s28 + $0x588] sm:$0xff]  ;;  %v2849_v62 = vld [vmem:[%s4645_s19 + $0x590] sm:$0xff] }
 0x246   : > { %v3172_v31 = vsel %vm3130_vm14, %v3062_v25, 0.0  ;;  %v3642_v23 = vsel %vm3600_vm15, %v3532_v13, 0.0  ;;  %v2774_v27 = vadd.f32 %v2702_v30, %v2304_v17  ;;  %v2196_v1 = vmul.f32 %v2124_v19, %v2124_v19  ;;  %v3318_v7 = vld [vmem:[%s4645_s19 + $0x7c8] sm:$0xff]  ;;  %v2921_v0 = vld [vmem:[%s4651_s28 + $0x590] sm:$0xff]  ;;  %v3787_v25 = vld [vmem:[#allocation2 + $0x80] sm:$0xff] }
 0x247   : > { %3928 = vst [vmem:[#allocation2 + $0x220] sm:$0xff] %v3856_v28  ;;  %v3857_v26 = vadd.f32 %v3785_v11, %v3713_v21  ;;  %v2521_v46 = vsub.f32 %v2377_v14, %v2449_v15  ;;  %vm2263_vm0 = vcmp.lt.s32.totalorder %v5987_v24, 591  ;;  %v5993_v45 = vadd.s32 %v5323_v48, %v1938_v4  ;;  %v3390_v53 = vld [vmem:[%s4651_s28 + $0x7c8] sm:$0xff]  ;;  %v3319_v21 = vld [vmem:[%s4645_s19 + $0x7d0] sm:$0xff] }
 0x248   : > { %v2991_v12 = vsub.f32 %v2847_v20, %v2919_v22  ;;  %v5996_v32 = vadd.s32 %v5330_v54, %v1938_v4  ;;  %v3244_v33 = vadd.f32 %v3172_v31, %v2774_v27  ;;  %v2305_v50 = vsel %vm2263_vm0, %v2196_v1, 0.0  ;;  %v3391_v17 = vld [vmem:[%s4651_s28 + $0x7d0] sm:$0xff]  ;;  %v1983_v31 = vld [vmem:[%s4645_s19 + $0x118] sm:$0xff] }
 0x249   : > { %3929 = vst [vmem:[#allocation2 + $0x1e8] sm:$0xff] %v3857_v26  ;;  %v2593_v36 = vmul.f32 %v2521_v46, %v2521_v46  ;;  %v3461_v37 = vsub.f32 %v3317_v42, %v3389_v39  ;;  %vm2661_vm1 = vcmp.lt.s32.totalorder %v5993_v45, 591  ;;  %v6008_v41 = vadd.s32 %v5334_v59, %v1938_v4  ;;  %v2380_v42 = vld [vmem:[%s4645_s19 + $0x358] sm:$0xff] }
 0x24a   : > { %v3063_v18 = vmul.f32 %v2991_v12, %v2991_v12  ;;  %vm3131_vm2 = vcmp.lt.s32.totalorder %v5996_v32, 591  ;;  %v3714_v5 = vadd.f32 %v3642_v23, %v3244_v33  ;;  %v2125_v58 = vsub.f32 %v1981_v63, %v2053_v52  ;;  %v2055_v23 = vld [vmem:[%s4651_s28 + $0x118] sm:$0xff] }
 0x24b   : > { %v2703_v8 = vsel %vm2661_vm1, %v2593_v36, 0.0  ;;  %v3533_v49 = vmul.f32 %v3461_v37, %v3461_v37  ;;  %vm3601_vm3 = vcmp.lt.s32.totalorder %v6008_v41, 591  ;;  %v2522_v60 = vsub.f32 %v2378_v47, %v2450_v38  ;;  %v2452_v46 = vld [vmem:[%s4651_s28 + $0x358] sm:$0xff] }
 0x24c   : > { %v2775_v56 = vadd.f32 %v2703_v8, %v2305_v50  ;;  %v3173_v34 = vsel %vm3131_vm2, %v3063_v18, 0.0  ;;  %v3858_v16 = vadd.f32 %v3786_v35, %v3714_v5  ;;  %v2197_v3 = vmul.f32 %v2125_v58, %v2125_v58  ;;  %v2850_v12 = vld [vmem:[%s4645_s19 + $0x598] sm:$0xff]  ;;  %v2056_v58 = vld [vmem:[%s4651_s28 + $0x120] sm:$0xff] }
 0x24d   : > { %v3643_v2 = vsel %vm3601_vm3, %v3533_v49, 0.0  ;;  %v2992_v29 = vsub.f32 %v2848_v6, %v2920_v43  ;;  %v2594_v9 = vmul.f32 %v2522_v60, %v2522_v60  ;;  %v3462_v11 = vsub.f32 %v3318_v7, %v3390_v53  ;;  %v2922_v63 = vld [vmem:[%s4651_s28 + $0x598] sm:$0xff]  ;;  %v1984_v49 = vld [vmem:[%s4645_s19 + $0x120] sm:$0xff] }
 0x24e   : > { %v3245_v4 = vadd.f32 %v3173_v34, %v2775_v56  ;;  %v2126_v10 = vsub.f32 %v1982_v40, %v2054_v57  ;;  %3930 = vst [vmem:[#allocation2 + $0x1c8] sm:$0xff] %v3858_v16  ;;  %v2306_v13 = vsel %vm2263_vm0, %v2197_v3, 0.0  ;;  %v2523_v15 = vsub.f32 %v2379_v55, %v2451_v61  ;;  %v3320_v50 = vld [vmem:[%s4645_s19 + $0x7d8] sm:$0xff]  ;;  %v2453_v16 = vld [vmem:[%s4651_s28 + $0x360] sm:$0xff] }
 0x24f   : > { %v3064_v14 = vmul.f32 %v2992_v29, %v2992_v29  ;;  %v2993_v28 = vsub.f32 %v2849_v62, %v2921_v0  ;;  %v2704_v20 = vsel %vm2661_vm1, %v2594_v9, 0.0  ;;  %v3534_v22 = vmul.f32 %v3462_v11, %v3462_v11  ;;  %v3392_v36 = vld [vmem:[%s4651_s28 + $0x7d8] sm:$0xff]  ;;  %v2381_v0 = vld [vmem:[%s4645_s19 + $0x360] sm:$0xff] }
 0x250   : > { %v3715_v19 = vadd.f32 %v3643_v2, %v3245_v4  ;;  %v2198_v30 = vmul.f32 %v2126_v10, %v2126_v10  ;;  %v2776_v39 = vadd.f32 %v2704_v20, %v2306_v13  ;;  %v2595_v27 = vmul.f32 %v2523_v15, %v2523_v15  ;;  %v3788_v6 = vld [vmem:[#allocation2 + $0xf8] sm:$0xff]  ;;  %v2851_v11 = vld [vmem:[%s4645_s19 + $0x5a0] sm:$0xff] }
 0x251   : > { %v3174_v26 = vsel %vm3131_vm2, %v3064_v14, 0.0  ;;  %v3065_v1 = vmul.f32 %v2993_v28, %v2993_v28  ;;  %v3644_v47 = vsel %vm3601_vm3, %v3534_v22, 0.0  ;;  %v3463_v35 = vsub.f32 %v3319_v21, %v3391_v17  ;;  %v3789_v3 = vld [vmem:[#allocation2 + $0x78] sm:$0xff]  ;;  %v2923_v10 = vld [vmem:[%s4651_s28 + $0x5a0] sm:$0xff] }
 0x252   : > { %v3859_v52 = vadd.f32 %v3787_v25, %v3715_v19  ;;  %v2307_v33 = vsel %vm2263_vm0, %v2198_v30, 0.0  ;;  %v3246_v37 = vadd.f32 %v3174_v26, %v2776_v39  ;;  %v2705_v38 = vsel %vm2661_vm1, %v2595_v27, 0.0  ;;  %v3321_v19 = vld [vmem:[%s4645_s19 + $0x7e0] sm:$0xff]  ;;  %v1985_v30 = vld [vmem:[%s4645_s19 + $0x128] sm:$0xff] }
 0x253   : > { %v3175_v40 = vsel %vm3131_vm2, %v3065_v1, 0.0  ;;  %v2127_v18 = vsub.f32 %v1983_v31, %v2055_v23  ;;  %v2777_v43 = vadd.f32 %v2705_v38, %v2307_v33  ;;  %v3535_v57 = vmul.f32 %v3463_v35, %v3463_v35  ;;  %v3393_v20 = vld [vmem:[%s4651_s28 + $0x7e0] sm:$0xff]  ;;  %v2057_v31 = vld [vmem:[%s4651_s28 + $0x128] sm:$0xff]  ;;  %v3790_v23 = vld [vmem:[#allocation2 + $0x170] sm:$0xff] }
 0x254   : > { %3931 = vst [vmem:[#allocation2 + $0x80] sm:$0xff] %v3859_v52  ;;  %v2524_v5 = vsub.f32 %v2380_v42, %v2452_v46  ;;  %v2994_v8 = vsub.f32 %v2850_v12, %v2922_v63  ;;  %v3716_v7 = vadd.f32 %v3644_v47, %v3246_v37  ;;  %v3464_v55 = vsub.f32 %v3320_v50, %v3392_v36  ;;  %v2382_v27 = vld [vmem:[%s4645_s19 + $0x368] sm:$0xff]  ;;  %v1986_v33 = vld [vmem:[%s4645_s19 + $0x130] sm:$0xff] }
 0x255   : > { %v2199_v53 = vmul.f32 %v2127_v18, %v2127_v18  ;;  %v1939_v56 = vadd.s32 72, %v5328_v51  ;;  %v3247_v34 = vadd.f32 %v3175_v40, %v2777_v43  ;;  %v3645_v60 = vsel %vm3601_vm3, %v3535_v57, 0.0  ;;  %v2454_v1 = vld [vmem:[%s4651_s28 + $0x368] sm:$0xff]  ;;  %v2058_v40 = vld [vmem:[%s4651_s28 + $0x130] sm:$0xff] }
 0x256   : > { %v2596_v61 = vmul.f32 %v2524_v5, %v2524_v5  ;;  %v3066_v62 = vmul.f32 %v2994_v8, %v2994_v8  ;;  %v3860_v2 = vadd.f32 %v3788_v6, %v3716_v7  ;;  %v3536_v4 = vmul.f32 %v3464_v55, %v3464_v55  ;;  %v2852_v52 = vld [vmem:[%s4645_s19 + $0x5a8] sm:$0xff]  ;;  %v2383_v57 = vld [vmem:[%s4645_s19 + $0x370] sm:$0xff] }
 0x257   : > { %v2308_v29 = vsel %vm2263_vm0, %v2199_v53, 0.0  ;;  %v2128_v9 = vsub.f32 %v1984_v49, %v2056_v58  ;;  %v3717_v25 = vadd.f32 %v3645_v60, %v3247_v34  ;;  %v6066_v15 = vadd.s32 %v5317_v44, %v1939_v56  ;;  %v2924_v47 = vld [vmem:[%s4651_s28 + $0x5a8] sm:$0xff]  ;;  %v2455_v5 = vld [vmem:[%s4651_s28 + $0x370] sm:$0xff] }
 0x258   : > { %v2706_v13 = vsel %vm2661_vm1, %v2596_v61, 0.0  ;;  %v3176_v14 = vsel %vm3131_vm2, %v3066_v62, 0.0  ;;  %3932 = vst [vmem:[#allocation2 + $0xf8] sm:$0xff] %v3860_v2  ;;  %v3646_v28 = vsel %vm3601_vm3, %v3536_v4, 0.0  ;;  %v2525_v17 = vsub.f32 %v2381_v0, %v2453_v16  ;;  %v3322_v37 = vld [vmem:[%s4645_s19 + $0x7e8] sm:$0xff]  ;;  %v2853_v53 = vld [vmem:[%s4645_s19 + $0x5b0] sm:$0xff] }
 0x259   : > { %v2778_v24 = vadd.f32 %v2706_v13, %v2308_v29  ;;  %v2200_v21 = vmul.f32 %v2128_v9, %v2128_v9  ;;  %v3861_v45 = vadd.f32 %v3789_v3, %v3717_v25  ;;  %vm2264_vm4 = vcmp.lt.s32.totalorder %v6066_v15, 591  ;;  %v3394_v38 = vld [vmem:[%s4651_s28 + $0x7e8] sm:$0xff]  ;;  %v2925_v55 = vld [vmem:[%s4651_s28 + $0x5b0] sm:$0xff]  ;;  %v3791_v16 = vld [vmem:[#allocation2 + $0x198] sm:$0xff] }
 0x25a   : > { %v6074_v32 = vadd.s32 %v5323_v48, %v1939_v56  ;;  %v2995_v22 = vsub.f32 %v2851_v11, %v2923_v10  ;;  %v2597_v39 = vmul.f32 %v2525_v17, %v2525_v17  ;;  %v6081_v26 = vadd.s32 %v5330_v54, %v1939_v56  ;;  %v3323_v62 = vld [vmem:[%s4645_s19 + $0x7f0] sm:$0xff]  ;;  %v1987_v13 = vld [vmem:[%s4645_s19 + $0x138] sm:$0xff] }
 0x25b   : > { %v3248_v41 = vadd.f32 %v3176_v14, %v2778_v24  ;;  %v2309_v42 = vsel %vm2264_vm4, %v2200_v21, 0.0  ;;  %3933 = vst [vmem:[#allocation2 + $0x78] sm:$0xff] %v3861_v45  ;;  %v3465_v12 = vsub.f32 %v3321_v19, %v3393_v20  ;;  %v6087_v63 = vadd.s32 %v5334_v59, %v1939_v56  ;;  %v3395_v0 = vld [vmem:[%s4651_s28 + $0x7f0] sm:$0xff]  ;;  %v2059_v14 = vld [vmem:[%s4651_s28 + $0x138] sm:$0xff] }
 0x25c   : > { %vm2662_vm5 = vcmp.lt.s32.totalorder %v6074_v32, 591  ;;  %v3067_v46 = vmul.f32 %v2995_v22, %v2995_v22  ;;  %vm3132_vm6 = vcmp.lt.s32.totalorder %v6081_v26, 591  ;;  %v2129_v36 = vsub.f32 %v1985_v30, %v2057_v31  ;;  %v2384_v24 = vld [vmem:[%s4645_s19 + $0x378] sm:$0xff] }
 0x25d   : > { %v3718_v35 = vadd.f32 %v3646_v28, %v3248_v41  ;;  %v2707_v50 = vsel %vm2662_vm5, %v2597_v39, 0.0  ;;  %v3537_v43 = vmul.f32 %v3465_v12, %v3465_v12  ;;  %vm3602_vm7 = vcmp.lt.s32.totalorder %v6087_v63, 591  ;;  %v2456_v20 = vld [vmem:[%s4651_s28 + $0x378] sm:$0xff] }
 0x25e   : > { %v2779_v18 = vadd.f32 %v2707_v50, %v2309_v42  ;;  %v3177_v6 = vsel %vm3132_vm6, %v3067_v46, 0.0  ;;  %v2201_v49 = vmul.f32 %v2129_v36, %v2129_v36  ;;  %v2526_v58 = vsub.f32 %v2382_v27, %v2454_v1  ;;  %v2854_v45 = vld [vmem:[%s4645_s19 + $0x5b8] sm:$0xff]  ;;  %v1988_v50 = vld [vmem:[%s4645_s19 + $0x140] sm:$0xff] }
 0x25f   : > { %v3862_v8 = vadd.f32 %v3790_v23, %v3718_v35  ;;  %v2996_v7 = vsub.f32 %v2852_v52, %v2924_v47  ;;  %v3647_v34 = vsel %vm3602_vm7, %v3537_v43, 0.0  ;;  %v3466_v60 = vsub.f32 %v3322_v37, %v3394_v38  ;;  %v2926_v22 = vld [vmem:[%s4651_s28 + $0x5b8] sm:$0xff]  ;;  %v2060_v36 = vld [vmem:[%s4651_s28 + $0x140] sm:$0xff] }
 0x260   : > { %v3249_v56 = vadd.f32 %v3177_v6, %v2779_v18  ;;  %v2130_v61 = vsub.f32 %v1986_v33, %v2058_v40  ;;  %v2310_v2 = vsel %vm2264_vm4, %v2201_v49, 0.0  ;;  %v2598_v3 = vmul.f32 %v2526_v58, %v2526_v58  ;;  %v3324_v42 = vld [vmem:[%s4645_s19 + $0x7f8] sm:$0xff]  ;;  %v3792_v37 = vld [vmem:[#allocation2 + $0xe0] sm:$0xff] }
 0x261   : > { %3934 = vst [vmem:[#allocation2 + $0x170] sm:$0xff] %v3862_v8  ;;  %v3068_v29 = vmul.f32 %v2996_v7, %v2996_v7  ;;  %v2527_v4 = vsub.f32 %v2383_v57, %v2455_v5  ;;  %v3538_v11 = vmul.f32 %v3466_v60, %v3466_v60  ;;  %v2997_v25 = vsub.f32 %v2853_v53, %v2925_v55  ;;  %v3396_v39 = vld [vmem:[%s4651_s28 + $0x7f8] sm:$0xff]  ;;  %v2385_v49 = vld [vmem:[%s4645_s19 + $0x380] sm:$0xff] }
 0x262   : > { %v3719_v9 = vadd.f32 %v3647_v34, %v3249_v56  ;;  %v2202_v10 = vmul.f32 %v2130_v61, %v2130_v61  ;;  %v2708_v28 = vsel %vm2662_vm5, %v2598_v3, 0.0  ;;  %v3467_v19 = vsub.f32 %v3323_v62, %v3395_v0  ;;  %v2457_v58 = vld [vmem:[%s4651_s28 + $0x380] sm:$0xff] }
 0x263   : > { %v3178_v21 = vsel %vm3132_vm6, %v3068_v29, 0.0  ;;  %v2599_v17 = vmul.f32 %v2527_v4, %v2527_v4  ;;  %v2780_v31 = vadd.f32 %v2708_v28, %v2310_v2  ;;  %v3648_v41 = vsel %vm3602_vm7, %v3538_v11, 0.0  ;;  %v3793_v7 = vld [vmem:[#allocation2 + $0x1e0] sm:$0xff]  ;;  %v2061_v28 = vld [vmem:[%s4651_s28 + $0x148] sm:$0xff] }
 0x264   : > { %v3863_v30 = vadd.f32 %v3791_v16, %v3719_v9  ;;  %v2311_v23 = vsel %vm2264_vm4, %v2202_v10, 0.0  ;;  %v3069_v1 = vmul.f32 %v2997_v25, %v2997_v25  ;;  %v3539_v46 = vmul.f32 %v3467_v19, %v3467_v19  ;;  %v2855_v60 = vld [vmem:[%s4645_s19 + $0x5c0] sm:$0xff]  ;;  %v3794_v19 = vld [vmem:[#allocation2 + $0x1f0] sm:$0xff] }
 0x265   : > { %v2709_v27 = vsel %vm2662_vm5, %v2599_v17, 0.0  ;;  %v2131_v12 = vsub.f32 %v1987_v13, %v2059_v14  ;;  %v3250_v52 = vadd.f32 %v3178_v21, %v2780_v31  ;;  %v2528_v33 = vsub.f32 %v2384_v24, %v2456_v20  ;;  %v2927_v61 = vld [vmem:[%s4651_s28 + $0x5c0] sm:$0xff]  ;;  %v1989_v13 = vld [vmem:[%s4645_s19 + $0x148] sm:$0xff] }
 0x266   : > { %3935 = vst [vmem:[#allocation2 + $0x198] sm:$0xff] %v3863_v30  ;;  %v2781_v47 = vadd.f32 %v2709_v27, %v2311_v23  ;;  %v2998_v35 = vsub.f32 %v2854_v45, %v2926_v22  ;;  %v3179_v38 = vsel %vm3132_vm6, %v3069_v1, 0.0  ;;  %v3649_v40 = vsel %vm3602_vm7, %v3539_v46, 0.0  ;;  %v3325_v3 = vld [vmem:[%s4645_s19 + $0x800] sm:$0xff]  ;;  %v2386_v21 = vld [vmem:[%s4645_s19 + $0x388] sm:$0xff]  ;;  %v1990_v1 = vld [vmem:[%s4645_s19 + $0x150] sm:$0xff] }
 0x267   : > { %v2203_v18 = vmul.f32 %v2131_v12, %v2131_v12  ;;  %v3468_v6 = vsub.f32 %v3324_v42, %v3396_v39  ;;  %v3720_v43 = vadd.f32 %v3648_v41, %v3250_v52  ;;  %v2600_v5 = vmul.f32 %v2528_v33, %v2528_v33  ;;  %v3397_v29 = vld [vmem:[%s4651_s28 + $0x800] sm:$0xff]  ;;  %v2458_v17 = vld [vmem:[%s4651_s28 + $0x388] sm:$0xff]  ;;  %v2062_v33 = vld [vmem:[%s4651_s28 + $0x150] sm:$0xff] }
 0x268   : > { %v3251_v57 = vadd.f32 %v3179_v38, %v2781_v47  ;;  %v3070_v8 = vmul.f32 %v2998_v35, %v2998_v35  ;;  %v1940_v56 = vadd.s32 80, %v5328_v51  ;;  %v2132_v34 = vsub.f32 %v1988_v50, %v2060_v36  ;;  %v2856_v30 = vld [vmem:[%s4645_s19 + $0x5c8] sm:$0xff]  ;;  %v2387_v35 = vld [vmem:[%s4645_s19 + $0x390] sm:$0xff] }
 0x269   : > { %v2312_v53 = vsel %vm2264_vm4, %v2203_v18, 0.0  ;;  %v3540_v55 = vmul.f32 %v3468_v6, %v3468_v6  ;;  %v3864_v62 = vadd.f32 %v3792_v37, %v3720_v43  ;;  %v2710_v16 = vsel %vm2662_vm5, %v2600_v5, 0.0  ;;  %v2928_v31 = vld [vmem:[%s4651_s28 + $0x5c8] sm:$0xff]  ;;  %v2459_v50 = vld [vmem:[%s4651_s28 + $0x390] sm:$0xff] }
 0x26a   : > { %v3721_v0 = vadd.f32 %v3649_v40, %v3251_v57  ;;  %v3180_v2 = vsel %vm3132_vm6, %v3070_v8, 0.0  ;;  %v2782_v15 = vadd.f32 %v2710_v16, %v2312_v53  ;;  %v2204_v9 = vmul.f32 %v2132_v34, %v2132_v34  ;;  %v3326_v39 = vld [vmem:[%s4645_s19 + $0x808] sm:$0xff]  ;;  %v2857_v40 = vld [vmem:[%s4645_s19 + $0x5d0] sm:$0xff]  ;;  %v2063_v16 = vld [vmem:[%s4651_s28 + $0x158] sm:$0xff] }
 0x26b   : > { %v3650_v4 = vsel %vm3602_vm7, %v3540_v55, 0.0  ;;  %v6151_v11 = vadd.s32 %v5317_v44, %v1940_v56  ;;  %3936 = vst [vmem:[#allocation2 + $0xe0] sm:$0xff] %v3864_v62  ;;  %v2529_v32 = vsub.f32 %v2385_v49, %v2457_v58  ;;  %v6154_v25 = vadd.s32 %v5323_v48, %v1940_v56  ;;  %v3398_v27 = vld [vmem:[%s4651_s28 + $0x808] sm:$0xff]  ;;  %v2929_v18 = vld [vmem:[%s4651_s28 + $0x5d0] sm:$0xff] }
 0x26c   : > { %v3865_v10 = vadd.f32 %v3793_v7, %v3721_v0  ;;  %v2999_v26 = vsub.f32 %v2855_v60, %v2927_v61  ;;  %v3252_v14 = vadd.f32 %v3180_v2, %v2782_v15  ;;  %v6159_v63 = vadd.s32 %v5330_v54, %v1940_v56  ;;  %v3327_v53 = vld [vmem:[%s4645_s19 + $0x810] sm:$0xff]  ;;  %v1991_v0 = vld [vmem:[%s4645_s19 + $0x158] sm:$0xff] }
 0x26d   : > { %vm2265_vm8 = vcmp.lt.s32.totalorder %v6151_v11, 591  ;;  %v3469_v24 = vsub.f32 %v3325_v3, %v3397_v29  ;;  %v2601_v45 = vmul.f32 %v2529_v32, %v2529_v32  ;;  %vm2663_vm9 = vcmp.lt.s32.totalorder %v6154_v25, 591  ;;  %v3399_v55 = vld [vmem:[%s4651_s28 + $0x810] sm:$0xff]  ;;  %v3401_v25 = vld [vmem:[%s4651_s28 + $0x820] sm:$0xff] }
 0x26e   : > { %3937 = vst [vmem:[#allocation2 + $0x1e0] sm:$0xff] %v3865_v10  ;;  %v2313_v20 = vsel %vm2265_vm8, %v2204_v9, 0.0  ;;  %v3071_v22 = vmul.f32 %v2999_v26, %v2999_v26  ;;  %v3722_v41 = vadd.f32 %v3650_v4, %v3252_v14  ;;  %vm3133_vm10 = vcmp.lt.s32.totalorder %v6159_v63, 591  ;;  %v2388_v4 = vld [vmem:[%s4645_s19 + $0x398] sm:$0xff] }
 0x26f   : > { %v3541_v23 = vmul.f32 %v3469_v24, %v3469_v24  ;;  %v6171_v42 = vadd.s32 %v5334_v59, %v1940_v56  ;;  %v2711_v46 = vsel %vm2663_vm9, %v2601_v45, 0.0  ;;  %v2133_v52 = vsub.f32 %v1989_v13, %v2061_v28  ;;  %v3795_v56 = vld [vmem:[#allocation2 + $0x48] sm:$0xff]  ;;  %v2460_v9 = vld [vmem:[%s4651_s28 + $0x398] sm:$0xff] }
 0x270   : > { %v3181_v12 = vsel %vm3133_vm10, %v3071_v22, 0.0  ;;  %v2530_v47 = vsub.f32 %v2386_v21, %v2458_v17  ;;  %v3866_v36 = vadd.f32 %v3794_v19, %v3722_v41  ;;  %v2783_v37 = vadd.f32 %v2711_v46, %v2313_v20  ;;  %v2858_v14 = vld [vmem:[%s4645_s19 + $0x5d8] sm:$0xff] }
 0x271   : > { %vm3603_vm11 = vcmp.lt.s32.totalorder %v6171_v42, 591  ;;  %v3000_v38 = vsub.f32 %v2856_v30, %v2928_v31  ;;  %v2205_v43 = vmul.f32 %v2133_v52, %v2133_v52  ;;  %v3470_v5 = vsub.f32 %v3326_v39, %v3398_v27  ;;  %v2930_v24 = vld [vmem:[%s4651_s28 + $0x5d8] sm:$0xff]  ;;  %v2064_v52 = vld [vmem:[%s4651_s28 + $0x160] sm:$0xff]  ;;  %v2390_v42 = vld [vmem:[%s4645_s19 + $0x3a8] sm:$0xff] }
 0x272   : > { %v3651_v6 = vsel %vm3603_vm11, %v3541_v23, 0.0  ;;  %v2602_v57 = vmul.f32 %v2530_v47, %v2530_v47  ;;  %3938 = vst [vmem:[#allocation2 + $0x1f0] sm:$0xff] %v3866_v36  ;;  %v3253_v8 = vadd.f32 %v3181_v12, %v2783_v37  ;;  %v2134_v58 = vsub.f32 %v1990_v1, %v2062_v33  ;;  %v3328_v20 = vld [vmem:[%s4645_s19 + $0x818] sm:$0xff]  ;;  %v1992_v12 = vld [vmem:[%s4645_s19 + $0x160] sm:$0xff] }
 0x273   : > { %v3072_v49 = vmul.f32 %v3000_v38, %v3000_v38  ;;  %v2531_v7 = vsub.f32 %v2387_v35, %v2459_v50  ;;  %v2314_v34 = vsel %vm2265_vm8, %v2205_v43, 0.0  ;;  %v3542_v61 = vmul.f32 %v3470_v5, %v3470_v5  ;;  %v3400_v45 = vld [vmem:[%s4651_s28 + $0x818] sm:$0xff]  ;;  %v2389_v36 = vld [vmem:[%s4645_s19 + $0x3a0] sm:$0xff] }
 0x274   : > { %v2712_v60 = vsel %vm2663_vm9, %v2602_v57, 0.0  ;;  %v3001_v62 = vsub.f32 %v2857_v40, %v2929_v18  ;;  %v3723_v2 = vadd.f32 %v3651_v6, %v3253_v8  ;;  %v2206_v15 = vmul.f32 %v2134_v58, %v2134_v58  ;;  %v3796_v22 = vld [vmem:[#allocation2 + $0x98] sm:$0xff]  ;;  %v2461_v37 = vld [vmem:[%s4651_s28 + $0x3a0] sm:$0xff] }
 0x275   : > { %v2784_v3 = vadd.f32 %v2712_v60, %v2314_v34  ;;  %v3182_v29 = vsel %vm3133_vm10, %v3072_v49, 0.0  ;;  %v3652_v10 = vsel %vm3603_vm11, %v3542_v61, 0.0  ;;  %v2603_v32 = vmul.f32 %v2531_v7, %v2531_v7  ;;  %v3797_v43 = vld [vmem:[#allocation2 + $0x238] sm:$0xff]  ;;  %v2859_v58 = vld [vmem:[%s4645_s19 + $0x5e0] sm:$0xff] }
 0x276   : > { %v3073_v26 = vmul.f32 %v3001_v62, %v3001_v62  ;;  %v3471_v13 = vsub.f32 %v3327_v53, %v3399_v55  ;;  %v3867_v28 = vadd.f32 %v3795_v56, %v3723_v2  ;;  %v2315_v17 = vsel %vm2265_vm8, %v2206_v15, 0.0  ;;  %v2931_v7 = vld [vmem:[%s4651_s28 + $0x5e0] sm:$0xff]  ;;  %v2065_v15 = vld [vmem:[%s4651_s28 + $0x168] sm:$0xff] }
 0x277   : > { %v3254_v21 = vadd.f32 %v3182_v29, %v2784_v3  ;;  %v2135_v19 = vsub.f32 %v1991_v0, %v2063_v16  ;;  %v2713_v30 = vsel %vm2663_vm9, %v2603_v32, 0.0  ;;  %v2532_v23 = vsub.f32 %v2388_v4, %v2460_v9  ;;  %v3329_v34 = vld [vmem:[%s4645_s19 + $0x820] sm:$0xff]  ;;  %v1993_v0 = vld [vmem:[%s4645_s19 + $0x168] sm:$0xff] }
 0x278   : > { %v3183_v31 = vsel %vm3133_vm10, %v3073_v26, 0.0  ;;  %v3543_v41 = vmul.f32 %v3471_v13, %v3471_v13  ;;  %3939 = vst [vmem:[#allocation2 + $0x48] sm:$0xff] %v3867_v28  ;;  %v2785_v27 = vadd.f32 %v2713_v30, %v2315_v17  ;;  %v3002_v46 = vsub.f32 %v2858_v14, %v2930_v24  ;;  %v3798_v2 = vld [vmem:[#allocation2 + $0x160] sm:$0xff]  ;;  %v2462_v32 = vld [vmem:[%s4651_s28 + $0x3a8] sm:$0xff]  ;;  %v1994_v26 = vld [vmem:[%s4645_s19 + $0x170] sm:$0xff] }
 0x279   : > { %v3724_v39 = vadd.f32 %v3652_v10, %v3254_v21  ;;  %v2207_v1 = vmul.f32 %v2135_v19, %v2135_v19  ;;  %v2604_v33 = vmul.f32 %v2532_v23, %v2532_v23  ;;  %v3472_v35 = vsub.f32 %v3328_v20, %v3400_v45  ;;  %v2066_v13 = vld [vmem:[%s4651_s28 + $0x170] sm:$0xff]  ;;  %v2860_v17 = vld [vmem:[%s4645_s19 + $0x5e8] sm:$0xff] }
 0x27a   : > { %v3653_v47 = vsel %vm3603_vm11, %v3543_v41, 0.0  ;;  %v1941_v50 = vadd.s32 88, %v5328_v51  ;;  %v3255_v40 = vadd.f32 %v3183_v31, %v2785_v27  ;;  %v3074_v6 = vmul.f32 %v3002_v46, %v3002_v46  ;;  %v2932_v19 = vld [vmem:[%s4651_s28 + $0x5e8] sm:$0xff]  ;;  %v2391_v20 = vld [vmem:[%s4645_s19 + $0x3b0] sm:$0xff] }
 0x27b   : > { %v3868_v38 = vadd.f32 %v3796_v22, %v3724_v39  ;;  %v2316_v18 = vsel %vm2265_vm8, %v2207_v1, 0.0  ;;  %v2714_v57 = vsel %vm2663_vm9, %v2604_v33, 0.0  ;;  %v3544_v5 = vmul.f32 %v3472_v35, %v3472_v35  ;;  %v3330_v31 = vld [vmem:[%s4645_s19 + $0x828] sm:$0xff]  ;;  %v2463_v23 = vld [vmem:[%s4651_s28 + $0x3b0] sm:$0xff] }
 0x27c   : > { %v2136_v8 = vsub.f32 %v1992_v12, %v2064_v52  ;;  %v6224_v49 = vadd.s32 %v5317_v44, %v1941_v50  ;;  %v3725_v53 = vadd.f32 %v3653_v47, %v3255_v40  ;;  %v2786_v55 = vadd.f32 %v2714_v57, %v2316_v18  ;;  %v3402_v41 = vld [vmem:[%s4651_s28 + $0x828] sm:$0xff]  ;;  %v2861_v46 = vld [vmem:[%s4645_s19 + $0x5f0] sm:$0xff]  ;;  %v1995_v18 = vld [vmem:[%s4645_s19 + $0x178] sm:$0xff] }
 0x27d   : > { %3940 = vst [vmem:[#allocation2 + $0x98] sm:$0xff] %v3868_v38  ;;  %v3184_v11 = vsel %vm3133_vm10, %v3074_v6, 0.0  ;;  %v2533_v56 = vsub.f32 %v2389_v36, %v2461_v37  ;;  %v3654_v60 = vsel %vm3603_vm11, %v3544_v5, 0.0  ;;  %v6236_v62 = vadd.s32 %v5323_v48, %v1941_v50  ;;  %v2933_v12 = vld [vmem:[%s4651_s28 + $0x5f0] sm:$0xff] }
 0x27e   : > { %v2208_v61 = vmul.f32 %v2136_v8, %v2136_v8  ;;  %vm2266_vm12 = vcmp.lt.s32.totalorder %v6224_v49, 591  ;;  %v3869_v16 = vadd.f32 %v3797_v43, %v3725_v53  ;;  %v3256_v63 = vadd.f32 %v3184_v11, %v2786_v55  ;;  %v3331_v8 = vld [vmem:[%s4645_s19 + $0x830] sm:$0xff]  ;;  %v3333_v49 = vld [vmem:[%s4645_s19 + $0x840] sm:$0xff] }
 0x27f   : > { %v2605_v3 = vmul.f32 %v2533_v56, %v2533_v56  ;;  %v3003_v29 = vsub.f32 %v2859_v58, %v2931_v7  ;;  %vm2664_vm13 = vcmp.lt.s32.totalorder %v6236_v62, 591  ;;  %v6245_v9 = vadd.s32 %v5330_v54, %v1941_v50  ;;  %v3403_v58 = vld [vmem:[%s4651_s28 + $0x830] sm:$0xff]  ;;  %v2067_v7 = vld [vmem:[%s4651_s28 + $0x178] sm:$0xff] }
 0x280   : > { %v2317_v4 = vsel %vm2266_vm12, %v2208_v61, 0.0  ;;  %v3473_v10 = vsub.f32 %v3329_v34, %v3401_v25  ;;  %3941 = vst [vmem:[#allocation2 + $0x238] sm:$0xff] %v3869_v16  ;;  %v3726_v14 = vadd.f32 %v3654_v60, %v3256_v63  ;;  %v6253_v21 = vadd.s32 %v5334_v59, %v1941_v50  ;;  %v3799_v50 = vld [vmem:[#allocation2 + $0x50] sm:$0xff]  ;;  %v2392_v34 = vld [vmem:[%s4645_s19 + $0x3b8] sm:$0xff] }
 0x281   : > { %v2715_v24 = vsel %vm2664_vm13, %v2605_v3, 0.0  ;;  %v3075_v28 = vmul.f32 %v3003_v29, %v3003_v29  ;;  %vm3134_vm14 = vcmp.lt.s32.totalorder %v6245_v9, 591  ;;  %v2137_v30 = vsub.f32 %v1993_v0, %v2065_v15  ;;  %v2464_v25 = vld [vmem:[%s4651_s28 + $0x3b8] sm:$0xff] }
 0x282   : > { %v2787_v45 = vadd.f32 %v2715_v24, %v2317_v4  ;;  %v3545_v22 = vmul.f32 %v3473_v10, %v3473_v10  ;;  %v3870_v39 = vadd.f32 %v3798_v2, %v3726_v14  ;;  %vm3604_vm15 = vcmp.lt.s32.totalorder %v6253_v21, 591  ;;  %v2862_v60 = vld [vmem:[%s4645_s19 + $0x5f8] sm:$0xff]  ;;  %v3800_v24 = vld [vmem:[#allocation2 + $0x100] sm:$0xff] }
 0x283   : > { %v3185_v27 = vsel %vm3134_vm14, %v3075_v28, 0.0  ;;  %v2534_v1 = vsub.f32 %v2390_v42, %v2462_v32  ;;  %v2209_v33 = vmul.f32 %v2137_v30, %v2137_v30  ;;  %v3004_v35 = vsub.f32 %v2860_v17, %v2932_v19  ;;  %v2934_v2 = vld [vmem:[%s4651_s28 + $0x5f8] sm:$0xff] }
 0x284   : > { %v3257_v52 = vadd.f32 %v3185_v27, %v2787_v45  ;;  %v3655_v47 = vsel %vm3604_vm15, %v3545_v22, 0.0  ;;  %3942 = vst [vmem:[#allocation2 + $0x160] sm:$0xff] %v3870_v39  ;;  %v3474_v37 = vsub.f32 %v3330_v31, %v3402_v41  ;;  %v2138_v38 = vsub.f32 %v1994_v26, %v2066_v13  ;;  %v3332_v3 = vld [vmem:[%s4645_s19 + $0x838] sm:$0xff]  ;;  %v1996_v45 = vld [vmem:[%s4645_s19 + $0x180] sm:$0xff]  ;;  %v3801_v27 = vld [vmem:[#allocation2 + $0x30] sm:$0xff] }
 0x285   : > { %v2606_v36 = vmul.f32 %v2534_v1, %v2534_v1  ;;  %v2535_v40 = vsub.f32 %v2391_v20, %v2463_v23  ;;  %v2318_v43 = vsel %vm2266_vm12, %v2209_v33, 0.0  ;;  %v3076_v57 = vmul.f32 %v3004_v35, %v3004_v35  ;;  %v3404_v29 = vld [vmem:[%s4651_s28 + $0x838] sm:$0xff]  ;;  %v2068_v22 = vld [vmem:[%s4651_s28 + $0x180] sm:$0xff] }
 0x286   : > { %v3727_v6 = vadd.f32 %v3655_v47, %v3257_v52  ;;  %v3005_v5 = vsub.f32 %v2861_v46, %v2933_v12  ;;  %v3546_v55 = vmul.f32 %v3474_v37, %v3474_v37  ;;  %v2210_v11 = vmul.f32 %v2138_v38, %v2138_v38  ;;  %v2393_v52 = vld [vmem:[%s4645_s19 + $0x3c0] sm:$0xff] }
 0x287   : > { %v2716_v53 = vsel %vm2664_vm13, %v2606_v36, 0.0  ;;  %v2607_v56 = vmul.f32 %v2535_v40, %v2535_v40  ;;  %v3186_v16 = vsel %vm3134_vm14, %v3076_v57, 0.0  ;;  %v3475_v10 = vsub.f32 %v3331_v8, %v3403_v58  ;;  %v2465_v47 = vld [vmem:[%s4651_s28 + $0x3c0] sm:$0xff] }
 0x288   : > { %v3871_v61 = vadd.f32 %v3799_v50, %v3727_v6  ;;  %v2788_v0 = vadd.f32 %v2716_v53, %v2318_v43  ;;  %v3077_v63 = vmul.f32 %v3005_v5, %v3005_v5  ;;  %v3656_v15 = vsel %vm3604_vm15, %v3546_v55, 0.0  ;;  %v2863_v37 = vld [vmem:[%s4645_s19 + $0x600] sm:$0xff]  ;;  %v1997_v53 = vld [vmem:[%s4645_s19 + $0x188] sm:$0xff] }
 0x289   : > { %v2319_v42 = vsel %vm2266_vm12, %v2210_v11, 0.0  ;;  %v2717_v4 = vsel %vm2664_vm13, %v2607_v56, 0.0  ;;  %v2139_v14 = vsub.f32 %v1995_v18, %v2067_v7  ;;  %v3547_v28 = vmul.f32 %v3475_v10, %v3475_v10  ;;  %v2935_v38 = vld [vmem:[%s4651_s28 + $0x600] sm:$0xff]  ;;  %v2069_v55 = vld [vmem:[%s4651_s28 + $0x188] sm:$0xff] }
 0x28a   : > { %3943 = vst [vmem:[#allocation2 + $0x50] sm:$0xff] %v3871_v61  ;;  %v3258_v32 = vadd.f32 %v3186_v16, %v2788_v0  ;;  %v2789_v26 = vadd.f32 %v2717_v4, %v2319_v42  ;;  %v3187_v13 = vsel %vm3134_vm14, %v3077_v63, 0.0  ;;  %v2536_v17 = vsub.f32 %v2392_v34, %v2464_v25  ;;  %v3405_v57 = vld [vmem:[%s4651_s28 + $0x840] sm:$0xff]  ;;  %v2394_v11 = vld [vmem:[%s4645_s19 + $0x3c8] sm:$0xff]  ;;  %v3802_v34 = vld [vmem:[#allocation2 + $0x1b0] sm:$0xff] }
 0x28b   : > { %v3006_v19 = vsub.f32 %v2862_v60, %v2934_v2  ;;  %v3476_v20 = vsub.f32 %v3332_v3, %v3404_v29  ;;  %v2211_v41 = vmul.f32 %v2139_v14, %v2139_v14  ;;  %v1942_v23 = vadd.s32 96, %v5328_v51  ;;  %v2466_v0 = vld [vmem:[%s4651_s28 + $0x3c8] sm:$0xff]  ;;  %v1998_v16 = vld [vmem:[%s4645_s19 + $0x190] sm:$0xff] }
 0x28c   : > { %v3728_v30 = vadd.f32 %v3656_v15, %v3258_v32  ;;  %v3259_v31 = vadd.f32 %v3187_v13, %v2789_v26  ;;  %v3657_v39 = vsel %vm3604_vm15, %v3547_v28, 0.0  ;;  %v2608_v1 = vmul.f32 %v2536_v17, %v2536_v17  ;;  %v2864_v3 = vld [vmem:[%s4645_s19 + $0x608] sm:$0xff]  ;;  %v2070_v15 = vld [vmem:[%s4651_s28 + $0x190] sm:$0xff] }
 0x28d   : > { %v3078_v46 = vmul.f32 %v3006_v19, %v3006_v19  ;;  %v3548_v12 = vmul.f32 %v3476_v20, %v3476_v20  ;;  %v2320_v50 = vsel %vm2266_vm12, %v2211_v41, 0.0  ;;  %v2140_v36 = vsub.f32 %v1996_v45, %v2068_v22  ;;  %v2936_v29 = vld [vmem:[%s4651_s28 + $0x608] sm:$0xff]  ;;  %v2395_v14 = vld [vmem:[%s4645_s19 + $0x3d0] sm:$0xff] }
 0x28e   : > { %v3872_v33 = vadd.f32 %v3800_v24, %v3728_v30  ;;  %v3729_v35 = vadd.f32 %v3657_v39, %v3259_v31  ;;  %v2718_v40 = vsel %vm2664_vm13, %v2608_v1, 0.0  ;;  %v6311_v43 = vadd.s32 %v5317_v44, %v1942_v23  ;;  %v3334_v26 = vld [vmem:[%s4645_s19 + $0x848] sm:$0xff]  ;;  %v2467_v19 = vld [vmem:[%s4651_s28 + $0x3d0] sm:$0xff] }
 0x28f   : > { %v3188_v18 = vsel %vm3134_vm14, %v3078_v46, 0.0  ;;  %v3658_v6 = vsel %vm3604_vm15, %v3548_v12, 0.0  ;;  %v2790_v8 = vadd.f32 %v2718_v40, %v2320_v50  ;;  %v2212_v62 = vmul.f32 %v2140_v36, %v2140_v36  ;;  %v3406_v13 = vld [vmem:[%s4651_s28 + $0x848] sm:$0xff]  ;;  %v2865_v20 = vld [vmem:[%s4645_s19 + $0x610] sm:$0xff] }
 0x290   : > { %3944 = vst [vmem:[#allocation2 + $0x100] sm:$0xff] %v3872_v33  ;;  %v3873_v5 = vadd.f32 %v3801_v27, %v3729_v35  ;;  %v2537_v58 = vsub.f32 %v2393_v52, %v2465_v47  ;;  %vm2267_vm0 = vcmp.lt.s32.totalorder %v6311_v43, 591  ;;  %v6317_v9 = vadd.s32 %v5323_v48, %v1942_v23  ;;  %v2937_v45 = vld [vmem:[%s4651_s28 + $0x610] sm:$0xff] }
 0x291   : > { %v3007_v21 = vsub.f32 %v2863_v37, %v2935_v38  ;;  %v6320_v7 = vadd.s32 %v5330_v54, %v1942_v23  ;;  %v3260_v56 = vadd.f32 %v3188_v18, %v2790_v8  ;;  %v2321_v25 = vsel %vm2267_vm0, %v2212_v62, 0.0  ;;  %v3803_v46 = vld [vmem:[#allocation2 + $0x90] sm:$0xff]  ;;  %v1999_v18 = vld [vmem:[%s4645_s19 + $0x198] sm:$0xff] }
 0x292   : > { %3945 = vst [vmem:[#allocation2 + $0x30] sm:$0xff] %v3873_v5  ;;  %v2609_v60 = vmul.f32 %v2537_v58, %v2537_v58  ;;  %v3477_v61 = vsub.f32 %v3333_v49, %v3405_v57  ;;  %vm2665_vm1 = vcmp.lt.s32.totalorder %v6317_v9, 591  ;;  %v6332_v2 = vadd.s32 %v5334_v59, %v1942_v23  ;;  %v3335_v35 = vld [vmem:[%s4645_s19 + $0x850] sm:$0xff]  ;;  %v2396_v49 = vld [vmem:[%s4645_s19 + $0x3d8] sm:$0xff] }
 0x293   : > { %v3079_v63 = vmul.f32 %v3007_v21, %v3007_v21  ;;  %vm3135_vm2 = vcmp.lt.s32.totalorder %v6320_v7, 591  ;;  %v3730_v42 = vadd.f32 %v3658_v6, %v3260_v56  ;;  %v2141_v32 = vsub.f32 %v1997_v53, %v2069_v55  ;;  %v3407_v50 = vld [vmem:[%s4651_s28 + $0x850] sm:$0xff]  ;;  %v2071_v6 = vld [vmem:[%s4651_s28 + $0x198] sm:$0xff] }
 0x294   : > { %v2719_v4 = vsel %vm2665_vm1, %v2609_v60, 0.0  ;;  %v3549_v10 = vmul.f32 %v3477_v61, %v3477_v61  ;;  %vm3605_vm3 = vcmp.lt.s32.totalorder %v6332_v2, 591  ;;  %v2538_v17 = vsub.f32 %v2394_v11, %v2466_v0  ;;  %v2468_v58 = vld [vmem:[%s4651_s28 + $0x3d8] sm:$0xff] }
 0x295   : > { %v2791_v24 = vadd.f32 %v2719_v4, %v2321_v25  ;;  %v3189_v28 = vsel %vm3135_vm2, %v3079_v63, 0.0  ;;  %v3874_v22 = vadd.f32 %v3802_v34, %v3730_v42  ;;  %v2213_v31 = vmul.f32 %v2141_v32, %v2141_v32  ;;  %v2866_v21 = vld [vmem:[%s4645_s19 + $0x618] sm:$0xff]  ;;  %v2072_v32 = vld [vmem:[%s4651_s28 + $0x1a0] sm:$0xff] }
 0x296   : > { %v3659_v30 = vsel %vm3605_vm3, %v3549_v10, 0.0  ;;  %v3008_v41 = vsub.f32 %v2864_v3, %v2936_v29  ;;  %v2610_v39 = vmul.f32 %v2538_v17, %v2538_v17  ;;  %v3478_v27 = vsub.f32 %v3334_v26, %v3406_v13  ;;  %v2938_v53 = vld [vmem:[%s4651_s28 + $0x618] sm:$0xff]  ;;  %v3804_v3 = vld [vmem:[#allocation2 + $0x130] sm:$0xff]  ;;  %v2000_v10 = vld [vmem:[%s4645_s19 + $0x1a0] sm:$0xff] }
 0x297   : > { %v3261_v23 = vadd.f32 %v3189_v28, %v2791_v24  ;;  %v2142_v1 = vsub.f32 %v1998_v16, %v2070_v15  ;;  %3946 = vst [vmem:[#allocation2 + $0x1b0] sm:$0xff] %v3874_v22  ;;  %v2322_v12 = vsel %vm2267_vm0, %v2213_v31, 0.0  ;;  %v2539_v47 = vsub.f32 %v2395_v14, %v2467_v19  ;;  %v3336_v25 = vld [vmem:[%s4645_s19 + $0x858] sm:$0xff]  ;;  %v2469_v22 = vld [vmem:[%s4651_s28 + $0x3e0] sm:$0xff]  ;;  %v3805_v31 = vld [vmem:[#allocation2 + $0x68] sm:$0xff] }
 0x298   : > { %v3080_v52 = vmul.f32 %v3008_v41, %v3008_v41  ;;  %v3009_v33 = vsub.f32 %v2865_v20, %v2937_v45  ;;  %v2720_v37 = vsel %vm2665_vm1, %v2610_v39, 0.0  ;;  %v3550_v38 = vmul.f32 %v3478_v27, %v3478_v27  ;;  %v3408_v60 = vld [vmem:[%s4651_s28 + $0x858] sm:$0xff]  ;;  %v2397_v45 = vld [vmem:[%s4645_s19 + $0x3e0] sm:$0xff] }
 0x299   : > { %v3731_v36 = vadd.f32 %v3659_v30, %v3261_v23  ;;  %v2214_v40 = vmul.f32 %v2142_v1, %v2142_v1  ;;  %v2792_v57 = vadd.f32 %v2720_v37, %v2322_v12  ;;  %v2611_v8 = vmul.f32 %v2539_v47, %v2539_v47  ;;  %v2867_v27 = vld [vmem:[%s4645_s19 + $0x620] sm:$0xff] }
 0x29a   : > { %v3190_v5 = vsel %vm3135_vm2, %v3080_v52, 0.0  ;;  %v3081_v62 = vmul.f32 %v3009_v33, %v3009_v33  ;;  %v3660_v11 = vsel %vm3605_vm3, %v3550_v38, 0.0  ;;  %v3479_v34 = vsub.f32 %v3335_v35, %v3407_v50  ;;  %v2939_v1 = vld [vmem:[%s4651_s28 + $0x620] sm:$0xff] }
 0x29b   : > { %v3875_v55 = vadd.f32 %v3803_v46, %v3731_v36  ;;  %v2323_v56 = vsel %vm2267_vm0, %v2214_v40, 0.0  ;;  %v3262_v61 = vadd.f32 %v3190_v5, %v2792_v57  ;;  %v2721_v0 = vsel %vm2665_vm1, %v2611_v8, 0.0  ;;  %v3337_v36 = vld [vmem:[%s4645_s19 + $0x860] sm:$0xff]  ;;  %v2001_v40 = vld [vmem:[%s4645_s19 + $0x1a8] sm:$0xff] }
 0x29c   : > { %v3191_v16 = vsel %vm3135_vm2, %v3081_v62, 0.0  ;;  %v2143_v63 = vsub.f32 %v1999_v18, %v2071_v6  ;;  %v2793_v29 = vadd.f32 %v2721_v0, %v2323_v56  ;;  %v3551_v15 = vmul.f32 %v3479_v34, %v3479_v34  ;;  %v3409_v37 = vld [vmem:[%s4651_s28 + $0x860] sm:$0xff]  ;;  %v2073_v18 = vld [vmem:[%s4651_s28 + $0x1a8] sm:$0xff]  ;;  %v3806_v6 = vld [vmem:[#allocation2 + $0x230] sm:$0xff] }
 0x29d   : > { %3947 = vst [vmem:[#allocation2 + $0x90] sm:$0xff] %v3875_v55  ;;  %v2540_v42 = vsub.f32 %v2396_v49, %v2468_v58  ;;  %v3010_v4 = vsub.f32 %v2866_v21, %v2938_v53  ;;  %v3732_v26 = vadd.f32 %v3660_v11, %v3262_v61  ;;  %v3480_v14 = vsub.f32 %v3336_v25, %v3408_v60  ;;  %v2398_v8 = vld [vmem:[%s4645_s19 + $0x3e8] sm:$0xff]  ;;  %v2002_v56 = vld [vmem:[%s4645_s19 + $0x1b0] sm:$0xff] }
 0x29e   : > { %v2215_v13 = vmul.f32 %v2143_v63, %v2143_v63  ;;  %v1943_v24 = vadd.s32 104, %v5328_v51  ;;  %v3263_v28 = vadd.f32 %v3191_v16, %v2793_v29  ;;  %v3661_v17 = vsel %vm3605_vm3, %v3551_v15, 0.0  ;;  %v2470_v62 = vld [vmem:[%s4651_s28 + $0x3e8] sm:$0xff]  ;;  %v2074_v16 = vld [vmem:[%s4651_s28 + $0x1b0] sm:$0xff] }
 0x29f   : > { %v2612_v19 = vmul.f32 %v2540_v42, %v2540_v42  ;;  %v3082_v20 = vmul.f32 %v3010_v4, %v3010_v4  ;;  %v3876_v30 = vadd.f32 %v3804_v3, %v3732_v26  ;;  %v3552_v23 = vmul.f32 %v3480_v14, %v3480_v14  ;;  %v2868_v55 = vld [vmem:[%s4645_s19 + $0x628] sm:$0xff]  ;;  %v2399_v15 = vld [vmem:[%s4645_s19 + $0x3f0] sm:$0xff] }
 0x2a0   : > { %v2324_v41 = vsel %vm2267_vm0, %v2215_v13, 0.0  ;;  %v2144_v39 = vsub.f32 %v2000_v10, %v2072_v32  ;;  %v3733_v46 = vadd.f32 %v3661_v17, %v3263_v28  ;;  %v6390_v47 = vadd.s32 %v5317_v44, %v1943_v24  ;;  %v2940_v11 = vld [vmem:[%s4651_s28 + $0x628] sm:$0xff]  ;;  %v2471_v42 = vld [vmem:[%s4651_s28 + $0x3f0] sm:$0xff] }
 0x2a1   : > { %v2722_v12 = vsel %vm2665_vm1, %v2612_v19, 0.0  ;;  %v3192_v52 = vsel %vm3135_vm2, %v3082_v20, 0.0  ;;  %3948 = vst [vmem:[#allocation2 + $0x130] sm:$0xff] %v3876_v30  ;;  %v3662_v33 = vsel %vm3605_vm3, %v3552_v23, 0.0  ;;  %v2541_v50 = vsub.f32 %v2397_v45, %v2469_v22  ;;  %v3338_v61 = vld [vmem:[%s4645_s19 + $0x868] sm:$0xff]  ;;  %v2869_v13 = vld [vmem:[%s4645_s19 + $0x630] sm:$0xff] }
 0x2a2   : > { %v2794_v43 = vadd.f32 %v2722_v12, %v2324_v41  ;;  %v2216_v35 = vmul.f32 %v2144_v39, %v2144_v39  ;;  %v3877_v9 = vadd.f32 %v3805_v31, %v3733_v46  ;;  %vm2268_vm4 = vcmp.lt.s32.totalorder %v6390_v47, 591  ;;  %v3410_v0 = vld [vmem:[%s4651_s28 + $0x868] sm:$0xff]  ;;  %v2941_v14 = vld [vmem:[%s4651_s28 + $0x630] sm:$0xff]  ;;  %v3807_v22 = vld [vmem:[#allocation2 + $0x1d8] sm:$0xff] }
 0x2a3   : > { %v6398_v7 = vadd.s32 %v5323_v48, %v1943_v24  ;;  %v3011_v38 = vsub.f32 %v2867_v27, %v2939_v1  ;;  %v2613_v57 = vmul.f32 %v2541_v50, %v2541_v50  ;;  %v6405_v5 = vadd.s32 %v5330_v54, %v1943_v24  ;;  %v3339_v20 = vld [vmem:[%s4645_s19 + $0x870] sm:$0xff]  ;;  %v2003_v12 = vld [vmem:[%s4645_s19 + $0x1b8] sm:$0xff] }
 0x2a4   : > { %v3264_v2 = vadd.f32 %v3192_v52, %v2794_v43  ;;  %v2325_v49 = vsel %vm2268_vm4, %v2216_v35, 0.0  ;;  %3949 = vst [vmem:[#allocation2 + $0x68] sm:$0xff] %v3877_v9  ;;  %v3481_v21 = vsub.f32 %v3337_v36, %v3409_v37  ;;  %v6411_v53 = vadd.s32 %v5334_v59, %v1943_v24  ;;  %v3411_v45 = vld [vmem:[%s4651_s28 + $0x870] sm:$0xff]  ;;  %v2075_v52 = vld [vmem:[%s4651_s28 + $0x1b8] sm:$0xff] }
 0x2a5   : > { %vm2666_vm5 = vcmp.lt.s32.totalorder %v6398_v7, 591  ;;  %v3083_v58 = vmul.f32 %v3011_v38, %v3011_v38  ;;  %vm3136_vm6 = vcmp.lt.s32.totalorder %v6405_v5, 591  ;;  %v2145_v60 = vsub.f32 %v2001_v40, %v2073_v18  ;;  %v2400_v43 = vld [vmem:[%s4645_s19 + $0x3f8] sm:$0xff] }
 0x2a6   : > { %v3734_v34 = vadd.f32 %v3662_v33, %v3264_v2  ;;  %v2723_v25 = vsel %vm2666_vm5, %v2613_v57, 0.0  ;;  %v3553_v29 = vmul.f32 %v3481_v21, %v3481_v21  ;;  %vm3606_vm7 = vcmp.lt.s32.totalorder %v6411_v53, 591  ;;  %v2472_v37 = vld [vmem:[%s4651_s28 + $0x3f8] sm:$0xff] }
 0x2a7   : > { %v2795_v63 = vadd.f32 %v2723_v25, %v2325_v49  ;;  %v3193_v3 = vsel %vm3136_vm6, %v3083_v58, 0.0  ;;  %v2217_v10 = vmul.f32 %v2145_v60, %v2145_v60  ;;  %v2542_v32 = vsub.f32 %v2398_v8, %v2470_v62  ;;  %v2870_v9 = vld [vmem:[%s4645_s19 + $0x638] sm:$0xff]  ;;  %v2004_v25 = vld [vmem:[%s4645_s19 + $0x1c0] sm:$0xff] }
 0x2a8   : > { %v3878_v4 = vadd.f32 %v3806_v6, %v3734_v34  ;;  %v3012_v26 = vsub.f32 %v2868_v55, %v2940_v11  ;;  %v3663_v28 = vsel %vm3606_vm7, %v3553_v29, 0.0  ;;  %v3482_v17 = vsub.f32 %v3338_v61, %v3410_v0  ;;  %v2942_v38 = vld [vmem:[%s4651_s28 + $0x638] sm:$0xff]  ;;  %v2076_v60 = vld [vmem:[%s4651_s28 + $0x1c0] sm:$0xff]  ;;  %v3808_v61 = vld [vmem:[#allocation2 + $0x228] sm:$0xff] }
 0x2a9   : > { %v3265_v24 = vadd.f32 %v3193_v3, %v2795_v63  ;;  %v2146_v19 = vsub.f32 %v2002_v56, %v2074_v16  ;;  %v2326_v30 = vsel %vm2268_vm4, %v2217_v10, 0.0  ;;  %v2614_v31 = vmul.f32 %v2542_v32, %v2542_v32  ;;  %v3340_v49 = vld [vmem:[%s4645_s19 + $0x878] sm:$0xff]  ;;  %v2401_v10 = vld [vmem:[%s4645_s19 + $0x400] sm:$0xff] }
 0x2aa   : > { %3950 = vst [vmem:[#allocation2 + $0x230] sm:$0xff] %v3878_v4  ;;  %v3084_v41 = vmul.f32 %v3012_v26, %v3012_v26  ;;  %v2543_v23 = vsub.f32 %v2399_v15, %v2471_v42  ;;  %v3554_v27 = vmul.f32 %v3482_v17, %v3482_v17  ;;  %v3013_v46 = vsub.f32 %v2869_v13, %v2941_v14  ;;  %v3412_v57 = vld [vmem:[%s4651_s28 + $0x878] sm:$0xff]  ;;  %v2473_v32 = vld [vmem:[%s4651_s28 + $0x400] sm:$0xff] }
 0x2ab   : > { %v3735_v39 = vadd.f32 %v3663_v28, %v3265_v24  ;;  %v2218_v1 = vmul.f32 %v2146_v19, %v2146_v19  ;;  %v2724_v33 = vsel %vm2666_vm5, %v2614_v31, 0.0  ;;  %v3483_v36 = vsub.f32 %v3339_v20, %v3411_v45  ;;  %v3809_v26 = vld [vmem:[#allocation2 + $0x218] sm:$0xff]  ;;  %v2871_v17 = vld [vmem:[%s4645_s19 + $0x640] sm:$0xff] }
 0x2ac   : > { %v3194_v35 = vsel %vm3136_vm6, %v3084_v41, 0.0  ;;  %v2615_v50 = vmul.f32 %v2543_v23, %v2543_v23  ;;  %v2796_v18 = vadd.f32 %v2724_v33, %v2326_v30  ;;  %v3664_v2 = vsel %vm3606_vm7, %v3554_v27, 0.0  ;;  %v2943_v19 = vld [vmem:[%s4651_s28 + $0x640] sm:$0xff]  ;;  %v2077_v33 = vld [vmem:[%s4651_s28 + $0x1c8] sm:$0xff] }
 0x2ad   : > { %v3879_v40 = vadd.f32 %v3807_v22, %v3735_v39  ;;  %v2327_v6 = vsel %vm2268_vm4, %v2218_v1, 0.0  ;;  %v3085_v62 = vmul.f32 %v3013_v46, %v3013_v46  ;;  %v3555_v58 = vmul.f32 %v3483_v36, %v3483_v36  ;;  %v3341_v31 = vld [vmem:[%s4645_s19 + $0x880] sm:$0xff] }
 0x2ae   : > { %v2725_v8 = vsel %vm2666_vm5, %v2615_v50, 0.0  ;;  %v2147_v21 = vsub.f32 %v2003_v12, %v2075_v52  ;;  %v3266_v55 = vadd.f32 %v3194_v35, %v2796_v18  ;;  %v2544_v56 = vsub.f32 %v2400_v43, %v2472_v37  ;;  %v3413_v41 = vld [vmem:[%s4651_s28 + $0x880] sm:$0xff]  ;;  %v2005_v12 = vld [vmem:[%s4645_s19 + $0x1c8] sm:$0xff] }
 0x2af   : > { %3951 = vst [vmem:[#allocation2 + $0x1d8] sm:$0xff] %v3879_v40  ;;  %v2797_v11 = vadd.f32 %v2725_v8, %v2327_v6  ;;  %v3014_v34 = vsub.f32 %v2870_v9, %v2942_v38  ;;  %v3195_v0 = vsel %vm3136_vm6, %v3085_v62, 0.0  ;;  %v3665_v16 = vsel %vm3606_vm7, %v3555_v58, 0.0  ;;  %v2402_v35 = vld [vmem:[%s4645_s19 + $0x408] sm:$0xff]  ;;  %v3810_v36 = vld [vmem:[#allocation2 + $0x200] sm:$0xff]  ;;  %v2006_v62 = vld [vmem:[%s4645_s19 + $0x1d0] sm:$0xff] }
 0x2b0   : > { %v2219_v63 = vmul.f32 %v2147_v21, %v2147_v21  ;;  %v3484_v3 = vsub.f32 %v3340_v49, %v3412_v57  ;;  %v3736_v29 = vadd.f32 %v3664_v2, %v3266_v55  ;;  %v2616_v42 = vmul.f32 %v2544_v56, %v2544_v56  ;;  %v2474_v50 = vld [vmem:[%s4651_s28 + $0x408] sm:$0xff]  ;;  %v2078_v56 = vld [vmem:[%s4651_s28 + $0x1d0] sm:$0xff] }
 0x2b1   : > { %v3267_v15 = vadd.f32 %v3195_v0, %v2797_v11  ;;  %v3086_v4 = vmul.f32 %v3014_v34, %v3014_v34  ;;  %v1944_v24 = vadd.s32 112, %v5328_v51  ;;  %v2148_v28 = vsub.f32 %v2004_v25, %v2076_v60  ;;  %v2872_v40 = vld [vmem:[%s4645_s19 + $0x648] sm:$0xff]  ;;  %v2403_v34 = vld [vmem:[%s4645_s19 + $0x410] sm:$0xff] }
 0x2b2   : > { %v2328_v13 = vsel %vm2268_vm4, %v2219_v63, 0.0  ;;  %v3556_v14 = vmul.f32 %v3484_v3, %v3484_v3  ;;  %v3880_v20 = vadd.f32 %v3808_v61, %v3736_v29  ;;  %v2726_v22 = vsel %vm2666_vm5, %v2616_v42, 0.0  ;;  %v2944_v18 = vld [vmem:[%s4651_s28 + $0x648] sm:$0xff]  ;;  %v2475_v25 = vld [vmem:[%s4651_s28 + $0x410] sm:$0xff] }
 0x2b3   : > { %v3737_v45 = vadd.f32 %v3665_v16, %v3267_v15  ;;  %v3196_v30 = vsel %vm3136_vm6, %v3086_v4, 0.0  ;;  %v2798_v47 = vadd.f32 %v2726_v22, %v2328_v13  ;;  %v2220_v39 = vmul.f32 %v2148_v28, %v2148_v28  ;;  %v3342_v57 = vld [vmem:[%s4645_s19 + $0x888] sm:$0xff]  ;;  %v2873_v16 = vld [vmem:[%s4645_s19 + $0x650] sm:$0xff]  ;;  %v2079_v22 = vld [vmem:[%s4651_s28 + $0x1d8] sm:$0xff] }
 0x2b4   : > { %v3666_v23 = vsel %vm3606_vm7, %v3556_v14, 0.0  ;;  %v6475_v27 = vadd.s32 %v5317_v44, %v1944_v24  ;;  %3952 = vst [vmem:[#allocation2 + $0x228] sm:$0xff] %v3880_v20  ;;  %v2545_v7 = vsub.f32 %v2401_v10, %v2473_v32  ;;  %v6478_v46 = vadd.s32 %v5323_v48, %v1944_v24  ;;  %v3414_v8 = vld [vmem:[%s4651_s28 + $0x888] sm:$0xff]  ;;  %v2945_v63 = vld [vmem:[%s4651_s28 + $0x650] sm:$0xff] }
 0x2b5   : > { %v3881_v1 = vadd.f32 %v3809_v26, %v3737_v45  ;;  %v3015_v5 = vsub.f32 %v2871_v17, %v2943_v19  ;;  %v3268_v52 = vadd.f32 %v3196_v30, %v2798_v47  ;;  %v6483_v53 = vadd.s32 %v5330_v54, %v1944_v24  ;;  %v3343_v13 = vld [vmem:[%s4645_s19 + $0x890] sm:$0xff]  ;;  %v2007_v45 = vld [vmem:[%s4645_s19 + $0x1d8] sm:$0xff] }
 0x2b6   : > { %vm2269_vm8 = vcmp.lt.s32.totalorder %v6475_v27, 591  ;;  %v3485_v43 = vsub.f32 %v3341_v31, %v3413_v41  ;;  %v2617_v9 = vmul.f32 %v2545_v7, %v2545_v7  ;;  %vm2667_vm9 = vcmp.lt.s32.totalorder %v6478_v46, 591  ;;  %v3415_v14 = vld [vmem:[%s4651_s28 + $0x890] sm:$0xff]  ;;  %v3417_v46 = vld [vmem:[%s4651_s28 + $0x8a0] sm:$0xff] }
 0x2b7   : > { %3953 = vst [vmem:[#allocation2 + $0x218] sm:$0xff] %v3881_v1  ;;  %v2329_v37 = vsel %vm2269_vm8, %v2220_v39, 0.0  ;;  %v3087_v38 = vmul.f32 %v3015_v5, %v3015_v5  ;;  %v3738_v2 = vadd.f32 %v3666_v23, %v3268_v52  ;;  %vm3137_vm10 = vcmp.lt.s32.totalorder %v6483_v53, 591  ;;  %v2404_v23 = vld [vmem:[%s4645_s19 + $0x418] sm:$0xff] }
 0x2b8   : > { %v3557_v6 = vmul.f32 %v3485_v43, %v3485_v43  ;;  %v6495_v49 = vadd.s32 %v5334_v59, %v1944_v24  ;;  %v2727_v58 = vsel %vm2667_vm9, %v2617_v9, 0.0  ;;  %v2149_v55 = vsub.f32 %v2005_v12, %v2077_v33  ;;  %v3811_v24 = vld [vmem:[#allocation2 + $0x10] sm:$0xff]  ;;  %v2476_v39 = vld [vmem:[%s4651_s28 + $0x418] sm:$0xff] }
 0x2b9   : > { %v3197_v21 = vsel %vm3137_vm10, %v3087_v38, 0.0  ;;  %v2546_v11 = vsub.f32 %v2402_v35, %v2474_v50  ;;  %v3882_v60 = vadd.f32 %v3810_v36, %v3738_v2  ;;  %v2799_v61 = vadd.f32 %v2727_v58, %v2329_v37  ;;  %v2874_v52 = vld [vmem:[%s4645_s19 + $0x658] sm:$0xff]  ;;  %v3812_v38 = vld [vmem:[#allocation2 + $0x128] sm:$0xff] }
 0x2ba   : > { %vm3607_vm11 = vcmp.lt.s32.totalorder %v6495_v49, 591  ;;  %v3016_v0 = vsub.f32 %v2872_v40, %v2944_v18  ;;  %v2221_v29 = vmul.f32 %v2149_v55, %v2149_v55  ;;  %v3486_v42 = vsub.f32 %v3342_v57, %v3414_v8  ;;  %v2946_v43 = vld [vmem:[%s4651_s28 + $0x658] sm:$0xff]  ;;  %v2080_v55 = vld [vmem:[%s4651_s28 + $0x1e0] sm:$0xff]  ;;  %v2406_v49 = vld [vmem:[%s4645_s19 + $0x428] sm:$0xff] }
 0x2bb   : > { %v3667_v3 = vsel %vm3607_vm11, %v3557_v6, 0.0  ;;  %v2618_v15 = vmul.f32 %v2546_v11, %v2546_v11  ;;  %3954 = vst [vmem:[#allocation2 + $0x200] sm:$0xff] %v3882_v60  ;;  %v3269_v4 = vadd.f32 %v3197_v21, %v2799_v61  ;;  %v2150_v32 = vsub.f32 %v2006_v62, %v2078_v56  ;;  %v3344_v37 = vld [vmem:[%s4645_s19 + $0x898] sm:$0xff]  ;;  %v2008_v21 = vld [vmem:[%s4645_s19 + $0x1e0] sm:$0xff] }
 0x2bc   : > { %v3088_v10 = vmul.f32 %v3016_v0, %v3016_v0  ;;  %v2547_v26 = vsub.f32 %v2403_v34, %v2475_v25  ;;  %v2330_v28 = vsel %vm2269_vm8, %v2221_v29, 0.0  ;;  %v3558_v19 = vmul.f32 %v3486_v42, %v3486_v42  ;;  %v3416_v9 = vld [vmem:[%s4651_s28 + $0x898] sm:$0xff]  ;;  %v2405_v60 = vld [vmem:[%s4645_s19 + $0x420] sm:$0xff] }
 0x2bd   : > { %v2728_v17 = vsel %vm2667_vm9, %v2618_v15, 0.0  ;;  %v3017_v20 = vsub.f32 %v2873_v16, %v2945_v63  ;;  %v3739_v30 = vadd.f32 %v3667_v3, %v3269_v4  ;;  %v2222_v47 = vmul.f32 %v2150_v32, %v2150_v32  ;;  %v2477_v61 = vld [vmem:[%s4651_s28 + $0x420] sm:$0xff]  ;;  %v3813_v29 = vld [vmem:[#allocation2 + $0x178] sm:$0xff] }
 0x2be   : > { %v2800_v31 = vadd.f32 %v2728_v17, %v2330_v28  ;;  %v3198_v41 = vsel %vm3137_vm10, %v3088_v10, 0.0  ;;  %v3668_v1 = vsel %vm3607_vm11, %v3558_v19, 0.0  ;;  %v2619_v7 = vmul.f32 %v2547_v26, %v2547_v26  ;;  %v2875_v32 = vld [vmem:[%s4645_s19 + $0x660] sm:$0xff] }
 0x2bf   : > { %v3089_v5 = vmul.f32 %v3017_v20, %v3017_v20  ;;  %v3487_v12 = vsub.f32 %v3343_v13, %v3415_v14  ;;  %v3883_v33 = vadd.f32 %v3811_v24, %v3739_v30  ;;  %v2331_v50 = vsel %vm2269_vm8, %v2222_v47, 0.0  ;;  %v2947_v26 = vld [vmem:[%s4651_s28 + $0x660] sm:$0xff]  ;;  %v3814_v30 = vld [vmem:[#allocation2 + $0x208] sm:$0xff] }
 0x2c0   : > { %v3270_v35 = vadd.f32 %v3198_v41, %v2800_v31  ;;  %v2151_v36 = vsub.f32 %v2007_v45, %v2079_v22  ;;  %v2729_v40 = vsel %vm2667_vm9, %v2619_v7, 0.0  ;;  %v2548_v6 = vsub.f32 %v2404_v23, %v2476_v39  ;;  %v3345_v28 = vld [vmem:[%s4645_s19 + $0x8a0] sm:$0xff]  ;;  %v2009_v45 = vld [vmem:[%s4645_s19 + $0x1e8] sm:$0xff] }
 0x2c1   : > { %v3199_v18 = vsel %vm3137_vm10, %v3089_v5, 0.0  ;;  %v3559_v2 = vmul.f32 %v3487_v12, %v3487_v12  ;;  %3955 = vst [vmem:[#allocation2 + $0x10] sm:$0xff] %v3883_v33  ;;  %v2801_v8 = vadd.f32 %v2729_v40, %v2331_v50  ;;  %v3018_v58 = vsub.f32 %v2874_v52, %v2946_v43  ;;  %v2081_v47 = vld [vmem:[%s4651_s28 + $0x1e8] sm:$0xff]  ;;  %v2010_v5 = vld [vmem:[%s4645_s19 + $0x1f0] sm:$0xff] }
 0x2c2   : > { %v3740_v57 = vadd.f32 %v3668_v1, %v3270_v35  ;;  %v2223_v62 = vmul.f32 %v2151_v36, %v2151_v36  ;;  %v2620_v56 = vmul.f32 %v2548_v6, %v2548_v6  ;;  %v3488_v34 = vsub.f32 %v3344_v37, %v3416_v9  ;;  %v2478_v7 = vld [vmem:[%s4651_s28 + $0x428] sm:$0xff]  ;;  %v2082_v12 = vld [vmem:[%s4651_s28 + $0x1f0] sm:$0xff] }
 0x2c3   : > { %v3669_v11 = vsel %vm3607_vm11, %v3559_v2, 0.0  ;;  %v1945_v25 = vadd.s32 120, %v5328_v51  ;;  %v3271_v16 = vadd.f32 %v3199_v18, %v2801_v8  ;;  %v3090_v3 = vmul.f32 %v3018_v58, %v3018_v58  ;;  %v2876_v50 = vld [vmem:[%s4645_s19 + $0x668] sm:$0xff]  ;;  %v2407_v37 = vld [vmem:[%s4645_s19 + $0x430] sm:$0xff] }
 0x2c4   : > { %v3884_v0 = vadd.f32 %v3812_v38, %v3740_v57  ;;  %v2332_v63 = vsel %vm2269_vm8, %v2223_v62, 0.0  ;;  %v2730_v15 = vsel %vm2667_vm9, %v2620_v56, 0.0  ;;  %v3560_v42 = vmul.f32 %v3488_v34, %v3488_v34  ;;  %v2948_v36 = vld [vmem:[%s4651_s28 + $0x668] sm:$0xff]  ;;  %v2479_v6 = vld [vmem:[%s4651_s28 + $0x430] sm:$0xff] }
 0x2c5   : > { %v2152_v4 = vsub.f32 %v2008_v21, %v2080_v55  ;;  %v6548_v10 = vadd.s32 %v5317_v44, %v1945_v25  ;;  %v3741_v13 = vadd.f32 %v3669_v11, %v3271_v16  ;;  %v2802_v14 = vadd.f32 %v2730_v15, %v2332_v63  ;;  %v3346_v18 = vld [vmem:[%s4645_s19 + $0x8a8] sm:$0xff]  ;;  %v2877_v58 = vld [vmem:[%s4645_s19 + $0x670] sm:$0xff]  ;;  %v2011_v63 = vld [vmem:[%s4645_s19 + $0x1f8] sm:$0xff] }
 0x2c6   : > { %3956 = vst [vmem:[#allocation2 + $0x128] sm:$0xff] %v3884_v0  ;;  %v3200_v27 = vsel %vm3137_vm10, %v3090_v3, 0.0  ;;  %v2549_v24 = vsub.f32 %v2405_v60, %v2477_v61  ;;  %v3670_v17 = vsel %vm3607_vm11, %v3560_v42, 0.0  ;;  %v6560_v20 = vadd.s32 %v5323_v48, %v1945_v25  ;;  %v3418_v2 = vld [vmem:[%s4651_s28 + $0x8a8] sm:$0xff]  ;;  %v2949_v21 = vld [vmem:[%s4651_s28 + $0x670] sm:$0xff] }
 0x2c7   : > { %v2224_v19 = vmul.f32 %v2152_v4, %v2152_v4  ;;  %vm2270_vm12 = vcmp.lt.s32.totalorder %v6548_v10, 591  ;;  %v3885_v22 = vadd.f32 %v3813_v29, %v3741_v13  ;;  %v3272_v53 = vadd.f32 %v3200_v27, %v2802_v14  ;;  %v3347_v4 = vld [vmem:[%s4645_s19 + $0x8b0] sm:$0xff]  ;;  %v3349_v10 = vld [vmem:[%s4645_s19 + $0x8c0] sm:$0xff] }
 0x2c8   : > { %v2621_v31 = vmul.f32 %v2549_v24, %v2549_v24  ;;  %v3019_v41 = vsub.f32 %v2875_v32, %v2947_v26  ;;  %vm2668_vm13 = vcmp.lt.s32.totalorder %v6560_v20, 591  ;;  %v6569_v39 = vadd.s32 %v5330_v54, %v1945_v25  ;;  %v3419_v32 = vld [vmem:[%s4651_s28 + $0x8b0] sm:$0xff]  ;;  %v2083_v26 = vld [vmem:[%s4651_s28 + $0x1f8] sm:$0xff] }
 0x2c9   : > { %v2333_v23 = vsel %vm2270_vm12, %v2224_v19, 0.0  ;;  %v3489_v1 = vsub.f32 %v3345_v28, %v3417_v46  ;;  %3957 = vst [vmem:[#allocation2 + $0x178] sm:$0xff] %v3885_v22  ;;  %v3742_v52 = vadd.f32 %v3670_v17, %v3272_v53  ;;  %v6577_v35 = vadd.s32 %v5334_v59, %v1945_v25  ;;  %v3815_v25 = vld [vmem:[#allocation2 + $0x210] sm:$0xff]  ;;  %v2408_v28 = vld [vmem:[%s4645_s19 + $0x438] sm:$0xff] }
 0x2ca   : > { %v2731_v43 = vsel %vm2668_vm13, %v2621_v31, 0.0  ;;  %v3091_v33 = vmul.f32 %v3019_v41, %v3019_v41  ;;  %vm3138_vm14 = vcmp.lt.s32.totalorder %v6569_v39, 591  ;;  %v2153_v40 = vsub.f32 %v2009_v45, %v2081_v47  ;;  %v2480_v46 = vld [vmem:[%s4651_s28 + $0x438] sm:$0xff] }
 0x2cb   : > { %v2803_v9 = vadd.f32 %v2731_v43, %v2333_v23  ;;  %v3561_v38 = vmul.f32 %v3489_v1, %v3489_v1  ;;  %v3886_v57 = vadd.f32 %v3814_v30, %v3742_v52  ;;  %vm3608_vm15 = vcmp.lt.s32.totalorder %v6577_v35, 591  ;;  %v2878_v17 = vld [vmem:[%s4645_s19 + $0x678] sm:$0xff]  ;;  %v3816_v43 = vld [vmem:[#allocation2 + $0x1d0] sm:$0xff] }
 0x2cc   : > { %v3201_v8 = vsel %vm3138_vm14, %v3091_v33, 0.0  ;;  %v2550_v62 = vsub.f32 %v2406_v49, %v2478_v7  ;;  %v2225_v56 = vmul.f32 %v2153_v40, %v2153_v40  ;;  %v3020_v34 = vsub.f32 %v2876_v50, %v2948_v36  ;;  %v2950_v30 = vld [vmem:[%s4651_s28 + $0x678] sm:$0xff] }
 0x2cd   : > { %v3273_v55 = vadd.f32 %v3201_v8, %v2803_v9  ;;  %v3671_v11 = vsel %vm3608_vm15, %v3561_v38, 0.0  ;;  %3958 = vst [vmem:[#allocation2 + $0x208] sm:$0xff] %v3886_v57  ;;  %v3490_v61 = vsub.f32 %v3346_v18, %v3418_v2  ;;  %v2154_v0 = vsub.f32 %v2010_v5, %v2082_v12  ;;  %v3348_v31 = vld [vmem:[%s4645_s19 + $0x8b8] sm:$0xff]  ;;  %v2012_v9 = vld [vmem:[%s4645_s19 + $0x200] sm:$0xff]  ;;  %v3817_v8 = vld [vmem:[#allocation2 + $0x168] sm:$0xff] }
 0x2ce   : > { %v2622_v60 = vmul.f32 %v2550_v62, %v2550_v62  ;;  %v2551_v16 = vsub.f32 %v2407_v37, %v2479_v6  ;;  %v2334_v29 = vsel %vm2270_vm12, %v2225_v56, 0.0  ;;  %v3092_v15 = vmul.f32 %v3020_v34, %v3020_v34  ;;  %v3420_v41 = vld [vmem:[%s4651_s28 + $0x8b8] sm:$0xff]  ;;  %v2084_v38 = vld [vmem:[%s4651_s28 + $0x200] sm:$0xff] }
 0x2cf   : > { %v3743_v3 = vadd.f32 %v3671_v11, %v3273_v55  ;;  %v3021_v42 = vsub.f32 %v2877_v58, %v2949_v21  ;;  %v3562_v14 = vmul.f32 %v3490_v61, %v3490_v61  ;;  %v2226_v27 = vmul.f32 %v2154_v0, %v2154_v0  ;;  %v2409_v55 = vld [vmem:[%s4645_s19 + $0x440] sm:$0xff] }
 0x2d0   : > { %v2732_v13 = vsel %vm2668_vm13, %v2622_v60, 0.0  ;;  %v2623_v24 = vmul.f32 %v2551_v16, %v2551_v16  ;;  %v3202_v22 = vsel %vm3138_vm14, %v3092_v15, 0.0  ;;  %v3491_v1 = vsub.f32 %v3347_v4, %v3419_v32  ;;  %v2481_v11 = vld [vmem:[%s4651_s28 + $0x440] sm:$0xff] }
 0x2d1   : > { %v3887_v19 = vadd.f32 %v3815_v25, %v3743_v3  ;;  %v2804_v45 = vadd.f32 %v2732_v13, %v2334_v29  ;;  %v3093_v53 = vmul.f32 %v3021_v42, %v3021_v42  ;;  %v3672_v47 = vsel %vm3608_vm15, %v3562_v14, 0.0  ;;  %v2879_v61 = vld [vmem:[%s4645_s19 + $0x680] sm:$0xff]  ;;  %v2013_v13 = vld [vmem:[%s4645_s19 + $0x208] sm:$0xff] }
 0x2d2   : > { %v2335_v49 = vsel %vm2270_vm12, %v2226_v27, 0.0  ;;  %v2733_v23 = vsel %vm2668_vm13, %v2623_v24, 0.0  ;;  %v2155_v52 = vsub.f32 %v2011_v63, %v2083_v26  ;;  %v3563_v33 = vmul.f32 %v3491_v1, %v3491_v1  ;;  %v2951_v0 = vld [vmem:[%s4651_s28 + $0x680] sm:$0xff]  ;;  %v2085_v14 = vld [vmem:[%s4651_s28 + $0x208] sm:$0xff] }
 0x2d3   : > { %3959 = vst [vmem:[#allocation2 + $0x210] sm:$0xff] %v3887_v19  ;;  %v3274_v7 = vadd.f32 %v3202_v22, %v2804_v45  ;;  %v2805_v5 = vadd.f32 %v2733_v23, %v2335_v49  ;;  %v3203_v12 = vsel %vm3138_vm14, %v3093_v53, 0.0  ;;  %v2552_v50 = vsub.f32 %v2408_v28, %v2480_v46  ;;  %v3421_v15 = vld [vmem:[%s4651_s28 + $0x8c0] sm:$0xff]  ;;  %v2410_v27 = vld [vmem:[%s4645_s19 + $0x448] sm:$0xff]  ;;  %v2014_v22 = vld [vmem:[%s4645_s19 + $0x210] sm:$0xff] }
 0x2d4   : > { %v3022_v36 = vsub.f32 %v2878_v17, %v2950_v30  ;;  %v3492_v37 = vsub.f32 %v3348_v31, %v3420_v41  ;;  %v2227_v2 = vmul.f32 %v2155_v52, %v2155_v52  ;;  %v1946_v6 = vadd.s32 128, %v5328_v51  ;;  %v3818_v28 = vld [vmem:[#allocation2 + $0xc0] sm:$0xff]  ;;  %v2482_v45 = vld [vmem:[%s4651_s28 + $0x448] sm:$0xff]  ;;  %v2411_v52 = vld [vmem:[%s4645_s19 + $0x450] sm:$0xff] }
 0x2d5   : > { %v3744_v40 = vadd.f32 %v3672_v47, %v3274_v7  ;;  %v3275_v18 = vadd.f32 %v3203_v12, %v2805_v5  ;;  %v3673_v57 = vsel %vm3608_vm15, %v3563_v33, 0.0  ;;  %v2624_v62 = vmul.f32 %v2552_v50, %v2552_v50  ;;  %v2880_v31 = vld [vmem:[%s4645_s19 + $0x688] sm:$0xff]  ;;  %v2086_v47 = vld [vmem:[%s4651_s28 + $0x210] sm:$0xff] }
 0x2d6   : > { %v3094_v58 = vmul.f32 %v3022_v36, %v3022_v36  ;;  %v3564_v21 = vmul.f32 %v3492_v37, %v3492_v37  ;;  %v2336_v25 = vsel %vm2270_vm12, %v2227_v2, 0.0  ;;  %v2156_v60 = vsub.f32 %v2012_v9, %v2084_v38  ;;  %v2952_v41 = vld [vmem:[%s4651_s28 + $0x688] sm:$0xff]  ;;  %v2483_v36 = vld [vmem:[%s4651_s28 + $0x450] sm:$0xff] }
 0x2d7   : > { %v3888_v56 = vadd.f32 %v3816_v43, %v3744_v40  ;;  %v3745_v34 = vadd.f32 %v3673_v57, %v3275_v18  ;;  %v2734_v16 = vsel %vm2668_vm13, %v2624_v62, 0.0  ;;  %v6635_v29 = vadd.s32 %v5317_v44, %v1946_v6  ;;  %v3350_v5 = vld [vmem:[%s4645_s19 + $0x8c8] sm:$0xff]  ;;  %v2881_v37 = vld [vmem:[%s4645_s19 + $0x690] sm:$0xff] }
 0x2d8   : > { %v3204_v63 = vsel %vm3138_vm14, %v3094_v58, 0.0  ;;  %v3674_v3 = vsel %vm3608_vm15, %v3564_v21, 0.0  ;;  %v2806_v4 = vadd.f32 %v2734_v16, %v2336_v25  ;;  %v2228_v20 = vmul.f32 %v2156_v60, %v2156_v60  ;;  %v3422_v12 = vld [vmem:[%s4651_s28 + $0x8c8] sm:$0xff]  ;;  %v2953_v9 = vld [vmem:[%s4651_s28 + $0x690] sm:$0xff]  ;;  %v3819_v58 = vld [vmem:[#allocation2 + $0x1a0] sm:$0xff] }
 0x2d9   : > { %3960 = vst [vmem:[#allocation2 + $0x1d0] sm:$0xff] %v3888_v56  ;;  %v3889_v42 = vadd.f32 %v3817_v8, %v3745_v34  ;;  %v2553_v32 = vsub.f32 %v2409_v55, %v2481_v11  ;;  %vm2271_vm0 = vcmp.lt.s32.totalorder %v6635_v29, 591  ;;  %v6641_v39 = vadd.s32 %v5323_v48, %v1946_v6  ;;  %v3351_v34 = vld [vmem:[%s4645_s19 + $0x8d0] sm:$0xff] }
 0x2da   : > { %v3023_v35 = vsub.f32 %v2879_v61, %v2951_v0  ;;  %v6644_v26 = vadd.s32 %v5330_v54, %v1946_v6  ;;  %v3276_v24 = vadd.f32 %v3204_v63, %v2806_v4  ;;  %v2337_v46 = vsel %vm2271_vm0, %v2228_v20, 0.0  ;;  %v3423_v25 = vld [vmem:[%s4651_s28 + $0x8d0] sm:$0xff]  ;;  %v2015_v63 = vld [vmem:[%s4645_s19 + $0x218] sm:$0xff] }
 0x2db   : > { %3961 = vst [vmem:[#allocation2 + $0x168] sm:$0xff] %v3889_v42  ;;  %v2625_v17 = vmul.f32 %v2553_v32, %v2553_v32  ;;  %v3493_v19 = vsub.f32 %v3349_v10, %v3421_v15  ;;  %vm2669_vm1 = vcmp.lt.s32.totalorder %v6641_v39, 591  ;;  %v6656_v30 = vadd.s32 %v5334_v59, %v1946_v6  ;;  %v2412_v10 = vld [vmem:[%s4645_s19 + $0x458] sm:$0xff] }
 0x2dc   : > { %v3095_v53 = vmul.f32 %v3023_v35, %v3023_v35  ;;  %vm3139_vm2 = vcmp.lt.s32.totalorder %v6644_v26, 591  ;;  %v3746_v49 = vadd.f32 %v3674_v3, %v3276_v24  ;;  %v2157_v7 = vsub.f32 %v2013_v13, %v2085_v14  ;;  %v2087_v3 = vld [vmem:[%s4651_s28 + $0x218] sm:$0xff] }
 0x2dd   : > { %v2735_v23 = vsel %vm2669_vm1, %v2625_v17, 0.0  ;;  %v3565_v1 = vmul.f32 %v3493_v19, %v3493_v19  ;;  %vm3609_vm3 = vcmp.lt.s32.totalorder %v6656_v30, 591  ;;  %v2554_v50 = vsub.f32 %v2410_v27, %v2482_v45  ;;  %v2484_v32 = vld [vmem:[%s4651_s28 + $0x458] sm:$0xff] }
 0x2de   : > { %v2807_v43 = vadd.f32 %v2735_v23, %v2337_v46  ;;  %v3205_v33 = vsel %vm3139_vm2, %v3095_v53, 0.0  ;;  %v3890_v38 = vadd.f32 %v3818_v28, %v3746_v49  ;;  %v2229_v18 = vmul.f32 %v2157_v7, %v2157_v7  ;;  %v2882_v35 = vld [vmem:[%s4645_s19 + $0x698] sm:$0xff]  ;;  %v2088_v7 = vld [vmem:[%s4651_s28 + $0x220] sm:$0xff] }
 0x2df   : > { %v3675_v40 = vsel %vm3609_vm3, %v3565_v1, 0.0  ;;  %v3024_v2 = vsub.f32 %v2880_v31, %v2952_v41  ;;  %v2626_v57 = vmul.f32 %v2554_v50, %v2554_v50  ;;  %v3494_v8 = vsub.f32 %v3350_v5, %v3422_v12  ;;  %v2954_v13 = vld [vmem:[%s4651_s28 + $0x698] sm:$0xff]  ;;  %v2016_v1 = vld [vmem:[%s4645_s19 + $0x220] sm:$0xff] }
 0x2e0   : > { %v3277_v6 = vadd.f32 %v3205_v33, %v2807_v43  ;;  %v2158_v62 = vsub.f32 %v2014_v22, %v2086_v47  ;;  %3962 = vst [vmem:[#allocation2 + $0xc0] sm:$0xff] %v3890_v38  ;;  %v2338_v21 = vsel %vm2271_vm0, %v2229_v18, 0.0  ;;  %v2555_v11 = vsub.f32 %v2411_v52, %v2483_v36  ;;  %v3352_v46 = vld [vmem:[%s4645_s19 + $0x8d8] sm:$0xff]  ;;  %v2485_v38 = vld [vmem:[%s4651_s28 + $0x460] sm:$0xff] }
 0x2e1   : > { %v3096_v55 = vmul.f32 %v3024_v2, %v3024_v2  ;;  %v3025_v56 = vsub.f32 %v2881_v37, %v2953_v9  ;;  %v2736_v61 = vsel %vm2669_vm1, %v2626_v57, 0.0  ;;  %v3566_v0 = vmul.f32 %v3494_v8, %v3494_v8  ;;  %v3424_v17 = vld [vmem:[%s4651_s28 + $0x8d8] sm:$0xff]  ;;  %v2413_v9 = vld [vmem:[%s4645_s19 + $0x460] sm:$0xff] }
 0x2e2   : > { %v3747_v60 = vadd.f32 %v3675_v40, %v3277_v6  ;;  %v2230_v16 = vmul.f32 %v2158_v62, %v2158_v62  ;;  %v2808_v15 = vadd.f32 %v2736_v61, %v2338_v21  ;;  %v2627_v4 = vmul.f32 %v2555_v11, %v2555_v11  ;;  %v3820_v31 = vld [vmem:[#allocation2 + $0x58] sm:$0xff]  ;;  %v2883_v8 = vld [vmem:[%s4645_s19 + $0x6a0] sm:$0xff]  ;;  %v2017_v61 = vld [vmem:[%s4645_s19 + $0x228] sm:$0xff] }
 0x2e3   : > { %v3206_v42 = vsel %vm3139_vm2, %v3096_v55, 0.0  ;;  %v3097_v20 = vmul.f32 %v3025_v56, %v3025_v56  ;;  %v3676_v27 = vsel %vm3609_vm3, %v3566_v0, 0.0  ;;  %v3495_v28 = vsub.f32 %v3351_v34, %v3423_v25  ;;  %v3821_v18 = vld [vmem:[#allocation2 + $0x118] sm:$0xff]  ;;  %v2955_v62 = vld [vmem:[%s4651_s28 + $0x6a0] sm:$0xff]  ;;  %v2089_v0 = vld [vmem:[%s4651_s28 + $0x228] sm:$0xff] }
 0x2e4   : > { %v3891_v14 = vadd.f32 %v3819_v58, %v3747_v60  ;;  %v2339_v24 = vsel %vm2271_vm0, %v2230_v16, 0.0  ;;  %v3278_v19 = vadd.f32 %v3206_v42, %v2808_v15  ;;  %v2737_v45 = vsel %vm2669_vm1, %v2627_v4, 0.0  ;;  %v3353_v25 = vld [vmem:[%s4645_s19 + $0x8e0] sm:$0xff]  ;;  %v2414_v15 = vld [vmem:[%s4645_s19 + $0x468] sm:$0xff] }
 0x2e5   : > { %v3207_v22 = vsel %vm3139_vm2, %v3097_v20, 0.0  ;;  %v2159_v53 = vsub.f32 %v2015_v63, %v2087_v3  ;;  %v2809_v41 = vadd.f32 %v2737_v45, %v2339_v24  ;;  %v3567_v47 = vmul.f32 %v3495_v28, %v3495_v28  ;;  %v3425_v60 = vld [vmem:[%s4651_s28 + $0x8e0] sm:$0xff]  ;;  %v3354_v24 = vld [vmem:[%s4645_s19 + $0x8e8] sm:$0xff]  ;;  %v2415_v45 = vld [vmem:[%s4645_s19 + $0x470] sm:$0xff] }
 0x2e6   : > { %3963 = vst [vmem:[#allocation2 + $0x1a0] sm:$0xff] %v3891_v14  ;;  %v2556_v49 = vsub.f32 %v2412_v10, %v2484_v32  ;;  %v3026_v23 = vsub.f32 %v2882_v35, %v2954_v13  ;;  %v3748_v5 = vadd.f32 %v3676_v27, %v3278_v19  ;;  %v3496_v52 = vsub.f32 %v3352_v46, %v3424_v17  ;;  %v3822_v16 = vld [vmem:[#allocation2 + $0x20] sm:$0xff]  ;;  %v2884_v32 = vld [vmem:[%s4645_s19 + $0x6a8] sm:$0xff]  ;;  %v2018_v13 = vld [vmem:[%s4645_s19 + $0x230] sm:$0xff] }
 0x2e7   : > { %v2231_v12 = vmul.f32 %v2159_v53, %v2159_v53  ;;  %v1947_v43 = vadd.s32 136, %v5328_v51  ;;  %v3279_v33 = vadd.f32 %v3207_v22, %v2809_v41  ;;  %v3677_v50 = vsel %vm3609_vm3, %v3567_v47, 0.0  ;;  %v2956_v35 = vld [vmem:[%s4651_s28 + $0x6a8] sm:$0xff]  ;;  %v2090_v46 = vld [vmem:[%s4651_s28 + $0x230] sm:$0xff] }
 0x2e8   : > { %v2628_v36 = vmul.f32 %v2556_v49, %v2556_v49  ;;  %v3098_v37 = vmul.f32 %v3026_v23, %v3026_v23  ;;  %v3892_v40 = vadd.f32 %v3820_v31, %v3748_v5  ;;  %v3568_v6 = vmul.f32 %v3496_v52, %v3496_v52  ;;  %v3426_v28 = vld [vmem:[%s4651_s28 + $0x8e8] sm:$0xff]  ;;  %v2487_v22 = vld [vmem:[%s4651_s28 + $0x470] sm:$0xff] }
 0x2e9   : > { %v2340_v2 = vsel %vm2271_vm0, %v2231_v12, 0.0  ;;  %v2160_v57 = vsub.f32 %v2016_v1, %v2088_v7  ;;  %v3749_v51 = vadd.f32 %v3677_v50, %v3279_v33  ;;  %v6714_v55 = vadd.s32 %v5317_v44, %v1947_v43  ;;  %v2885_v49 = vld [vmem:[%s4645_s19 + $0x6b0] sm:$0xff]  ;;  %v3823_v33 = vld [vmem:[#allocation2 + $0x148] sm:$0xff] }
 0x2ea   : > { %v2738_v58 = vsel %vm2669_vm1, %v2628_v36, 0.0  ;;  %v3208_v21 = vsel %vm3139_vm2, %v3098_v37, 0.0  ;;  %3964 = vst [vmem:[#allocation2 + $0x58] sm:$0xff] %v3892_v40  ;;  %v3678_v11 = vsel %vm3609_vm3, %v3568_v6, 0.0  ;;  %v2557_v34 = vsub.f32 %v2413_v9, %v2485_v38  ;;  %v2957_v23 = vld [vmem:[%s4651_s28 + $0x6b0] sm:$0xff]  ;;  %v2019_v6 = vld [vmem:[%s4645_s19 + $0x238] sm:$0xff] }
 0x2eb   : > { %v2810_v29 = vadd.f32 %v2738_v58, %v2340_v2  ;;  %v2232_v56 = vmul.f32 %v2160_v57, %v2160_v57  ;;  %v3893_v39 = vadd.f32 %v3821_v18, %v3749_v51  ;;  %vm2272_vm4 = vcmp.lt.s32.totalorder %v6714_v55, 591  ;;  %v3355_v52 = vld [vmem:[%s4645_s19 + $0x8f0] sm:$0xff]  ;;  %v2091_v57 = vld [vmem:[%s4651_s28 + $0x238] sm:$0xff] }
 0x2ec   : > { %v6722_v26 = vadd.s32 %v5323_v48, %v1947_v43  ;;  %v3027_v44 = vsub.f32 %v2883_v8, %v2955_v62  ;;  %v2629_v3 = vmul.f32 %v2557_v34, %v2557_v34  ;;  %v6729_v10 = vadd.s32 %v5330_v54, %v1947_v43  ;;  %v2486_v48 = vld [vmem:[%s4651_s28 + $0x468] sm:$0xff]  ;;  %v2416_v8 = vld [vmem:[%s4645_s19 + $0x478] sm:$0xff] }
 0x2ed   : > { %v3280_v30 = vadd.f32 %v3208_v21, %v2810_v29  ;;  %v2341_v63 = vsel %vm2272_vm4, %v2232_v56, 0.0  ;;  %3965 = vst [vmem:[#allocation2 + $0x118] sm:$0xff] %v3893_v39  ;;  %v3497_v4 = vsub.f32 %v3353_v25, %v3425_v60  ;;  %v6735_v20 = vadd.s32 %v5334_v59, %v1947_v43  ;;  %v3427_v43 = vld [vmem:[%s4651_s28 + $0x8f0] sm:$0xff]  ;;  %v2488_v29 = vld [vmem:[%s4651_s28 + $0x478] sm:$0xff] }
 0x2ee   : > { %vm2670_vm5 = vcmp.lt.s32.totalorder %v6722_v26, 591  ;;  %v3099_v42 = vmul.f32 %v3027_v44, %v3027_v44  ;;  %vm3140_vm6 = vcmp.lt.s32.totalorder %v6729_v10, 591  ;;  %v2161_v27 = vsub.f32 %v2017_v61, %v2089_v0  ;;  %v2958_v56 = vld [vmem:[%s4651_s28 + $0x6b8] sm:$0xff] }
 0x2ef   : > { %v3750_v14 = vadd.f32 %v3678_v11, %v3280_v30  ;;  %v2739_v54 = vsel %vm2670_vm5, %v2629_v3, 0.0  ;;  %v3569_v19 = vmul.f32 %v3497_v4, %v3497_v4  ;;  %vm3610_vm7 = vcmp.lt.s32.totalorder %v6735_v20, 591  ;;  %v2886_v11 = vld [vmem:[%s4645_s19 + $0x6b8] sm:$0xff]  ;;  %v3824_v4 = vld [vmem:[#allocation2 + $0xa8] sm:$0xff] }
 0x2f0   : > { %v2811_v17 = vadd.f32 %v2739_v54, %v2341_v63  ;;  %v3209_v59 = vsel %vm3140_vm6, %v3099_v42, 0.0  ;;  %v2233_v31 = vmul.f32 %v2161_v27, %v2161_v27  ;;  %v2558_v41 = vsub.f32 %v2414_v15, %v2486_v48  ;;  %v3356_v44 = vld [vmem:[%s4645_s19 + $0x8f8] sm:$0xff] }
 0x2f1   : > { %v3894_v53 = vadd.f32 %v3822_v16, %v3750_v14  ;;  %v3028_v47 = vsub.f32 %v2884_v32, %v2956_v35  ;;  %v3679_v7 = vsel %vm3610_vm7, %v3569_v19, 0.0  ;;  %v3498_v5 = vsub.f32 %v3354_v24, %v3426_v28  ;;  %v3428_v61 = vld [vmem:[%s4651_s28 + $0x8f8] sm:$0xff] }
 0x2f2   : > { %v3281_v1 = vadd.f32 %v3209_v59, %v2811_v17  ;;  %v2162_v12 = vsub.f32 %v2018_v13, %v2090_v46  ;;  %v2342_v50 = vsel %vm2272_vm4, %v2233_v31, 0.0  ;;  %v2630_v36 = vmul.f32 %v2558_v41, %v2558_v41  ;;  %v3825_v46 = vld [vmem:[#allocation2 + $0x150] sm:$0xff] }
 0x2f3   : > { %3966 = vst [vmem:[#allocation2 + $0x20] sm:$0xff] %v3894_v53  ;;  %v3100_v37 = vmul.f32 %v3028_v47, %v3028_v47  ;;  %v2559_v9 = vsub.f32 %v2415_v45, %v2487_v22  ;;  %v3570_v40 = vmul.f32 %v3498_v5, %v3498_v5  ;;  %v3029_v2 = vsub.f32 %v2885_v49, %v2957_v23  ;;  %v3826_v23 = vld [vmem:[#allocation2 + $0xa0] sm:$0xff] }
 0x2f4   : > { %v3751_v38 = vadd.f32 %v3679_v7, %v3281_v1  ;;  %v2234_v18 = vmul.f32 %v2162_v12, %v2162_v12  ;;  %v2740_v62 = vsel %vm2670_vm5, %v2630_v36, 0.0  ;;  %v3499_v21 = vsub.f32 %v3355_v52, %v3427_v43 }
 0x2f5   : > { %v3210_v51 = vsel %vm3140_vm6, %v3100_v37, 0.0  ;;  %v2631_v58 = vmul.f32 %v2559_v9, %v2559_v9  ;;  %v2812_v25 = vadd.f32 %v2740_v62, %v2342_v50  ;;  %v3680_v60 = vsel %vm3610_vm7, %v3570_v40, 0.0 }
 0x2f6   : > { %v3895_v34 = vadd.f32 %v3823_v33, %v3751_v38  ;;  %v2343_v39 = vsel %vm2272_vm4, %v2234_v18, 0.0  ;;  %v3101_v30 = vmul.f32 %v3029_v2, %v3029_v2  ;;  %v3571_v16 = vmul.f32 %v3499_v21, %v3499_v21 }
 0x2f7   : > { %v2741_v0 = vsel %vm2670_vm5, %v2631_v58, 0.0  ;;  %v2163_v63 = vsub.f32 %v2019_v6, %v2091_v57  ;;  %v3282_v3 = vadd.f32 %v3210_v51, %v2812_v25  ;;  %v2560_v48 = vsub.f32 %v2416_v8, %v2488_v29 }
 0x2f8   : > { %3967 = vst [vmem:[#allocation2 + $0x148] sm:$0xff] %v3895_v34  ;;  %v2813_v15 = vadd.f32 %v2741_v0, %v2343_v39  ;;  %v3030_v42 = vsub.f32 %v2886_v11, %v2958_v56  ;;  %v3211_v32 = vsel %vm3140_vm6, %v3101_v30, 0.0  ;;  %v3681_v35 = vsel %vm3610_vm7, %v3571_v16, 0.0 }
 0x2f9   : > { %v2235_v13 = vmul.f32 %v2163_v63, %v2163_v63  ;;  %v3500_v14 = vsub.f32 %v3356_v44, %v3428_v61  ;;  %v3752_v54 = vadd.f32 %v3680_v60, %v3282_v3  ;;  %v2632_v24 = vmul.f32 %v2560_v48, %v2560_v48 }
 0x2fa   : > { %v3283_v27 = vadd.f32 %v3211_v32, %v2813_v15  ;;  %v3102_v28 = vmul.f32 %v3030_v42, %v3030_v42 }
 0x2fb   : > { %v2344_v17 = vsel %vm2272_vm4, %v2235_v13, 0.0  ;;  %v3572_v59 = vmul.f32 %v3500_v14, %v3500_v14  ;;  %v3896_v19 = vadd.f32 %v3824_v4, %v3752_v54  ;;  %v2742_v22 = vsel %vm2670_vm5, %v2632_v24, 0.0 }
 0x2fc   : > { %v3753_v45 = vadd.f32 %v3681_v35, %v3283_v27  ;;  %v3212_v53 = vsel %vm3140_vm6, %v3102_v28, 0.0  ;;  %v2814_v31 = vadd.f32 %v2742_v22, %v2344_v17 }
 0x2fd   : > { %3968 = vst [vmem:[#allocation2 + $0xa8] sm:$0xff] %v3896_v19  ;;  %v3682_v47 = vsel %vm3610_vm7, %v3572_v59, 0.0 }
 0x2fe   : > { %v3897_v41 = vadd.f32 %v3825_v46, %v3753_v45  ;;  %v3284_v49 = vadd.f32 %v3212_v53, %v2814_v31 }
 0x300   : > { %3969 = vst [vmem:[#allocation2 + $0x150] sm:$0xff] %v3897_v41  ;;  %v3754_v55 = vadd.f32 %v3682_v47, %v3284_v49 }
 0x302   : > { %v3898_v1 = vadd.f32 %v3826_v23, %v3754_v55 }
 0x304   : > { %3970 = vst [vmem:[#allocation2 + $0xa0] sm:$0xff] %v3898_v1 }
 0x305 PF: > { %p4246_p12 = scmp.ne.s32.totalorder %s4468_s12, 1 }
 0x307   : > { %3974 = sbr.rel (%p4246_p12) target bundleno = 1103 (0x44f), region = 52 }
 0x30c   : > { %v3975_v26 = vld [vmem:[#allocation2 + $0xc8] sm:$0xff]  ;;  %v3977_v10 = vld [vmem:[#allocation2 + $0x40] sm:$0xff]  ;;  %v3980_v20 = vld [vmem:[#allocation2 + $0xf0] sm:$0xff] }
 0x30d   : > { %v3976_v7 = vld [vmem:[#allocation2 + $0x8] sm:$0xff]  ;;  %v3981_v36 = vld [vmem:[#allocation2 + $0x70] sm:$0xff]  ;;  %v3982_v9 = vld [vmem:[#allocation2 + $0x120] sm:$0xff] }
 0x30e   : > { %v4047_v5 = vadd.f32 %v3976_v7, %v3975_v26  ;;  %v3978_v12 = vld [vmem:[#allocation2 + $0x28] sm:$0xff]  ;;  %v3983_v40 = vld [vmem:[#allocation2 + $0xd8] sm:$0xff]  ;;  %v3985_v57 = vld [vmem:[#allocation2 + $0xb0] sm:$0xff] }
 0x30f   : > { %v3979_v43 = vld [vmem:[#allocation2 + $0xe8] sm:$0xff]  ;;  %v3984_v2 = vld [vmem:[#allocation2 + $0x18] sm:$0xff]  ;;  %v3988_v29 = vld [vmem:[#allocation2 + $0x110] sm:$0xff] }
 0x310   : > { %v4048_v52 = vadd.f32 %v4047_v5, %v3977_v10  ;;  %v3986_v62 = vld [vmem:[#allocation2 + $0x158] sm:$0xff]  ;;  %v3987_v58 = vld [vmem:[#allocation2 + $0x108] sm:$0xff]  ;;  %v3991_v39 = vld [vmem:[#allocation2 + $0x180] sm:$0xff] }
 0x311   : > { %v3989_v56 = vld [vmem:[#allocation2 + $0x1f8] sm:$0xff]  ;;  %v3992_v61 = vld [vmem:[#allocation2 + $0x190] sm:$0xff]  ;;  %v3993_v30 = vld [vmem:[#allocation2 + $0x140] sm:$0xff] }
 0x312   : > { %v4049_v33 = vadd.f32 %v4048_v52, %v3978_v12  ;;  %v3990_v25 = vld [vmem:[#allocation2 + $0xb8] sm:$0xff]  ;;  %v3994_v63 = vld [vmem:[#allocation2 + $0x1c0] sm:$0xff]  ;;  %v3995_v15 = vld [vmem:[#allocation2 + $0xd0] sm:$0xff] }
 0x313   : > { %v3996_v42 = vld [vmem:[#allocation2 + $0x138] sm:$0xff]  ;;  %v3997_v32 = vld [vmem:[#allocation2 + $0x60] sm:$0xff]  ;;  %v3999_v54 = vld [vmem:[#allocation2 + $0x88] sm:$0xff] }
 0x314   : > { %v4050_v50 = vadd.f32 %v4049_v33, %v3979_v43  ;;  %v3998_v13 = vld [vmem:[#allocation2 + $0x1b8] sm:$0xff]  ;;  %v4000_v24 = vld [vmem:[#allocation2] sm:$0xff]  ;;  %v4001_v46 = vld [vmem:[#allocation2 + $0x188] sm:$0xff] }
 0x315   : > { %v4002_v59 = vld [vmem:[#allocation2 + $0x38] sm:$0xff]  ;;  %v4003_v45 = vld [vmem:[#allocation2 + $0x1a8] sm:$0xff]  ;;  %v4004_v53 = vld [vmem:[#allocation2 + $0x220] sm:$0xff] }
 0x316   : > { %v4051_v37 = vadd.f32 %v4050_v50, %v3980_v20  ;;  %v4005_v41 = vld [vmem:[#allocation2 + $0x1e8] sm:$0xff]  ;;  %v4007_v55 = vld [vmem:[#allocation2 + $0x80] sm:$0xff]  ;;  %v4008_v26 = vld [vmem:[#allocation2 + $0xf8] sm:$0xff] }
 0x317   : > { %v4006_v49 = vld [vmem:[#allocation2 + $0x1c8] sm:$0xff]  ;;  %v4009_v10 = vld [vmem:[#allocation2 + $0x78] sm:$0xff]  ;;  %v4010_v12 = vld [vmem:[#allocation2 + $0x170] sm:$0xff] }
 0x318   : > { %v4052_v38 = vadd.f32 %v4051_v37, %v3981_v36  ;;  %v4011_v43 = vld [vmem:[#allocation2 + $0x198] sm:$0xff]  ;;  %v4012_v20 = vld [vmem:[#allocation2 + $0xe0] sm:$0xff] }
 0x319   : > { %v4013_v36 = vld [vmem:[#allocation2 + $0x1e0] sm:$0xff] }
 0x31a   : > { %v4053_v18 = vadd.f32 %v4052_v38, %v3982_v9  ;;  %v4014_v9 = vld [vmem:[#allocation2 + $0x1f0] sm:$0xff] }
 0x31c   : > { %v4054_v6 = vadd.f32 %v4053_v18, %v3983_v40  ;;  %v4015_v40 = vld [vmem:[#allocation2 + $0x48] sm:$0xff] }
 0x31e   : > { %v4055_v8 = vadd.f32 %v4054_v6, %v3984_v2  ;;  %v4016_v2 = vld [vmem:[#allocation2 + $0x98] sm:$0xff] }
 0x320   : > { %v4056_v51 = vadd.f32 %v4055_v8, %v3985_v57  ;;  %v4017_v57 = vld [vmem:[#allocation2 + $0x238] sm:$0xff] }
 0x322   : > { %v4057_v21 = vadd.f32 %v4056_v51, %v3986_v62  ;;  %v4018_v62 = vld [vmem:[#allocation2 + $0x160] sm:$0xff] }
 0x324   : > { %v4058_v11 = vadd.f32 %v4057_v21, %v3987_v58  ;;  %v4019_v58 = vld [vmem:[#allocation2 + $0x50] sm:$0xff] }
 0x326   : > { %v4059_v34 = vadd.f32 %v4058_v11, %v3988_v29  ;;  %v4020_v29 = vld [vmem:[#allocation2 + $0x100] sm:$0xff] }
 0x328   : > { %v4060_v60 = vadd.f32 %v4059_v34, %v3989_v56  ;;  %v4021_v56 = vld [vmem:[#allocation2 + $0x30] sm:$0xff] }
 0x32a   : > { %v4061_v44 = vadd.f32 %v4060_v60, %v3990_v25  ;;  %v4022_v25 = vld [vmem:[#allocation2 + $0x1b0] sm:$0xff] }
 0x32c   : > { %v4062_v0 = vadd.f32 %v4061_v44, %v3991_v39  ;;  %v4023_v39 = vld [vmem:[#allocation2 + $0x90] sm:$0xff] }
 0x32e   : > { %v4063_v16 = vadd.f32 %v4062_v0, %v3992_v61  ;;  %v4024_v61 = vld [vmem:[#allocation2 + $0x130] sm:$0xff] }
 0x330   : > { %v4064_v3 = vadd.f32 %v4063_v16, %v3993_v30  ;;  %v4025_v30 = vld [vmem:[#allocation2 + $0x68] sm:$0xff] }
 0x332   : > { %v4065_v48 = vadd.f32 %v4064_v3, %v3994_v63  ;;  %v4026_v63 = vld [vmem:[#allocation2 + $0x230] sm:$0xff] }
 0x334   : > { %v4066_v4 = vadd.f32 %v4065_v48, %v3995_v15  ;;  %v4027_v15 = vld [vmem:[#allocation2 + $0x1d8] sm:$0xff] }
 0x336   : > { %v4067_v35 = vadd.f32 %v4066_v4, %v3996_v42  ;;  %v4028_v42 = vld [vmem:[#allocation2 + $0x228] sm:$0xff] }
 0x338   : > { %v4068_v14 = vadd.f32 %v4067_v35, %v3997_v32  ;;  %v4029_v32 = vld [vmem:[#allocation2 + $0x218] sm:$0xff] }
 0x33a   : > { %v4069_v27 = vadd.f32 %v4068_v14, %v3998_v13  ;;  %v4030_v13 = vld [vmem:[#allocation2 + $0x200] sm:$0xff] }
 0x33c   : > { %v4070_v28 = vadd.f32 %v4069_v27, %v3999_v54  ;;  %v4031_v54 = vld [vmem:[#allocation2 + $0x10] sm:$0xff] }
 0x33e   : > { %v4071_v17 = vadd.f32 %v4070_v28, %v4000_v24  ;;  %v4032_v24 = vld [vmem:[#allocation2 + $0x128] sm:$0xff] }
 0x340   : > { %v4072_v19 = vadd.f32 %v4071_v17, %v4001_v46  ;;  %v4033_v46 = vld [vmem:[#allocation2 + $0x178] sm:$0xff] }
 0x342   : > { %v4073_v22 = vadd.f32 %v4072_v19, %v4002_v59  ;;  %v4034_v59 = vld [vmem:[#allocation2 + $0x208] sm:$0xff] }
 0x344   : > { %v4074_v31 = vadd.f32 %v4073_v22, %v4003_v45  ;;  %v4035_v45 = vld [vmem:[#allocation2 + $0x210] sm:$0xff] }
 0x346   : > { %v4075_v47 = vadd.f32 %v4074_v31, %v4004_v53  ;;  %v4036_v53 = vld [vmem:[#allocation2 + $0x1d0] sm:$0xff] }
 0x348   : > { %v4076_v23 = vadd.f32 %v4075_v47, %v4005_v41  ;;  %v4037_v41 = vld [vmem:[#allocation2 + $0x168] sm:$0xff] }
 0x34a   : > { %v4077_v1 = vadd.f32 %v4076_v23, %v4006_v49  ;;  %v4038_v49 = vld [vmem:[#allocation2 + $0xc0] sm:$0xff] }
 0x34c   : > { %v4078_v7 = vadd.f32 %v4077_v1, %v4007_v55  ;;  %v4039_v55 = vld [vmem:[#allocation2 + $0x1a0] sm:$0xff] }
 0x34e   : > { %v4079_v5 = vadd.f32 %v4078_v7, %v4008_v26  ;;  %v4040_v26 = vld [vmem:[#allocation2 + $0x58] sm:$0xff] }
 0x350   : > { %v4080_v52 = vadd.f32 %v4079_v5, %v4009_v10  ;;  %v4041_v10 = vld [vmem:[#allocation2 + $0x118] sm:$0xff] }
 0x352   : > { %v4081_v33 = vadd.f32 %v4080_v52, %v4010_v12  ;;  %v4042_v12 = vld [vmem:[#allocation2 + $0x20] sm:$0xff] }
 0x354   : > { %v4082_v50 = vadd.f32 %v4081_v33, %v4011_v43  ;;  %v4043_v43 = vld [vmem:[#allocation2 + $0x148] sm:$0xff] }
 0x356   : > { %v4083_v37 = vadd.f32 %v4082_v50, %v4012_v20  ;;  %v4044_v20 = vld [vmem:[#allocation2 + $0xa8] sm:$0xff] }
 0x358   : > { %v4084_v38 = vadd.f32 %v4083_v37, %v4013_v36  ;;  %v4045_v36 = vld [vmem:[#allocation2 + $0x150] sm:$0xff] }
 0x35a   : > { %v4085_v18 = vadd.f32 %v4084_v38, %v4014_v9  ;;  %v4046_v9 = vld [vmem:[#allocation2 + $0xa0] sm:$0xff] }
 0x35c   : > { %v4086_v6 = vadd.f32 %v4085_v18, %v4015_v40 }
 0x35e   : > { %v4087_v8 = vadd.f32 %v4086_v6, %v4016_v2 }
 0x360   : > { %v4088_v51 = vadd.f32 %v4087_v8, %v4017_v57 }
 0x362   : > { %v4089_v21 = vadd.f32 %v4088_v51, %v4018_v62 }
 0x364   : > { %v4090_v11 = vadd.f32 %v4089_v21, %v4019_v58 }
 0x366   : > { %v4091_v34 = vadd.f32 %v4090_v11, %v4020_v29 }
 0x368   : > { %v4092_v60 = vadd.f32 %v4091_v34, %v4021_v56 }
 0x36a   : > { %v4093_v44 = vadd.f32 %v4092_v60, %v4022_v25 }
 0x36c   : > { %v4094_v0 = vadd.f32 %v4093_v44, %v4023_v39 }
 0x36e   : > { %v4095_v16 = vadd.f32 %v4094_v0, %v4024_v61 }
 0x370   : > { %v4096_v3 = vadd.f32 %v4095_v16, %v4025_v30 }
 0x372   : > { %v4097_v48 = vadd.f32 %v4096_v3, %v4026_v63 }
 0x374   : > { %v4098_v4 = vadd.f32 %v4097_v48, %v4027_v15 }
 0x376   : > { %v4099_v35 = vadd.f32 %v4098_v4, %v4028_v42 }
 0x378   : > { %v4100_v14 = vadd.f32 %v4099_v35, %v4029_v32 }
 0x37a   : > { %v4101_v27 = vadd.f32 %v4100_v14, %v4030_v13 }
 0x37c   : > { %v4102_v28 = vadd.f32 %v4101_v27, %v4031_v54 }
 0x37e   : > { %v4103_v17 = vadd.f32 %v4102_v28, %v4032_v24 }
 0x380   : > { %v4104_v19 = vadd.f32 %v4103_v17, %v4033_v46 }
 0x382   : > { %v4105_v22 = vadd.f32 %v4104_v19, %v4034_v59 }
 0x384   : > { %v4106_v31 = vadd.f32 %v4105_v22, %v4035_v45 }
 0x386   : > { %v4107_v47 = vadd.f32 %v4106_v31, %v4036_v53 }
 0x388   : > { %v4108_v23 = vadd.f32 %v4107_v47, %v4037_v41 }
 0x38a   : > { %v4109_v1 = vadd.f32 %v4108_v23, %v4038_v49 }
 0x38c   : > { %v4110_v7 = vadd.f32 %v4109_v1, %v4039_v55 }
 0x38e   : > { %v4111_v5 = vadd.f32 %v4110_v7, %v4040_v26 }
 0x390   : > { %v4112_v52 = vadd.f32 %v4111_v5, %v4041_v10 }
 0x392   : > { %v4113_v33 = vadd.f32 %v4112_v52, %v4042_v12 }
 0x394   : > { %v4114_v50 = vadd.f32 %v4113_v33, %v4043_v43 }
 0x396   : > { %v4115_v37 = vadd.f32 %v4114_v50, %v4044_v20 }
 0x398   : > { %v4116_v38 = vadd.f32 %v4115_v37, %v4045_v36 }
 0x39a   : > { %v4117_v40 = vadd.f32 %v4116_v38, %v4046_v9 }
 0x39c   : > { %4118 = vadd.xlane.f32.xlu0 %v4117_v40 }
 0x40f   : > { %v4119_v18 = vpop.xlane.xlu0 %4118 }
 0x410   : > { %v4120_v2 = vrot.slane %v4119_v18, 4 }
 0x412   : > { %v4121_v6 = vadd.f32 %v4120_v2, %v4119_v18 }
 0x414   : > { %v4122_v57 = vrot.slane %v4121_v6, 2 }
 0x416   : > { %v4123_v8 = vadd.f32 %v4122_v57, %v4121_v6 }
 0x418   : > { %v4124_v62 = vrot.slane %v4123_v8, 1 }
 0x41a   : > { %v4125_v51 = vadd.f32 %v4124_v62, %v4123_v8 }
 0x41c   : > { %4262 = vpush %v4125_v51 }
 0x44d   : > { %s4263_s12 = spop %4262 }
 0x44e   : > { %4128 = sst [smem:[#allocation8]] %s4263_s12 }
 0x44f PF: > { %p4270_p13 = scmp.eq.s32.totalorder %s4225_s15, 1  ;;  %s4136_s26 = sshll.u32 %s6815_s2, 4  ;;  %s4137_s26 = int_to_ptr.hbm [resolvable:$true] %s4136_s26 }
 0x450   : > { %s4485_s27 = smov [#allocation8]  }
 0x451   : > { %4267 = dma.smem_to_hbm (%p4270_p13), %s4485_s27, 16, %s4137_s26, [#allocation5]  }
 0x452   : > { %4451 = dma.done.wait (%p4270_p13), [#allocation5], 16  }
 0x453   : > { %4453 = vsyncadd (%p4270_p13), [#allocation5], 4294967280 }
 0x454   : > { %4145 = sfence }
 0x455 PF: > { %s19_s14 = sadd.s32 1, %s4476_s14   ;;  %s6820_s9 = smov %s4460_s10 }
 0x456   : > { %p16_p0 = scmp.ge.s32.totalorder %s19_s14, 4   ;;  %s6821_s10 = smov %s4464_s11 }
 0x457   : > { %s6822_s11 = smov %s4551_s21  ;;  %s6823_s12 = smov %s4472_s13 }
 0x458   : > { %s6824_s13 = smov %s6826_s16  ;;  %18 = sbr.rel (!%p16_p0) target bundleno = 7 (0x7), region = 96 }
 0x45d   :  { %4151 = vsyncpa [#allocation4], 1 }
 0x45e   :  { %4153 = vsyncpa [#allocation4 + $0x1], 1 }
 0x45f   :  { %4154 = vsyncpa [#allocation7], 1 }
 0x460   :  { %4156 = vsyncpa [#allocation7 + $0x1], 1 }
 0x461   :  { %4157 = vsyncpa [#allocation5], 1 }
 0x462   :  { %4159 = vsyncpa [#allocation5 + $0x1], 1 }

</bundles_post_ra>
